<compile_context>
chip_gen: v5e
topology: v5e:2x2
jax: 0.10.0
libtpu: 0.0.40
codegen_flags: <defaults>
</compile_context>

<pallas_src>
import functools

import numpy as np

import jax
import jax.numpy as jnp
from jax import lax
from jax.experimental import pallas as pl
from jax.experimental.pallas import tpu as pltpu


def _round_up(x, m):
    return -(-x // m) * m


# ---------------------------------------------------------------------------
# Fused Pallas kernel (pair layout: rows = H*W//2, lanes = 2*C)
# ---------------------------------------------------------------------------
def _fusion_block_kernel(
    bottom_ref, up_ref,
    bp1_dw_w, bp1_dw_b, bp1_pw_w, bp1_pw_b,
    bp2_dw_w, bp2_dw_b, bp2_pw_w, bp2_pw_b,
    fu_dw_w, fu_dw_b, fu_pw_w, fu_pw_b,
    out_ref, pad_ref,
    *, H, W, P,
):
    f32 = jnp.float32
    W2 = W // 2
    Hu, Wu = H // 2, W // 2
    rows = H * W2            # pixel-pairs per image
    up_rows = Hu * Wu        # rows of the (not yet upsampled) `up` image

    # pair-column index of every row (row-major: row = h*W2 + k)
    col = lax.broadcasted_iota(jnp.int32, (rows, 1), 0) % W2
    not_first = col > 0              # pair-col k == 0  -> left tap invalid
    not_last = col < (W2 - 1)        # pair-col k == W2-1 -> right tap invalid

    # Zero only the halo rows (full width).  Cheap (2*P rows), and done every
    # grid step so it stays correct even if the batch axis is core-split.
    zeros_halo = jnp.zeros((P, pad_ref.shape[1]), pad_ref.dtype)
    pad_ref[0:P, :] = zeros_halo
    pad_ref[P + rows:2 * P + rows, :] = zeros_halo

    def conv3x3_pair(x, w_ref, b_ref, relu):
        """3x3 conv (pair layout) as 9 accumulated bf16 MXU dots + bias/ReLU.

        x: (rows, cin) f32; w_ref: (9, cin, cout) bf16 pair weights with BN
        scale folded; b_ref: (1, cout) f32.
        """
        cin = w_ref.shape[1]
        cout = w_ref.shape[2]
        pad_ref[P:P + rows, 0:cin] = x.astype(pad_ref.dtype)
        acc = jnp.zeros((rows, cout), f32)
        for t in range(9):
            kh, kwp = t // 3, t % 3
            s = (kh - 1) * W2 + (kwp - 1)
            tap = pad_ref[P + s:P + s + rows, 0:cin]
            if kwp == 0:
                tap = jnp.where(not_first, tap, jnp.zeros_like(tap))
            elif kwp == 2:
                tap = jnp.where(not_last, tap, jnp.zeros_like(tap))
            acc = acc + jnp.dot(tap, w_ref[t], preferred_element_type=f32)
        y = acc + b_ref[...]
        return jnp.maximum(y, 0.0) if relu else y

    def conv1x1_pair(x, w_ref, b_ref):
        return jnp.dot(x.astype(jnp.bfloat16), w_ref[...],
                       preferred_element_type=f32) + b_ref[...]

    # ------------------- bottom_proj = BasicVarGBlock(bottom) ---------------
    bottom = bottom_ref[0].astype(f32)                     # (rows, 2*Cb)
    a = conv3x3_pair(bottom, bp1_dw_w, bp1_dw_b, True)
    b = conv1x1_pair(a, bp1_pw_w, bp1_pw_b)
    c = conv3x3_pair(b, bp2_dw_w, bp2_dw_b, True)
    d = conv1x1_pair(c, bp2_pw_w, bp2_pw_b)
    bottom_proj = jnp.maximum(d + bottom, 0.0)

    # --------- separable 2x bilinear upsample (align_corners=False) ---------
    # Stage 1 (H axis): neighbours are +-Wu rows of the flat (Hu*Wu, Cup) map.
    cup = up_ref.shape[-1]
    pad_ref[P:P + up_rows, 0:cup] = up_ref[0].astype(pad_ref.dtype)
    r_up = lax.broadcasted_iota(jnp.int32, (up_rows, 1), 0)
    u_c = pad_ref[P:P + up_rows, 0:cup].astype(f32)
    u_p = pad_ref[P - Wu:P - Wu + up_rows, 0:cup].astype(f32)
    u_n = pad_ref[P + Wu:P + Wu + up_rows, 0:cup].astype(f32)
    even_h = 0.75 * u_c + 0.25 * jnp.where(r_up >= Wu, u_p, u_c)
    odd_h = 0.75 * u_c + 0.25 * jnp.where(r_up < (Hu - 1) * Wu, u_n, u_c)
    # interleave Wu-row blocks (output rows h=2*hu and h=2*hu+1)
    for hu in range(Hu):
        pad_ref[P + (2 * hu) * Wu:P + (2 * hu + 1) * Wu, 0:cup] = (
            even_h[hu * Wu:(hu + 1) * Wu].astype(pad_ref.dtype))
        pad_ref[P + (2 * hu + 1) * Wu:P + (2 * hu + 2) * Wu, 0:cup] = (
            odd_h[hu * Wu:(hu + 1) * Wu].astype(pad_ref.dtype))
    # Stage 2 (W axis): neighbours are +-1 row; output lands in pair layout
    # (even column in lanes [0:Cup), odd column in lanes [Cup:2*Cup)).
    m_c = pad_ref[P:P + rows, 0:cup].astype(f32)
    m_l = pad_ref[P - 1:P - 1 + rows, 0:cup].astype(f32)
    m_r = pad_ref[P + 1:P + 1 + rows, 0:cup].astype(f32)
    even_w = 0.75 * m_c + 0.25 * jnp.where(not_first, m_l, m_c)
    odd_w = 0.75 * m_c + 0.25 * jnp.where(not_last, m_r, m_c)
    ups_pair = jnp.concatenate([even_w, odd_w], axis=-1)   # (rows, 2*Cup)

    # -------------- fusion = SeparableGroupConvModule2d; add; ReLU ----------
    e = conv3x3_pair(ups_pair, fu_dw_w, fu_dw_b, True)
    f = conv1x1_pair(e, fu_pw_w, fu_pw_b)
    out_ref[0] = jnp.maximum(f + bottom_proj, 0.0).astype(out_ref.dtype)


# ---------------------------------------------------------------------------
# Host-side helpers: BN folding and pair-layout weight construction
# ---------------------------------------------------------------------------
def _fold_dw(w9, s):
    """(9, Cin, Cout) dense grouped-conv weight * BN scale."""
    return np.asarray(w9, np.float32) * np.asarray(s, np.float32).reshape(1, 1, -1)


def _fold_pw(w, s):
    """(Cin, Cout) 1x1 weight * BN scale."""
    return np.asarray(w, np.float32) * np.asarray(s, np.float32).reshape(1, -1)


def _pairify_dw(w9):
    """(9, Cin, Cout) 3x3 weight -> pair-layout (9, 2Cin, 2Cout) weight.

    Pair layout: input/output lanes = [even column channels ; odd column
    channels]; pair tap index kwp in {0,1,2} means pair-column shift {-1,0,+1}.
    Exactly reproduces the original conv (zero quadrants where no coupling).
    """
    w9 = np.asarray(w9, np.float32)
    _, cin, cout = w9.shape
    wp = np.zeros((9, 2 * cin, 2 * cout), np.float32)
    for kh in range(3):
        w_m1 = w9[kh * 3 + 0]   # dx = -1
        w_0 = w9[kh * 3 + 1]    # dx =  0
        w_p1 = w9[kh * 3 + 2]   # dx = +1
        # even output pixel (col 2k): inputs at cols 2k-1, 2k, 2k+1
        wp[kh * 3 + 0, cin:, :cout] += w_m1     # pair col k-1, odd half
        wp[kh * 3 + 1, :cin, :cout] += w_0      # pair col k,   even half
        wp[kh * 3 + 1, cin:, :cout] += w_p1     # pair col k,   odd half
        # odd output pixel (col 2k+1): inputs at cols 2k, 2k+1, 2k+2
        wp[kh * 3 + 1, :cin, cout:] += w_m1     # pair col k,   even half
        wp[kh * 3 + 1, cin:, cout:] += w_0      # pair col k,   odd half
        wp[kh * 3 + 2, :cin, cout:] += w_p1     # pair col k+1, even half
    return wp


def _pairify_pw(w):
    """(Cin, Cout) 1x1 weight -> block-diagonal (2Cin, 2Cout) pair weight."""
    w = np.asarray(w, np.float32)
    cin, cout = w.shape
    wp = np.zeros((2 * cin, 2 * cout), np.float32)
    wp[:cin, :cout] = w
    wp[cin:, cout:] = w
    return wp


def _pair_bias(b):
    b = np.asarray(b, np.float32)
    return np.concatenate([b, b], axis=-1)


# ---------------------------------------------------------------------------
# FusionBlock forward (single fused pallas_call)
# ---------------------------------------------------------------------------
def fusion_block_forward(up_nhwc, bottom_nhwc, p):
    N, H, W, Cb = bottom_nhwc.shape
    Nu, Hu, Wu, Cup = up_nhwc.shape
    assert N == Nu and H == 2 * Hu and W == 2 * Wu and W % 2 == 0
    Cout = p["bp1_pw_w"].shape[-1]
    W2 = W // 2
    rows = H * W2
    up_rows = Hu * Wu
    P = _round_up(max(W2 + 1, Wu), 8)           # halo rows (sublane aligned)
    c_pad = max(2 * Cb, 2 * Cout, 2 * Cup)      # widest staged activation

    bf16 = jnp.bfloat16
    weights = [
        jnp.asarray(_pairify_dw(_fold_dw(p["bp1_dw_w"], p["bp1_dw_s"])), bf16),
        jnp.asarray(_pair_bias(p["bp1_dw_b"]), jnp.float32),
        jnp.asarray(_pairify_pw(_fold_pw(p["bp1_pw_w"], p["bp1_pw_s"])), bf16),
        jnp.asarray(_pair_bias(p["bp1_pw_b"]), jnp.float32),
        jnp.asarray(_pairify_dw(_fold_dw(p["bp2_dw_w"], p["bp2_dw_s"])), bf16),
        jnp.asarray(_pair_bias(p["bp2_dw_b"]), jnp.float32),
        jnp.asarray(_pairify_pw(_fold_pw(p["bp2_pw_w"], p["bp2_pw_s"])), bf16),
        jnp.asarray(_pair_bias(p["bp2_pw_b"]), jnp.float32),
        jnp.asarray(_pairify_dw(_fold_dw(p["fu_dw_w"], p["fu_dw_s"])), bf16),
        jnp.asarray(_pair_bias(p["fu_dw_b"]), jnp.float32),
        jnp.asarray(_pairify_pw(_fold_pw(p["fu_pw_w"], p["fu_pw_s"])), bf16),
        jnp.asarray(_pair_bias(p["fu_pw_b"]), jnp.float32),
    ]

    # pair layout for bottom / out (pure metadata reshapes of contiguous NHWC)
    bottom_pair = bottom_nhwc.reshape(N, rows, 2 * Cb)
    up_flat = up_nhwc.reshape(N, up_rows, Cup)

    w_specs = [pl.BlockSpec(w.shape, lambda n, d=w.ndim: (0,) * d)
               for w in weights]
    kern = functools.partial(_fusion_block_kernel, H=H, W=W, P=P)

    out_flat = pl.pallas_call(
        kern,
        out_shape=jax.ShapeDtypeStruct((N, rows, 2 * Cout), bottom_nhwc.dtype),
        grid=(N,),
        in_specs=[
            pl.BlockSpec((1, rows, 2 * Cb), lambda n: (n, 0, 0)),
            pl.BlockSpec((1, up_rows, Cup), lambda n: (n, 0, 0)),
            *w_specs,
        ],
        out_specs=pl.BlockSpec((1, rows, 2 * Cout), lambda n: (n, 0, 0)),
        scratch_shapes=[pltpu.VMEM((2 * P + rows, c_pad), jnp.bfloat16)],
        compiler_params=pltpu.CompilerParams(
            dimension_semantics=("parallel",),
            vmem_limit_bytes=32 * 1024 * 1024),
    )(bottom_pair, up_flat, *weights)

    return out_flat.reshape(N, H, W, Cout)


# ---------------------------------------------------------------------------
# Parameter construction (deterministic, synthetic)
# ---------------------------------------------------------------------------
def group_conv3x3_weight(key, cin, cout, groups):
    """PyTorch grouped conv weight (cout, cin/groups, 3, 3) -> dense
    (9, cin, cout), block-diagonal across groups (exactly equivalent)."""
    cin_g, cout_g = cin // groups, cout // groups
    w = jax.random.normal(key, (cout, cin_g, 3, 3), dtype=jnp.float32) * 0.1
    dense = jnp.zeros((3, 3, cin, cout), jnp.float32)
    for g in range(groups):
        blk = w[g * cout_g:(g + 1) * cout_g]            # (cout_g, cin_g, 3, 3)
        blk = jnp.transpose(blk, (2, 3, 1, 0))          # (3, 3, cin_g, cout_g)
        dense = dense.at[:, :, g * cin_g:(g + 1) * cin_g,
                         g * cout_g:(g + 1) * cout_g].set(blk)
    return dense.reshape(9, cin, cout)


def conv1x1_weight(key, cin, cout):
    w = jax.random.normal(key, (cout, cin, 1, 1), dtype=jnp.float32) * 0.1
    return jnp.transpose(w[:, :, 0, 0], (1, 0))  # (cin, cout)


def bn_fold(key, c, eps=1e-5):
    k1, k2, k3, k4 = jax.random.split(key, 4)
    gamma = jax.random.uniform(k1, (c,), minval=0.5, maxval=1.5, dtype=jnp.float32)
    beta = jax.random.normal(k2, (c,), dtype=jnp.float32) * 0.1
    mean = jax.random.normal(k3, (c,), dtype=jnp.float32) * 0.1
    var = jax.random.uniform(k4, (c,), minval=0.5, maxval=1.5, dtype=jnp.float32)
    scale = gamma / jnp.sqrt(var + eps)
    bias = beta - mean * scale
    return scale.reshape(1, c), bias.reshape(1, c)


def init_params(key, up_c, bottom_c, output_c, factor, group_base):
    ks = iter(jax.random.split(key, 16))
    p = {}
    # bottom_proj.conv (separable group conv 1)
    p["bp1_dw_w"] = group_conv3x3_weight(next(ks), bottom_c, bottom_c * factor,
                                         bottom_c // group_base)
    p["bp1_dw_s"], p["bp1_dw_b"] = bn_fold(next(ks), bottom_c * factor)
    p["bp1_pw_w"] = conv1x1_weight(next(ks), bottom_c * factor, output_c)
    p["bp1_pw_s"], p["bp1_pw_b"] = bn_fold(next(ks), output_c)
    # bottom_proj.conv2 (separable group conv 2)
    p["bp2_dw_w"] = group_conv3x3_weight(next(ks), output_c, output_c * factor,
                                         output_c // group_base)
    p["bp2_dw_s"], p["bp2_dw_b"] = bn_fold(next(ks), output_c * factor)
    p["bp2_pw_w"] = conv1x1_weight(next(ks), output_c * factor, output_c)
    p["bp2_pw_s"], p["bp2_pw_b"] = bn_fold(next(ks), output_c)
    # fusion (separable group conv on upsampled `up`)
    p["fu_dw_w"] = group_conv3x3_weight(next(ks), up_c, up_c * factor,
                                        up_c // group_base)
    p["fu_dw_s"], p["fu_dw_b"] = bn_fold(next(ks), up_c * factor)
    p["fu_pw_w"] = conv1x1_weight(next(ks), up_c * factor, output_c)
    p["fu_pw_s"], p["fu_pw_b"] = bn_fold(next(ks), output_c)
    return p


# ---------------------------------------------------------------------------
# Pure-JAX reference (f32, XLA convs, XLA bilinear resize)
# ---------------------------------------------------------------------------
def _ref_conv3(x, w9, s, b, relu):
    w = w9.reshape(3, 3, w9.shape[1], w9.shape[2])
    y = lax.conv_general_dilated(
        x, w, (1, 1), ((1, 1), (1, 1)),
        dimension_numbers=("NHWC", "HWIO", "NHWC"),
        precision=lax.Precision.HIGHEST)
    y = y * s.reshape(1, 1, 1, -1) + b.reshape(1, 1, 1, -1)
    return jnp.maximum(y, 0.0) if relu else y


def _ref_conv1(x, w, s, b):
    y = lax.conv_general_dilated(
        x, w.reshape(1, 1, *w.shape), (1, 1), ((0, 0), (0, 0)),
        dimension_numbers=("NHWC", "HWIO", "NHWC"),
        precision=lax.Precision.HIGHEST)
    return y * s.reshape(1, 1, 1, -1) + b.reshape(1, 1, 1, -1)


def fusion_block_reference(up_nhwc, bottom_nhwc, p):
    a = _ref_conv3(bottom_nhwc, p["bp1_dw_w"], p["bp1_dw_s"], p["bp1_dw_b"], True)
    b = _ref_conv1(a, p["bp1_pw_w"], p["bp1_pw_s"], p["bp1_pw_b"])
    c = _ref_conv3(b, p["bp2_dw_w"], p["bp2_dw_s"], p["bp2_dw_b"], True)
    d = _ref_conv1(c, p["bp2_pw_w"], p["bp2_pw_s"], p["bp2_pw_b"])
    bottom_proj = jnp.maximum(d + bottom_nhwc, 0.0)
    N, H, W, C = up_nhwc.shape
    ups = jax.image.resize(up_nhwc, (N, 2 * H, 2 * W, C), method="bilinear")
    e = _ref_conv3(ups, p["fu_dw_w"], p["fu_dw_s"], p["fu_dw_b"], True)
    f = _ref_conv1(e, p["fu_pw_w"], p["fu_pw_s"], p["fu_pw_b"])
    return jnp.maximum(f + bottom_proj, 0.0)


# ---------------------------------------------------------------------------
if __name__ == "__main__":
    key = jax.random.PRNGKey(0)
    k_up, k_bot, k_par = jax.random.split(key, 3)

    N = 2
    up_c, bottom_c, output_c = 32, 16, 16
    factor, group_base = 2, 8
    Hb, Wb = 16, 16            # bottom spatial
    Hu, Wu = Hb // 2, Wb // 2  # up spatial (upsampled x2 to match bottom)

    # PyTorch-convention NCHW inputs
    up_nchw = jax.random.normal(k_up, (N, up_c, Hu, Wu), dtype=jnp.float32)
    bottom_nchw = jax.random.normal(k_bot, (N, bottom_c, Hb, Wb), dtype=jnp.float32)

    # kernel layout: NHWC
    up = jnp.transpose(up_nchw, (0, 2, 3, 1))
    bottom = jnp.transpose(bottom_nchw, (0, 2, 3, 1))

    params = init_params(k_par, up_c, bottom_c, output_c, factor, group_base)

    out = jax.block_until_ready(fusion_block_forward(up, bottom, params))
    ref = jax.block_until_ready(fusion_block_reference(up, bottom, params))

    assert out.shape == (N, Hb, Wb, output_c), out.shape
    # Tolerance sized for bf16 MXU operands (~0.4% per matmul input,
    # compounded over four conv stages plus two residual adds).
    err = float(jnp.max(jnp.abs(out - ref)))
    scale = float(jnp.max(jnp.abs(ref)))
    assert err <= 2e-2 * scale + 1e-2, (err, scale)

    print("KERNEL_OK")
</pallas_src>

<mosaic_0001>
module attributes {stable_mosaic.version = 11 : i64} {
  func.func @_fusion_block_kernel(%arg0: i32, %arg1: memref<1x128x32xf32, #tpu.memory_space<vmem>>, %arg2: memref<1x64x32xf32, #tpu.memory_space<vmem>>, %arg3: memref<9x32x64xbf16, #tpu.memory_space<vmem>>, %arg4: memref<1x64xf32, #tpu.memory_space<vmem>>, %arg5: memref<64x32xbf16, #tpu.memory_space<vmem>>, %arg6: memref<1x32xf32, #tpu.memory_space<vmem>>, %arg7: memref<9x32x64xbf16, #tpu.memory_space<vmem>>, %arg8: memref<1x64xf32, #tpu.memory_space<vmem>>, %arg9: memref<64x32xbf16, #tpu.memory_space<vmem>>, %arg10: memref<1x32xf32, #tpu.memory_space<vmem>>, %arg11: memref<9x64x128xbf16, #tpu.memory_space<vmem>>, %arg12: memref<1x128xf32, #tpu.memory_space<vmem>>, %arg13: memref<128x32xbf16, #tpu.memory_space<vmem>>, %arg14: memref<1x32xf32, #tpu.memory_space<vmem>>, %arg15: memref<1x128x32xf32, #tpu.memory_space<vmem>>, %arg16: memref<160x64xbf16, #tpu.memory_space<vmem>>) attributes {dimension_semantics = [#tpu.dimension_semantics<parallel>], iteration_bounds = array<i64: 2>, scalar_prefetch = 0 : i64, scratch_operands = 1 : i64, tpu.core_type = #tpu.core_type<tc>, window_params = [{transform_indices = @transform_0, window_bounds = array<i64: 1, 128, 32>}, {transform_indices = @transform_1, window_bounds = array<i64: 1, 64, 32>}, {pipeline_mode = #tpu.pipeline_mode<synchronous>, transform_indices = @transform_2, window_bounds = array<i64: 9, 32, 64>}, {pipeline_mode = #tpu.pipeline_mode<synchronous>, transform_indices = @transform_3, window_bounds = array<i64: 1, 64>}, {pipeline_mode = #tpu.pipeline_mode<synchronous>, transform_indices = @transform_4, window_bounds = array<i64: 64, 32>}, {pipeline_mode = #tpu.pipeline_mode<synchronous>, transform_indices = @transform_5, window_bounds = array<i64: 1, 32>}, {pipeline_mode = #tpu.pipeline_mode<synchronous>, transform_indices = @transform_6, window_bounds = array<i64: 9, 32, 64>}, {pipeline_mode = #tpu.pipeline_mode<synchronous>, transform_indices = @transform_7, window_bounds = array<i64: 1, 64>}, {pipeline_mode = #tpu.pipeline_mode<synchronous>, transform_indices = @transform_8, window_bounds = array<i64: 64, 32>}, {pipeline_mode = #tpu.pipeline_mode<synchronous>, transform_indices = @transform_9, window_bounds = array<i64: 1, 32>}, {pipeline_mode = #tpu.pipeline_mode<synchronous>, transform_indices = @transform_10, window_bounds = array<i64: 9, 64, 128>}, {pipeline_mode = #tpu.pipeline_mode<synchronous>, transform_indices = @transform_11, window_bounds = array<i64: 1, 128>}, {pipeline_mode = #tpu.pipeline_mode<synchronous>, transform_indices = @transform_12, window_bounds = array<i64: 128, 32>}, {pipeline_mode = #tpu.pipeline_mode<synchronous>, transform_indices = @transform_13, window_bounds = array<i64: 1, 32>}, {transform_indices = @transform_14, window_bounds = array<i64: 1, 128, 32>}]} {
    %0 = tpu.iota {dimensions = array<i32: 0>} : vector<128x1xi32>
    %c8_i32 = arith.constant 8 : i32
    %c0_i32 = arith.constant 0 : i32
    %1 = arith.cmpi eq, %c8_i32, %c0_i32 : i32
    %c1_i32 = arith.constant 1 : i32
    %2 = arith.select %1, %c1_i32, %c8_i32 : i32
    %3 = vector.broadcast %2 : i32 to vector<128x1xi32>
    %4 = arith.remsi %0, %3 : vector<128x1xi32>
    %c0_i32_0 = arith.constant 0 : i32
    %5 = vector.broadcast %c0_i32_0 : i32 to vector<128x1xi32>
    %6 = arith.cmpi ne, %4, %5 : vector<128x1xi32>
    %c0_i32_1 = arith.constant 0 : i32
    %7 = vector.broadcast %c0_i32_1 : i32 to vector<128x1xi32>
    %8 = arith.cmpi slt, %4, %7 : vector<128x1xi32>
    %c0_i32_2 = arith.constant 0 : i32
    %9 = arith.cmpi slt, %2, %c0_i32_2 : i32
    %10 = vector.broadcast %9 : i1 to vector<128x1xi1>
    %11 = vector.broadcast %10 : vector<128x1xi1> to vector<128x1xi1>
    %12 = arith.xori %8, %11 : vector<128x1xi1>
    %13 = arith.andi %12, %6 : vector<128x1xi1>
    %14 = vector.broadcast %2 : i32 to vector<128x1xi32>
    %15 = arith.addi %4, %14 : vector<128x1xi32>
    %16 = arith.select %13, %15, %4 : vector<128x1xi1>, vector<128x1xi32>
    %c0_i32_3 = arith.constant 0 : i32
    %17 = vector.broadcast %c0_i32_3 : i32 to vector<128x1xi32>
    %18 = arith.cmpi sgt, %16, %17 : vector<128x1xi32>
    %c7_i32 = arith.constant 7 : i32
    %19 = vector.broadcast %c7_i32 : i32 to vector<128x1xi32>
    %20 = arith.cmpi slt, %16, %19 : vector<128x1xi32>
    %cst = arith.constant 0.000000e+00 : bf16
    %21 = vector.broadcast %cst : bf16 to vector<16x64xbf16>
    %c0 = arith.constant 0 : index
    %c0_4 = arith.constant 0 : index
    %22 = vector.load %arg16[%c0, %c0_4] : memref<160x64xbf16, #tpu.memory_space<vmem>>, vector<16x64xbf16>
    tpu.vector_store %arg16[%c0, %c0_4], %21 {strides = array<i32>} : memref<160x64xbf16, #tpu.memory_space<vmem>>, vector<16x64xbf16>,
    %c144 = arith.constant 144 : index
    %c0_5 = arith.constant 0 : index
    %23 = vector.load %arg16[%c144, %c0_5] : memref<160x64xbf16, #tpu.memory_space<vmem>>, vector<16x64xbf16>
    tpu.vector_store %arg16[%c144, %c0_5], %21 {strides = array<i32>} : memref<160x64xbf16, #tpu.memory_space<vmem>>, vector<16x64xbf16>,
    %c0_6 = arith.constant 0 : index
    %c0_7 = arith.constant 0 : index
    %c0_8 = arith.constant 0 : index
    %24 = vector.load %arg1[%c0_6, %c0_7, %c0_8] : memref<1x128x32xf32, #tpu.memory_space<vmem>>, vector<1x128x32xf32>
    %25 = vector.shape_cast %24 : vector<1x128x32xf32> to vector<128x32xf32>
    %26 = arith.truncf %25 : vector<128x32xf32> to vector<128x32xbf16>
    %c16 = arith.constant 16 : index
    %c0_9 = arith.constant 0 : index
    %27 = vector.load %arg16[%c16, %c0_9] : memref<160x64xbf16, #tpu.memory_space<vmem>>, vector<128x32xbf16>
    tpu.vector_store %arg16[%c16, %c0_9], %26 {strides = array<i32>} : memref<160x64xbf16, #tpu.memory_space<vmem>>, vector<128x32xbf16>,
    %cst_10 = arith.constant 0.000000e+00 : f32
    %28 = vector.broadcast %cst_10 : f32 to vector<128x64xf32>
    %c7 = arith.constant 7 : index
    %c0_11 = arith.constant 0 : index
    %29 = vector.load %arg16[%c7, %c0_11] : memref<160x64xbf16, #tpu.memory_space<vmem>>, vector<128x32xbf16>
    %cst_12 = arith.constant 0.000000e+00 : bf16
    %30 = vector.broadcast %cst_12 : bf16 to vector<128x32xbf16>
    %31 = vector.shape_cast %18 : vector<128x1xi1> to vector<128x1xi1>
    %32 = vector.broadcast %31 : vector<128x1xi1> to vector<128x32xi1>
    %33 = arith.select %32, %29, %30 : vector<128x32xi1>, vector<128x32xbf16>
    %c0_13 = arith.constant 0 : index
    %c0_14 = arith.constant 0 : index
    %c0_15 = arith.constant 0 : index
    %34 = vector.load %arg3[%c0_13, %c0_14, %c0_15] : memref<9x32x64xbf16, #tpu.memory_space<vmem>>, vector<1x32x64xbf16>
    %35 = vector.shape_cast %34 : vector<1x32x64xbf16> to vector<32x64xbf16>
    %cst_16 = arith.constant dense<0.000000e+00> : vector<128x64xf32>
    %36 = tpu.matmul %33, %35, %cst_16 {dimension_numbers = #tpu.dot_dimension_numbers<[1], [0], [0], [1], [0, 0, 1, 1], [], []>} : vector<128x32xbf16>, vector<32x64xbf16>, vector<128x64xf32> -> vector<128x64xf32>
    %37 = arith.addf %28, %36 : vector<128x64xf32>
    %c8 = arith.constant 8 : index
    %c0_17 = arith.constant 0 : index
    %38 = vector.load %arg16[%c8, %c0_17] : memref<160x64xbf16, #tpu.memory_space<vmem>>, vector<128x32xbf16>
    %c1 = arith.constant 1 : index
    %c0_18 = arith.constant 0 : index
    %c0_19 = arith.constant 0 : index
    %39 = vector.load %arg3[%c1, %c0_18, %c0_19] : memref<9x32x64xbf16, #tpu.memory_space<vmem>>, vector<1x32x64xbf16>
    %40 = vector.shape_cast %39 : vector<1x32x64xbf16> to vector<32x64xbf16>
    %cst_20 = arith.constant dense<0.000000e+00> : vector<128x64xf32>
    %41 = tpu.matmul %38, %40, %cst_20 {dimension_numbers = #tpu.dot_dimension_numbers<[1], [0], [0], [1], [0, 0, 1, 1], [], []>} : vector<128x32xbf16>, vector<32x64xbf16>, vector<128x64xf32> -> vector<128x64xf32>
    %42 = arith.addf %37, %41 : vector<128x64xf32>
    %c9 = arith.constant 9 : index
    %c0_21 = arith.constant 0 : index
    %43 = vector.load %arg16[%c9, %c0_21] : memref<160x64xbf16, #tpu.memory_space<vmem>>, vector<128x32xbf16>
    %cst_22 = arith.constant 0.000000e+00 : bf16
    %44 = vector.broadcast %cst_22 : bf16 to vector<128x32xbf16>
    %45 = vector.shape_cast %20 : vector<128x1xi1> to vector<128x1xi1>
    %46 = vector.broadcast %45 : vector<128x1xi1> to vector<128x32xi1>
    %47 = arith.select %46, %43, %44 : vector<128x32xi1>, vector<128x32xbf16>
    %c2 = arith.constant 2 : index
    %c0_23 = arith.constant 0 : index
    %c0_24 = arith.constant 0 : index
    %48 = vector.load %arg3[%c2, %c0_23, %c0_24] : memref<9x32x64xbf16, #tpu.memory_space<vmem>>, vector<1x32x64xbf16>
    %49 = vector.shape_cast %48 : vector<1x32x64xbf16> to vector<32x64xbf16>
    %cst_25 = arith.constant dense<0.000000e+00> : vector<128x64xf32>
    %50 = tpu.matmul %47, %49, %cst_25 {dimension_numbers = #tpu.dot_dimension_numbers<[1], [0], [0], [1], [0, 0, 1, 1], [], []>} : vector<128x32xbf16>, vector<32x64xbf16>, vector<128x64xf32> -> vector<128x64xf32>
    %51 = arith.addf %42, %50 : vector<128x64xf32>
    %c15 = arith.constant 15 : index
    %c0_26 = arith.constant 0 : index
    %52 = vector.load %arg16[%c15, %c0_26] : memref<160x64xbf16, #tpu.memory_space<vmem>>, vector<128x32xbf16>
    %cst_27 = arith.constant 0.000000e+00 : bf16
    %53 = vector.broadcast %cst_27 : bf16 to vector<128x32xbf16>
    %54 = vector.shape_cast %18 : vector<128x1xi1> to vector<128x1xi1>
    %55 = vector.broadcast %54 : vector<128x1xi1> to vector<128x32xi1>
    %56 = arith.select %55, %52, %53 : vector<128x32xi1>, vector<128x32xbf16>
    %c3 = arith.constant 3 : index
    %c0_28 = arith.constant 0 : index
    %c0_29 = arith.constant 0 : index
    %57 = vector.load %arg3[%c3, %c0_28, %c0_29] : memref<9x32x64xbf16, #tpu.memory_space<vmem>>, vector<1x32x64xbf16>
    %58 = vector.shape_cast %57 : vector<1x32x64xbf16> to vector<32x64xbf16>
    %cst_30 = arith.constant dense<0.000000e+00> : vector<128x64xf32>
    %59 = tpu.matmul %56, %58, %cst_30 {dimension_numbers = #tpu.dot_dimension_numbers<[1], [0], [0], [1], [0, 0, 1, 1], [], []>} : vector<128x32xbf16>, vector<32x64xbf16>, vector<128x64xf32> -> vector<128x64xf32>
    %60 = arith.addf %51, %59 : vector<128x64xf32>
    %c16_31 = arith.constant 16 : index
    %c0_32 = arith.constant 0 : index
    %61 = vector.load %arg16[%c16_31, %c0_32] : memref<160x64xbf16, #tpu.memory_space<vmem>>, vector<128x32xbf16>
    %c4 = arith.constant 4 : index
    %c0_33 = arith.constant 0 : index
    %c0_34 = arith.constant 0 : index
    %62 = vector.load %arg3[%c4, %c0_33, %c0_34] : memref<9x32x64xbf16, #tpu.memory_space<vmem>>, vector<1x32x64xbf16>
    %63 = vector.shape_cast %62 : vector<1x32x64xbf16> to vector<32x64xbf16>
    %cst_35 = arith.constant dense<0.000000e+00> : vector<128x64xf32>
    %64 = tpu.matmul %61, %63, %cst_35 {dimension_numbers = #tpu.dot_dimension_numbers<[1], [0], [0], [1], [0, 0, 1, 1], [], []>} : vector<128x32xbf16>, vector<32x64xbf16>, vector<128x64xf32> -> vector<128x64xf32>
    %65 = arith.addf %60, %64 : vector<128x64xf32>
    %c17 = arith.constant 17 : index
    %c0_36 = arith.constant 0 : index
    %66 = vector.load %arg16[%c17, %c0_36] : memref<160x64xbf16, #tpu.memory_space<vmem>>, vector<128x32xbf16>
    %cst_37 = arith.constant 0.000000e+00 : bf16
    %67 = vector.broadcast %cst_37 : bf16 to vector<128x32xbf16>
    %68 = vector.shape_cast %20 : vector<128x1xi1> to vector<128x1xi1>
    %69 = vector.broadcast %68 : vector<128x1xi1> to vector<128x32xi1>
    %70 = arith.select %69, %66, %67 : vector<128x32xi1>, vector<128x32xbf16>
    %c5 = arith.constant 5 : index
    %c0_38 = arith.constant 0 : index
    %c0_39 = arith.constant 0 : index
    %71 = vector.load %arg3[%c5, %c0_38, %c0_39] : memref<9x32x64xbf16, #tpu.memory_space<vmem>>, vector<1x32x64xbf16>
    %72 = vector.shape_cast %71 : vector<1x32x64xbf16> to vector<32x64xbf16>
    %cst_40 = arith.constant dense<0.000000e+00> : vector<128x64xf32>
    %73 = tpu.matmul %70, %72, %cst_40 {dimension_numbers = #tpu.dot_dimension_numbers<[1], [0], [0], [1], [0, 0, 1, 1], [], []>} : vector<128x32xbf16>, vector<32x64xbf16>, vector<128x64xf32> -> vector<128x64xf32>
    %74 = arith.addf %65, %73 : vector<128x64xf32>
    %c23 = arith.constant 23 : index
    %c0_41 = arith.constant 0 : index
    %75 = vector.load %arg16[%c23, %c0_41] : memref<160x64xbf16, #tpu.memory_space<vmem>>, vector<128x32xbf16>
    %cst_42 = arith.constant 0.000000e+00 : bf16
    %76 = vector.broadcast %cst_42 : bf16 to vector<128x32xbf16>
    %77 = vector.shape_cast %18 : vector<128x1xi1> to vector<128x1xi1>
    %78 = vector.broadcast %77 : vector<128x1xi1> to vector<128x32xi1>
    %79 = arith.select %78, %75, %76 : vector<128x32xi1>, vector<128x32xbf16>
    %c6 = arith.constant 6 : index
    %c0_43 = arith.constant 0 : index
    %c0_44 = arith.constant 0 : index
    %80 = vector.load %arg3[%c6, %c0_43, %c0_44] : memref<9x32x64xbf16, #tpu.memory_space<vmem>>, vector<1x32x64xbf16>
    %81 = vector.shape_cast %80 : vector<1x32x64xbf16> to vector<32x64xbf16>
    %cst_45 = arith.constant dense<0.000000e+00> : vector<128x64xf32>
    %82 = tpu.matmul %79, %81, %cst_45 {dimension_numbers = #tpu.dot_dimension_numbers<[1], [0], [0], [1], [0, 0, 1, 1], [], []>} : vector<128x32xbf16>, vector<32x64xbf16>, vector<128x64xf32> -> vector<128x64xf32>
    %83 = arith.addf %74, %82 : vector<128x64xf32>
    %c24 = arith.constant 24 : index
    %c0_46 = arith.constant 0 : index
    %84 = vector.load %arg16[%c24, %c0_46] : memref<160x64xbf16, #tpu.memory_space<vmem>>, vector<128x32xbf16>
    %c7_47 = arith.constant 7 : index
    %c0_48 = arith.constant 0 : index
    %c0_49 = arith.constant 0 : index
    %85 = vector.load %arg3[%c7_47, %c0_48, %c0_49] : memref<9x32x64xbf16, #tpu.memory_space<vmem>>, vector<1x32x64xbf16>
    %86 = vector.shape_cast %85 : vector<1x32x64xbf16> to vector<32x64xbf16>
    %cst_50 = arith.constant dense<0.000000e+00> : vector<128x64xf32>
    %87 = tpu.matmul %84, %86, %cst_50 {dimension_numbers = #tpu.dot_dimension_numbers<[1], [0], [0], [1], [0, 0, 1, 1], [], []>} : vector<128x32xbf16>, vector<32x64xbf16>, vector<128x64xf32> -> vector<128x64xf32>
    %88 = arith.addf %83, %87 : vector<128x64xf32>
    %c25 = arith.constant 25 : index
    %c0_51 = arith.constant 0 : index
    %89 = vector.load %arg16[%c25, %c0_51] : memref<160x64xbf16, #tpu.memory_space<vmem>>, vector<128x32xbf16>
    %cst_52 = arith.constant 0.000000e+00 : bf16
    %90 = vector.broadcast %cst_52 : bf16 to vector<128x32xbf16>
    %91 = vector.shape_cast %20 : vector<128x1xi1> to vector<128x1xi1>
    %92 = vector.broadcast %91 : vector<128x1xi1> to vector<128x32xi1>
    %93 = arith.select %92, %89, %90 : vector<128x32xi1>, vector<128x32xbf16>
    %c8_53 = arith.constant 8 : index
    %c0_54 = arith.constant 0 : index
    %c0_55 = arith.constant 0 : index
    %94 = vector.load %arg3[%c8_53, %c0_54, %c0_55] : memref<9x32x64xbf16, #tpu.memory_space<vmem>>, vector<1x32x64xbf16>
    %95 = vector.shape_cast %94 : vector<1x32x64xbf16> to vector<32x64xbf16>
    %cst_56 = arith.constant dense<0.000000e+00> : vector<128x64xf32>
    %96 = tpu.matmul %93, %95, %cst_56 {dimension_numbers = #tpu.dot_dimension_numbers<[1], [0], [0], [1], [0, 0, 1, 1], [], []>} : vector<128x32xbf16>, vector<32x64xbf16>, vector<128x64xf32> -> vector<128x64xf32>
    %97 = arith.addf %88, %96 : vector<128x64xf32>
    %c0_57 = arith.constant 0 : index
    %c0_58 = arith.constant 0 : index
    %98 = vector.load %arg4[%c0_57, %c0_58] : memref<1x64xf32, #tpu.memory_space<vmem>>, vector<1x64xf32>
    %99 = vector.broadcast %98 : vector<1x64xf32> to vector<128x64xf32>
    %100 = arith.addf %97, %99 : vector<128x64xf32>
    %cst_59 = arith.constant 0.000000e+00 : f32
    %101 = vector.broadcast %cst_59 : f32 to vector<128x64xf32>
    %102 = arith.maximumf %100, %101 : vector<128x64xf32>
    %103 = arith.truncf %102 : vector<128x64xf32> to vector<128x64xbf16>
    %c0_60 = arith.constant 0 : index
    %c0_61 = arith.constant 0 : index
    %104 = vector.load %arg5[%c0_60, %c0_61] : memref<64x32xbf16, #tpu.memory_space<vmem>>, vector<64x32xbf16>
    %cst_62 = arith.constant dense<0.000000e+00> : vector<128x32xf32>
    %105 = tpu.matmul %103, %104, %cst_62 {dimension_numbers = #tpu.dot_dimension_numbers<[1], [0], [0], [1], [0, 0, 1, 1], [], []>} : vector<128x64xbf16>, vector<64x32xbf16>, vector<128x32xf32> -> vector<128x32xf32>
    %c0_63 = arith.constant 0 : index
    %c0_64 = arith.constant 0 : index
    %106 = vector.load %arg6[%c0_63, %c0_64] : memref<1x32xf32, #tpu.memory_space<vmem>>, vector<1x32xf32>
    %107 = vector.broadcast %106 : vector<1x32xf32> to vector<128x32xf32>
    %108 = arith.addf %105, %107 : vector<128x32xf32>
    %109 = arith.truncf %108 : vector<128x32xf32> to vector<128x32xbf16>
    %c16_65 = arith.constant 16 : index
    %c0_66 = arith.constant 0 : index
    %110 = vector.load %arg16[%c16_65, %c0_66] : memref<160x64xbf16, #tpu.memory_space<vmem>>, vector<128x32xbf16>
    tpu.vector_store %arg16[%c16_65, %c0_66], %109 {strides = array<i32>} : memref<160x64xbf16, #tpu.memory_space<vmem>>, vector<128x32xbf16>,
    %cst_67 = arith.constant 0.000000e+00 : f32
    %111 = vector.broadcast %cst_67 : f32 to vector<128x64xf32>
    %c7_68 = arith.constant 7 : index
    %c0_69 = arith.constant 0 : index
    %112 = vector.load %arg16[%c7_68, %c0_69] : memref<160x64xbf16, #tpu.memory_space<vmem>>, vector<128x32xbf16>
    %cst_70 = arith.constant 0.000000e+00 : bf16
    %113 = vector.broadcast %cst_70 : bf16 to vector<128x32xbf16>
    %114 = vector.shape_cast %18 : vector<128x1xi1> to vector<128x1xi1>
    %115 = vector.broadcast %114 : vector<128x1xi1> to vector<128x32xi1>
    %116 = arith.select %115, %112, %113 : vector<128x32xi1>, vector<128x32xbf16>
    %c0_71 = arith.constant 0 : index
    %c0_72 = arith.constant 0 : index
    %c0_73 = arith.constant 0 : index
    %117 = vector.load %arg7[%c0_71, %c0_72, %c0_73] : memref<9x32x64xbf16, #tpu.memory_space<vmem>>, vector<1x32x64xbf16>
    %118 = vector.shape_cast %117 : vector<1x32x64xbf16> to vector<32x64xbf16>
    %cst_74 = arith.constant dense<0.000000e+00> : vector<128x64xf32>
    %119 = tpu.matmul %116, %118, %cst_74 {dimension_numbers = #tpu.dot_dimension_numbers<[1], [0], [0], [1], [0, 0, 1, 1], [], []>} : vector<128x32xbf16>, vector<32x64xbf16>, vector<128x64xf32> -> vector<128x64xf32>
    %120 = arith.addf %111, %119 : vector<128x64xf32>
    %c8_75 = arith.constant 8 : index
    %c0_76 = arith.constant 0 : index
    %121 = vector.load %arg16[%c8_75, %c0_76] : memref<160x64xbf16, #tpu.memory_space<vmem>>, vector<128x32xbf16>
    %c1_77 = arith.constant 1 : index
    %c0_78 = arith.constant 0 : index
    %c0_79 = arith.constant 0 : index
    %122 = vector.load %arg7[%c1_77, %c0_78, %c0_79] : memref<9x32x64xbf16, #tpu.memory_space<vmem>>, vector<1x32x64xbf16>
    %123 = vector.shape_cast %122 : vector<1x32x64xbf16> to vector<32x64xbf16>
    %cst_80 = arith.constant dense<0.000000e+00> : vector<128x64xf32>
    %124 = tpu.matmul %121, %123, %cst_80 {dimension_numbers = #tpu.dot_dimension_numbers<[1], [0], [0], [1], [0, 0, 1, 1], [], []>} : vector<128x32xbf16>, vector<32x64xbf16>, vector<128x64xf32> -> vector<128x64xf32>
    %125 = arith.addf %120, %124 : vector<128x64xf32>
    %c9_81 = arith.constant 9 : index
    %c0_82 = arith.constant 0 : index
    %126 = vector.load %arg16[%c9_81, %c0_82] : memref<160x64xbf16, #tpu.memory_space<vmem>>, vector<128x32xbf16>
    %cst_83 = arith.constant 0.000000e+00 : bf16
    %127 = vector.broadcast %cst_83 : bf16 to vector<128x32xbf16>
    %128 = vector.shape_cast %20 : vector<128x1xi1> to vector<128x1xi1>
    %129 = vector.broadcast %128 : vector<128x1xi1> to vector<128x32xi1>
    %130 = arith.select %129, %126, %127 : vector<128x32xi1>, vector<128x32xbf16>
    %c2_84 = arith.constant 2 : index
    %c0_85 = arith.constant 0 : index
    %c0_86 = arith.constant 0 : index
    %131 = vector.load %arg7[%c2_84, %c0_85, %c0_86] : memref<9x32x64xbf16, #tpu.memory_space<vmem>>, vector<1x32x64xbf16>
    %132 = vector.shape_cast %131 : vector<1x32x64xbf16> to vector<32x64xbf16>
    %cst_87 = arith.constant dense<0.000000e+00> : vector<128x64xf32>
    %133 = tpu.matmul %130, %132, %cst_87 {dimension_numbers = #tpu.dot_dimension_numbers<[1], [0], [0], [1], [0, 0, 1, 1], [], []>} : vector<128x32xbf16>, vector<32x64xbf16>, vector<128x64xf32> -> vector<128x64xf32>
    %134 = arith.addf %125, %133 : vector<128x64xf32>
    %c15_88 = arith.constant 15 : index
    %c0_89 = arith.constant 0 : index
    %135 = vector.load %arg16[%c15_88, %c0_89] : memref<160x64xbf16, #tpu.memory_space<vmem>>, vector<128x32xbf16>
    %cst_90 = arith.constant 0.000000e+00 : bf16
    %136 = vector.broadcast %cst_90 : bf16 to vector<128x32xbf16>
    %137 = vector.shape_cast %18 : vector<128x1xi1> to vector<128x1xi1>
    %138 = vector.broadcast %137 : vector<128x1xi1> to vector<128x32xi1>
    %139 = arith.select %138, %135, %136 : vector<128x32xi1>, vector<128x32xbf16>
    %c3_91 = arith.constant 3 : index
    %c0_92 = arith.constant 0 : index
    %c0_93 = arith.constant 0 : index
    %140 = vector.load %arg7[%c3_91, %c0_92, %c0_93] : memref<9x32x64xbf16, #tpu.memory_space<vmem>>, vector<1x32x64xbf16>
    %141 = vector.shape_cast %140 : vector<1x32x64xbf16> to vector<32x64xbf16>
    %cst_94 = arith.constant dense<0.000000e+00> : vector<128x64xf32>
    %142 = tpu.matmul %139, %141, %cst_94 {dimension_numbers = #tpu.dot_dimension_numbers<[1], [0], [0], [1], [0, 0, 1, 1], [], []>} : vector<128x32xbf16>, vector<32x64xbf16>, vector<128x64xf32> -> vector<128x64xf32>
    %143 = arith.addf %134, %142 : vector<128x64xf32>
    %c16_95 = arith.constant 16 : index
    %c0_96 = arith.constant 0 : index
    %144 = vector.load %arg16[%c16_95, %c0_96] : memref<160x64xbf16, #tpu.memory_space<vmem>>, vector<128x32xbf16>
    %c4_97 = arith.constant 4 : index
    %c0_98 = arith.constant 0 : index
    %c0_99 = arith.constant 0 : index
    %145 = vector.load %arg7[%c4_97, %c0_98, %c0_99] : memref<9x32x64xbf16, #tpu.memory_space<vmem>>, vector<1x32x64xbf16>
    %146 = vector.shape_cast %145 : vector<1x32x64xbf16> to vector<32x64xbf16>
    %cst_100 = arith.constant dense<0.000000e+00> : vector<128x64xf32>
    %147 = tpu.matmul %144, %146, %cst_100 {dimension_numbers = #tpu.dot_dimension_numbers<[1], [0], [0], [1], [0, 0, 1, 1], [], []>} : vector<128x32xbf16>, vector<32x64xbf16>, vector<128x64xf32> -> vector<128x64xf32>
    %148 = arith.addf %143, %147 : vector<128x64xf32>
    %c17_101 = arith.constant 17 : index
    %c0_102 = arith.constant 0 : index
    %149 = vector.load %arg16[%c17_101, %c0_102] : memref<160x64xbf16, #tpu.memory_space<vmem>>, vector<128x32xbf16>
    %cst_103 = arith.constant 0.000000e+00 : bf16
    %150 = vector.broadcast %cst_103 : bf16 to vector<128x32xbf16>
    %151 = vector.shape_cast %20 : vector<128x1xi1> to vector<128x1xi1>
    %152 = vector.broadcast %151 : vector<128x1xi1> to vector<128x32xi1>
    %153 = arith.select %152, %149, %150 : vector<128x32xi1>, vector<128x32xbf16>
    %c5_104 = arith.constant 5 : index
    %c0_105 = arith.constant 0 : index
    %c0_106 = arith.constant 0 : index
    %154 = vector.load %arg7[%c5_104, %c0_105, %c0_106] : memref<9x32x64xbf16, #tpu.memory_space<vmem>>, vector<1x32x64xbf16>
    %155 = vector.shape_cast %154 : vector<1x32x64xbf16> to vector<32x64xbf16>
    %cst_107 = arith.constant dense<0.000000e+00> : vector<128x64xf32>
    %156 = tpu.matmul %153, %155, %cst_107 {dimension_numbers = #tpu.dot_dimension_numbers<[1], [0], [0], [1], [0, 0, 1, 1], [], []>} : vector<128x32xbf16>, vector<32x64xbf16>, vector<128x64xf32> -> vector<128x64xf32>
    %157 = arith.addf %148, %156 : vector<128x64xf32>
    %c23_108 = arith.constant 23 : index
    %c0_109 = arith.constant 0 : index
    %158 = vector.load %arg16[%c23_108, %c0_109] : memref<160x64xbf16, #tpu.memory_space<vmem>>, vector<128x32xbf16>
    %cst_110 = arith.constant 0.000000e+00 : bf16
    %159 = vector.broadcast %cst_110 : bf16 to vector<128x32xbf16>
    %160 = vector.shape_cast %18 : vector<128x1xi1> to vector<128x1xi1>
    %161 = vector.broadcast %160 : vector<128x1xi1> to vector<128x32xi1>
    %162 = arith.select %161, %158, %159 : vector<128x32xi1>, vector<128x32xbf16>
    %c6_111 = arith.constant 6 : index
    %c0_112 = arith.constant 0 : index
    %c0_113 = arith.constant 0 : index
    %163 = vector.load %arg7[%c6_111, %c0_112, %c0_113] : memref<9x32x64xbf16, #tpu.memory_space<vmem>>, vector<1x32x64xbf16>
    %164 = vector.shape_cast %163 : vector<1x32x64xbf16> to vector<32x64xbf16>
    %cst_114 = arith.constant dense<0.000000e+00> : vector<128x64xf32>
    %165 = tpu.matmul %162, %164, %cst_114 {dimension_numbers = #tpu.dot_dimension_numbers<[1], [0], [0], [1], [0, 0, 1, 1], [], []>} : vector<128x32xbf16>, vector<32x64xbf16>, vector<128x64xf32> -> vector<128x64xf32>
    %166 = arith.addf %157, %165 : vector<128x64xf32>
    %c24_115 = arith.constant 24 : index
    %c0_116 = arith.constant 0 : index
    %167 = vector.load %arg16[%c24_115, %c0_116] : memref<160x64xbf16, #tpu.memory_space<vmem>>, vector<128x32xbf16>
    %c7_117 = arith.constant 7 : index
    %c0_118 = arith.constant 0 : index
    %c0_119 = arith.constant 0 : index
    %168 = vector.load %arg7[%c7_117, %c0_118, %c0_119] : memref<9x32x64xbf16, #tpu.memory_space<vmem>>, vector<1x32x64xbf16>
    %169 = vector.shape_cast %168 : vector<1x32x64xbf16> to vector<32x64xbf16>
    %cst_120 = arith.constant dense<0.000000e+00> : vector<128x64xf32>
    %170 = tpu.matmul %167, %169, %cst_120 {dimension_numbers = #tpu.dot_dimension_numbers<[1], [0], [0], [1], [0, 0, 1, 1], [], []>} : vector<128x32xbf16>, vector<32x64xbf16>, vector<128x64xf32> -> vector<128x64xf32>
    %171 = arith.addf %166, %170 : vector<128x64xf32>
    %c25_121 = arith.constant 25 : index
    %c0_122 = arith.constant 0 : index
    %172 = vector.load %arg16[%c25_121, %c0_122] : memref<160x64xbf16, #tpu.memory_space<vmem>>, vector<128x32xbf16>
    %cst_123 = arith.constant 0.000000e+00 : bf16
    %173 = vector.broadcast %cst_123 : bf16 to vector<128x32xbf16>
    %174 = vector.shape_cast %20 : vector<128x1xi1> to vector<128x1xi1>
    %175 = vector.broadcast %174 : vector<128x1xi1> to vector<128x32xi1>
    %176 = arith.select %175, %172, %173 : vector<128x32xi1>, vector<128x32xbf16>
    %c8_124 = arith.constant 8 : index
    %c0_125 = arith.constant 0 : index
    %c0_126 = arith.constant 0 : index
    %177 = vector.load %arg7[%c8_124, %c0_125, %c0_126] : memref<9x32x64xbf16, #tpu.memory_space<vmem>>, vector<1x32x64xbf16>
    %178 = vector.shape_cast %177 : vector<1x32x64xbf16> to vector<32x64xbf16>
    %cst_127 = arith.constant dense<0.000000e+00> : vector<128x64xf32>
    %179 = tpu.matmul %176, %178, %cst_127 {dimension_numbers = #tpu.dot_dimension_numbers<[1], [0], [0], [1], [0, 0, 1, 1], [], []>} : vector<128x32xbf16>, vector<32x64xbf16>, vector<128x64xf32> -> vector<128x64xf32>
    %180 = arith.addf %171, %179 : vector<128x64xf32>
    %c0_128 = arith.constant 0 : index
    %c0_129 = arith.constant 0 : index
    %181 = vector.load %arg8[%c0_128, %c0_129] : memref<1x64xf32, #tpu.memory_space<vmem>>, vector<1x64xf32>
    %182 = vector.broadcast %181 : vector<1x64xf32> to vector<128x64xf32>
    %183 = arith.addf %180, %182 : vector<128x64xf32>
    %cst_130 = arith.constant 0.000000e+00 : f32
    %184 = vector.broadcast %cst_130 : f32 to vector<128x64xf32>
    %185 = arith.maximumf %183, %184 : vector<128x64xf32>
    %186 = arith.truncf %185 : vector<128x64xf32> to vector<128x64xbf16>
    %c0_131 = arith.constant 0 : index
    %c0_132 = arith.constant 0 : index
    %187 = vector.load %arg9[%c0_131, %c0_132] : memref<64x32xbf16, #tpu.memory_space<vmem>>, vector<64x32xbf16>
    %cst_133 = arith.constant dense<0.000000e+00> : vector<128x32xf32>
    %188 = tpu.matmul %186, %187, %cst_133 {dimension_numbers = #tpu.dot_dimension_numbers<[1], [0], [0], [1], [0, 0, 1, 1], [], []>} : vector<128x64xbf16>, vector<64x32xbf16>, vector<128x32xf32> -> vector<128x32xf32>
    %c0_134 = arith.constant 0 : index
    %c0_135 = arith.constant 0 : index
    %189 = vector.load %arg10[%c0_134, %c0_135] : memref<1x32xf32, #tpu.memory_space<vmem>>, vector<1x32xf32>
    %190 = vector.broadcast %189 : vector<1x32xf32> to vector<128x32xf32>
    %191 = arith.addf %188, %190 : vector<128x32xf32>
    %192 = arith.addf %191, %25 : vector<128x32xf32>
    %cst_136 = arith.constant 0.000000e+00 : f32
    %193 = vector.broadcast %cst_136 : f32 to vector<128x32xf32>
    %194 = arith.maximumf %192, %193 : vector<128x32xf32>
    %c0_137 = arith.constant 0 : index
    %c0_138 = arith.constant 0 : index
    %c0_139 = arith.constant 0 : index
    %195 = vector.load %arg2[%c0_137, %c0_138, %c0_139] : memref<1x64x32xf32, #tpu.memory_space<vmem>>, vector<1x64x32xf32>
    %196 = vector.shape_cast %195 : vector<1x64x32xf32> to vector<64x32xf32>
    %197 = arith.truncf %196 : vector<64x32xf32> to vector<64x32xbf16>
    %c16_140 = arith.constant 16 : index
    %c0_141 = arith.constant 0 : index
    %198 = vector.load %arg16[%c16_140, %c0_141] : memref<160x64xbf16, #tpu.memory_space<vmem>>, vector<64x32xbf16>
    tpu.vector_store %arg16[%c16_140, %c0_141], %197 {strides = array<i32>} : memref<160x64xbf16, #tpu.memory_space<vmem>>, vector<64x32xbf16>,
    %199 = tpu.iota {dimensions = array<i32: 0>} : vector<64x1xi32>
    %c16_142 = arith.constant 16 : index
    %c0_143 = arith.constant 0 : index
    %200 = vector.load %arg16[%c16_142, %c0_143] : memref<160x64xbf16, #tpu.memory_space<vmem>>, vector<64x32xbf16>
    %201 = arith.extf %200 : vector<64x32xbf16> to vector<64x32xf32>
    %c8_144 = arith.constant 8 : index
    %c0_145 = arith.constant 0 : index
    %202 = vector.load %arg16[%c8_144, %c0_145] : memref<160x64xbf16, #tpu.memory_space<vmem>>, vector<64x32xbf16>
    %203 = arith.extf %202 : vector<64x32xbf16> to vector<64x32xf32>
    %c24_146 = arith.constant 24 : index
    %c0_147 = arith.constant 0 : index
    %204 = vector.load %arg16[%c24_146, %c0_147] : memref<160x64xbf16, #tpu.memory_space<vmem>>, vector<64x32xbf16>
    %205 = arith.extf %204 : vector<64x32xbf16> to vector<64x32xf32>
    %cst_148 = arith.constant 7.500000e-01 : f32
    %206 = vector.broadcast %cst_148 : f32 to vector<64x32xf32>
    %207 = arith.mulf %206, %201 : vector<64x32xf32>
    %c8_i32_149 = arith.constant 8 : i32
    %208 = vector.broadcast %c8_i32_149 : i32 to vector<64x1xi32>
    %209 = arith.cmpi sge, %199, %208 : vector<64x1xi32>
    %210 = vector.shape_cast %209 : vector<64x1xi1> to vector<64x1xi1>
    %211 = vector.broadcast %210 : vector<64x1xi1> to vector<64x32xi1>
    %212 = arith.select %211, %203, %201 : vector<64x32xi1>, vector<64x32xf32>
    %cst_150 = arith.constant 2.500000e-01 : f32
    %213 = vector.broadcast %cst_150 : f32 to vector<64x32xf32>
    %214 = arith.mulf %213, %212 : vector<64x32xf32>
    %215 = arith.addf %207, %214 : vector<64x32xf32>
    %cst_151 = arith.constant 7.500000e-01 : f32
    %216 = vector.broadcast %cst_151 : f32 to vector<64x32xf32>
    %217 = arith.mulf %216, %201 : vector<64x32xf32>
    %c56_i32 = arith.constant 56 : i32
    %218 = vector.broadcast %c56_i32 : i32 to vector<64x1xi32>
    %219 = arith.cmpi slt, %199, %218 : vector<64x1xi32>
    %220 = vector.shape_cast %219 : vector<64x1xi1> to vector<64x1xi1>
    %221 = vector.broadcast %220 : vector<64x1xi1> to vector<64x32xi1>
    %222 = arith.select %221, %205, %201 : vector<64x32xi1>, vector<64x32xf32>
    %cst_152 = arith.constant 2.500000e-01 : f32
    %223 = vector.broadcast %cst_152 : f32 to vector<64x32xf32>
    %224 = arith.mulf %223, %222 : vector<64x32xf32>
    %225 = arith.addf %217, %224 : vector<64x32xf32>
    %226 = vector.extract_strided_slice %215 {offsets = [0, 0], sizes = [8, 32], strides = [1, 1]} : vector<64x32xf32> to vector<8x32xf32>
    %227 = arith.truncf %226 : vector<8x32xf32> to vector<8x32xbf16>
    %c16_153 = arith.constant 16 : index
    %c0_154 = arith.constant 0 : index
    %228 = vector.load %arg16[%c16_153, %c0_154] : memref<160x64xbf16, #tpu.memory_space<vmem>>, vector<8x32xbf16>
    tpu.vector_store %arg16[%c16_153, %c0_154], %227 {strides = array<i32>} : memref<160x64xbf16, #tpu.memory_space<vmem>>, vector<8x32xbf16>,
    %229 = vector.extract_strided_slice %225 {offsets = [0, 0], sizes = [8, 32], strides = [1, 1]} : vector<64x32xf32> to vector<8x32xf32>
    %230 = arith.truncf %229 : vector<8x32xf32> to vector<8x32xbf16>
    %c24_155 = arith.constant 24 : index
    %c0_156 = arith.constant 0 : index
    %231 = vector.load %arg16[%c24_155, %c0_156] : memref<160x64xbf16, #tpu.memory_space<vmem>>, vector<8x32xbf16>
    tpu.vector_store %arg16[%c24_155, %c0_156], %230 {strides = array<i32>} : memref<160x64xbf16, #tpu.memory_space<vmem>>, vector<8x32xbf16>,
    %232 = vector.extract_strided_slice %215 {offsets = [8, 0], sizes = [8, 32], strides = [1, 1]} : vector<64x32xf32> to vector<8x32xf32>
    %233 = arith.truncf %232 : vector<8x32xf32> to vector<8x32xbf16>
    %c32 = arith.constant 32 : index
    %c0_157 = arith.constant 0 : index
    %234 = vector.load %arg16[%c32, %c0_157] : memref<160x64xbf16, #tpu.memory_space<vmem>>, vector<8x32xbf16>
    tpu.vector_store %arg16[%c32, %c0_157], %233 {strides = array<i32>} : memref<160x64xbf16, #tpu.memory_space<vmem>>, vector<8x32xbf16>,
    %235 = vector.extract_strided_slice %225 {offsets = [8, 0], sizes = [8, 32], strides = [1, 1]} : vector<64x32xf32> to vector<8x32xf32>
    %236 = arith.truncf %235 : vector<8x32xf32> to vector<8x32xbf16>
    %c40 = arith.constant 40 : index
    %c0_158 = arith.constant 0 : index
    %237 = vector.load %arg16[%c40, %c0_158] : memref<160x64xbf16, #tpu.memory_space<vmem>>, vector<8x32xbf16>
    tpu.vector_store %arg16[%c40, %c0_158], %236 {strides = array<i32>} : memref<160x64xbf16, #tpu.memory_space<vmem>>, vector<8x32xbf16>,
    %238 = vector.extract_strided_slice %215 {offsets = [16, 0], sizes = [8, 32], strides = [1, 1]} : vector<64x32xf32> to vector<8x32xf32>
    %239 = arith.truncf %238 : vector<8x32xf32> to vector<8x32xbf16>
    %c48 = arith.constant 48 : index
    %c0_159 = arith.constant 0 : index
    %240 = vector.load %arg16[%c48, %c0_159] : memref<160x64xbf16, #tpu.memory_space<vmem>>, vector<8x32xbf16>
    tpu.vector_store %arg16[%c48, %c0_159], %239 {strides = array<i32>} : memref<160x64xbf16, #tpu.memory_space<vmem>>, vector<8x32xbf16>,
    %241 = vector.extract_strided_slice %225 {offsets = [16, 0], sizes = [8, 32], strides = [1, 1]} : vector<64x32xf32> to vector<8x32xf32>
    %242 = arith.truncf %241 : vector<8x32xf32> to vector<8x32xbf16>
    %c56 = arith.constant 56 : index
    %c0_160 = arith.constant 0 : index
    %243 = vector.load %arg16[%c56, %c0_160] : memref<160x64xbf16, #tpu.memory_space<vmem>>, vector<8x32xbf16>
    tpu.vector_store %arg16[%c56, %c0_160], %242 {strides = array<i32>} : memref<160x64xbf16, #tpu.memory_space<vmem>>, vector<8x32xbf16>,
    %244 = vector.extract_strided_slice %215 {offsets = [24, 0], sizes = [8, 32], strides = [1, 1]} : vector<64x32xf32> to vector<8x32xf32>
    %245 = arith.truncf %244 : vector<8x32xf32> to vector<8x32xbf16>
    %c64 = arith.constant 64 : index
    %c0_161 = arith.constant 0 : index
    %246 = vector.load %arg16[%c64, %c0_161] : memref<160x64xbf16, #tpu.memory_space<vmem>>, vector<8x32xbf16>
    tpu.vector_store %arg16[%c64, %c0_161], %245 {strides = array<i32>} : memref<160x64xbf16, #tpu.memory_space<vmem>>, vector<8x32xbf16>,
    %247 = vector.extract_strided_slice %225 {offsets = [24, 0], sizes = [8, 32], strides = [1, 1]} : vector<64x32xf32> to vector<8x32xf32>
    %248 = arith.truncf %247 : vector<8x32xf32> to vector<8x32xbf16>
    %c72 = arith.constant 72 : index
    %c0_162 = arith.constant 0 : index
    %249 = vector.load %arg16[%c72, %c0_162] : memref<160x64xbf16, #tpu.memory_space<vmem>>, vector<8x32xbf16>
    tpu.vector_store %arg16[%c72, %c0_162], %248 {strides = array<i32>} : memref<160x64xbf16, #tpu.memory_space<vmem>>, vector<8x32xbf16>,
    %250 = vector.extract_strided_slice %215 {offsets = [32, 0], sizes = [8, 32], strides = [1, 1]} : vector<64x32xf32> to vector<8x32xf32>
    %251 = arith.truncf %250 : vector<8x32xf32> to vector<8x32xbf16>
    %c80 = arith.constant 80 : index
    %c0_163 = arith.constant 0 : index
    %252 = vector.load %arg16[%c80, %c0_163] : memref<160x64xbf16, #tpu.memory_space<vmem>>, vector<8x32xbf16>
    tpu.vector_store %arg16[%c80, %c0_163], %251 {strides = array<i32>} : memref<160x64xbf16, #tpu.memory_space<vmem>>, vector<8x32xbf16>,
    %253 = vector.extract_strided_slice %225 {offsets = [32, 0], sizes = [8, 32], strides = [1, 1]} : vector<64x32xf32> to vector<8x32xf32>
    %254 = arith.truncf %253 : vector<8x32xf32> to vector<8x32xbf16>
    %c88 = arith.constant 88 : index
    %c0_164 = arith.constant 0 : index
    %255 = vector.load %arg16[%c88, %c0_164] : memref<160x64xbf16, #tpu.memory_space<vmem>>, vector<8x32xbf16>
    tpu.vector_store %arg16[%c88, %c0_164], %254 {strides = array<i32>} : memref<160x64xbf16, #tpu.memory_space<vmem>>, vector<8x32xbf16>,
    %256 = vector.extract_strided_slice %215 {offsets = [40, 0], sizes = [8, 32], strides = [1, 1]} : vector<64x32xf32> to vector<8x32xf32>
    %257 = arith.truncf %256 : vector<8x32xf32> to vector<8x32xbf16>
    %c96 = arith.constant 96 : index
    %c0_165 = arith.constant 0 : index
    %258 = vector.load %arg16[%c96, %c0_165] : memref<160x64xbf16, #tpu.memory_space<vmem>>, vector<8x32xbf16>
    tpu.vector_store %arg16[%c96, %c0_165], %257 {strides = array<i32>} : memref<160x64xbf16, #tpu.memory_space<vmem>>, vector<8x32xbf16>,
    %259 = vector.extract_strided_slice %225 {offsets = [40, 0], sizes = [8, 32], strides = [1, 1]} : vector<64x32xf32> to vector<8x32xf32>
    %260 = arith.truncf %259 : vector<8x32xf32> to vector<8x32xbf16>
    %c104 = arith.constant 104 : index
    %c0_166 = arith.constant 0 : index
    %261 = vector.load %arg16[%c104, %c0_166] : memref<160x64xbf16, #tpu.memory_space<vmem>>, vector<8x32xbf16>
    tpu.vector_store %arg16[%c104, %c0_166], %260 {strides = array<i32>} : memref<160x64xbf16, #tpu.memory_space<vmem>>, vector<8x32xbf16>,
    %262 = vector.extract_strided_slice %215 {offsets = [48, 0], sizes = [8, 32], strides = [1, 1]} : vector<64x32xf32> to vector<8x32xf32>
    %263 = arith.truncf %262 : vector<8x32xf32> to vector<8x32xbf16>
    %c112 = arith.constant 112 : index
    %c0_167 = arith.constant 0 : index
    %264 = vector.load %arg16[%c112, %c0_167] : memref<160x64xbf16, #tpu.memory_space<vmem>>, vector<8x32xbf16>
    tpu.vector_store %arg16[%c112, %c0_167], %263 {strides = array<i32>} : memref<160x64xbf16, #tpu.memory_space<vmem>>, vector<8x32xbf16>,
    %265 = vector.extract_strided_slice %225 {offsets = [48, 0], sizes = [8, 32], strides = [1, 1]} : vector<64x32xf32> to vector<8x32xf32>
    %266 = arith.truncf %265 : vector<8x32xf32> to vector<8x32xbf16>
    %c120 = arith.constant 120 : index
    %c0_168 = arith.constant 0 : index
    %267 = vector.load %arg16[%c120, %c0_168] : memref<160x64xbf16, #tpu.memory_space<vmem>>, vector<8x32xbf16>
    tpu.vector_store %arg16[%c120, %c0_168], %266 {strides = array<i32>} : memref<160x64xbf16, #tpu.memory_space<vmem>>, vector<8x32xbf16>,
    %268 = vector.extract_strided_slice %215 {offsets = [56, 0], sizes = [8, 32], strides = [1, 1]} : vector<64x32xf32> to vector<8x32xf32>
    %269 = arith.truncf %268 : vector<8x32xf32> to vector<8x32xbf16>
    %c128 = arith.constant 128 : index
    %c0_169 = arith.constant 0 : index
    %270 = vector.load %arg16[%c128, %c0_169] : memref<160x64xbf16, #tpu.memory_space<vmem>>, vector<8x32xbf16>
    tpu.vector_store %arg16[%c128, %c0_169], %269 {strides = array<i32>} : memref<160x64xbf16, #tpu.memory_space<vmem>>, vector<8x32xbf16>,
    %271 = vector.extract_strided_slice %225 {offsets = [56, 0], sizes = [8, 32], strides = [1, 1]} : vector<64x32xf32> to vector<8x32xf32>
    %272 = arith.truncf %271 : vector<8x32xf32> to vector<8x32xbf16>
    %c136 = arith.constant 136 : index
    %c0_170 = arith.constant 0 : index
    %273 = vector.load %arg16[%c136, %c0_170] : memref<160x64xbf16, #tpu.memory_space<vmem>>, vector<8x32xbf16>
    tpu.vector_store %arg16[%c136, %c0_170], %272 {strides = array<i32>} : memref<160x64xbf16, #tpu.memory_space<vmem>>, vector<8x32xbf16>,
    %c16_171 = arith.constant 16 : index
    %c0_172 = arith.constant 0 : index
    %274 = vector.load %arg16[%c16_171, %c0_172] : memref<160x64xbf16, #tpu.memory_space<vmem>>, vector<128x32xbf16>
    %275 = arith.extf %274 : vector<128x32xbf16> to vector<128x32xf32>
    %c15_173 = arith.constant 15 : index
    %c0_174 = arith.constant 0 : index
    %276 = vector.load %arg16[%c15_173, %c0_174] : memref<160x64xbf16, #tpu.memory_space<vmem>>, vector<128x32xbf16>
    %277 = arith.extf %276 : vector<128x32xbf16> to vector<128x32xf32>
    %c17_175 = arith.constant 17 : index
    %c0_176 = arith.constant 0 : index
    %278 = vector.load %arg16[%c17_175, %c0_176] : memref<160x64xbf16, #tpu.memory_space<vmem>>, vector<128x32xbf16>
    %279 = arith.extf %278 : vector<128x32xbf16> to vector<128x32xf32>
    %cst_177 = arith.constant 7.500000e-01 : f32
    %280 = vector.broadcast %cst_177 : f32 to vector<128x32xf32>
    %281 = arith.mulf %280, %275 : vector<128x32xf32>
    %282 = vector.shape_cast %18 : vector<128x1xi1> to vector<128x1xi1>
    %283 = vector.broadcast %282 : vector<128x1xi1> to vector<128x32xi1>
    %284 = arith.select %283, %277, %275 : vector<128x32xi1>, vector<128x32xf32>
    %cst_178 = arith.constant 2.500000e-01 : f32
    %285 = vector.broadcast %cst_178 : f32 to vector<128x32xf32>
    %286 = arith.mulf %285, %284 : vector<128x32xf32>
    %287 = arith.addf %281, %286 : vector<128x32xf32>
    %cst_179 = arith.constant 7.500000e-01 : f32
    %288 = vector.broadcast %cst_179 : f32 to vector<128x32xf32>
    %289 = arith.mulf %288, %275 : vector<128x32xf32>
    %290 = vector.shape_cast %20 : vector<128x1xi1> to vector<128x1xi1>
    %291 = vector.broadcast %290 : vector<128x1xi1> to vector<128x32xi1>
    %292 = arith.select %291, %279, %275 : vector<128x32xi1>, vector<128x32xf32>
    %cst_180 = arith.constant 2.500000e-01 : f32
    %293 = vector.broadcast %cst_180 : f32 to vector<128x32xf32>
    %294 = arith.mulf %293, %292 : vector<128x32xf32>
    %295 = arith.addf %289, %294 : vector<128x32xf32>
    %296 = tpu.concatenate %287, %295 in 1 : vector<128x32xf32>, vector<128x32xf32> -> vector<128x64xf32>
    %297 = arith.truncf %296 : vector<128x64xf32> to vector<128x64xbf16>
    %c16_181 = arith.constant 16 : index
    %c0_182 = arith.constant 0 : index
    %298 = vector.load %arg16[%c16_181, %c0_182] : memref<160x64xbf16, #tpu.memory_space<vmem>>, vector<128x64xbf16>
    tpu.vector_store %arg16[%c16_181, %c0_182], %297 {strides = array<i32>} : memref<160x64xbf16, #tpu.memory_space<vmem>>, vector<128x64xbf16>,
    %cst_183 = arith.constant 0.000000e+00 : f32
    %299 = vector.broadcast %cst_183 : f32 to vector<128x128xf32>
    %c7_184 = arith.constant 7 : index
    %c0_185 = arith.constant 0 : index
    %300 = vector.load %arg16[%c7_184, %c0_185] : memref<160x64xbf16, #tpu.memory_space<vmem>>, vector<128x64xbf16>
    %cst_186 = arith.constant 0.000000e+00 : bf16
    %301 = vector.broadcast %cst_186 : bf16 to vector<128x64xbf16>
    %302 = vector.shape_cast %18 : vector<128x1xi1> to vector<128x1xi1>
    %303 = vector.broadcast %302 : vector<128x1xi1> to vector<128x64xi1>
    %304 = arith.select %303, %300, %301 : vector<128x64xi1>, vector<128x64xbf16>
    %c0_187 = arith.constant 0 : index
    %c0_188 = arith.constant 0 : index
    %c0_189 = arith.constant 0 : index
    %305 = vector.load %arg11[%c0_187, %c0_188, %c0_189] : memref<9x64x128xbf16, #tpu.memory_space<vmem>>, vector<1x64x128xbf16>
    %306 = vector.shape_cast %305 : vector<1x64x128xbf16> to vector<64x128xbf16>
    %cst_190 = arith.constant dense<0.000000e+00> : vector<128x128xf32>
    %307 = tpu.matmul %304, %306, %cst_190 {dimension_numbers = #tpu.dot_dimension_numbers<[1], [0], [0], [1], [0, 0, 1, 1], [], []>} : vector<128x64xbf16>, vector<64x128xbf16>, vector<128x128xf32> -> vector<128x128xf32>
    %308 = arith.addf %299, %307 : vector<128x128xf32>
    %c8_191 = arith.constant 8 : index
    %c0_192 = arith.constant 0 : index
    %309 = vector.load %arg16[%c8_191, %c0_192] : memref<160x64xbf16, #tpu.memory_space<vmem>>, vector<128x64xbf16>
    %c1_193 = arith.constant 1 : index
    %c0_194 = arith.constant 0 : index
    %c0_195 = arith.constant 0 : index
    %310 = vector.load %arg11[%c1_193, %c0_194, %c0_195] : memref<9x64x128xbf16, #tpu.memory_space<vmem>>, vector<1x64x128xbf16>
    %311 = vector.shape_cast %310 : vector<1x64x128xbf16> to vector<64x128xbf16>
    %cst_196 = arith.constant dense<0.000000e+00> : vector<128x128xf32>
    %312 = tpu.matmul %309, %311, %cst_196 {dimension_numbers = #tpu.dot_dimension_numbers<[1], [0], [0], [1], [0, 0, 1, 1], [], []>} : vector<128x64xbf16>, vector<64x128xbf16>, vector<128x128xf32> -> vector<128x128xf32>
    %313 = arith.addf %308, %312 : vector<128x128xf32>
    %c9_197 = arith.constant 9 : index
    %c0_198 = arith.constant 0 : index
    %314 = vector.load %arg16[%c9_197, %c0_198] : memref<160x64xbf16, #tpu.memory_space<vmem>>, vector<128x64xbf16>
    %cst_199 = arith.constant 0.000000e+00 : bf16
    %315 = vector.broadcast %cst_199 : bf16 to vector<128x64xbf16>
    %316 = vector.shape_cast %20 : vector<128x1xi1> to vector<128x1xi1>
    %317 = vector.broadcast %316 : vector<128x1xi1> to vector<128x64xi1>
    %318 = arith.select %317, %314, %315 : vector<128x64xi1>, vector<128x64xbf16>
    %c2_200 = arith.constant 2 : index
    %c0_201 = arith.constant 0 : index
    %c0_202 = arith.constant 0 : index
    %319 = vector.load %arg11[%c2_200, %c0_201, %c0_202] : memref<9x64x128xbf16, #tpu.memory_space<vmem>>, vector<1x64x128xbf16>
    %320 = vector.shape_cast %319 : vector<1x64x128xbf16> to vector<64x128xbf16>
    %cst_203 = arith.constant dense<0.000000e+00> : vector<128x128xf32>
    %321 = tpu.matmul %318, %320, %cst_203 {dimension_numbers = #tpu.dot_dimension_numbers<[1], [0], [0], [1], [0, 0, 1, 1], [], []>} : vector<128x64xbf16>, vector<64x128xbf16>, vector<128x128xf32> -> vector<128x128xf32>
    %322 = arith.addf %313, %321 : vector<128x128xf32>
    %c15_204 = arith.constant 15 : index
    %c0_205 = arith.constant 0 : index
    %323 = vector.load %arg16[%c15_204, %c0_205] : memref<160x64xbf16, #tpu.memory_space<vmem>>, vector<128x64xbf16>
    %cst_206 = arith.constant 0.000000e+00 : bf16
    %324 = vector.broadcast %cst_206 : bf16 to vector<128x64xbf16>
    %325 = vector.shape_cast %18 : vector<128x1xi1> to vector<128x1xi1>
    %326 = vector.broadcast %325 : vector<128x1xi1> to vector<128x64xi1>
    %327 = arith.select %326, %323, %324 : vector<128x64xi1>, vector<128x64xbf16>
    %c3_207 = arith.constant 3 : index
    %c0_208 = arith.constant 0 : index
    %c0_209 = arith.constant 0 : index
    %328 = vector.load %arg11[%c3_207, %c0_208, %c0_209] : memref<9x64x128xbf16, #tpu.memory_space<vmem>>, vector<1x64x128xbf16>
    %329 = vector.shape_cast %328 : vector<1x64x128xbf16> to vector<64x128xbf16>
    %cst_210 = arith.constant dense<0.000000e+00> : vector<128x128xf32>
    %330 = tpu.matmul %327, %329, %cst_210 {dimension_numbers = #tpu.dot_dimension_numbers<[1], [0], [0], [1], [0, 0, 1, 1], [], []>} : vector<128x64xbf16>, vector<64x128xbf16>, vector<128x128xf32> -> vector<128x128xf32>
    %331 = arith.addf %322, %330 : vector<128x128xf32>
    %c16_211 = arith.constant 16 : index
    %c0_212 = arith.constant 0 : index
    %332 = vector.load %arg16[%c16_211, %c0_212] : memref<160x64xbf16, #tpu.memory_space<vmem>>, vector<128x64xbf16>
    %c4_213 = arith.constant 4 : index
    %c0_214 = arith.constant 0 : index
    %c0_215 = arith.constant 0 : index
    %333 = vector.load %arg11[%c4_213, %c0_214, %c0_215] : memref<9x64x128xbf16, #tpu.memory_space<vmem>>, vector<1x64x128xbf16>
    %334 = vector.shape_cast %333 : vector<1x64x128xbf16> to vector<64x128xbf16>
    %cst_216 = arith.constant dense<0.000000e+00> : vector<128x128xf32>
    %335 = tpu.matmul %332, %334, %cst_216 {dimension_numbers = #tpu.dot_dimension_numbers<[1], [0], [0], [1], [0, 0, 1, 1], [], []>} : vector<128x64xbf16>, vector<64x128xbf16>, vector<128x128xf32> -> vector<128x128xf32>
    %336 = arith.addf %331, %335 : vector<128x128xf32>
    %c17_217 = arith.constant 17 : index
    %c0_218 = arith.constant 0 : index
    %337 = vector.load %arg16[%c17_217, %c0_218] : memref<160x64xbf16, #tpu.memory_space<vmem>>, vector<128x64xbf16>
    %cst_219 = arith.constant 0.000000e+00 : bf16
    %338 = vector.broadcast %cst_219 : bf16 to vector<128x64xbf16>
    %339 = vector.shape_cast %20 : vector<128x1xi1> to vector<128x1xi1>
    %340 = vector.broadcast %339 : vector<128x1xi1> to vector<128x64xi1>
    %341 = arith.select %340, %337, %338 : vector<128x64xi1>, vector<128x64xbf16>
    %c5_220 = arith.constant 5 : index
    %c0_221 = arith.constant 0 : index
    %c0_222 = arith.constant 0 : index
    %342 = vector.load %arg11[%c5_220, %c0_221, %c0_222] : memref<9x64x128xbf16, #tpu.memory_space<vmem>>, vector<1x64x128xbf16>
    %343 = vector.shape_cast %342 : vector<1x64x128xbf16> to vector<64x128xbf16>
    %cst_223 = arith.constant dense<0.000000e+00> : vector<128x128xf32>
    %344 = tpu.matmul %341, %343, %cst_223 {dimension_numbers = #tpu.dot_dimension_numbers<[1], [0], [0], [1], [0, 0, 1, 1], [], []>} : vector<128x64xbf16>, vector<64x128xbf16>, vector<128x128xf32> -> vector<128x128xf32>
    %345 = arith.addf %336, %344 : vector<128x128xf32>
    %c23_224 = arith.constant 23 : index
    %c0_225 = arith.constant 0 : index
    %346 = vector.load %arg16[%c23_224, %c0_225] : memref<160x64xbf16, #tpu.memory_space<vmem>>, vector<128x64xbf16>
    %cst_226 = arith.constant 0.000000e+00 : bf16
    %347 = vector.broadcast %cst_226 : bf16 to vector<128x64xbf16>
    %348 = vector.shape_cast %18 : vector<128x1xi1> to vector<128x1xi1>
    %349 = vector.broadcast %348 : vector<128x1xi1> to vector<128x64xi1>
    %350 = arith.select %349, %346, %347 : vector<128x64xi1>, vector<128x64xbf16>
    %c6_227 = arith.constant 6 : index
    %c0_228 = arith.constant 0 : index
    %c0_229 = arith.constant 0 : index
    %351 = vector.load %arg11[%c6_227, %c0_228, %c0_229] : memref<9x64x128xbf16, #tpu.memory_space<vmem>>, vector<1x64x128xbf16>
    %352 = vector.shape_cast %351 : vector<1x64x128xbf16> to vector<64x128xbf16>
    %cst_230 = arith.constant dense<0.000000e+00> : vector<128x128xf32>
    %353 = tpu.matmul %350, %352, %cst_230 {dimension_numbers = #tpu.dot_dimension_numbers<[1], [0], [0], [1], [0, 0, 1, 1], [], []>} : vector<128x64xbf16>, vector<64x128xbf16>, vector<128x128xf32> -> vector<128x128xf32>
    %354 = arith.addf %345, %353 : vector<128x128xf32>
    %c24_231 = arith.constant 24 : index
    %c0_232 = arith.constant 0 : index
    %355 = vector.load %arg16[%c24_231, %c0_232] : memref<160x64xbf16, #tpu.memory_space<vmem>>, vector<128x64xbf16>
    %c7_233 = arith.constant 7 : index
    %c0_234 = arith.constant 0 : index
    %c0_235 = arith.constant 0 : index
    %356 = vector.load %arg11[%c7_233, %c0_234, %c0_235] : memref<9x64x128xbf16, #tpu.memory_space<vmem>>, vector<1x64x128xbf16>
    %357 = vector.shape_cast %356 : vector<1x64x128xbf16> to vector<64x128xbf16>
    %cst_236 = arith.constant dense<0.000000e+00> : vector<128x128xf32>
    %358 = tpu.matmul %355, %357, %cst_236 {dimension_numbers = #tpu.dot_dimension_numbers<[1], [0], [0], [1], [0, 0, 1, 1], [], []>} : vector<128x64xbf16>, vector<64x128xbf16>, vector<128x128xf32> -> vector<128x128xf32>
    %359 = arith.addf %354, %358 : vector<128x128xf32>
    %c25_237 = arith.constant 25 : index
    %c0_238 = arith.constant 0 : index
    %360 = vector.load %arg16[%c25_237, %c0_238] : memref<160x64xbf16, #tpu.memory_space<vmem>>, vector<128x64xbf16>
    %cst_239 = arith.constant 0.000000e+00 : bf16
    %361 = vector.broadcast %cst_239 : bf16 to vector<128x64xbf16>
    %362 = vector.shape_cast %20 : vector<128x1xi1> to vector<128x1xi1>
    %363 = vector.broadcast %362 : vector<128x1xi1> to vector<128x64xi1>
    %364 = arith.select %363, %360, %361 : vector<128x64xi1>, vector<128x64xbf16>
    %c8_240 = arith.constant 8 : index
    %c0_241 = arith.constant 0 : index
    %c0_242 = arith.constant 0 : index
    %365 = vector.load %arg11[%c8_240, %c0_241, %c0_242] : memref<9x64x128xbf16, #tpu.memory_space<vmem>>, vector<1x64x128xbf16>
    %366 = vector.shape_cast %365 : vector<1x64x128xbf16> to vector<64x128xbf16>
    %cst_243 = arith.constant dense<0.000000e+00> : vector<128x128xf32>
    %367 = tpu.matmul %364, %366, %cst_243 {dimension_numbers = #tpu.dot_dimension_numbers<[1], [0], [0], [1], [0, 0, 1, 1], [], []>} : vector<128x64xbf16>, vector<64x128xbf16>, vector<128x128xf32> -> vector<128x128xf32>
    %368 = arith.addf %359, %367 : vector<128x128xf32>
    %c0_244 = arith.constant 0 : index
    %c0_245 = arith.constant 0 : index
    %369 = vector.load %arg12[%c0_244, %c0_245] : memref<1x128xf32, #tpu.memory_space<vmem>>, vector<1x128xf32>
    %370 = vector.broadcast %369 : vector<1x128xf32> to vector<128x128xf32>
    %371 = arith.addf %368, %370 : vector<128x128xf32>
    %cst_246 = arith.constant 0.000000e+00 : f32
    %372 = vector.broadcast %cst_246 : f32 to vector<128x128xf32>
    %373 = arith.maximumf %371, %372 : vector<128x128xf32>
    %374 = arith.truncf %373 : vector<128x128xf32> to vector<128x128xbf16>
    %c0_247 = arith.constant 0 : index
    %c0_248 = arith.constant 0 : index
    %375 = vector.load %arg13[%c0_247, %c0_248] : memref<128x32xbf16, #tpu.memory_space<vmem>>, vector<128x32xbf16>
    %cst_249 = arith.constant dense<0.000000e+00> : vector<128x32xf32>
    %376 = tpu.matmul %374, %375, %cst_249 {dimension_numbers = #tpu.dot_dimension_numbers<[1], [0], [0], [1], [0, 0, 1, 1], [], []>} : vector<128x128xbf16>, vector<128x32xbf16>, vector<128x32xf32> -> vector<128x32xf32>
    %c0_250 = arith.constant 0 : index
    %c0_251 = arith.constant 0 : index
    %377 = vector.load %arg14[%c0_250, %c0_251] : memref<1x32xf32, #tpu.memory_space<vmem>>, vector<1x32xf32>
    %378 = vector.broadcast %377 : vector<1x32xf32> to vector<128x32xf32>
    %379 = arith.addf %376, %378 : vector<128x32xf32>
    %380 = arith.addf %379, %194 : vector<128x32xf32>
    %cst_252 = arith.constant 0.000000e+00 : f32
    %381 = vector.broadcast %cst_252 : f32 to vector<128x32xf32>
    %382 = arith.maximumf %380, %381 : vector<128x32xf32>
    %c0_253 = arith.constant 0 : index
    %c0_254 = arith.constant 0 : index
    %c0_255 = arith.constant 0 : index
    %383 = vector.load %arg15[%c0_253, %c0_254, %c0_255] : memref<1x128x32xf32, #tpu.memory_space<vmem>>, vector<1x128x32xf32>
    %384 = vector.shape_cast %383 : vector<1x128x32xf32> to vector<128x32xf32>
    %385 = vector.shape_cast %382 : vector<128x32xf32> to vector<1x128x32xf32>
    tpu.vector_store %arg15[%c0_253, %c0_254, %c0_255], %385 {strides = array<i32>} : memref<1x128x32xf32, #tpu.memory_space<vmem>>, vector<1x128x32xf32>,
    return
  }
  func.func @transform_0(%arg0: i32) -> (i32, i32, i32) {
    %c0_i32 = arith.constant 0 : i32
    %c0_i32_0 = arith.constant 0 : i32
    %c0_i32_1 = arith.constant 0 : i32
    return %arg0, %c0_i32, %c0_i32_0 : i32, i32, i32
  }
  func.func @transform_1(%arg0: i32) -> (i32, i32, i32) {
    %c0_i32 = arith.constant 0 : i32
    %c0_i32_0 = arith.constant 0 : i32
    %c0_i32_1 = arith.constant 0 : i32
    return %arg0, %c0_i32, %c0_i32_0 : i32, i32, i32
  }
  func.func @transform_2(%arg0: i32) -> (i32, i32, i32) {
    %c0_i32 = arith.constant 0 : i32
    %c0_i32_0 = arith.constant 0 : i32
    %c0_i32_1 = arith.constant 0 : i32
    %c0_i32_2 = arith.constant 0 : i32
    return %c0_i32, %c0_i32_0, %c0_i32_1 : i32, i32, i32
  }
  func.func @transform_3(%arg0: i32) -> (i32, i32) {
    %c0_i32 = arith.constant 0 : i32
    %c0_i32_0 = arith.constant 0 : i32
    %c0_i32_1 = arith.constant 0 : i32
    return %c0_i32, %c0_i32_0 : i32, i32
  }
  func.func @transform_4(%arg0: i32) -> (i32, i32) {
    %c0_i32 = arith.constant 0 : i32
    %c0_i32_0 = arith.constant 0 : i32
    %c0_i32_1 = arith.constant 0 : i32
    return %c0_i32, %c0_i32_0 : i32, i32
  }
  func.func @transform_5(%arg0: i32) -> (i32, i32) {
    %c0_i32 = arith.constant 0 : i32
    %c0_i32_0 = arith.constant 0 : i32
    %c0_i32_1 = arith.constant 0 : i32
    return %c0_i32, %c0_i32_0 : i32, i32
  }
  func.func @transform_6(%arg0: i32) -> (i32, i32, i32) {
    %c0_i32 = arith.constant 0 : i32
    %c0_i32_0 = arith.constant 0 : i32
    %c0_i32_1 = arith.constant 0 : i32
    %c0_i32_2 = arith.constant 0 : i32
    return %c0_i32, %c0_i32_0, %c0_i32_1 : i32, i32, i32
  }
  func.func @transform_7(%arg0: i32) -> (i32, i32) {
    %c0_i32 = arith.constant 0 : i32
    %c0_i32_0 = arith.constant 0 : i32
    %c0_i32_1 = arith.constant 0 : i32
    return %c0_i32, %c0_i32_0 : i32, i32
  }
  func.func @transform_8(%arg0: i32) -> (i32, i32) {
    %c0_i32 = arith.constant 0 : i32
    %c0_i32_0 = arith.constant 0 : i32
    %c0_i32_1 = arith.constant 0 : i32
    return %c0_i32, %c0_i32_0 : i32, i32
  }
  func.func @transform_9(%arg0: i32) -> (i32, i32) {
    %c0_i32 = arith.constant 0 : i32
    %c0_i32_0 = arith.constant 0 : i32
    %c0_i32_1 = arith.constant 0 : i32
    return %c0_i32, %c0_i32_0 : i32, i32
  }
  func.func @transform_10(%arg0: i32) -> (i32, i32, i32) {
    %c0_i32 = arith.constant 0 : i32
    %c0_i32_0 = arith.constant 0 : i32
    %c0_i32_1 = arith.constant 0 : i32
    %c0_i32_2 = arith.constant 0 : i32
    return %c0_i32, %c0_i32_0, %c0_i32_1 : i32, i32, i32
  }
  func.func @transform_11(%arg0: i32) -> (i32, i32) {
    %c0_i32 = arith.constant 0 : i32
    %c0_i32_0 = arith.constant 0 : i32
    %c0_i32_1 = arith.constant 0 : i32
    return %c0_i32, %c0_i32_0 : i32, i32
  }
  func.func @transform_12(%arg0: i32) -> (i32, i32) {
    %c0_i32 = arith.constant 0 : i32
    %c0_i32_0 = arith.constant 0 : i32
    %c0_i32_1 = arith.constant 0 : i32
    return %c0_i32, %c0_i32_0 : i32, i32
  }
  func.func @transform_13(%arg0: i32) -> (i32, i32) {
    %c0_i32 = arith.constant 0 : i32
    %c0_i32_0 = arith.constant 0 : i32
    %c0_i32_1 = arith.constant 0 : i32
    return %c0_i32, %c0_i32_0 : i32, i32
  }
  func.func @transform_14(%arg0: i32) -> (i32, i32, i32) {
    %c0_i32 = arith.constant 0 : i32
    %c0_i32_0 = arith.constant 0 : i32
    %c0_i32_1 = arith.constant 0 : i32
    return %arg0, %c0_i32, %c0_i32_0 : i32, i32, i32
  }
}

</mosaic_0001>

<bundles_post_ra>
// kernel: tpu_custom_call.1
= control target key start
LH: loop header
LB: loop body
LE: loop exit
PB: predicated region body
PF: predicated region fallthrough
CT: control target
= control target key end

     0   :  { %19 = vsyncpa [#allocation4], 0  ;;  %s10015_s29 = smov 0   ;;  %s14214_s0 = inlined_call_operand.vmem [shape: f32[2,128,32], index: 0, kind: input, shape index: {}]   ;;  %s14215_s1 = inlined_call_operand.vmem [shape: f32[2,64,32], index: 1, kind: input, shape index: {}]   ;;  %s14216_s2 = inlined_call_operand.vmem [shape: bf16[9,32,64], index: 2, kind: input, shape index: {}]   ;;  %s14217_s3 = inlined_call_operand.vmem [shape: f32[1,64], index: 3, kind: input, shape index: {}]   ;;  %s14218_s4 = inlined_call_operand.vmem [shape: bf16[64,32], index: 4, kind: input, shape index: {}]   ;;  %s14219_s5 = inlined_call_operand.vmem [shape: f32[1,32], index: 5, kind: input, shape index: {}]   ;;  %s14220_s6 = inlined_call_operand.hbm [shape: bf16[9,32,64], index: 6, kind: input, shape index: {}]   ;;  %s14221_s7 = inlined_call_operand.vmem [shape: f32[1,64], index: 7, kind: input, shape index: {}]   ;;  %s14222_s8 = inlined_call_operand.vmem [shape: bf16[64,32], index: 8, kind: input, shape index: {}]   ;;  %s14223_s9 = inlined_call_operand.vmem [shape: f32[1,32], index: 9, kind: input, shape index: {}]   ;;  %s14224_s10 = inlined_call_operand.vmem [shape: bf16[9,64,128], index: 10, kind: input, shape index: {}]   ;;  %s14225_s11 = inlined_call_operand.vmem [shape: f32[1,128], index: 11, kind: input, shape index: {}]   ;;  %s14226_s12 = inlined_call_operand.vmem [shape: bf16[128,32], index: 12, kind: input, shape index: {}]   ;;  %s14227_s13 = inlined_call_operand.vmem [shape: f32[1,32], index: 13, kind: input, shape index: {}]   ;;  %s14228_s14 = inlined_call_operand.vmem [shape: f32[2,128,32], index: 14, kind: output, shape index: {}]  }
   0x1 LB: > { %s383_s16 = sshll.u32 %s14220_s6, 4  ;;  %s8592_s17 = sadd.s32 4294967295, %s9933_s29   ;;  %s9933_s29 = sphi %s10015_s29, %s25_s29   ;;  %s384_s16 = int_to_ptr.hbm [resolvable:$true] %s383_s16 }
   0x2   : > { %p8594_p0 = scmp.ge.s32.totalorder %s9933_s29, 1  ;;  %p360_p1 = scmp.lt.s32.totalorder %s9933_s29, 3 }
   0x3   : > { %p9810_p2 = scmp.eq.s32.totalorder %s8592_s17, 0  ;;  %s9935_s18 = smov [#allocation3]  }
   0x4   : > { %p361_p3 = pnand %p8594_p0, %p360_p1  ;;  %s385_s19 = sshll.u32 %s9935_s18, 4  ;;  %s386_s19 = int_to_ptr.vmem [resolvable:$true] %s385_s19 }
   0x5   : > { %s9936_s20 = smov 64   ;;  %s9937_s21 = smov 4  }
   0x6   : > { %p9806_p4 = pneg %p361_p3  ;;  %438 = sbr.rel (%p361_p3) target bundleno = 1684 (0x694), region = 76 }
   0x8   : > { %p9807_p5 = pnand %p9810_p2, %p9806_p4 }
   0xa   : > { %9809 = dma.hbm_to_vmem [thread:$0]  (!%p9807_p5), %s384_s16, 2304, %s386_s19, [#allocation4], %s9936_s20, %s9936_s20, %s9937_s21  }
   0xb   : > { %9928 = dma.done.wait (%p9810_p2), [#allocation4], 2304  }
   0xc   : > { %9930 = vsyncadd (%p9810_p2), [#allocation4], 4294964992  ;;  %p490_p6 = scmp.lt.s32.totalorder %s8592_s17, 1  ;;  %vm14229_vm0 = vcmask 519168   ;;  %v508_v0 = vlaneseq  ;;  %v14258_v1 = vmov 0   ;;  %v9589_v9 = vld [vmem:[%s14216_s2 + $0x18] sm:$0xff] }
   0xd   : > { %751 = vst.msk [vmem:[#allocation2 + $0x4] sm:$0xf] %vm14229_vm0, %v14258_v1  ;;  %vm14230_vm1 = vcmask 257024   ;;  %9798 = vmatpush.bf16.msra.mxu2 %v9589_v9  ;;  %v9588_v18 = vld [vmem:[%s14216_s2 + $0x10] sm:$0xff]  ;;  %vm14231_vm2 = vcmask 261120   ;;  %1274 = vmatpush.bf16.msra.mxu0 %v9589_v9  ;;  %v14548_v20 = vmov 0  ;;  %v10119_v31 = vunpack.c.l.b16 %v14258_v1 }
   0xe   : > { %s15724_s17 = smov (!%p490_p6, %s8592_s17), 1  ;;  %v10030_v2 = vshrl.u32 %v508_v0, 7  ;;  %750 = vst.msk [vmem:[#allocation2] sm:$0xf] %vm14229_vm0, %v14258_v1  ;;  %vm884_vm3 = vsmask.f32 3328  ;;  %v10195_v63 = vunpack.c.h.b16 %v14258_v1 }
   0xf   : > { %s9575_s22 = sshll.u32 %s15724_s17, 7  ;;  %752 = vst.msk [vmem:[#allocation2 + $0x48] sm:$0xf] %vm14229_vm0, %v14258_v1  ;;  %vm885_vm4 = vsmask.f32 7440  ;;  %v14551_v21 = vmov 0 }
  0x10   : > { %v10038_v3 = vadd.s32 8, %v10030_v2  ;;  %v10041_v4 = vadd.s32 16, %v10030_v2  ;;  %s10048_s25 = scalar_lea.vmem %s14214_s0, %s9575_s22  ;;  %753 = vst.msk [vmem:[#allocation2 + $0x4c] sm:$0xf] %vm14229_vm0, %v14258_v1  ;;  %v10053_v5 = vadd.s32 24, %v10030_v2  ;;  %v14250_v6 = vand.u32 7, %v10030_v2  ;;  %vm10130_vm9 = vmor %vm884_vm3, %vm885_vm4  ;;  %s14119_s18 = scalar_lea.vmem %s14228_s14, %s9575_s22 }
  0x11   : > { %v761_v10 = vld [vmem:[%s10048_s25 + $0x38] sm:$0xff]  ;;  %v10064_v12 = vadd.s32 56, %v10030_v2  ;;  %v762_v13 = vld [vmem:[%s10048_s25 + $0x40] sm:$0xff]  ;;  %v10068_v15 = vadd.s32 64, %v10030_v2  ;;  %v10071_v16 = vadd.s32 72, %v10030_v2  ;;  %v10074_v17 = vadd.s32 80, %v10030_v2  ;;  %9799 = vmatpush.bf16.msra.mxu2 %v9588_v18  ;;  %1275 = vmatpush.bf16.msra.mxu0 %v9588_v18 }
  0x12   : > { %v14249_v7 = vand.u32 7, %v10038_v3  ;;  %v14248_v8 = vand.u32 7, %v10041_v4  ;;  %v14247_v11 = vand.u32 7, %v10053_v5  ;;  %v777_v14 = vpack.c.bf16 %v761_v10, %v761_v10  ;;  %v9587_v24 = vld [vmem:[%s14216_s2 + $0x8] sm:$0xff]  ;;  %v754_v28 = vld [vmem:[%s10048_s25] sm:$0xff]  ;;  %v764_v30 = vld [vmem:[%s10048_s25 + $0x50] sm:$0xff] }
  0x13   : > { %v778_v19 = vpack.c.bf16 %v762_v13, %v762_v13  ;;  %vm10082_vm5 = vcmp.gt.s32.totalorder %v14250_v6, 0  ;;  %v14554_v22 = vmov 0  ;;  %v10099_v23 = vadd.s32 88, %v10030_v2  ;;  %v9598_v25 = vld [vmem:[%s14216_s2 + $0x28] sm:$0xff]  ;;  %1483 = vmatpush.bf16.msra.mxu1 %v9587_v24  ;;  %v9586_v35 = vld [vmem:[%s14216_s2] sm:$0xff]  ;;  %9800 = vmatpush.bf16.msra.mxu3 %v9587_v24  ;;  %v760_v46 = vld [vmem:[%s10048_s25 + $0x30] sm:$0xff] }
  0x14   : > { %794 = vst.msk [vmem:[#allocation2 + $0x24] sm:$0xf] %vm14230_vm1, %v777_v14  ;;  %v14549_v20 = vsel %vm10082_vm5, 4294967295, %v14548_v20  ;;  %vm10088_vm6 = vcmp.gt.s32.totalorder %v14249_v7, 0  ;;  %vm10094_vm7 = vcmp.gt.s32.totalorder %v14248_v8, 0  ;;  %vm10110_vm8 = vcmp.gt.s32.totalorder %v14247_v11, 0  ;;  %vm852_vm10 = vmpackc.low %vm10082_vm5, %vm10082_vm5 }
  0x15   : > { %14550 = vst [vmem:[#allocation6_spill] sm:$0xff] %v14549_v20  ;;  %v14552_v21 = vsel %vm10088_vm6, 4294967295, %v14551_v21  ;;  %v14555_v22 = vsel %vm10094_vm7, 4294967295, %v14554_v22  ;;  %v14557_v26 = vmov 0  ;;  %v14237_v27 = vand.u32 7, %v10064_v12  ;;  %v763_v29 = vld [vmem:[%s10048_s25 + $0x48] sm:$0xff]  ;;  %2048 = vmatpush.bf16.msrb.mxu2 %v9598_v25  ;;  %vm853_vm14 = vmpackc.low %vm10088_vm6, %vm10088_vm6 }
  0x16   : > { %14553 = vst [vmem:[#allocation7_spill] sm:$0xff] %v14552_v21  ;;  %v14558_v26 = vsel %vm10110_vm8, 4294967295, %v14557_v26  ;;  %v14236_v32 = vand.u32 7, %v10068_v15  ;;  %v14235_v33 = vand.u32 7, %v10071_v16  ;;  %v14234_v34 = vand.u32 7, %v10074_v17  ;;  %v755_v39 = vld [vmem:[%s10048_s25 + $0x8] sm:$0xff]  ;;  %vm854_vm4 = vmpackc.low %vm10094_vm7, %vm10094_vm7 }
  0x17   : > { %14556 = vst [vmem:[#allocation8_spill] sm:$0xff] %v14555_v22  ;;  %v770_v36 = vpack.c.bf16 %v754_v28, %v754_v28  ;;  %v779_v37 = vpack.c.bf16 %v763_v29, %v763_v29  ;;  %v780_v38 = vpack.c.bf16 %v764_v30, %v764_v30  ;;  %v14233_v41 = vand.u32 7, %v10099_v23  ;;  %1484 = vmatpush.bf16.msra.mxu1 %v9586_v35  ;;  %v9615_v40 = vld [vmem:[%s14216_s2 + $0x68] sm:$0xff]  ;;  %s9576_s26 = sshll.u32 %s15724_s17, 6  ;;  %s9939_s15 = smov 32  }
  0x18   : > { %795 = vst.msk [vmem:[#allocation2 + $0x28] sm:$0xf] %vm14230_vm1, %v778_v19  ;;  %v771_v42 = vpack.c.bf16 %v755_v39, %v755_v39  ;;  %vm10140_vm11 = vcmp.gt.s32.totalorder %v14237_v27, 0  ;;  %v14562_v43 = vmov 0  ;;  %vm10146_vm12 = vcmp.gt.s32.totalorder %v14236_v32, 0  ;;  %9801 = vmatpush.bf16.msra.mxu3 %v9586_v35  ;;  %s11694_s30 = scalar_lea.vmem %s14215_s1, %s9576_s26 }
  0x19   : > { %14559 = vst [vmem:[#allocation9_spill] sm:$0xff] %v14558_v26  ;;  %v14563_v43 = vsel %vm10140_vm11, 4294967295, %v14562_v43  ;;  %v14565_v44 = vmov 0  ;;  %vm10152_vm13 = vcmp.gt.s32.totalorder %v14235_v33, 0  ;;  %v14568_v45 = vmov 0 }
  0x1a   : > { %14564 = vst [vmem:[#allocation10_spill] sm:$0xff] %v14563_v43  ;;  %v14566_v44 = vsel %vm10146_vm12, 4294967295, %v14565_v44  ;;  %v14569_v45 = vsel %vm10152_vm13, 4294967295, %v14568_v45  ;;  %v868_v47 = vsel %vm852_vm10, 65537, %v14258_v1  ;;  %vm10164_vm15 = vcmp.gt.s32.totalorder %v14234_v34, 0  ;;  %vm855_vm10 = vmpackc.low %vm10110_vm8, %vm10110_vm8 }
  0x1b   : > { %14567 = vst [vmem:[#allocation11_spill] sm:$0xff] %v14566_v44  ;;  %v14571_v48 = vmov 0  ;;  %vm10170_vm3 = vcmp.gt.s32.totalorder %v14233_v41, 0  ;;  %v14574_v49 = vmov 0  ;;  %v776_v50 = vpack.c.bf16 %v760_v46, %v760_v46  ;;  %v803_v39 = vld [vmem:[#allocation2] sm:$0x8] }
  0x1c   : > { %14570 = vst [vmem:[#allocation12_spill] sm:$0xff] %v14569_v45  ;;  %v14572_v48 = vsel %vm10164_vm15, 4294967295, %v14571_v48  ;;  %v14575_v49 = vsel %vm10170_vm3, 4294967295, %v14574_v49  ;;  %v869_v51 = vsel %vm853_vm14, 65537, %v14258_v1  ;;  %v888_v52 = vshll.u32 %v868_v47, 16  ;;  %vm859_vm14 = vmpackc.low %vm10140_vm11, %vm10140_vm11 }
  0x1d   : > { %787 = vst.msk [vmem:[#allocation2 + $0x8] sm:$0xf] %vm14230_vm1, %v770_v36  ;;  %v891_v53 = vshrl.u32 %v868_v47, 16  ;;  %v10180_v54 = vadd.s32 32, %v10030_v2  ;;  %v870_v55 = vsel %vm854_vm4, 65537, %v14258_v1  ;;  %v897_v56 = vshll.u32 %v869_v51, 16  ;;  %vm860_vm4 = vmpackc.low %vm10146_vm12, %vm10146_vm12 }
  0x1e   : > { %14573 = vst [vmem:[#allocation13_spill] sm:$0xff] %v14572_v48  ;;  %v901_v57 = vshrl.u32 %v869_v51, 16  ;;  %v10188_v58 = vadd.s32 40, %v10030_v2  ;;  %v10192_v60 = vsel %vm855_vm10, 65537, %v14258_v1  ;;  %v890_v61 = vrot.slane %v888_v52, 5 }
  0x1f   : > { %14576 = vst [vmem:[#allocation14_spill] sm:$0xff] %v14575_v49  ;;  %v9582_v59 = vld [vmem:[#allocation2 + $0x24] sm:$0xff]  ;;  %v893_v62 = vrot.slane %v891_v53, 4  ;;  %v899_v0 = vrot.slane %v897_v56, 5  ;;  %v907_v10 = vshll.u32 %v870_v55, 16  ;;  %v911_v13 = vshrl.u32 %v870_v55, 16 }
  0x20   : > { %796 = vst.msk [vmem:[#allocation2 + $0x2c] sm:$0xf] %vm14230_vm1, %v779_v37  ;;  %v903_v9 = vrot.slane %v901_v57, 4  ;;  %8653 = vmatmul.msk.bf16.vlgmr.msra.gmra.mxu2 %vm14231_vm2, %v9582_v59  ;;  %v917_v18 = vshll.u32 %v10192_v60, 16  ;;  %v921_v19 = vshrl.u32 %v10192_v60, 16  ;;  %v1046_v24 = vunpack.c.l.b16 %v890_v61  ;;  %vm863_vm2 = vmpackc.low %vm10170_vm3, %vm10170_vm3 }
  0x21   : > { %797 = vst.msk [vmem:[#allocation2 + $0x30] sm:$0xf] %vm14230_vm1, %v780_v38  ;;  %v894_v14 = vor.u32 %v893_v62, %v890_v61  ;;  %v909_v28 = vrot.slane %v907_v10, 5  ;;  %v913_v29 = vrot.slane %v911_v13, 4  ;;  %v1047_v30 = vunpack.c.h.b16 %v890_v61  ;;  %v804_v62 = vld [vmem:[#allocation2 + $0x4] sm:$0xf] }
  0x22   : > { %788 = vst.msk [vmem:[#allocation2 + $0xc] sm:$0xf] %vm14230_vm1, %v771_v42  ;;  %v904_v25 = vor.u32 %v903_v9, %v899_v0  ;;  %v10213_v37 = vrot.slane %v917_v18, 5  ;;  %v875_v38 = vsel %vm859_vm14, 65537, %v14258_v1  ;;  %v876_v47 = vsel %vm860_vm4, 65537, %v14258_v1  ;;  %vm14581_vm14 = vmpackc.low %vm10152_vm13, %vm10152_vm13 }
  0x23   : > { %793 = vst.msk [vmem:[#allocation2 + $0x20] sm:$0xf] %vm14230_vm1, %v776_v50  ;;  %v895_v36 = vrot.slane %v894_v14, 4  ;;  %vm1050_vm1 = vcmp.ne.s32.totalorder %v1046_v24, %v10119_v31  ;;  %v914_v46 = vor.u32 %v913_v29, %v909_v28  ;;  %vm1051_vm0 = vcmp.ne.s32.totalorder %v1047_v30, %v10195_v63  ;;  %vm14582_vm4 = vmpackc.low %vm10164_vm15, %vm10164_vm15 }
  0x24   : > { %v9578_v35 = vld [vmem:[#allocation2 + $0x4] sm:$0xff]  ;;  %v905_v42 = vrot.slane %v904_v25, 4  ;;  %vm14577_vm10 = vcmask 261120   ;;  %vm10235_vm3 = vmpackc.low %vm1051_vm0, %vm1050_vm1  ;;  %v14578_v51 = vmov 0  ;;  %v877_v52 = vsel %vm14581_vm14, 65537, %v14258_v1 }
  0x25   : > { %8649 = vmatmul.msk.bf16.vlgmr.msra.gmra.mxu0 %vm14577_vm10, %v9578_v35  ;;  %v900_v50 = vsel %vm10130_vm9, %v895_v36, %v899_v0  ;;  %v14579_v51 = vsel %vm10235_vm3, 4294967295, %v14578_v51  ;;  %v10251_v53 = vsel %vm14582_vm4, 65537, %v14258_v1  ;;  %v10254_v55 = vsel %vm863_vm2, 65537, %v14258_v1  ;;  %v805_v14 = vld [vmem:[#allocation2 + $0x8] sm:$0xf] }
  0x26   : > { %14580 = vst [vmem:[#allocation15_spill] sm:$0xff] %v14579_v51  ;;  %v910_v56 = vsel %vm10130_vm9, %v905_v42, %v909_v28  ;;  %v915_v57 = vrot.slane %v914_v46, 4  ;;  %v1053_v59 = vunpack.c.l.b16 %v900_v50  ;;  %v1054_v61 = vunpack.c.h.b16 %v900_v50  ;;  %v9601_v50 = vld [vmem:[%s14216_s2 + $0x38] sm:$0xff] }
  0x27   : > { %v1060_v0 = vunpack.c.l.b16 %v910_v56  ;;  %v1061_v9 = vunpack.c.h.b16 %v910_v56  ;;  %v1165_v10 = vsel %vm10235_vm3, %v803_v39, 0  ;;  %v957_v13 = vshll.u32 %v875_v38, 16  ;;  %v9603_v56 = vld [vmem:[%s14216_s2 + $0x48] sm:$0xff]  ;;  %2296 = vmatpush.bf16.msrb.mxu3 %v9601_v50 }
  0x28   : > { %v920_v18 = vsel %vm10130_vm9, %v915_v57, %v10213_v37  ;;  %vm1057_vm0 = vcmp.ne.s32.totalorder %v1053_v59, %v10119_v31  ;;  %vm1058_vm1 = vcmp.ne.s32.totalorder %v1054_v61, %v10195_v63  ;;  %v1334_v24 = vunpack.c.l.b16 %v1165_v10  ;;  %2442 = vmatpush.bf16.msrb.mxu0 %v9603_v56  ;;  %v9583_v10 = vld [vmem:[#allocation2 + $0x2c] sm:$0xff] }
  0x29   : > { %v806_v25 = vld [vmem:[#allocation2 + $0xc] sm:$0xf]  ;;  %vm10265_vm2 = vmpackc.low %vm1058_vm1, %vm1057_vm0  ;;  %v14583_v28 = vmov 0  ;;  %vm1064_vm10 = vcmp.ne.s32.totalorder %v1060_v0, %v10119_v31  ;;  %vm1065_vm14 = vcmp.ne.s32.totalorder %v1061_v9, %v10195_v63  ;;  %v1067_v29 = vunpack.c.l.b16 %v920_v18 }
  0x2a   : > { %v14584_v28 = vsel %vm10265_vm2, 4294967295, %v14583_v28  ;;  %v1068_v30 = vunpack.c.h.b16 %v920_v18  ;;  %vm10271_vm4 = vmpackc.low %vm1065_vm14, %vm1064_vm10  ;;  %v14586_v35 = vmov 0  ;;  %v1166_v36 = vsel %vm10265_vm2, %v804_v62, 0 }
  0x2b   : > { %14585 = vst [vmem:[#allocation16_spill] sm:$0xff] %v14584_v28  ;;  %v14587_v35 = vsel %vm10271_vm4, 4294967295, %v14586_v35  ;;  %v10277_v39 = vrot.slane %v957_v13, 5  ;;  %v961_v42 = vshrl.u32 %v875_v38, 16  ;;  %v967_v46 = vshll.u32 %v876_v47, 16 }
  0x2c   : > { %14588 = vst [vmem:[#allocation17_spill] sm:$0xff] %v14587_v35  ;;  %vm1071_vm0 = vcmp.ne.s32.totalorder %v1067_v29, %v10119_v31  ;;  %vm1072_vm1 = vcmp.ne.s32.totalorder %v1068_v30, %v10195_v63  ;;  %v1167_v57 = vsel %vm10271_vm4, %v805_v14, 0  ;;  %v1335_v59 = vunpack.c.l.b16 %v1166_v36 }
  0x2d   : > { %vm10289_vm10 = vmpackc.low %vm1072_vm1, %vm1071_vm0  ;;  %v14589_v61 = vmov 0  ;;  %v1336_v38 = vunpack.c.l.b16 %v1167_v57  ;;  %v963_v62 = vrot.slane %v961_v42, 4  ;;  %v969_v0 = vrot.slane %v967_v46, 5 }
  0x2e   : > { %v14590_v61 = vsel %vm10289_vm10, 4294967295, %v14589_v61  ;;  %v971_v9 = vshrl.u32 %v876_v47, 16  ;;  %v1168_v13 = vsel %vm10289_vm10, %v806_v25, 0  ;;  %v1351_v18 = vpack.c.b16 %v1335_v59, %v1334_v24 }
  0x2f   : > { %14591 = vst [vmem:[#allocation18_spill] sm:$0xff] %v14590_v61  ;;  %vm14242_vm14 = vsmask.f32 4352  ;;  %v977_v29 = vshll.u32 %v877_v52, 16  ;;  %v981_v30 = vshrl.u32 %v877_v52, 16  ;;  %v1337_v14 = vunpack.c.l.b16 %v1168_v13 }
  0x30   : > { %v964_v36 = vor.u32 %v963_v62, %v10277_v39  ;;  %v973_v41 = vrot.slane %v971_v9, 4  ;;  %v987_v34 = vshll.u32 %v10251_v53, 16  ;;  %v1362_v57 = vshrl.u32 %v1351_v18, 16 }
  0x31   : > { %v1365_v42 = vshll.u32 %v1351_v18, 16  ;;  %v979_v46 = vrot.slane %v977_v29, 5  ;;  %v983_v47 = vrot.slane %v981_v30, 4  ;;  %v1352_v50 = vpack.c.b16 %v1337_v14, %v1336_v38 }
  0x32   : > { %v965_v56 = vrot.slane %v964_v36, 4  ;;  %v974_v33 = vor.u32 %v973_v41, %v969_v0  ;;  %v989_v32 = vrot.slane %v987_v34, 5  ;;  %vm14592_vm0 = vcmask 261120  }
  0x33   : > { %8654 = vmatmul.msk.bf16.gmra.mxu2 %vm14592_vm0, %v9583_v10  ;;  %v1364_v24 = vrot.slane %v1362_v57, 3  ;;  %v1367_v25 = vrot.slane %v1365_v42, 4  ;;  %v984_v59 = vor.u32 %v983_v47, %v979_v46  ;;  %v991_v52 = vshrl.u32 %v10251_v53, 16 }
  0x34   : > { %v1370_v13 = vshrl.u32 %v1352_v50, 16  ;;  %v1373_v62 = vshll.u32 %v1352_v50, 16  ;;  %v970_v9 = vsel %vm10130_vm9, %v965_v56, %v969_v0  ;;  %v975_v27 = vrot.slane %v974_v33, 4  ;;  %v756_v56 = vld [vmem:[%s10048_s25 + $0x10] sm:$0xff] }
  0x35   : > { %v1368_v18 = vor.u32 %v1367_v25, %v1364_v24  ;;  %v985_v29 = vrot.slane %v984_v59, 4  ;;  %v993_v38 = vrot.slane %v991_v52, 4  ;;  %v997_v41 = vshll.u32 %v10254_v55, 16  ;;  %v811_v24 = vld [vmem:[#allocation2 + $0x20] sm:$0xf]  ;;  %v765_v59 = vld [vmem:[%s10048_s25 + $0x58] sm:$0xff] }
  0x36   : > { %v1372_v34 = vrot.slane %v1370_v13, 3  ;;  %v1375_v30 = vrot.slane %v1373_v62, 4  ;;  %v980_v10 = vsel %vm10130_vm9, %v975_v27, %v979_v46  ;;  %v1102_v33 = vunpack.c.l.b16 %v970_v9  ;;  %v812_v52 = vld [vmem:[#allocation2 + $0x24] sm:$0xf]  ;;  %v813_v62 = vld [vmem:[#allocation2 + $0x28] sm:$0xf] }
  0x37   : > { %v990_v14 = vsel %vm10130_vm9, %v985_v29, %v989_v32  ;;  %v994_v36 = vor.u32 %v993_v38, %v989_v32  ;;  %v10307_v0 = vrot.slane %v997_v41, 5  ;;  %v1103_v42 = vunpack.c.h.b16 %v970_v9  ;;  %v766_v13 = vld [vmem:[%s10048_s25 + $0x60] sm:$0xff] }
  0x38   : > { %v10309_v57 = vor.u32 %v1375_v30, %v1372_v34  ;;  %v1109_v47 = vunpack.c.l.b16 %v980_v10  ;;  %v1110_v50 = vunpack.c.h.b16 %v980_v10  ;;  %vm1106_vm1 = vcmp.ne.s32.totalorder %v1102_v33, %v10119_v31 }
  0x39   : > { %v995_v25 = vrot.slane %v994_v36, 4  ;;  %v1116_v27 = vunpack.c.l.b16 %v990_v14  ;;  %v1117_v46 = vunpack.c.h.b16 %v990_v14  ;;  %vm1107_vm0 = vcmp.ne.s32.totalorder %v1103_v42, %v10195_v63  ;;  %v757_v14 = vld [vmem:[%s10048_s25 + $0x18] sm:$0xff]  ;;  %v814_v36 = vld [vmem:[#allocation2 + $0x2c] sm:$0xf] }
  0x3a   : > { %v1377_v32 = vsel %vm14242_vm14, %v1368_v18, %v10309_v57  ;;  %vm1113_vm15 = vcmp.ne.s32.totalorder %v1109_v47, %v10119_v31  ;;  %vm1114_vm13 = vcmp.ne.s32.totalorder %v1110_v50, %v10195_v63  ;;  %vm14593_vm12 = vcmask 261120   ;;  %vm10324_vm11 = vmpackc.low %vm1107_vm0, %vm1106_vm1 }
  0x3b   : > { %8665 = vmatmul.msk.bf16.vlgmr.msra.gmra.mxu1 %vm14593_vm12, %v1377_v32  ;;  %v1000_v9 = vsel %vm10130_vm9, %v995_v25, %v10307_v0  ;;  %v14594_v29 = vmov 0  ;;  %vm1120_vm14 = vcmp.ne.s32.totalorder %v1116_v27, %v10119_v31  ;;  %vm1121_vm8 = vcmp.ne.s32.totalorder %v1117_v46, %v10195_v63  ;;  %vm10330_vm7 = vmpackc.low %vm1114_vm13, %vm1113_vm15 }
  0x3c   : > { %v14595_v29 = vsel %vm10324_vm11, 4294967295, %v14594_v29  ;;  %v772_v18 = vpack.c.bf16 %v756_v56, %v756_v56  ;;  %v14597_v38 = vmov 0  ;;  %v1123_v41 = vunpack.c.l.b16 %v1000_v9  ;;  %vm10337_vm12 = vmpackc.low %vm1121_vm8, %vm1120_vm14 }
  0x3d   : > { %14596 = vst [vmem:[#allocation19_spill] sm:$0xff] %v14595_v29  ;;  %v14598_v38 = vsel %vm10330_vm7, 4294967295, %v14597_v38  ;;  %v1124_v34 = vunpack.c.h.b16 %v1000_v9  ;;  %v1173_v30 = vsel %vm10324_vm11, %v811_v24, 0  ;;  %v781_v10 = vpack.c.bf16 %v765_v59, %v765_v59 }
  0x3e   : > { %14599 = vst [vmem:[#allocation20_spill] sm:$0xff] %v14598_v38  ;;  %v14600_v33 = vmov 0  ;;  %v1174_v42 = vsel %vm10330_vm7, %v812_v52, 0  ;;  %v1342_v47 = vunpack.c.l.b16 %v1173_v30  ;;  %vm14603_vm13 = vcmask 257024  }
  0x3f   : > { %v14601_v33 = vsel %vm10337_vm12, 4294967295, %v14600_v33  ;;  %789 = vst.msk [vmem:[#allocation2 + $0x10] sm:$0xf] %vm14603_vm13, %v772_v18  ;;  %v782_v50 = vpack.c.bf16 %v766_v13, %v766_v13  ;;  %v14246_v56 = vand.u32 7, %v10180_v54  ;;  %vm1127_vm15 = vcmp.ne.s32.totalorder %v1123_v41, %v10119_v31  ;;  %vm14604_vm8 = vmmov %vm14603_vm13 }
  0x40   : > { %14602 = vst [vmem:[#allocation21_spill] sm:$0xff] %v14601_v33  ;;  %vm1128_vm1 = vcmp.ne.s32.totalorder %v1124_v34, %v10195_v63  ;;  %v1175_v24 = vsel %vm10337_vm12, %v813_v62, 0  ;;  %v1343_v25 = vunpack.c.l.b16 %v1174_v42  ;;  %v14605_v27 = vmov 0  ;;  %vm14608_vm0 = vmmov %vm14604_vm8 }
  0x41   : > { %798 = vst.msk [vmem:[#allocation2 + $0x34] sm:$0xf] %vm14604_vm8, %v781_v10  ;;  %vm10350_vm14 = vmpackc.low %vm1128_vm1, %vm1127_vm15  ;;  %v1344_v46 = vunpack.c.l.b16 %v1175_v24  ;;  %v14245_v59 = vand.u32 7, %v10188_v58  ;;  %vm10358_vm13 = vcmp.gt.s32.totalorder %v14246_v56, 0  ;;  %v14609_v32 = vmov 0 }
  0x42   : > { %v14606_v27 = vsel %vm10350_vm14, 4294967295, %v14605_v27  ;;  %799 = vst.msk [vmem:[#allocation2 + $0x38] sm:$0xf] %vm14608_vm0, %v782_v50  ;;  %v14610_v32 = vsel %vm10358_vm13, 4294967295, %v14609_v32  ;;  %v773_v52 = vpack.c.bf16 %v757_v14, %v757_v14  ;;  %v1176_v13 = vsel %vm10350_vm14, %v814_v36, 0  ;;  %vm856_vm15 = vmpackc.low %vm10358_vm13, %vm10358_vm13  ;;  %v758_v14 = vld [vmem:[%s10048_s25 + $0x20] sm:$0xff] }
  0x43   : > { %14607 = vst [vmem:[#allocation22_spill] sm:$0xff] %v14606_v27  ;;  %v1355_v62 = vpack.c.b16 %v1343_v25, %v1342_v47  ;;  %v923_v9 = vrot.slane %v921_v19, 4  ;;  %v10370_v18 = vadd.s32 96, %v10030_v2  ;;  %v1345_v41 = vunpack.c.l.b16 %v1176_v13  ;;  %vm14615_vm8 = vmmov %vm14608_vm0 }
  0x44   : > { %14611 = vst [vmem:[#allocation23_spill] sm:$0xff] %v14610_v32  ;;  %vm10374_vm1 = vcmp.gt.s32.totalorder %v14245_v59, 0  ;;  %v14612_v34 = vmov 0  ;;  %v872_v30 = vsel %vm856_vm15, 65537, %v14258_v1  ;;  %v10381_v10 = vadd.s32 104, %v10030_v2 }
  0x45   : > { %v14613_v34 = vsel %vm10374_vm1, 4294967295, %v14612_v34  ;;  %790 = vst.msk [vmem:[#allocation2 + $0x14] sm:$0xf] %vm14615_vm8, %v773_v52  ;;  %v1397_v60 = vshrl.u32 %v1355_v62, 16  ;;  %v1400_v19 = vshll.u32 %v1355_v62, 16  ;;  %vm857_vm0 = vmpackc.low %vm10374_vm1, %vm10374_vm1  ;;  %v924_v36 = vor.u32 %v923_v9, %v10213_v37 }
  0x46   : > { %14614 = vst [vmem:[#allocation24_spill] sm:$0xff] %v14613_v34  ;;  %v927_v42 = vshll.u32 %v872_v30, 16  ;;  %v1356_v47 = vpack.c.b16 %v1345_v41, %v1344_v46  ;;  %v10389_v50 = vsel %vm857_vm0, 65537, %v14258_v1  ;;  %v931_v24 = vshrl.u32 %v872_v30, 16  ;;  %v9579_v59 = vld [vmem:[#allocation2 + $0xc] sm:$0xff]  ;;  %v9597_v30 = vld [vmem:[%s14216_s2 + $0x20] sm:$0xff] }
  0x47   : > { %v14257_v25 = vand.u32 7, %v10370_v18  ;;  %v1399_v52 = vrot.slane %v1397_v60, 3  ;;  %v1402_v13 = vrot.slane %v1400_v19, 4  ;;  %v925_v56 = vrot.slane %v924_v36, 4  ;;  %2049 = vmatpush.bf16.msrb.mxu2 %v9597_v30 }
  0x48   : > { %v774_v11 = vpack.c.bf16 %v758_v14, %v758_v14  ;;  %v1406_v62 = vshrl.u32 %v1356_v47, 16  ;;  %v1409_v8 = vshll.u32 %v1356_v47, 16  ;;  %v929_v7 = vrot.slane %v927_v42, 5 }
  0x49   : > { %v933_v6 = vrot.slane %v931_v24, 4  ;;  %v10392_v53 = vor.u32 %v1402_v13, %v1399_v52  ;;  %vm14616_vm15 = vcmask 261120   ;;  %v9584_v37 = vld [vmem:[#allocation2 + $0x34] sm:$0xff]  ;;  %v937_v46 = vshll.u32 %v10389_v50, 16  ;;  %v807_v52 = vld [vmem:[#allocation2 + $0x10] sm:$0xf] }
  0x4a   : > { %8650 = vmatmul.msk.bf16.gmra.mxu0 %vm14616_vm15, %v9579_v59  ;;  %v941_v9 = vshrl.u32 %v10389_v50, 16  ;;  %v14256_v41 = vand.u32 7, %v10381_v10  ;;  %v1408_v14 = vrot.slane %v1406_v62, 3  ;;  %v1411_v60 = vrot.slane %v1409_v8, 4  ;;  %791 = vst.msk [vmem:[#allocation2 + $0x18] sm:$0xf] %vm14615_vm8, %v774_v11  ;;  %vm14617_vm0 = vmmov %vm14616_vm15 }
  0x4b   : > { %v930_v19 = vsel %vm10130_vm9, %v925_v56, %v929_v7  ;;  %v934_v36 = vor.u32 %v933_v6, %v929_v7  ;;  %v767_v59 = vld [vmem:[%s10048_s25 + $0x68] sm:$0xff]  ;;  %8655 = vmatmul.msk.bf16.gmra.mxu2 %vm14617_vm0, %v9584_v37  ;;  %v10406_v42 = vrot.slane %v937_v46, 5  ;;  %vm10410_vm15 = vcmp.gt.s32.totalorder %v14257_v25, 0 }
  0x4c   : > { %v1074_v47 = vunpack.c.l.b16 %v930_v19  ;;  %v1075_v50 = vunpack.c.h.b16 %v930_v19  ;;  %v14618_v24 = vmov 0  ;;  %v10414_v8 = vor.u32 %v1411_v60, %v1408_v14  ;;  %vm864_vm0 = vmpackc.low %vm10410_vm15, %vm10410_vm15  ;;  %2941 = vmatpush.bf16.msra.mxu2 %v9615_v40  ;;  %v3148_v28 = vld [vmem:[#allocation2 + $0x14] sm:$0xf] }
  0x4d   : > { %v14619_v24 = vsel %vm10410_vm15, 4294967295, %v14618_v24  ;;  %v935_v56 = vrot.slane %v934_v36, 4  ;;  %vm10418_vm8 = vcmp.gt.s32.totalorder %v14256_v41, 0  ;;  %v14621_v6 = vmov 0 }
  0x4e   : > { %14620 = vst [vmem:[#allocation25_spill] sm:$0xff] %v14619_v24  ;;  %v14622_v6 = vsel %vm10418_vm8, 4294967295, %v14621_v6  ;;  %v14624_v7 = vshrl.u32 %v10254_v55, 16  ;;  %vm1078_vm1 = vcmp.ne.s32.totalorder %v1074_v47, %v10119_v31  ;;  %vm1079_vm13 = vcmp.ne.s32.totalorder %v1075_v50, %v10195_v63  ;;  %vm865_vm6 = vmpackc.low %vm10418_vm8, %vm10418_vm8  ;;  %v768_v47 = vld [vmem:[%s10048_s25 + $0x70] sm:$0xff] }
  0x4f   : > { %14623 = vst [vmem:[#allocation26_spill] sm:$0xff] %v14622_v6  ;;  %v880_v13 = vsel %vm864_vm0, 65537, %v14258_v1  ;;  %v783_v62 = vpack.c.bf16 %v767_v59, %v767_v59  ;;  %vm14625_vm5 = vsmask.f32 4352  ;;  %v940_v55 = vsel %vm10130_vm9, %v935_v56, %v10406_v42  ;;  %vm10439_vm15 = vmpackc.low %vm1079_vm13, %vm1078_vm1  ;;  %v808_v50 = vld [vmem:[#allocation2 + $0x14] sm:$0xf] }
  0x50   : > { %v1003_v11 = vrot.slane %v14624_v7, 4  ;;  %v1413_v37 = vsel %vm14625_vm5, %v10392_v53, %v10414_v8  ;;  %v14626_v46 = vmov 0  ;;  %v10444_v30 = vsel %vm865_vm6, 65537, %v14258_v1  ;;  %v759_v1 = vld [vmem:[%s10048_s25 + $0x28] sm:$0xff] }
  0x51   : > { %v14627_v46 = vsel %vm10439_vm15, 4294967295, %v14626_v46  ;;  %vm14629_vm0 = vcmask 261120   ;;  %v1081_v60 = vunpack.c.l.b16 %v940_v55  ;;  %v1082_v19 = vunpack.c.h.b16 %v940_v55 }
  0x52   : > { %14628 = vst [vmem:[#allocation27_spill] sm:$0xff] %v14627_v46  ;;  %v1004_v14 = vor.u32 %v1003_v11, %v10307_v0  ;;  %8669 = vmatmul.msk.bf16.vlgmr.msra.gmra.mxu3 %vm14629_vm0, %v1413_v37  ;;  %v1169_v36 = vsel %vm10439_vm15, %v807_v52, 0  ;;  %v1007_v59 = vshll.u32 %v880_v13, 16  ;;  %vm14630_vm5 = vcmask 257024  }
  0x53   : > { %800 = vst.msk [vmem:[#allocation2 + $0x3c] sm:$0xf] %vm14630_vm5, %v783_v62  ;;  %v1338_v56 = vunpack.c.l.b16 %v1169_v36  ;;  %v1011_v41 = vshrl.u32 %v880_v13, 16  ;;  %v1017_v25 = vshll.u32 %v10444_v30, 16  ;;  %vm1085_vm6 = vcmp.ne.s32.totalorder %v1081_v60, %v10119_v31  ;;  %vm14634_vm0 = vmmov %vm14630_vm5 }
  0x54   : > { %v1005_v7 = vrot.slane %v1004_v14, 4  ;;  %vm1086_vm13 = vcmp.ne.s32.totalorder %v1082_v19, %v10195_v63  ;;  %v1009_v0 = vrot.slane %v1007_v59, 5  ;;  %v1021_v11 = vshrl.u32 %v10444_v30, 16  ;;  %v815_v59 = vld [vmem:[#allocation2 + $0x30] sm:$0xf]  ;;  %vm14635_vm5 = vmmov %vm14634_vm0 }
  0x55   : > { %vm10457_vm1 = vmpackc.low %vm1086_vm13, %vm1085_vm6  ;;  %v14631_v52 = vmov 0  ;;  %v1013_v37 = vrot.slane %v1011_v41, 4  ;;  %v10461_v62 = vrot.slane %v1017_v25, 5  ;;  %v784_v55 = vpack.c.bf16 %v768_v47, %v768_v47  ;;  %v9580_v25 = vld [vmem:[#allocation2 + $0x14] sm:$0xff] }
  0x56   : > { %v14632_v52 = vsel %vm10457_vm1, 4294967295, %v14631_v52  ;;  %v10464_v13 = vadd.s32 48, %v10030_v2  ;;  %v1170_v14 = vsel %vm10457_vm1, %v808_v50, 0  ;;  %v1010_v60 = vsel %vm10130_vm9, %v1005_v7, %v1009_v0 }
  0x57   : > { %14633 = vst [vmem:[#allocation28_spill] sm:$0xff] %v14632_v52  ;;  %v775_v19 = vpack.c.bf16 %v759_v1, %v759_v1  ;;  %v943_v36 = vrot.slane %v941_v9, 4  ;;  %v1339_v30 = vunpack.c.l.b16 %v1170_v14  ;;  %v1014_v6 = vor.u32 %v1013_v37, %v1009_v0 }
  0x58   : > { %v1130_v24 = vunpack.c.l.b16 %v1010_v60  ;;  %v1131_v49 = vunpack.c.h.b16 %v1010_v60  ;;  %801 = vst.msk [vmem:[#allocation2 + $0x40] sm:$0xf] %vm14634_vm0, %v784_v55  ;;  %v14263_v41 = vand.u32 7, %v10464_v13  ;;  %v10475_v50 = vadd.s32 112, %v10030_v2 }
  0x59   : > { %792 = vst.msk [vmem:[#allocation2 + $0x1c] sm:$0xf] %vm14635_vm5, %v775_v19  ;;  %v944_v47 = vor.u32 %v943_v36, %v10406_v42  ;;  %v10478_v1 = vadd.s32 120, %v10030_v2  ;;  %v1353_v9 = vpack.c.b16 %v1339_v30, %v1338_v56  ;;  %v1015_v7 = vrot.slane %v1014_v6, 4  ;;  %v816_v56 = vld [vmem:[#allocation2 + $0x34] sm:$0xf] }
  0x5a   : > { %vm1134_vm6 = vcmp.ne.s32.totalorder %v1130_v24, %v10119_v31  ;;  %vm1135_vm13 = vcmp.ne.s32.totalorder %v1131_v49, %v10195_v63  ;;  %v14636_v0 = vmov 0  ;;  %vm10488_vm5 = vcmp.gt.s32.totalorder %v14263_v41, 0 }
  0x5b   : > { %vm10482_vm0 = vmpackc.low %vm1135_vm13, %vm1134_vm6  ;;  %v14639_v42 = vmov 0  ;;  %v945_v37 = vrot.slane %v944_v47, 4  ;;  %v1379_v6 = vshrl.u32 %v1353_v9, 16  ;;  %v1382_v14 = vshll.u32 %v1353_v9, 16 }
  0x5c   : > { %v14637_v0 = vsel %vm10482_vm0, 4294967295, %v14636_v0  ;;  %v14640_v42 = vsel %vm10488_vm5, 4294967295, %v14639_v42  ;;  %v1020_v49 = vsel %vm10130_vm9, %v1015_v7, %v10461_v62  ;;  %v1177_v24 = vsel %vm10482_vm0, %v815_v59, 0  ;;  %vm858_vm6 = vmpackc.low %vm10488_vm5, %vm10488_vm5 }
  0x5d   : > { %14638 = vst [vmem:[#allocation29_spill] sm:$0xff] %v14637_v0  ;;  %v1137_v60 = vunpack.c.l.b16 %v1020_v49  ;;  %v1138_v19 = vunpack.c.h.b16 %v1020_v49  ;;  %v1346_v36 = vunpack.c.l.b16 %v1177_v24  ;;  %vm14642_vm13 = vcmask 261120  }
  0x5e   : > { %14641 = vst [vmem:[#allocation30_spill] sm:$0xff] %v14640_v42  ;;  %8651 = vmatmul.msk.bf16.gmra.mxu0 %vm14642_vm13, %v9580_v25  ;;  %v14643_v30 = vmov 0   ;;  %v1381_v41 = vrot.slane %v1379_v6, 3  ;;  %v1384_v9 = vrot.slane %v1382_v14, 4  ;;  %v14644_v7 = vand.u32 7, %v10475_v50  ;;  %v9600_v6 = vld [vmem:[%s14216_s2 + $0x30] sm:$0xff] }
  0x5f   : > { %v874_v47 = vsel %vm858_vm6, 65537, %v14643_v30  ;;  %vm1141_vm8 = vcmp.ne.s32.totalorder %v1137_v60, %v10119_v31  ;;  %vm1142_vm0 = vcmp.ne.s32.totalorder %v1138_v19, %v10195_v63  ;;  %v9585_v59 = vld [vmem:[#allocation2 + $0x3c] sm:$0xff]  ;;  %v14645_v45 = vmov 0  ;;  %2297 = vmatpush.bf16.msrb.mxu3 %v9600_v6 }
  0x60   : > { %v947_v55 = vshll.u32 %v874_v47, 16  ;;  %v951_v48 = vshrl.u32 %v874_v47, 16  ;;  %vm10508_vm5 = vcmp.gt.s32.totalorder %v14644_v7, 0  ;;  %v14648_v25 = vand.u32 7, %v10478_v1  ;;  %v9602_v14 = vld [vmem:[%s14216_s2 + $0x40] sm:$0xff]  ;;  %vm10526_vm6 = vmpackc.low %vm1142_vm0, %vm1141_vm8 }
  0x61   : > { %v14646_v45 = vsel %vm10508_vm5, 4294967295, %v14645_v45  ;;  %v14649_v49 = vmov 0  ;;  %v10524_v24 = vor.u32 %v1384_v9, %v1381_v41  ;;  %v14652_v60 = vmov 0  ;;  %vm866_vm12 = vmpackc.low %vm10508_vm5, %vm10508_vm5  ;;  %2443 = vmatpush.bf16.msrb.mxu0 %v9602_v14  ;;  %v819_v40 = vld [vmem:[#allocation2 + $0x40] sm:$0xf] }
  0x62   : > { %14647 = vst [vmem:[#allocation31_spill] sm:$0xff] %v14646_v45  ;;  %vm10514_vm13 = vcmp.gt.s32.totalorder %v14648_v25, 0  ;;  %v14653_v60 = vsel %vm10526_vm6, 4294967295, %v14652_v60  ;;  %v949_v19 = vrot.slane %v947_v55, 5  ;;  %v953_v47 = vrot.slane %v951_v48, 4 }
  0x63   : > { %v14650_v49 = vsel %vm10514_vm13, 4294967295, %v14649_v49  ;;  %14654 = vst [vmem:[#allocation33_spill] sm:$0xff] %v14653_v60  ;;  %v1023_v7 = vrot.slane %v1021_v11, 4  ;;  %v1178_v25 = vsel %vm10526_vm6, %v816_v56, 0  ;;  %vm14655_vm14 = vcmask 261120   ;;  %vm867_vm5 = vmpackc.low %vm10514_vm13, %vm10514_vm13 }
  0x64   : > { %14651 = vst [vmem:[#allocation32_spill] sm:$0xff] %v14650_v49  ;;  %8656 = vmatmul.msk.bf16.gmra.mxu2 %vm14655_vm14, %v9585_v59  ;;  %v14656_v41 = vand.u32 7, %v10030_v2  ;;  %v14657_v9 = vmov 0  ;;  %v14660_v55 = vand.u32 7, %v10038_v3  ;;  %v14661_v48 = vmov 0 }
  0x65   : > { %v14664_v11 = vand.u32 7, %v10041_v4  ;;  %v14665_v56 = vmov 0  ;;  %vm14668_vm0 = vsmask.f32 4352  ;;  %v1347_v59 = vunpack.c.l.b16 %v1178_v25 }
  0x66   : > { %vm10538_vm7 = vcmp.lt.s32.totalorder %v14656_v41, 7  ;;  %vm10544_vm8 = vcmp.lt.s32.totalorder %v14660_v55, 7  ;;  %v1386_v2 = vsel %vm14668_vm0, %v10309_v57, %v10524_v24  ;;  %v950_v6 = vsel %vm10130_vm9, %v945_v37, %v949_v19  ;;  %v809_v57 = vld [vmem:[#allocation2 + $0x18] sm:$0xf] }
  0x67   : > { %v14658_v9 = vsel %vm10538_vm7, 4294967295, %v14657_v9  ;;  %v14662_v48 = vsel %vm10544_vm8, 4294967295, %v14661_v48  ;;  %vm10550_vm14 = vcmp.lt.s32.totalorder %v14664_v11, 7  ;;  %v954_v41 = vor.u32 %v953_v47, %v949_v19 }
  0x68   : > { %14659 = vst [vmem:[#allocation34_spill] sm:$0xff] %v14658_v9  ;;  %v14666_v56 = vsel %vm10550_vm14, 4294967295, %v14665_v56  ;;  %vm14669_vm6 = vcmask 261120   ;;  %v1088_v3 = vunpack.c.l.b16 %v950_v6  ;;  %v1089_v4 = vunpack.c.h.b16 %v950_v6 }
  0x69   : > { %14663 = vst [vmem:[#allocation35_spill] sm:$0xff] %v14662_v48  ;;  %8666 = vmatmul.msk.bf16.gmra.mxu1 %vm14669_vm6, %v1386_v2  ;;  %v882_v55 = vsel %vm866_vm12, 65537, %v14643_v30  ;;  %v883_v11 = vsel %vm867_vm5, 65537, %v14643_v30  ;;  %v1357_v45 = vpack.c.b16 %v1347_v59, %v1346_v36  ;;  %v955_v25 = vrot.slane %v954_v41, 4 }
  0x6a   : > { %14667 = vst [vmem:[#allocation36_spill] sm:$0xff] %v14666_v56  ;;  %v1024_v44 = vor.u32 %v1023_v7, %v10461_v62  ;;  %v1027_v37 = vshll.u32 %v882_v55, 16  ;;  %vm1092_vm0 = vcmp.ne.s32.totalorder %v1088_v3, %v10119_v31  ;;  %vm1093_vm11 = vcmp.ne.s32.totalorder %v1089_v4, %v10195_v63 }
  0x6b   : > { %v1031_v19 = vshrl.u32 %v882_v55, 16  ;;  %v1037_v14 = vshll.u32 %v883_v11, 16  ;;  %v1415_v47 = vshrl.u32 %v1357_v45, 16  ;;  %v1418_v2 = vshll.u32 %v1357_v45, 16  ;;  %vm10571_vm12 = vmpackc.low %vm1093_vm11, %vm1092_vm0  ;;  %v810_v55 = vld [vmem:[#allocation2 + $0x1c] sm:$0xf] }
  0x6c   : > { %v960_v6 = vsel %vm10130_vm9, %v955_v25, %v10277_v39  ;;  %v14670_v49 = vmov 0  ;;  %v1025_v36 = vrot.slane %v1024_v44, 4  ;;  %v1171_v7 = vsel %vm10571_vm12, %v809_v57, 0  ;;  %v9581_v25 = vld [vmem:[#allocation2 + $0x1c] sm:$0xff] }
  0x6d   : > { %v14671_v49 = vsel %vm10571_vm12, 4294967295, %v14670_v49  ;;  %v1095_v59 = vunpack.c.l.b16 %v960_v6  ;;  %v1096_v62 = vunpack.c.h.b16 %v960_v6  ;;  %v1029_v41 = vrot.slane %v1027_v37, 5 }
  0x6e   : > { %14672 = vst [vmem:[#allocation37_spill] sm:$0xff] %v14671_v49  ;;  %v1417_v3 = vrot.slane %v1415_v47, 3  ;;  %v1420_v4 = vrot.slane %v1418_v2, 4  ;;  %v1340_v43 = vunpack.c.l.b16 %v1171_v7  ;;  %v1033_v45 = vrot.slane %v1031_v19, 4 }
  0x6f   : > { %vm1099_vm11 = vcmp.ne.s32.totalorder %v1095_v59, %v10119_v31  ;;  %vm1100_vm6 = vcmp.ne.s32.totalorder %v1096_v62, %v10195_v63  ;;  %v1030_v44 = vsel %vm10130_vm9, %v1025_v36, %v1029_v41  ;;  %v1039_v39 = vrot.slane %v1037_v14, 5 }
  0x70   : > { %v10587_v57 = vor.u32 %v1420_v4, %v1417_v3  ;;  %vm10589_vm13 = vmpackc.low %vm1100_vm6, %vm1099_vm11  ;;  %v14673_v37 = vmov 0  ;;  %v1034_v19 = vor.u32 %v1033_v45, %v1029_v41  ;;  %v1144_v47 = vunpack.c.l.b16 %v1030_v44  ;;  %v817_v41 = vld [vmem:[#allocation2 + $0x38] sm:$0xf] }
  0x71   : > { %v14674_v37 = vsel %vm10589_vm13, 4294967295, %v14673_v37  ;;  %v1145_v2 = vunpack.c.h.b16 %v1030_v44  ;;  %v1172_v6 = vsel %vm10589_vm13, %v810_v55, 0  ;;  %v1041_v59 = vshrl.u32 %v883_v11, 16  ;;  %vm14683_vm11 = vmpackc.low %vm10538_vm7, %vm10538_vm7 }
  0x72   : > { %14675 = vst [vmem:[#allocation38_spill] sm:$0xff] %v14674_v37  ;;  %v14676_v14 = vand.u32 7, %v10053_v5  ;;  %v14677_v36 = vmov 0  ;;  %vm14680_vm6 = vsmask.f32 4352  ;;  %v1341_v7 = vunpack.c.l.b16 %v1172_v6 }
  0x73   : > { %v1422_v62 = vsel %vm14680_vm6, %v10414_v8, %v10587_v57  ;;  %v1035_v3 = vrot.slane %v1034_v19, 4  ;;  %vm1148_vm0 = vcmp.ne.s32.totalorder %v1144_v47, %v10119_v31  ;;  %vm14681_vm13 = vcmask 261120   ;;  %vm14684_vm6 = vmpackc.low %vm10544_vm8, %vm10544_vm8 }
  0x74   : > { %vm10597_vm5 = vcmp.lt.s32.totalorder %v14676_v14, 7  ;;  %8670 = vmatmul.msk.bf16.gmra.mxu3 %vm14681_vm13, %v1422_v62  ;;  %vm1149_vm12 = vcmp.ne.s32.totalorder %v1145_v2, %v10195_v63  ;;  %vm14682_vm1 = vmmov %vm14681_vm13  ;;  %v1043_v5 = vrot.slane %v1041_v59, 4  ;;  %v1591_v11 = vsel %vm14683_vm11, 65537, %v14643_v30  ;;  %v818_v59 = vld [vmem:[#allocation2 + $0x3c] sm:$0xf] }
  0x75   : > { %v14678_v36 = vsel %vm10597_vm5, 4294967295, %v14677_v36  ;;  %8652 = vmatmul.msk.bf16.gmra.mxu0 %vm14682_vm1, %v9581_v25  ;;  %v1592_v8 = vsel %vm14684_vm6, 65537, %v14643_v30  ;;  %v1354_v4 = vpack.c.b16 %v1341_v7, %v1340_v43  ;;  %v1040_v55 = vsel %vm10130_vm9, %v1035_v3, %v1039_v39  ;;  %vm10625_vm1 = vmpackc.low %vm1149_vm12, %vm1148_vm0 }
  0x76   : > { %14679 = vst [vmem:[#allocation39_spill] sm:$0xff] %v14678_v36  ;;  %v14685_v45 = vmov 0  ;;  %vm14688_vm13 = vmpackc.low %vm10550_vm14, %vm10550_vm14  ;;  %vm1607_vm11 = vsmask.f32 256  ;;  %v1151_v25 = vunpack.c.l.b16 %v1040_v55  ;;  %v1152_v19 = vunpack.c.h.b16 %v1040_v55 }
  0x77   : > { %v14686_v45 = vsel %vm10625_vm1, 4294967295, %v14685_v45  ;;  %v1593_v44 = vsel %vm14688_vm13, 65537, %v14643_v30  ;;  %v1179_v43 = vsel %vm10625_vm1, %v817_v41, 0  ;;  %v1044_v47 = vor.u32 %v1043_v5, %v1039_v39  ;;  %vm14698_vm7 = vmpackc.low %vm10597_vm5, %vm10597_vm5 }
  0x78   : > { %14687 = vst [vmem:[#allocation40_spill] sm:$0xff] %v14686_v45  ;;  %v1388_v2 = vshrl.u32 %v1354_v4, 16  ;;  %v1391_v6 = vshll.u32 %v1354_v4, 16  ;;  %v1348_v14 = vunpack.c.l.b16 %v1179_v43  ;;  %vm1608_vm9 = vsmask.f32 4368 }
  0x79   : > { %vm1155_vm12 = vcmp.ne.s32.totalorder %v1151_v25, %v10119_v31  ;;  %vm1156_vm0 = vcmp.ne.s32.totalorder %v1152_v19, %v10195_v63  ;;  %v1045_v62 = vrot.slane %v1044_v47, 4  ;;  %v1611_v7 = vshrl.u32 %v1591_v11, 16  ;;  %vm10655_vm14 = vmor %vm1607_vm11, %vm1608_vm9 }
  0x7a   : > { %v1390_v3 = vrot.slane %v1388_v2, 3  ;;  %v1393_v55 = vrot.slane %v1391_v6, 4  ;;  %vm10642_vm6 = vmpackc.low %vm1156_vm0, %vm1155_vm12  ;;  %v14689_v39 = vmov 0  ;;  %v1614_v41 = vshll.u32 %v1591_v11, 16 }
  0x7b   : > { %v14690_v39 = vsel %vm10642_vm6, 4294967295, %v14689_v39  ;;  %v1619_v5 = vshrl.u32 %v1592_v8, 16  ;;  %v1180_v4 = vsel %vm10642_vm6, %v818_v59, 0  ;;  %v1158_v43 = vunpack.c.l.b16 %v1045_v62 }
  0x7c   : > { %14691 = vst [vmem:[#allocation41_spill] sm:$0xff] %v14690_v39  ;;  %v1159_v34 = vunpack.c.h.b16 %v1045_v62  ;;  %v1613_v25 = vrot.slane %v1611_v7, 7  ;;  %v1394_v19 = vor.u32 %v1393_v55, %v1390_v3  ;;  %v1349_v47 = vunpack.c.l.b16 %v1180_v4 }
  0x7d   : > { %v1621_v2 = vrot.slane %v1619_v5, 7  ;;  %v1622_v6 = vshll.u32 %v1592_v8, 16  ;;  %vm1162_vm12 = vcmp.ne.s32.totalorder %v1158_v43, %v10119_v31  ;;  %vm14694_vm13 = vsmask.f32 4352 }
  0x7e   : > { %vm1163_vm0 = vcmp.ne.s32.totalorder %v1159_v34, %v10195_v63  ;;  %v1616_v59 = vor.u32 %v1614_v41, %v1613_v25  ;;  %v1617_v62 = vrot.slane %v1613_v25, 4  ;;  %v1395_v7 = vsel %vm14694_vm13, %v10524_v24, %v1394_v19 }
  0x7f   : > { %v1358_v3 = vpack.c.b16 %v1349_v47, %v1348_v14  ;;  %vm10661_vm8 = vmpackc.low %vm1163_vm0, %vm1162_vm12  ;;  %v14695_v55 = vmov 0  ;;  %v1594_v34 = vsel %vm14698_vm7, 65537, %v14643_v30  ;;  %v1624_v8 = vor.u32 %v1622_v6, %v1621_v2 }
  0x80   : > { %v14696_v55 = vsel %vm10661_vm8, 4294967295, %v14695_v55  ;;  %vm14699_vm11 = vcmask 261120   ;;  %v1181_v41 = vsel %vm10661_vm8, %v819_v40, 0  ;;  %v1626_v5 = vrot.slane %v1621_v2, 4 }
  0x81   : > { %14697 = vst [vmem:[#allocation42_spill] sm:$0xff] %v14696_v55  ;;  %8667 = vmatmul.msk.bf16.gmra.mxu1 %vm14699_vm11, %v1395_v7  ;;  %v1628_v24 = vshrl.u32 %v1593_v44, 16  ;;  %v1631_v14 = vshll.u32 %v1593_v44, 16  ;;  %v1424_v4 = vshrl.u32 %v1358_v3, 16  ;;  %v1427_v43 = vshll.u32 %v1358_v3, 16  ;;  %vm14705_vm0 = vmmov %vm14699_vm11  ;;  %v9619_v44 = vld [vmem:[%s14216_s2 + $0x88] sm:$0xff] }
  0x82   : > { %v1350_v25 = vunpack.c.l.b16 %v1181_v41  ;;  %v1625_v47 = vsel %vm10655_vm14, %v1617_v62, %v1624_v8  ;;  %v1637_v26 = vshrl.u32 %v1594_v34, 16  ;;  %v1640_v36 = vshll.u32 %v1594_v34, 16  ;;  %vm14706_vm5 = vmmov %vm14705_vm0  ;;  %3338 = vmatpush.bf16.msra.mxu0 %v9619_v44 }
  0x83   : > { %v1630_v42 = vrot.slane %v1628_v24, 7  ;;  %v1753_v32 = vunpack.c.l.b16 %v1616_v59  ;;  %v1426_v56 = vrot.slane %v1424_v4, 3  ;;  %v1429_v6 = vrot.slane %v1427_v43, 4  ;;  %v1526_v24 = vld [vmem:[#allocation2 + $0x4] sm:$0xf]  ;;  %v9617_v4 = vld [vmem:[%s14216_s2 + $0x78] sm:$0xff] }
  0x84   : > { %v1359_v48 = vpack.c.b16 %v1350_v25, %v1350_v25  ;;  %v1754_v7 = vunpack.c.h.b16 %v1616_v59  ;;  %v10676_v40 = vrot.slane %v1637_v26, 7  ;;  %v1760_v8 = vunpack.c.l.b16 %v1625_v47  ;;  %v9590_v26 = vld [vmem:[#allocation2 + $0x8] sm:$0xff]  ;;  %v9612_v43 = vld [vmem:[%s14216_s2 + $0x58] sm:$0xff]  ;;  %3087 = vmatpush.bf16.msra.mxu3 %v9617_v4 }
  0x85   : > { %v1633_v22 = vor.u32 %v1631_v14, %v1630_v42  ;;  %v1635_v21 = vrot.slane %v1630_v42, 4  ;;  %vm10679_vm7 = vcmp.ne.s32.totalorder %v1753_v32, %v10119_v31  ;;  %v10683_v2 = vor.u32 %v1429_v6, %v1426_v56  ;;  %8757 = vmatmul.msk.bf16.vlgmr.msrb.gmra.mxu0 %vm14706_vm5, %v9590_v26  ;;  %2693 = vmatpush.bf16.msrb.mxu1 %v9612_v43 }
  0x86   : > { %v1433_v62 = vshrl.u32 %v1359_v48, 16  ;;  %v1436_v3 = vshll.u32 %v1359_v48, 16  ;;  %vm1758_vm9 = vcmp.ne.s32.totalorder %v1754_v7, %v10195_v63  ;;  %v1642_v59 = vor.u32 %v1640_v36, %v10676_v40  ;;  %v10696_v48 = vld [vmem:[#allocation2 + $0x8] sm:$0xf] }
  0x87   : > { %v1634_v34 = vsel %vm10655_vm14, %v1626_v5, %v1633_v22  ;;  %v1761_v42 = vunpack.c.h.b16 %v1625_v47  ;;  %v1431_v32 = vsel %vm14694_vm13, %v10587_v57, %v10683_v2  ;;  %vm10700_vm12 = vmpackc.low %vm1758_vm9, %vm10679_vm7  ;;  %v14702_v22 = vmov 0  ;;  %v10705_v5 = vld [vmem:[#allocation2 + $0xc] sm:$0xf]  ;;  %v1529_v47 = vld [vmem:[#allocation2 + $0x10] sm:$0xf] }
  0x88   : > { %v10692_v41 = vrot.slane %v1433_v62, 3  ;;  %v10694_v56 = vrot.slane %v1436_v3, 4  ;;  %v14703_v22 = vsel %vm10700_vm12, 4294967295, %v14702_v22  ;;  %v1767_v36 = vunpack.c.l.b16 %v1634_v34  ;;  %8671 = vmatmul.msk.bf16.gmra.mxu3 %vm14705_vm0, %v1431_v32  ;;  %v2107_v3 = vld [vmem:[#allocation2 + $0x4] sm:$0x8] }
  0x89   : > { %14704 = vst [vmem:[#allocation43_spill] sm:$0xff] %v14703_v22  ;;  %v1643_v57 = vsel %vm10655_vm14, %v1635_v21, %v1642_v59  ;;  %vm1764_vm11 = vcmp.ne.s32.totalorder %v1760_v8, %v10119_v31  ;;  %vm1765_vm13 = vcmp.ne.s32.totalorder %v1761_v42, %v10195_v63  ;;  %v1768_v14 = vunpack.c.h.b16 %v1634_v34  ;;  %v9611_v34 = vld [vmem:[%s14216_s2 + $0x50] sm:$0xff] }
  0x8a   : > { %vm14707_vm7 = vsmask.f32 4352  ;;  %vm10720_vm9 = vmpackc.low %vm1765_vm13, %vm1764_vm11  ;;  %v14708_v21 = vmov 0  ;;  %vm1771_vm0 = vcmp.ne.s32.totalorder %v1767_v36, %v10119_v31  ;;  %v1774_v6 = vunpack.c.l.b16 %v1643_v57  ;;  %2694 = vmatpush.bf16.msrb.mxu1 %v9611_v34 }
  0x8b   : > { %v1404_v25 = vsel %vm14707_vm7, %v1394_v19, %v10392_v53  ;;  %v14709_v21 = vsel %vm10720_vm9, 4294967295, %v14708_v21  ;;  %v1775_v7 = vunpack.c.h.b16 %v1643_v57  ;;  %v1439_v62 = vor.u32 %v10694_v56, %v10692_v41 }
  0x8c   : > { %14710 = vst [vmem:[#allocation44_spill] sm:$0xff] %v14709_v21  ;;  %vm1772_vm5 = vcmp.ne.s32.totalorder %v1768_v14, %v10195_v63  ;;  %v1872_v53 = vsel %vm10700_vm12, %v1526_v24, 0  ;;  %v1873_v19 = vsel %vm10720_vm9, %v10696_v48, 0  ;;  %v14711_v59 = vmov 0 }
  0x8d   : > { %vm10739_vm11 = vmpackc.low %vm1772_vm5, %vm1771_vm0  ;;  %vm1778_vm13 = vcmp.ne.s32.totalorder %v1774_v6, %v10119_v31  ;;  %vm1779_vm7 = vcmp.ne.s32.totalorder %v1775_v7, %v10195_v63  ;;  %v1911_v8 = vunpack.c.l.b16 %v1872_v53  ;;  %v14714_v42 = vmov 0 }
  0x8e   : > { %v14712_v59 = vsel %vm10739_vm11, 4294967295, %v14711_v59  ;;  %vm10745_vm6 = vmpackc.low %vm1779_vm7, %vm1778_vm13  ;;  %v1874_v26 = vsel %vm10739_vm11, %v10705_v5, 0  ;;  %v1912_v32 = vunpack.c.l.b16 %v1873_v19  ;;  %v14717_v41 = vand.u32 7, %v10180_v54 }
  0x8f   : > { %14713 = vst [vmem:[#allocation45_spill] sm:$0xff] %v14712_v59  ;;  %v14715_v42 = vsel %vm10745_vm6, 4294967295, %v14714_v42  ;;  %v14718_v56 = vmov 0  ;;  %v14721_v24 = vand.u32 7, %v10188_v58  ;;  %v14722_v36 = vmov 0 }
  0x90   : > { %14716 = vst [vmem:[#allocation46_spill] sm:$0xff] %v14715_v42  ;;  %vm10754_vm0 = vcmp.lt.s32.totalorder %v14717_v41, 7  ;;  %v1875_v57 = vsel %vm10745_vm6, %v1529_v47, 0  ;;  %v1913_v14 = vunpack.c.l.b16 %v1874_v26  ;;  %v1644_v54 = vrot.slane %v10676_v40, 4 }
  0x91   : > { %v14719_v56 = vsel %vm10754_vm0, 4294967295, %v14718_v56  ;;  %vm10760_vm5 = vcmp.lt.s32.totalorder %v14721_v24, 7  ;;  %vm1579_vm13 = vmpackc.low %vm10754_vm0, %vm10754_vm0  ;;  %v2109_v4 = vsel %vm10235_vm3, %v2107_v3, 0  ;;  %v1914_v43 = vunpack.c.l.b16 %v1875_v57 }
  0x92   : > { %14720 = vst [vmem:[#allocation47_spill] sm:$0xff] %v14719_v56  ;;  %v14723_v36 = vsel %vm10760_vm5, 4294967295, %v14722_v36  ;;  %v1928_v6 = vpack.c.b16 %v1912_v32, %v1911_v8  ;;  %vm1580_vm7 = vmpackc.low %vm10760_vm5, %vm10760_vm5  ;;  %v1595_v58 = vsel %vm1579_vm13, 65537, %v14643_v30  ;;  %v2110_v7 = vsel %vm10265_vm2, %v10696_v48, 0 }
  0x93   : > { %14724 = vst [vmem:[#allocation48_spill] sm:$0xff] %v14723_v36  ;;  %v1596_v44 = vsel %vm1580_vm7, 65537, %v14643_v30  ;;  %v1646_v53 = vshrl.u32 %v1595_v58, 16  ;;  %v1649_v40 = vshll.u32 %v1595_v58, 16  ;;  %v2111_v19 = vsel %vm10271_vm4, %v10705_v5, 0 }
  0x94   : > { %vm14725_vm8 = vcmask 261120   ;;  %v10784_v3 = vpack.c.b16 %v1914_v43, %v1913_v14  ;;  %v1939_v8 = vshrl.u32 %v1928_v6, 16  ;;  %v1941_v26 = vshll.u32 %v1928_v6, 16 }
  0x95   : > { %8668 = vmatmul.msk.bf16.gmra.mxu1 %vm14725_vm8, %v1404_v25  ;;  %v1655_v32 = vshrl.u32 %v1596_v44, 16  ;;  %v1648_v41 = vrot.slane %v1646_v53, 7  ;;  %v1658_v24 = vshll.u32 %v1596_v44, 16  ;;  %v2112_v48 = vsel %vm10289_vm10, %v1529_v47, 0  ;;  %v2501_v25 = vld [vmem:[#allocation2 + $0x8] sm:$0xf] }
  0x96   : > { %v2148_v34 = vunpack.c.l.b16 %v2109_v4  ;;  %vm14726_vm13 = vsmask.f32 4352  ;;  %v1943_v58 = vrot.slane %v1941_v26, 1  ;;  %v1946_v36 = vshll.u32 %v10784_v3, 16  ;;  %v10794_v47 = vld [vmem:[#allocation2 + $0xc] sm:$0xf] }
  0x97   : > { %v1440_v57 = vsel %vm14726_vm13, %v10683_v2, %v1439_v62  ;;  %v10791_v5 = vrot.slane %v1655_v32, 7  ;;  %v1651_v14 = vor.u32 %v1649_v40, %v1648_v41  ;;  %v1653_v43 = vrot.slane %v1648_v41, 4  ;;  %v14878_v22 = vld [vmem:[#allocation45_spill] sm:$0xff] }
  0x98   : > { %v2149_v56 = vunpack.c.l.b16 %v2110_v7  ;;  %v2150_v6 = vunpack.c.l.b16 %v2111_v19  ;;  %v1944_v9 = vor.u32 %v1943_v58, %v1939_v8  ;;  %v1948_v53 = vrot.slane %v1946_v36, 1  ;;  %v10805_v8 = vld [vmem:[#allocation2 + $0x14] sm:$0xf] }
  0x99   : > { %v1660_v44 = vor.u32 %v1658_v24, %v10791_v5  ;;  %v2151_v20 = vunpack.c.l.b16 %v2112_v48  ;;  %v1652_v2 = vsel %vm10655_vm14, %v1644_v54, %v1651_v14  ;;  %v1950_v62 = vshrl.u32 %v10784_v3, 16  ;;  %v10807_v24 = vld [vmem:[#allocation2 + $0x10] sm:$0xf]  ;;  %v10821_v14 = vld [vmem:[#allocation2 + $0x14] sm:$0xf] }
  0x9a   : > { %v2165_v4 = vpack.c.b16 %v2149_v56, %v2148_v34  ;;  %v2518_v26 = vsel %vm10700_vm12, %v2501_v25, 0  ;;  %vm14727_vm8 = vsmask.f32 7424  ;;  %v1781_v36 = vunpack.c.l.b16 %v1652_v2  ;;  %14729 = vst [vmem:[#allocation49_spill] sm:$0xff] %v10807_v24  ;;  %v9591_v3 = vld [vmem:[#allocation2 + $0x10] sm:$0xff] }
  0x9b   : > { %v1949_v40 = vsel %vm14727_vm8, %v1944_v9, %v1948_v53  ;;  %v1661_v7 = vsel %vm10655_vm14, %v1653_v43, %v1660_v44  ;;  %v1782_v19 = vunpack.c.h.b16 %v1652_v2  ;;  %vm14728_vm7 = vcmask 261120   ;;  %v1531_v9 = vld [vmem:[#allocation2 + $0x18] sm:$0xf] }
  0x9c   : > { %8685 = vmatmul.msk.bf16.vlgmr.msrb.gmra.mxu2 %vm14728_vm7, %v1949_v40  ;;  %v1788_v32 = vunpack.c.l.b16 %v1661_v7  ;;  %v1789_v41 = vunpack.c.h.b16 %v1661_v7  ;;  %v2166_v54 = vpack.c.b16 %v2151_v20, %v2150_v6  ;;  %v2519_v56 = vsel %vm10720_vm9, %v10794_v47, 0  ;;  %vm14730_vm13 = vmmov %vm14728_vm7 }
  0x9d   : > { %8672 = vmatmul.msk.bf16.gmra.mxu3 %vm14730_vm13, %v1440_v57  ;;  %vm1785_vm8 = vcmp.ne.s32.totalorder %v1781_v36, %v10119_v31  ;;  %vm1786_vm5 = vcmp.ne.s32.totalorder %v1782_v19, %v10195_v63  ;;  %v2175_v48 = vshrl.u32 %v2165_v4, 16  ;;  %v2178_v34 = vshll.u32 %v2165_v4, 16  ;;  %8758 = vmatmul.msk.bf16.gmra.mxu0 %vm14730_vm13, %v9591_v3 }
  0x9e   : > { %vm10815_vm7 = vmpackc.low %vm1786_vm5, %vm1785_vm8  ;;  %v14731_v58 = vmov 0  ;;  %vm1792_vm0 = vcmp.ne.s32.totalorder %v1788_v32, %v10119_v31  ;;  %vm1793_vm10 = vcmp.ne.s32.totalorder %v1789_v41, %v10195_v63  ;;  %v2183_v20 = vshrl.u32 %v2166_v54, 16 }
  0x9f   : > { %v14732_v58 = vsel %vm10815_vm7, 4294967295, %v14731_v58  ;;  %v2186_v25 = vshll.u32 %v2166_v54, 16  ;;  %vm10824_vm4 = vmpackc.low %vm1793_vm10, %vm1792_vm0  ;;  %v14734_v57 = vmov 0  ;;  %v1876_v43 = vsel %vm10815_vm7, %v10805_v8, 0 }
  0xa0   : > { %14733 = vst [vmem:[#allocation50_spill] sm:$0xff] %v14732_v58  ;;  %v14735_v57 = vsel %vm10824_vm4, 4294967295, %v14734_v57  ;;  %v2177_v6 = vrot.slane %v2175_v48, 3  ;;  %v2180_v44 = vrot.slane %v2178_v34, 4  ;;  %v2520_v2 = vsel %vm10739_vm11, %v10807_v24, 0 }
  0xa1   : > { %14736 = vst [vmem:[#allocation51_spill] sm:$0xff] %v14735_v57  ;;  %v1877_v4 = vsel %vm10824_vm4, %v1531_v9, 0  ;;  %v1915_v40 = vunpack.c.l.b16 %v1876_v43  ;;  %v2185_v7 = vrot.slane %v2183_v20, 3  ;;  %v2188_v36 = vrot.slane %v2186_v25, 4 }
  0xa2   : > { %v1916_v19 = vunpack.c.l.b16 %v1877_v4  ;;  %v2521_v32 = vsel %vm10745_vm6, %v10821_v14, 0  ;;  %v2557_v41 = vunpack.c.l.b16 %v2518_v26  ;;  %v1952_v54 = vor.u32 %v1950_v62, %v1948_v53  ;;  %v10873_v4 = vld [vmem:[#allocation2 + $0x18] sm:$0xf] }
  0xa3   : > { %v2558_v3 = vunpack.c.l.b16 %v2519_v56  ;;  %v2559_v48 = vunpack.c.l.b16 %v2520_v2  ;;  %v2560_v34 = vunpack.c.l.b16 %v2521_v32  ;;  %v2181_v59 = vor.u32 %v2180_v44, %v2177_v6  ;;  %v10875_v32 = vld [vmem:[#allocation2 + $0x1c] sm:$0xf] }
  0xa4   : > { %v10839_v61 = vpack.c.b16 %v1916_v19, %v1915_v40  ;;  %v14737_v35 = vand.u32 7, %v10464_v13  ;;  %v14738_v24 = vmov 0  ;;  %v14741_v20 = vand.u32 7, %v10064_v12 }
  0xa5   : > { %v14742_v25 = vmov 0  ;;  %v10853_v26 = vor.u32 %v2188_v36, %v2185_v7  ;;  %v2574_v53 = vpack.c.b16 %v2558_v3, %v2557_v41  ;;  %v10855_v62 = vpack.c.b16 %v2560_v34, %v2559_v48 }
  0xa6   : > { %vm10843_vm10 = vcmp.lt.s32.totalorder %v14737_v35, 7  ;;  %vm10849_vm0 = vcmp.lt.s32.totalorder %v14741_v20, 7  ;;  %v1662_v35 = vrot.slane %v10791_v5, 4  ;;  %v1954_v13 = vshll.u32 %v10839_v61, 16 }
  0xa7   : > { %v14739_v24 = vsel %vm10843_vm10, 4294967295, %v14738_v24  ;;  %v14743_v25 = vsel %vm10849_vm0, 4294967295, %v14742_v25  ;;  %vm1581_vm5 = vmpackc.low %vm10843_vm10, %vm10843_vm10  ;;  %v2113_v56 = vsel %vm10439_vm15, %v10805_v8, 0  ;;  %vm14745_vm13 = vnez %v14632_v52 }
  0xa8   : > { %14740 = vst [vmem:[#allocation52_spill] sm:$0xff] %v14739_v24  ;;  %vm1582_vm8 = vmpackc.low %vm10849_vm0, %vm10849_vm0  ;;  %v1597_v12 = vsel %vm1581_vm5, 65537, %v14643_v30  ;;  %v2114_v43 = vsel %vm14745_vm13, %v1531_v9, 0  ;;  %v2584_v6 = vshrl.u32 %v2574_v53, 16  ;;  %v2586_v44 = vshll.u32 %v2574_v53, 16 }
  0xa9   : > { %14744 = vst [vmem:[#allocation53_spill] sm:$0xff] %v14743_v25  ;;  %v2591_v2 = vshll.u32 %v10855_v62, 16  ;;  %v1598_v5 = vsel %vm1582_vm8, 65537, %v14643_v30  ;;  %v1956_v40 = vrot.slane %v1954_v13, 1  ;;  %v1664_v7 = vshrl.u32 %v1597_v12, 16 }
  0xaa   : > { %v1667_v36 = vshll.u32 %v1597_v12, 16  ;;  %v1673_v19 = vshrl.u32 %v1598_v5, 16  ;;  %v2588_v41 = vrot.slane %v2586_v44, 1  ;;  %v1676_v8 = vshll.u32 %v1598_v5, 16 }
  0xab   : > { %v10877_v3 = vrot.slane %v2591_v2, 1  ;;  %v2152_v48 = vunpack.c.l.b16 %v2113_v56  ;;  %vm14746_vm5 = vsmask.f32 7424  ;;  %vm14747_vm0 = vsmask.f32 4352 }
  0xac   : > { %v1957_v9 = vsel %vm14746_vm5, %v1952_v54, %v1956_v40  ;;  %v2190_v34 = vsel %vm14747_vm0, %v2181_v59, %v10853_v26  ;;  %v1666_v20 = vrot.slane %v1664_v7, 7  ;;  %v10882_v53 = vrot.slane %v1673_v19, 7  ;;  %vm14749_vm0 = vmmov %vm14746_vm5  ;;  %v9592_v19 = vld [vmem:[#allocation2 + $0x18] sm:$0xff] }
  0xad   : > { %v2589_v25 = vor.u32 %v2588_v41, %v2584_v6  ;;  %v2153_v13 = vunpack.c.l.b16 %v2114_v43  ;;  %v2522_v12 = vsel %vm10815_vm7, %v10873_v4, 0  ;;  %v2523_v44 = vsel %vm10824_vm4, %v10875_v32, 0 }
  0xae   : > { %v1669_v2 = vor.u32 %v1667_v36, %v1666_v20  ;;  %v1671_v56 = vrot.slane %v1666_v20, 4  ;;  %v1678_v54 = vor.u32 %v1676_v8, %v10882_v53  ;;  %v2561_v5 = vunpack.c.l.b16 %v2522_v12 }
  0xaf   : > { %vm14748_vm8 = vcmask 261120   ;;  %v2594_v59 = vsel %vm14749_vm0, %v2589_v25, %v10877_v3  ;;  %v1958_v43 = vshrl.u32 %v10839_v61, 16  ;;  %v2167_v6 = vpack.c.b16 %v2153_v13, %v2152_v48 }
  0xb0   : > { %8686 = vmatmul.msk.bf16.gmra.mxu2 %vm14748_vm8, %v1957_v9  ;;  %v2562_v7 = vunpack.c.l.b16 %v2523_v44  ;;  %vm14750_vm5 = vmmov %vm14748_vm8  ;;  %v1670_v36 = vsel %vm10655_vm14, %v1662_v35, %v1669_v2  ;;  %v1679_v41 = vsel %vm10655_vm14, %v1671_v56, %v1678_v54  ;;  %v14752_v8 = vand.u32 7, %v10068_v15  ;;  %v1532_v15 = vld [vmem:[#allocation2 + $0x1c] sm:$0xf]  ;;  %v1533_v2 = vld [vmem:[#allocation2 + $0x20] sm:$0xf] }
  0xb1   : > { %8705 = vmatmul.msk.bf16.vlgmr.msrb.gmra.mxu3 %vm14750_vm5, %v2190_v34  ;;  %vm14751_vm10 = vmmov %vm14750_vm5  ;;  %v14753_v9 = vmov 0  ;;  %v14756_v61 = vand.u32 7, %v10071_v16  ;;  %v14757_v25 = vmov 0  ;;  %v1795_v48 = vunpack.c.l.b16 %v1670_v36  ;;  %8759 = vmatmul.msk.bf16.gmra.mxu0 %vm14750_vm5, %v9592_v19 }
  0xb2   : > { %8777 = vmatmul.msk.bf16.vlgmr.msrb.gmra.mxu1 %vm14751_vm10, %v2594_v59  ;;  %vm10903_vm8 = vcmp.lt.s32.totalorder %v14752_v8, 7  ;;  %v1796_v34 = vunpack.c.h.b16 %v1670_v36  ;;  %v1802_v20 = vunpack.c.l.b16 %v1679_v41  ;;  %v1803_v13 = vunpack.c.h.b16 %v1679_v41 }
  0xb3   : > { %v14754_v9 = vsel %vm10903_vm8, 4294967295, %v14753_v9  ;;  %vm10909_vm0 = vcmp.lt.s32.totalorder %v14756_v61, 7  ;;  %v2192_v35 = vshrl.u32 %v2167_v6, 16  ;;  %v2195_v12 = vshll.u32 %v2167_v6, 16 }
  0xb4   : > { %14755 = vst [vmem:[#allocation54_spill] sm:$0xff] %v14754_v9  ;;  %v14758_v25 = vsel %vm10909_vm0, 4294967295, %v14757_v25  ;;  %v10917_v44 = vpack.c.b16 %v2562_v7, %v2561_v5  ;;  %v2595_v16 = vshrl.u32 %v10855_v62, 16  ;;  %vm1584_vm4 = vmpackc.low %vm10909_vm0, %vm10909_vm0  ;;  %vm1799_vm7 = vcmp.ne.s32.totalorder %v1795_v48, %v10119_v31  ;;  %v10952_v9 = vld [vmem:[#allocation2 + $0x24] sm:$0xf] }
  0xb5   : > { %14759 = vst [vmem:[#allocation55_spill] sm:$0xff] %v14758_v25  ;;  %vm1800_vm13 = vcmp.ne.s32.totalorder %v1796_v34, %v10195_v63  ;;  %vm1806_vm10 = vcmp.ne.s32.totalorder %v1802_v20, %v10119_v31  ;;  %vm1807_vm5 = vcmp.ne.s32.totalorder %v1803_v13, %v10195_v63  ;;  %v14760_v56 = vmov 0  ;;  %vm14762_vm0 = vmpackc.low %vm10903_vm8, %vm10903_vm8  ;;  %v10950_v20 = vld [vmem:[#allocation2 + $0x20] sm:$0xf] }
  0xb6   : > { %vm10927_vm15 = vmpackc.low %vm1800_vm13, %vm1799_vm7  ;;  %v2194_v54 = vrot.slane %v2192_v35, 3  ;;  %v2197_v5 = vrot.slane %v2195_v12, 4  ;;  %v2599_v62 = vshll.u32 %v10917_v44, 16  ;;  %v1599_v59 = vsel %vm14762_vm0, 65537, %v14643_v30 }
  0xb7   : > { %v14761_v56 = vsel %vm10927_vm15, 4294967295, %v14760_v56  ;;  %vm10938_vm6 = vmpackc.low %vm1807_vm5, %vm1806_vm10  ;;  %v14763_v6 = vmov 0  ;;  %v1878_v7 = vsel %vm10927_vm15, %v1532_v15, 0  ;;  %v1960_v19 = vor.u32 %v1958_v43, %v1956_v40 }
  0xb8   : > { %v14764_v6 = vsel %vm10938_vm6, 4294967295, %v14763_v6  ;;  %v1600_v36 = vsel %vm1584_vm4, 65537, %v14643_v30  ;;  %v1682_v41 = vshrl.u32 %v1599_v59, 16  ;;  %v1879_v8 = vsel %vm10938_vm6, %v1533_v2, 0 }
  0xb9   : > { %14765 = vst [vmem:[#allocation56_spill] sm:$0xff] %v14764_v6  ;;  %v1917_v61 = vunpack.c.l.b16 %v1878_v7  ;;  %v10947_v48 = vor.u32 %v2197_v5, %v2194_v54  ;;  %v1680_v34 = vrot.slane %v10882_v53, 4  ;;  %v1918_v13 = vunpack.c.l.b16 %v1879_v8 }
  0xba   : > { %v1684_v35 = vrot.slane %v1682_v41, 7  ;;  %v1685_v12 = vshll.u32 %v1599_v59, 16  ;;  %v1691_v25 = vshrl.u32 %v1600_v36, 16  ;;  %v2597_v40 = vor.u32 %v2595_v16, %v10877_v3 }
  0xbb   : > { %v2601_v43 = vrot.slane %v2599_v62, 1  ;;  %v1694_v24 = vshll.u32 %v1600_v36, 16  ;;  %vm14766_vm4 = vnez %v14671_v49  ;;  %v1931_v7 = vpack.c.b16 %v1918_v13, %v1917_v61 }
  0xbc   : > { %v2115_v57 = vsel %vm14766_vm4, %v1532_v15, 0  ;;  %v1687_v54 = vor.u32 %v1685_v12, %v1684_v35  ;;  %v1689_v5 = vrot.slane %v1684_v35, 4  ;;  %v10957_v58 = vrot.slane %v1691_v25, 7  ;;  %v1534_v35 = vld [vmem:[#allocation2 + $0x24] sm:$0xf] }
  0xbd   : > { %vm14767_vm7 = vsmask.f32 4352  ;;  %vm14768_vm13 = vnez %v14674_v37  ;;  %v2524_v3 = vsel %vm10927_vm15, %v10950_v20, 0  ;;  %v2525_v15 = vsel %vm10938_vm6, %v10952_v9, 0 }
  0xbe   : > { %v2199_v53 = vsel %vm14767_vm7, %v10853_v26, %v10947_v48  ;;  %v2116_v59 = vsel %vm14768_vm13, %v1533_v2, 0  ;;  %v1962_v16 = vshll.u32 %v1931_v7, 16  ;;  %v1688_v25 = vsel %vm10655_vm14, %v1680_v34, %v1687_v54 }
  0xbf   : > { %v1696_v62 = vor.u32 %v1694_v24, %v10957_v58  ;;  %v2154_v36 = vunpack.c.l.b16 %v2115_v57  ;;  %v1809_v41 = vunpack.c.l.b16 %v1688_v25  ;;  %v1810_v26 = vunpack.c.h.b16 %v1688_v25  ;;  %v1535_v57 = vld [vmem:[#allocation2 + $0x28] sm:$0xf]  ;;  %v9593_v25 = vld [vmem:[#allocation2 + $0x20] sm:$0xff] }
  0xc0   : > { %v2155_v8 = vunpack.c.l.b16 %v2116_v59  ;;  %v2563_v61 = vunpack.c.l.b16 %v2524_v3  ;;  %v1964_v2 = vrot.slane %v1962_v16, 1  ;;  %vm14769_vm0 = vsmask.f32 7424 }
  0xc1   : > { %v2602_v13 = vsel %vm14769_vm0, %v2597_v40, %v2601_v43  ;;  %v1697_v12 = vsel %vm10655_vm14, %v1689_v5, %v1696_v62  ;;  %v2564_v6 = vunpack.c.l.b16 %v2525_v15  ;;  %vm1813_vm10 = vcmp.ne.s32.totalorder %v1809_v41, %v10119_v31  ;;  %vm14770_vm7 = vmmov %vm14769_vm0 }
  0xc2   : > { %vm1814_vm5 = vcmp.ne.s32.totalorder %v1810_v26, %v10195_v63  ;;  %v1816_v34 = vunpack.c.l.b16 %v1697_v12  ;;  %v1817_v54 = vunpack.c.h.b16 %v1697_v12  ;;  %v1965_v24 = vsel %vm14770_vm7, %v1960_v19, %v1964_v2 }
  0xc3   : > { %vm10979_vm8 = vmpackc.low %vm1814_vm5, %vm1813_vm10  ;;  %v14771_v59 = vmov 0  ;;  %v1966_v3 = vshrl.u32 %v1931_v7, 16  ;;  %v2168_v40 = vpack.c.b16 %v2155_v8, %v2154_v36  ;;  %v2603_v16 = vshrl.u32 %v10917_v44, 16 }
  0xc4   : > { %v14772_v59 = vsel %vm10979_vm8, 4294967295, %v14771_v59  ;;  %vm14774_vm0 = vcmask 261120   ;;  %vm1820_vm15 = vcmp.ne.s32.totalorder %v1816_v34, %v10119_v31  ;;  %vm1821_vm13 = vcmp.ne.s32.totalorder %v1817_v54, %v10195_v63 }
  0xc5   : > { %14773 = vst [vmem:[#allocation57_spill] sm:$0xff] %v14772_v59  ;;  %8687 = vmatmul.msk.bf16.gmra.mxu2 %vm14774_vm0, %v1965_v24  ;;  %vm14775_vm6 = vmmov %vm14774_vm0  ;;  %v1880_v19 = vsel %vm10979_vm8, %v1534_v35, 0  ;;  %v10990_v5 = vpack.c.b16 %v2564_v6, %v2563_v61  ;;  %v14777_v7 = vmov 0  ;;  %v2201_v15 = vshrl.u32 %v2168_v40, 16  ;;  %v11015_v61 = vld [vmem:[#allocation2 + $0x28] sm:$0xf] }
  0xc6   : > { %8706 = vmatmul.msk.bf16.gmra.mxu3 %vm14775_vm6, %v2199_v53  ;;  %vm14776_vm10 = vmmov %vm14774_vm0  ;;  %v1919_v44 = vunpack.c.l.b16 %v1880_v19  ;;  %v2204_v62 = vshll.u32 %v2168_v40, 16  ;;  %v9614_v53 = vld [vmem:[%s14216_s2 + $0x60] sm:$0xff]  ;;  %v14781_v6 = vand.u32 7, %v10074_v17  ;;  %v14782_v41 = vmov 0  ;;  %v11032_v19 = vld [vmem:[#allocation2 + $0x2c] sm:$0xf] }
  0xc7   : > { %8778 = vmatmul.msk.bf16.gmra.mxu1 %vm14776_vm10, %v2602_v13  ;;  %vm10993_vm5 = vmpackc.low %vm1821_vm13, %vm1820_vm15  ;;  %v14785_v26 = vand.u32 7, %v10099_v23  ;;  %v14786_v8 = vmov 0  ;;  %v1968_v12 = vor.u32 %v1966_v3, %v1964_v2  ;;  %v2203_v34 = vrot.slane %v2201_v15, 3  ;;  %2942 = vmatpush.bf16.msra.mxu2 %v9614_v53  ;;  %14791 = vst [vmem:[#allocation61_spill] sm:$0xff] %v11032_v19 }
  0xc8   : > { %v14778_v7 = vsel %vm10993_vm5, 4294967295, %v14777_v7  ;;  %vm14780_vm7 = vmmov %vm14774_vm0  ;;  %v1881_v36 = vsel %vm10993_vm5, %v1535_v57, 0  ;;  %vm11005_vm6 = vcmp.lt.s32.totalorder %v14781_v6, 7  ;;  %v2206_v54 = vrot.slane %v2204_v62, 4 }
  0xc9   : > { %14779 = vst [vmem:[#allocation58_spill] sm:$0xff] %v14778_v7  ;;  %8760 = vmatmul.msk.bf16.gmra.mxu0 %vm14780_vm7, %v9593_v25  ;;  %v14783_v41 = vsel %vm11005_vm6, 4294967295, %v14782_v41  ;;  %vm11011_vm15 = vcmp.lt.s32.totalorder %v14785_v26, 7  ;;  %v1920_v13 = vunpack.c.l.b16 %v1881_v36  ;;  %vm1585_vm13 = vmpackc.low %vm11005_vm6, %vm11005_vm6  ;;  %v2605_v17 = vor.u32 %v2603_v16, %v2601_v43  ;;  %v1277_v26 = vpop.f32.mrf.mxu0 }
  0xca   : > { %14784 = vst [vmem:[#allocation59_spill] sm:$0xff] %v14783_v41  ;;  %v14787_v8 = vsel %vm11011_vm15, 4294967295, %v14786_v8  ;;  %v2607_v24 = vshll.u32 %v10990_v5, 16  ;;  %vm1586_vm0 = vmpackc.low %vm11011_vm15, %vm11011_vm15  ;;  %v1601_v23 = vsel %vm1585_vm13, 65537, %v14643_v30  ;;  %vm14789_vm10 = vnez %v14595_v29 }
  0xcb   : > { %14788 = vst [vmem:[#allocation60_spill] sm:$0xff] %v14787_v8  ;;  %v2117_v40 = vsel %vm14789_vm10, %v1534_v35, 0  ;;  %v11027_v2 = vpack.c.b16 %v1920_v13, %v1919_v44  ;;  %v1602_v3 = vsel %vm1586_vm0, 65537, %v14643_v30  ;;  %vm14790_vm7 = vnez %v14598_v38 }
  0xcc   : > { %v2118_v25 = vsel %vm14790_vm7, %v1535_v57, 0  ;;  %v2526_v43 = vsel %vm10979_vm8, %v11015_v61, 0  ;;  %v1700_v16 = vshrl.u32 %v1601_v23, 16  ;;  %v1703_v15 = vshll.u32 %v1601_v23, 16 }
  0xcd   : > { %v1709_v62 = vshrl.u32 %v1602_v3, 16  ;;  %v1712_v53 = vshll.u32 %v1602_v3, 16  ;;  %v1970_v36 = vshll.u32 %v11027_v2, 16  ;;  %v11038_v35 = vor.u32 %v2206_v54, %v2203_v34 }
  0xce   : > { %v1698_v44 = vrot.slane %v10957_v58, 4  ;;  %v2156_v6 = vunpack.c.l.b16 %v2117_v40  ;;  %v1702_v13 = vrot.slane %v1700_v16, 7  ;;  %v2157_v41 = vunpack.c.l.b16 %v2118_v25 }
  0xcf   : > { %v11041_v57 = vrot.slane %v1709_v62, 7  ;;  %v2527_v8 = vsel %vm10993_vm5, %v11032_v19, 0  ;;  %v11046_v59 = vrot.slane %v1970_v36, 1  ;;  %v11048_v23 = vrot.slane %v2607_v24, 1 }
  0xd0   : > { %v2565_v3 = vunpack.c.l.b16 %v2526_v43  ;;  %v2566_v38 = vunpack.c.l.b16 %v2527_v8  ;;  %v1705_v34 = vor.u32 %v1703_v15, %v1702_v13  ;;  %v1707_v54 = vrot.slane %v1702_v13, 4 }
  0xd1   : > { %v1714_v58 = vor.u32 %v1712_v53, %v11041_v57  ;;  %v2169_v40 = vpack.c.b16 %v2157_v41, %v2156_v6  ;;  %vm14792_vm13 = vsmask.f32 7424  ;;  %vm14793_vm0 = vsmask.f32 4352 }
  0xd2   : > { %v1973_v16 = vsel %vm14792_vm13, %v1968_v12, %v11046_v59  ;;  %v2208_v25 = vsel %vm14793_vm0, %v10947_v48, %v11038_v35  ;;  %v1706_v62 = vsel %vm10655_vm14, %v1698_v44, %v1705_v34  ;;  %vm14794_vm6 = vmmov %vm14792_vm13  ;;  %v1536_v12 = vld [vmem:[#allocation2 + $0x2c] sm:$0xf]  ;;  %v1974_v6 = vshrl.u32 %v11027_v2, 16  ;;  %v1537_v34 = vld [vmem:[#allocation2 + $0x30] sm:$0xf] }
  0xd3   : > { %v1715_v24 = vsel %vm10655_vm14, %v1707_v54, %v1714_v58  ;;  %v2210_v43 = vshrl.u32 %v2169_v40, 16  ;;  %v2213_v8 = vshll.u32 %v2169_v40, 16  ;;  %v1823_v15 = vunpack.c.l.b16 %v1706_v62 }
  0xd4   : > { %v1824_v36 = vunpack.c.h.b16 %v1706_v62  ;;  %v1830_v13 = vunpack.c.l.b16 %v1715_v24  ;;  %v1831_v53 = vunpack.c.h.b16 %v1715_v24  ;;  %v2610_v41 = vsel %vm14794_vm6, %v2605_v17, %v11048_v23 }
  0xd5   : > { %v11063_v7 = vpack.c.b16 %v2566_v38, %v2565_v3  ;;  %v14795_v48 = vand.u32 7, %v10370_v18  ;;  %v14796_v44 = vmov 0  ;;  %vm1827_vm0 = vcmp.ne.s32.totalorder %v1823_v15, %v10119_v31  ;;  %v9594_v38 = vld [vmem:[#allocation2 + $0x28] sm:$0xff]  ;;  %v1486_v3 = vpop.f32.mrf.mxu1 }
  0xd6   : > { %vm1828_vm15 = vcmp.ne.s32.totalorder %v1824_v36, %v10195_v63  ;;  %vm11074_vm5 = vcmp.ne.s32.totalorder %v1830_v13, %v10119_v31  ;;  %vm1835_vm6 = vcmp.ne.s32.totalorder %v1831_v53, %v10195_v63  ;;  %vm14801_vm7 = vcmask 261120   ;;  %v11114_v36 = vpop.f32.mrf.mxu0 }
  0xd7   : > { %vm11067_vm13 = vcmp.lt.s32.totalorder %v14795_v48, 7  ;;  %8688 = vmatmul.msk.bf16.gmra.mxu2 %vm14801_vm7, %v1973_v16  ;;  %vm14802_vm10 = vmmov %vm14801_vm7  ;;  %v14803_v18 = vmov 0  ;;  %v2212_v17 = vrot.slane %v2210_v43, 3  ;;  %v2611_v2 = vshrl.u32 %v10990_v5, 16  ;;  %v9616_v16 = vld [vmem:[%s14216_s2 + $0x70] sm:$0xff] }
  0xd8   : > { %v14797_v44 = vsel %vm11067_vm13, 4294967295, %v14796_v44  ;;  %vm1587_vm8 = vmpackc.low %vm11067_vm13, %vm11067_vm13  ;;  %8707 = vmatmul.msk.bf16.gmra.mxu3 %vm14802_vm10, %v2208_v25  ;;  %v14806_v58 = vand.u32 7, %v10381_v10  ;;  %v14807_v40 = vmov 0  ;;  %v9618_v25 = vld [vmem:[%s14216_s2 + $0x80] sm:$0xff]  ;;  %v14811_v10 = vmov 0 }
  0xd9   : > { %14798 = vst [vmem:[#allocation62_spill] sm:$0xff] %v14797_v44  ;;  %vm11084_vm4 = vmpackc.low %vm1828_vm15, %vm1827_vm0  ;;  %v1603_v62 = vsel %vm1587_vm8, 65537, %v14643_v30  ;;  %v2215_v24 = vrot.slane %v2213_v8, 4  ;;  %v11111_v43 = vadd.f32 %v1486_v3, %v1277_v26  ;;  %v2615_v48 = vshll.u32 %v11063_v7, 16  ;;  %3088 = vmatpush.bf16.msra.mxu3 %v9616_v16  ;;  %3339 = vmatpush.bf16.msra.mxu0 %v9618_v25 }
  0xda   : > { %v14804_v18 = vsel %vm11084_vm4, 4294967295, %v14803_v18  ;;  %vm11091_vm11 = vcmp.lt.s32.totalorder %v14806_v58, 7  ;;  %vm14810_vm15 = vmmov %vm14801_vm7  ;;  %v1882_v5 = vsel %vm11084_vm4, %v1536_v12, 0  ;;  %v1718_v15 = vshrl.u32 %v1603_v62, 16 }
  0xdb   : > { %14805 = vst [vmem:[#allocation63_spill] sm:$0xff] %v14804_v18  ;;  %v14808_v40 = vsel %vm11091_vm11, 4294967295, %v14807_v40  ;;  %8779 = vmatmul.msk.bf16.gmra.mxu1 %vm14810_vm15, %v2610_v41  ;;  %vm11105_vm10 = vmpackc.low %vm1835_vm6, %vm11074_vm5  ;;  %v1921_v53 = vunpack.c.l.b16 %v1882_v5  ;;  %v11118_v41 = vpop.f32.mrf.mxu2  ;;  %v1716_v26 = vrot.slane %v11041_v57, 4  ;;  %v1721_v3 = vshll.u32 %v1603_v62, 16 }
  0xdc   : > { %14809 = vst [vmem:[#allocation64_spill] sm:$0xff] %v14808_v40  ;;  %v14812_v10 = vsel %vm11105_vm10, 4294967295, %v14811_v10  ;;  %vm14814_vm8 = vmmov %vm14801_vm7  ;;  %v1883_v13 = vsel %vm11105_vm10, %v1537_v34, 0  ;;  %vm14815_vm7 = vnez %v14601_v33  ;;  %vm14816_vm0 = vnez %v14606_v27  ;;  %v11130_v40 = vld [vmem:[#allocation2 + $0x30] sm:$0xf] }
  0xdd   : > { %14813 = vst [vmem:[#allocation65_spill] sm:$0xff] %v14812_v10  ;;  %8761 = vmatmul.msk.bf16.gmra.mxu0 %vm14814_vm8, %v9594_v38  ;;  %vm1588_vm5 = vmpackc.low %vm11091_vm11, %vm11091_vm11  ;;  %v1922_v8 = vunpack.c.l.b16 %v1883_v13  ;;  %v1720_v38 = vrot.slane %v1718_v15, 7  ;;  %v2119_v5 = vsel %vm14815_vm7, %v1536_v12, 0  ;;  %v2120_v19 = vsel %vm14816_vm0, %v1537_v34, 0  ;;  %v11135_v13 = vld [vmem:[#allocation2 + $0x34] sm:$0xf]  ;;  %v11231_v18 = vpop.f32.mrf.mxu1 }
  0xde   : > { %v1604_v54 = vsel %vm1588_vm5, 65537, %v14643_v30  ;;  %v2613_v57 = vor.u32 %v2611_v2, %v11048_v23  ;;  %v2158_v25 = vunpack.c.l.b16 %v2119_v5  ;;  %v11137_v15 = vor.u32 %v2215_v24, %v2212_v17 }
  0xdf   : > { %v1727_v58 = vshrl.u32 %v1604_v54, 16  ;;  %v1730_v44 = vshll.u32 %v1604_v54, 16  ;;  %v11132_v29 = vpack.c.b16 %v1922_v8, %v1921_v53  ;;  %v1723_v16 = vor.u32 %v1721_v3, %v1720_v38 }
  0xe0   : > { %v1725_v62 = vrot.slane %v1720_v38, 4  ;;  %v2159_v33 = vunpack.c.l.b16 %v2120_v19  ;;  %v11142_v27 = vrot.slane %v2615_v48, 1  ;;  %v2528_v23 = vsel %vm11084_vm4, %v11130_v40, 0  ;;  %v11154_v48 = vld [vmem:[#allocation2 + $0x34] sm:$0xf] }
  0xe1   : > { %v11139_v54 = vrot.slane %v1727_v58, 7  ;;  %v1978_v12 = vshll.u32 %v11132_v29, 16  ;;  %v1724_v34 = vsel %vm10655_vm14, %v1716_v26, %v1723_v16  ;;  %v2529_v24 = vsel %vm11105_vm10, %v11135_v13, 0 }
  0xe2   : > { %v1837_v53 = vunpack.c.l.b16 %v1724_v34  ;;  %v1838_v17 = vunpack.c.h.b16 %v1724_v34  ;;  %v1976_v19 = vor.u32 %v1974_v6, %v11046_v59  ;;  %v2170_v38 = vpack.c.b16 %v2159_v33, %v2158_v25  ;;  %v11164_v59 = vpop.f32.mrf.mxu0 }
  0xe3   : > { %v1732_v2 = vor.u32 %v1730_v44, %v11139_v54  ;;  %v1980_v8 = vrot.slane %v1978_v12, 1  ;;  %v14817_v44 = vmov 0  ;;  %v2567_v5 = vunpack.c.l.b16 %v2528_v23  ;;  %v11171_v25 = vpop.f32.mrf.mxu2 }
  0xe4   : > { %vm1841_vm6 = vcmp.ne.s32.totalorder %v1837_v53, %v10119_v31  ;;  %vm1842_vm15 = vcmp.ne.s32.totalorder %v1838_v17, %v10195_v63  ;;  %v2568_v16 = vunpack.c.l.b16 %v2529_v24  ;;  %vm14820_vm5 = vsmask.f32 4352  ;;  %14822 = vst [vmem:[#allocation67_spill] sm:$0xff] %v11171_v25 }
  0xe5   : > { %v1733_v26 = vsel %vm10655_vm14, %v1725_v62, %v1732_v2  ;;  %vm11160_vm8 = vmpackc.low %vm1842_vm15, %vm1841_vm6  ;;  %v2217_v33 = vsel %vm14820_vm5, %v11038_v35, %v11137_v15  ;;  %vm14821_vm11 = vsmask.f32 7424  ;;  %v1539_v62 = vld [vmem:[#allocation2 + $0x38] sm:$0xf]  ;;  %v2219_v23 = vshrl.u32 %v2170_v38, 16 }
  0xe6   : > { %v14818_v44 = vsel %vm11160_vm8, 4294967295, %v14817_v44  ;;  %v1844_v3 = vunpack.c.l.b16 %v1733_v26  ;;  %v1845_v58 = vunpack.c.h.b16 %v1733_v26  ;;  %v2618_v6 = vsel %vm14821_vm11, %v2613_v57, %v11142_v27  ;;  %vm14823_vm6 = vmmov %vm14821_vm11 }
  0xe7   : > { %14819 = vst [vmem:[#allocation66_spill] sm:$0xff] %v14818_v44  ;;  %v1884_v12 = vsel %vm11160_vm8, %v11154_v48, 0  ;;  %v1981_v34 = vsel %vm14823_vm6, %v1976_v19, %v1980_v8  ;;  %v14824_v2 = vmov 0  ;;  %v2222_v57 = vshll.u32 %v2170_v38, 16 }
  0xe8   : > { %vm1848_vm15 = vcmp.ne.s32.totalorder %v1844_v3, %v10119_v31  ;;  %vm1849_vm13 = vcmp.ne.s32.totalorder %v1845_v58, %v10195_v63  ;;  %v1923_v35 = vunpack.c.l.b16 %v1884_v12  ;;  %v14827_v53 = vand.u32 7, %v10475_v50  ;;  %v9595_v50 = vld [vmem:[#allocation2 + $0x30] sm:$0xff] }
  0xe9   : > { %vm11179_vm10 = vmpackc.low %vm1849_vm13, %vm1848_vm15  ;;  %v14828_v17 = vmov 0  ;;  %v14831_v24 = vand.u32 7, %v10478_v1  ;;  %v14832_v19 = vmov 0  ;;  %v11197_v3 = vpack.c.b16 %v2568_v16, %v2567_v5 }
  0xea   : > { %v14825_v2 = vsel %vm11179_vm10, 4294967295, %v14824_v2  ;;  %vm11185_vm11 = vcmp.lt.s32.totalorder %v14827_v53, 7  ;;  %v1885_v26 = vsel %vm11179_vm10, %v1539_v62, 0  ;;  %vm14835_vm6 = vcmask 261120   ;;  %v11217_v25 = vpop.f32.mrf.mxu0 }
  0xeb   : > { %14826 = vst [vmem:[#allocation68_spill] sm:$0xff] %v14825_v2  ;;  %v14829_v17 = vsel %vm11185_vm11, 4294967295, %v14828_v17  ;;  %vm11191_vm5 = vcmp.lt.s32.totalorder %v14831_v24, 7  ;;  %vm1589_vm13 = vmpackc.low %vm11185_vm11, %vm11185_vm11  ;;  %8689 = vmatmul.msk.bf16.gmra.mxu2 %vm14835_vm6, %v1981_v34  ;;  %v1924_v38 = vunpack.c.l.b16 %v1885_v26  ;;  %v1982_v1 = vshrl.u32 %v11132_v29, 16 }
  0xec   : > { %14830 = vst [vmem:[#allocation69_spill] sm:$0xff] %v14829_v17  ;;  %v14833_v19 = vsel %vm11191_vm5, 4294967295, %v14832_v19  ;;  %vm14836_vm15 = vmmov %vm14835_vm6  ;;  %v1605_v58 = vsel %vm1589_vm13, 65537, %v14643_v30  ;;  %v2619_v5 = vshrl.u32 %v11063_v7, 16  ;;  %v2221_v29 = vrot.slane %v2219_v23, 3 }
  0xed   : > { %14834 = vst [vmem:[#allocation70_spill] sm:$0xff] %v14833_v19  ;;  %8708 = vmatmul.msk.bf16.gmra.mxu3 %vm14836_vm15, %v2217_v33  ;;  %vm1590_vm4 = vmpackc.low %vm11191_vm5, %vm11191_vm5  ;;  %v1736_v12 = vshrl.u32 %v1605_v58, 16  ;;  %v1739_v34 = vshll.u32 %v1605_v58, 16  ;;  %v11213_v33 = vpack.c.b16 %v1924_v38, %v1923_v35  ;;  %v2224_v53 = vrot.slane %v2222_v57, 4  ;;  %v769_v58 = vld [vmem:[%s10048_s25 + $0x78] sm:$0xff] }
  0xee   : > { %vm14837_vm0 = vmmov %vm14835_vm6  ;;  %v1606_v16 = vsel %vm1590_vm4, 65537, %v14643_v30  ;;  %v2623_v26 = vshll.u32 %v11197_v3, 16  ;;  %v1734_v19 = vrot.slane %v11139_v54, 4  ;;  %vm14839_vm4 = vnez %v14637_v0  ;;  %v11228_v54 = vpop.f32.mrf.mxu2  ;;  %v11237_v0 = vld [vmem:[#allocation2 + $0x38] sm:$0xf] }
  0xef   : > { %8780 = vmatmul.msk.bf16.gmra.mxu1 %vm14837_vm0, %v2618_v6  ;;  %vm14838_vm6 = vmmov %vm14837_vm0  ;;  %v1745_v24 = vshrl.u32 %v1606_v16, 16  ;;  %v1738_v17 = vrot.slane %v1736_v12, 7  ;;  %v1748_v6 = vshll.u32 %v1606_v16, 16  ;;  %v2121_v30 = vsel %vm14839_vm4, %v11154_v48, 0 }
  0xf0   : > { %8762 = vmatmul.msk.bf16.gmra.mxu0 %vm14838_vm6, %v9595_v50  ;;  %v1986_v35 = vshll.u32 %v11213_v33, 16  ;;  %vm14840_vm0 = vnez %v14653_v60  ;;  %v1984_v38 = vor.u32 %v1982_v1, %v1980_v8  ;;  %v11226_v10 = vor.u32 %v2224_v53, %v2221_v29  ;;  %v11244_v29 = vld [vmem:[#allocation2 + $0x3c] sm:$0xf] }
  0xf1   : > { %v1747_v7 = vrot.slane %v1745_v24, 7  ;;  %v1741_v50 = vor.u32 %v1739_v34, %v1738_v17  ;;  %v1743_v23 = vrot.slane %v1738_v17, 4  ;;  %v2122_v57 = vsel %vm14840_vm0, %v1539_v62, 0  ;;  %v1506_v24 = vpop.f32.mrf.mxu3 }
  0xf2   : > { %v2621_v16 = vor.u32 %v2619_v5, %v11142_v27  ;;  %v11233_v48 = vrot.slane %v2623_v26, 1  ;;  %v2160_v17 = vunpack.c.l.b16 %v2121_v30  ;;  %v785_v62 = vpack.c.bf16 %v769_v58, %v769_v58  ;;  %v1541_v30 = vld [vmem:[#allocation2 + $0x40] sm:$0xf]  ;;  %v11257_v58 = vpop.f32.mrf.mxu0 }
  0xf3   : > { %v1750_v12 = vor.u32 %v1748_v6, %v1747_v7  ;;  %v1742_v34 = vsel %vm10655_vm14, %v1734_v19, %v1741_v50  ;;  %v11240_v8 = vadd.f32 %v1506_v24, %v11118_v41  ;;  %v2161_v5 = vunpack.c.l.b16 %v2122_v57  ;;  %v1540_v19 = vld [vmem:[#allocation2 + $0x3c] sm:$0xf] }
  0xf4   : > { %v1851_v27 = vunpack.c.l.b16 %v1742_v34  ;;  %v1988_v53 = vrot.slane %v1986_v35, 1  ;;  %v1852_v26 = vunpack.c.h.b16 %v1742_v34  ;;  %vm14842_vm13 = vcmask 257024  }
  0xf5   : > { %14841 = vst [vmem:[#allocation71_spill] sm:$0xff] %v11240_v8  ;;  %v1751_v1 = vsel %vm10655_vm14, %v1743_v23, %v1750_v12  ;;  %v2530_v41 = vsel %vm11160_vm8, %v11237_v0, 0  ;;  %v2531_v11 = vsel %vm11179_vm10, %v11244_v29, 0  ;;  %v14844_v50 = vmov 0  ;;  %v1491_v8 = vpop.f32.mrf.mxu1 }
  0xf6   : > { %v1858_v6 = vunpack.c.l.b16 %v1751_v1  ;;  %v1859_v60 = vunpack.c.h.b16 %v1751_v1  ;;  %802 = vst.msk [vmem:[#allocation2 + $0x44] sm:$0xf] %vm14842_vm13, %v785_v62  ;;  %vm1855_vm15 = vcmp.ne.s32.totalorder %v1851_v27, %v10119_v31  ;;  %vm1856_vm14 = vcmp.ne.s32.totalorder %v1852_v26, %v10195_v63 }
  0xf7   : > { %vm14843_vm13 = vsmask.f32 4352  ;;  %vm11262_vm11 = vmpackc.low %vm1856_vm14, %vm1855_vm15  ;;  %v1752_v23 = vrot.slane %v1747_v7, 4  ;;  %vm14847_vm8 = vsmask.f32 7424  ;;  %v14849_v12 = vmov 0 }
  0xf8   : > { %vm1862_vm6 = vcmp.ne.s32.totalorder %v1858_v6, %v10119_v31  ;;  %vm1863_vm5 = vcmp.ne.s32.totalorder %v1859_v60, %v10195_v63  ;;  %v2226_v35 = vsel %vm14843_vm13, %v11137_v15, %v11226_v10  ;;  %v14845_v50 = vsel %vm11262_vm11, 4294967295, %v14844_v50  ;;  %vm14848_vm0 = vmmov %vm14847_vm8  ;;  %v9596_v6 = vld [vmem:[#allocation2 + $0x38] sm:$0xff] }
  0xf9   : > { %14846 = vst [vmem:[#allocation72_spill] sm:$0xff] %v14845_v50  ;;  %v1989_v57 = vsel %vm14847_vm8, %v1984_v38, %v1988_v53  ;;  %v2626_v60 = vsel %vm14848_vm0, %v2621_v16, %v11233_v48  ;;  %vm11269_vm4 = vmpackc.low %vm1863_vm5, %vm1862_vm6  ;;  %v1886_v24 = vsel %vm11262_vm11, %v1540_v19, 0  ;;  %v2171_v34 = vpack.c.b16 %v2161_v5, %v2160_v17  ;;  %v11279_v16 = vpop.f32.mrf.mxu2 }
  0xfa   : > { %v14850_v12 = vsel %vm11269_vm4, 4294967295, %v14849_v12  ;;  %v1887_v15 = vsel %vm11269_vm4, %v1541_v30, 0  ;;  %v1925_v62 = vunpack.c.l.b16 %v1886_v24  ;;  %v2569_v1 = vunpack.c.l.b16 %v2530_v41  ;;  %14854 = vst [vmem:[#allocation74_spill] sm:$0xff] %v11279_v16 }
  0xfb   : > { %14851 = vst [vmem:[#allocation73_spill] sm:$0xff] %v14850_v12  ;;  %v2570_v27 = vunpack.c.l.b16 %v2531_v11  ;;  %v1926_v7 = vunpack.c.l.b16 %v1887_v15  ;;  %v1865_v26 = vunpack.c.l.b16 %v1752_v23  ;;  %v1866_v38 = vunpack.c.h.b16 %v1752_v23 }
  0xfc   : > { %vm14852_vm8 = vcmask 261120   ;;  %v2228_v5 = vshrl.u32 %v2171_v34, 16  ;;  %v2231_v2 = vshll.u32 %v2171_v34, 16  ;;  %v11285_v41 = vadd.f32 %v1491_v8, %v11164_v59 }
  0xfd   : > { %8690 = vmatmul.msk.bf16.gmra.mxu2 %vm14852_vm8, %v1989_v57  ;;  %vm14853_vm5 = vmmov %vm14852_vm8  ;;  %v11282_v17 = vpack.c.b16 %v1926_v7, %v1925_v62  ;;  %v11287_v11 = vpack.c.b16 %v2570_v27, %v2569_v1  ;;  %vm1869_vm14 = vcmp.ne.s32.totalorder %v1865_v26, %v10119_v31  ;;  %vm1870_vm6 = vcmp.ne.s32.totalorder %v1866_v38, %v10195_v63  ;;  %v11296_v57 = vpop.f32.mrf.mxu0  ;;  %v1542_v15 = vld [vmem:[#allocation2 + $0x44] sm:$0x1]  ;;  %v11308_v1 = vld [vmem:[#allocation2 + $0x40] sm:$0xf] }
  0xfe   : > { %8709 = vmatmul.msk.bf16.gmra.mxu3 %vm14853_vm5, %v2226_v35  ;;  %vm14855_vm0 = vmmov %vm14853_vm5  ;;  %v2123_v35 = vsel %vm10625_vm1, %v1540_v19, 0  ;;  %vm14857_vm13 = vnez %v14690_v39  ;;  %v2230_v8 = vrot.slane %v2228_v5, 3  ;;  %v2233_v24 = vrot.slane %v2231_v2, 4  ;;  %v11306_v19 = vpop.f32.mrf.mxu3  ;;  %v9599_v12 = vld [vmem:[#allocation2 + $0x40] sm:$0xff] }
  0xff   : > { %8781 = vmatmul.msk.bf16.gmra.mxu1 %vm14855_vm0, %v2626_v60  ;;  %vm14856_vm15 = vmmov %vm14855_vm0  ;;  %v2124_v23 = vsel %vm14857_vm13, %v1541_v30, 0  ;;  %v1990_v60 = vshrl.u32 %v11213_v33, 16  ;;  %v1994_v59 = vshll.u32 %v11282_v17, 16  ;;  %v2627_v34 = vshrl.u32 %v11197_v3, 16  ;;  %14861 = vst [vmem:[#allocation76_spill] sm:$0xff] %v11306_v19 }
 0x100   : > { %8763 = vmatmul.msk.bf16.gmra.mxu0 %vm14856_vm15, %v9596_v6  ;;  %v2631_v31 = vshll.u32 %v11287_v11, 16  ;;  %vm11302_vm8 = vmpackc.low %vm1870_vm6, %vm1869_vm14  ;;  %v14858_v63 = vmov 0  ;;  %v2162_v30 = vunpack.c.l.b16 %v2123_v35  ;;  %v2163_v62 = vunpack.c.l.b16 %v2124_v23  ;;  %v11310_v33 = vld [vmem:[#allocation2 + $0x44] sm:$0xf] }
 0x101   : > { %v14859_v63 = vsel %vm11302_vm8, 4294967295, %v14858_v63  ;;  %14862 = vst [vmem:[#allocation77_spill] sm:$0xff] %v11310_v33  ;;  %v1992_v27 = vor.u32 %v1990_v60, %v1988_v53  ;;  %v1996_v7 = vrot.slane %v1994_v59, 1  ;;  %v11312_v2 = vor.u32 %v2233_v24, %v2230_v8  ;;  %v11316_v26 = vpop.f32.mrf.mxu2  ;;  %v11325_v53 = vpop.f32.mrf.mxu1 }
 0x102   : > { %14860 = vst [vmem:[#allocation75_spill] sm:$0xff] %v14859_v63  ;;  %v1888_v3 = vsel %vm11302_vm8, %v1542_v15, 0  ;;  %v2629_v38 = vor.u32 %v2627_v34, %v11233_v48  ;;  %v2633_v6 = vrot.slane %v2631_v31, 1  ;;  %v2532_v5 = vsel %vm11262_vm11, %v11308_v1, 0  ;;  %v2108_v15 = vld [vmem:[#allocation2 + $0x44] sm:$0xf] }
 0x103   : > { %v2533_v35 = vsel %vm11269_vm4, %v11310_v33, 0  ;;  %v2172_v23 = vpack.c.b16 %v2163_v62, %v2162_v30  ;;  %v1927_v60 = vunpack.c.l.b16 %v1888_v3  ;;  %vm14863_vm5 = vsmask.f32 7424  ;;  %v2752_v3 = vld [vmem:[#allocation2 + $0x8] sm:$0x8] }
 0x104   : > { %v1997_v8 = vsel %vm14863_vm5, %v1992_v27, %v1996_v7  ;;  %vm14864_vm0 = vsmask.f32 4352  ;;  %v2571_v24 = vunpack.c.l.b16 %v2532_v5  ;;  %v2572_v34 = vunpack.c.l.b16 %v2533_v35  ;;  %vm14865_vm15 = vmmov %vm14863_vm5 }
 0x105   : > { %v11327_v59 = vpop.f32.mrf.mxu0  ;;  %v2235_v48 = vsel %vm14864_vm0, %v11226_v10, %v11312_v2  ;;  %v2634_v31 = vsel %vm14865_vm15, %v2629_v38, %v2633_v6  ;;  %v2237_v16 = vshrl.u32 %v2172_v23, 16  ;;  %v2240_v19 = vshll.u32 %v2172_v23, 16 }
 0x106   : > { %vm14866_vm14 = vcmask 261120   ;;  %v1936_v30 = vpack.c.b16 %v1927_v60, %v1927_v60  ;;  %v1511_v62 = vpop.f32.mrf.mxu3  ;;  %v11337_v27 = vpack.c.b16 %v2572_v34, %v2571_v24  ;;  %vm14869_vm5 = vnez %v14696_v55 }
 0x107   : > { %vm14867_vm6 = vmmov %vm14866_vm14  ;;  %v2125_v10 = vsel %vm14869_vm5, %v2108_v15, 0  ;;  %v11342_v38 = vadd.f32 %v1511_v62, %v11228_v54  ;;  %v1998_v5 = vshrl.u32 %v11282_v17, 16  ;;  %v2239_v35 = vrot.slane %v2237_v16, 3  ;;  %v3146_v15 = vld [vmem:[#allocation2 + $0xc] sm:$0xf] }
 0x108   : > { %vm14868_vm4 = vmmov %vm14867_vm6  ;;  %v2242_v23 = vrot.slane %v2240_v19, 4  ;;  %v2635_v60 = vshrl.u32 %v11287_v11, 16  ;;  %v2164_v24 = vunpack.c.l.b16 %v2125_v10  ;;  %v2754_v34 = vsel %vm10235_vm3, %v2752_v3, 0  ;;  %v3147_v54 = vld [vmem:[#allocation2 + $0x10] sm:$0xf]  ;;  %v14873_v10 = vld [vmem:[#allocation49_spill] sm:$0xff] }
 0x109   : > { %14870 = vst [vmem:[#allocation78_spill] sm:$0xff] %v11342_v38  ;;  %vm14871_vm0 = vmmov %vm14868_vm4  ;;  %v1496_v62 = vpop.f32.mrf.mxu1  ;;  %v2639_v17 = vshll.u32 %v11337_v27, 16  ;;  %v3163_v16 = vsel %vm10700_vm12, %v3146_v15, 0  ;;  %v3164_v11 = vsel %vm10720_vm9, %v3147_v54, 0  ;;  %v14874_v3 = vld [vmem:[#allocation17_spill] sm:$0xff]  ;;  %v2793_v38 = vunpack.c.l.b16 %v2754_v34 }
 0x10a   : > { %v11362_v19 = vadd.f32 %v1496_v62, %v11257_v58  ;;  %v3202_v58 = vunpack.c.l.b16 %v3163_v16  ;;  %v2637_v34 = vor.u32 %v2635_v60, %v2633_v6 }
 0x10b   : > { %v2641_v33 = vrot.slane %v2639_v17, 1 }
 0x10d   : > { %8691 = vmatmul.msk.bf16.gmra.mxu2 %vm14866_vm14, %v1997_v8  ;;  %v11347_v8 = vpop.f32.mrf.mxu2  ;;  %vm14879_vm14 = vnez %v14878_v22 }
 0x10e   : > { %8710 = vmatmul.msk.bf16.gmra.mxu3 %vm14867_vm6, %v2235_v48  ;;  %14872 = vst [vmem:[#allocation79_spill] sm:$0xff] %v11347_v8  ;;  %v2002_v48 = vshll.u32 %v1936_v30, 16  ;;  %v2000_v30 = vor.u32 %v1998_v5, %v1996_v7  ;;  %v14876_v8 = vld [vmem:[#allocation18_spill] sm:$0xff]  ;;  %v3165_v15 = vsel %vm14879_vm14, %v3148_v28, 0  ;;  %vm14880_vm6 = vnez %v14715_v42  ;;  %v2517_v7 = vld [vmem:[#allocation2 + $0x48] sm:$0x1] }
 0x10f   : > { %8782 = vmatmul.msk.bf16.gmra.mxu1 %vm14868_vm4, %v2634_v31  ;;  %v11351_v31 = vpop.f32.mrf.mxu0  ;;  %vm14875_vm4 = vnez %v14874_v3  ;;  %vm14877_vm15 = vnez %v14876_v8  ;;  %v3203_v5 = vunpack.c.l.b16 %v3164_v11  ;;  %v3204_v21 = vunpack.c.l.b16 %v3165_v15 }
 0x110   : > { %8764 = vmatmul.msk.bf16.gmra.mxu0 %vm14871_vm0, %v9599_v12  ;;  %v2755_v12 = vsel %vm10265_vm2, %v10794_v47, 0  ;;  %v2756_v51 = vsel %vm14875_vm4, %v14873_v10, 0  ;;  %v2757_v55 = vsel %vm14877_vm15, %v10821_v14, 0  ;;  %v3149_v47 = vld [vmem:[#allocation2 + $0x18] sm:$0xf]  ;;  %v11374_v10 = vpop.f32.mrf.mxu3  ;;  %v2004_v50 = vrot.slane %v2002_v48, 1 }
 0x111   : > { %v3166_v54 = vsel %vm14880_vm6, %v3149_v47, 0  ;;  %v2794_v62 = vunpack.c.l.b16 %v2755_v12  ;;  %v11376_v8 = vor.u32 %v2242_v23, %v2239_v35  ;;  %v2795_v14 = vunpack.c.l.b16 %v2756_v51 }
 0x112   : > { %v3205_v3 = vunpack.c.l.b16 %v3166_v54  ;;  %v2796_v39 = vunpack.c.l.b16 %v2757_v55  ;;  %v3219_v22 = vpack.c.b16 %v3203_v5, %v3202_v58  ;;  %v2173_v42 = vpack.c.b16 %v2164_v24, %v2164_v24  ;;  %v11387_v55 = vpop.f32.mrf.mxu1 }
 0x113   : > { %v2534_v12 = vsel %vm11302_vm8, %v2517_v7, 0  ;;  %v2810_v16 = vpack.c.b16 %v2794_v62, %v2793_v38  ;;  %vm14881_vm0 = vsmask.f32 7424  ;;  %vm14882_vm6 = vsmask.f32 4352 }
 0x114   : > { %v11378_v28 = vpack.c.b16 %v3205_v3, %v3204_v21  ;;  %v3229_v11 = vshrl.u32 %v3219_v22, 16  ;;  %v3231_v47 = vshll.u32 %v3219_v22, 16  ;;  %v2005_v48 = vsel %vm14881_vm0, %v2000_v30, %v2004_v50  ;;  %vm14883_vm14 = vmmov %vm14881_vm0 }
 0x115   : > { %v2244_v51 = vsel %vm14882_vm6, %v11312_v2, %v11376_v8  ;;  %v2811_v6 = vpack.c.b16 %v2796_v39, %v2795_v14  ;;  %v11391_v35 = vpop.f32.mrf.mxu2  ;;  %v2642_v23 = vsel %vm14883_vm14, %v2637_v34, %v2641_v33  ;;  %v2573_v38 = vunpack.c.l.b16 %v2534_v12  ;;  %vm14887_vm4 = vmmov %vm14883_vm14 }
 0x116   : > { %v3236_v15 = vshll.u32 %v11378_v28, 16  ;;  %v3233_v60 = vrot.slane %v3231_v47, 1  ;;  %v2246_v24 = vshrl.u32 %v2173_v42, 16  ;;  %vm14884_vm15 = vcmask 261120  }
 0x117   : > { %v11389_v21 = vpop.f32.mrf.mxu0  ;;  %vm14885_vm0 = vmmov %vm14884_vm15  ;;  %v2249_v50 = vshll.u32 %v2173_v42, 16  ;;  %v2820_v17 = vshrl.u32 %v2810_v16, 16  ;;  %v2823_v2 = vshll.u32 %v2810_v16, 16  ;;  %v2828_v39 = vshrl.u32 %v2811_v6, 16 }
 0x118   : > { %v3238_v22 = vrot.slane %v3236_v15, 1  ;;  %v3234_v30 = vor.u32 %v3233_v60, %v3229_v11  ;;  %vm14886_vm6 = vmmov %vm14885_vm0  ;;  %v2831_v3 = vshll.u32 %v2811_v6, 16  ;;  %v2582_v54 = vpack.c.b16 %v2573_v38, %v2573_v38  ;;  %v1516_v62 = vpop.f32.mrf.mxu3  ;;  %v3151_v38 = vld [vmem:[#allocation2 + $0x20] sm:$0xf] }
 0x119   : > { %v2248_v7 = vrot.slane %v2246_v24, 3  ;;  %vm14888_vm14 = vmmov %vm14885_vm0  ;;  %v11400_v5 = vadd.f32 %v1516_v62, %v11316_v26  ;;  %v2251_v14 = vrot.slane %v2249_v50, 4  ;;  %v2822_v34 = vrot.slane %v2820_v17, 3  ;;  %v14891_v60 = vld [vmem:[#allocation50_spill] sm:$0xff] }
 0x11a   : > { %v3239_v58 = vsel %vm14887_vm4, %v3234_v30, %v3238_v22  ;;  %v2825_v42 = vrot.slane %v2823_v2, 4  ;;  %v1501_v12 = vpop.f32.mrf.mxu1  ;;  %v2830_v16 = vrot.slane %v2828_v39, 3  ;;  %v2833_v11 = vrot.slane %v2831_v3, 4 }
 0x11b   : > { %v2643_v47 = vshrl.u32 %v11337_v27, 16  ;;  %v2647_v6 = vshll.u32 %v2582_v54, 16  ;;  %vm14890_vm4 = vnez %v14632_v52  ;;  %v14893_v27 = vld [vmem:[#allocation51_spill] sm:$0xff]  ;;  %v3240_v52 = vshrl.u32 %v11378_v28, 16 }
 0x11c   : > { %v2759_v26 = vsel %vm14890_vm4, %v10875_v32, 0  ;;  %v2826_v39 = vor.u32 %v2825_v42, %v2822_v34  ;;  %vm14898_vm4 = vcmask 261120  }
 0x11d   : > { %8692 = vmatmul.msk.bf16.gmra.mxu2 %vm14884_vm15, %v2005_v48  ;;  %vm14889_vm15 = vnez %v14627_v46  ;;  %v1314_v17 = vpop.f32.mrf.mxu2  ;;  %v2798_v54 = vunpack.c.l.b16 %v2759_v26  ;;  %v2649_v62 = vrot.slane %v2647_v6, 1  ;;  %v3242_v42 = vor.u32 %v3240_v52, %v3238_v22  ;;  %vm14901_vm12 = vmmov %vm14898_vm4  ;;  %v9623_v52 = vld [vmem:[%s14218_s4 + $0x18] sm:$0xff] }
 0x11e   : > { %8711 = vmatmul.msk.bf16.gmra.mxu3 %vm14885_vm0, %v2244_v51  ;;  %v2758_v15 = vsel %vm14889_vm15, %v10873_v4, 0  ;;  %v11409_v51 = vadd.f32 %v1501_v12, %v11327_v59  ;;  %vm14892_vm0 = vnez %v14891_v60  ;;  %v2252_v4 = vor.u32 %v2251_v14, %v2248_v7  ;;  %vm14899_vm15 = vmmov %vm14898_vm4  ;;  %3506 = vmatpush.bf16.msra.mxu1 %v9623_v52 }
 0x11f   : > { %8783 = vmatmul.msk.bf16.gmra.mxu1 %vm14886_vm6, %v2642_v23  ;;  %v11406_v48 = vpop.f32.mrf.mxu0  ;;  %v3150_v23 = vld [vmem:[#allocation2 + $0x1c] sm:$0xf]  ;;  %vm14894_vm6 = vnez %v14893_v27  ;;  %v2834_v59 = vor.u32 %v2833_v11, %v2830_v16  ;;  %v2797_v3 = vunpack.c.l.b16 %v2758_v15 }
 0x120   : > { %8869 = vmatmul.msk.bf16.vlgmr.msra.gmra.mxu0 %vm14888_vm14, %v3239_v58  ;;  %v3167_v24 = vsel %vm14892_vm0, %v3150_v23, 0  ;;  %v3168_v50 = vsel %vm14894_vm6, %v3151_v38, 0  ;;  %v2645_v58 = vor.u32 %v2643_v47, %v2641_v33  ;;  %v11418_v32 = vpop.f32.mrf.mxu3  ;;  %vm14895_vm14 = vsmask.f32 4352 }
 0x121   : > { %v3206_v2 = vunpack.c.l.b16 %v3167_v24  ;;  %v3207_v30 = vunpack.c.l.b16 %v3168_v50  ;;  %v2253_v23 = vsel %vm14895_vm14, %v11376_v8, %v2252_v4  ;;  %vm14896_vm6 = vmmov %vm14895_vm14  ;;  %v2812_v7 = vpack.c.b16 %v2798_v54, %v2797_v3  ;;  %v3152_v50 = vld [vmem:[#allocation2 + $0x24] sm:$0xf] }
 0x122   : > { %v2835_v38 = vsel %vm14896_vm6, %v2826_v39, %v2834_v59  ;;  %vm14897_vm0 = vsmask.f32 7424  ;;  %vm14902_vm6 = vmmov %vm14898_vm4 }
 0x123   : > { %v3221_v12 = vpack.c.b16 %v3207_v30, %v3206_v2  ;;  %v2650_v14 = vsel %vm14897_vm0, %v2645_v58, %v2649_v62  ;;  %vm14900_vm9 = vmmov %vm14897_vm0  ;;  %v2837_v28 = vshrl.u32 %v2812_v7, 16  ;;  %v2840_v11 = vshll.u32 %v2812_v7, 16  ;;  %v14906_v2 = vld [vmem:[#allocation56_spill] sm:$0xff] }
 0x124   : > { %vm14908_vm0 = vmmov %vm14895_vm14 }
 0x125   : > { %v3244_v60 = vshll.u32 %v3221_v12, 16  ;;  %v2051_v8 = vpop.f32.mrf.mxu2  ;;  %v2839_v22 = vrot.slane %v2837_v28, 3  ;;  %v2842_v26 = vrot.slane %v2840_v11, 4  ;;  %vm14909_vm14 = vmmov %vm14902_vm6 }
 0x126   : > { %v2091_v15 = vadd.f32 %v2051_v8, %v11111_v43 }
 0x127   : > { %v11425_v34 = vpop.f32.mrf.mxu0  ;;  %v3246_v16 = vrot.slane %v3244_v60, 1  ;;  %v2843_v54 = vor.u32 %v2842_v26, %v2839_v22 }
 0x128   : > { %v1521_v47 = vpop.f32.mrf.mxu3 }
 0x129   : > { %v3247_v33 = vsel %vm14900_vm9, %v3242_v42, %v3246_v16  ;;  %v11434_v6 = vadd.f32 %v1521_v47, %v11391_v35  ;;  %vm14904_vm9 = vnez %v14674_v37  ;;  %v3153_v35 = vld [vmem:[#allocation2 + $0x28] sm:$0xf]  ;;  %v9604_v42 = vld [vmem:[#allocation2 + $0xc] sm:$0xff]  ;;  %v2844_v11 = vsel %vm14908_vm0, %v2834_v59, %v2843_v54 }
 0x12a   : > { %v2761_v24 = vsel %vm14904_vm9, %v10952_v9, 0 }
 0x12b   : > { %v2800_v62 = vunpack.c.l.b16 %v2761_v24 }
 0x12d   : > { %8797 = vmatmul.msk.bf16.vlgmr.msra.gmra.mxu2 %vm14899_vm15, %v2835_v38  ;;  %vm14905_vm15 = vnez %v14761_v56  ;;  %v2053_v9 = vpop.f32.mrf.mxu2 }
 0x12e   : > { %8712 = vmatmul.msk.bf16.gmra.mxu3 %vm14898_vm4, %v2253_v23  ;;  %v3169_v4 = vsel %vm14905_vm15, %v3152_v50, 0  ;;  %vm14907_vm4 = vnez %v14906_v2  ;;  %vm14911_vm15 = vmmov %vm14902_vm6 }
 0x12f   : > { %8784 = vmatmul.msk.bf16.gmra.mxu1 %vm14901_vm12, %v2650_v14  ;;  %vm14903_vm12 = vnez %v14671_v49  ;;  %v11445_v43 = vpop.f32.mrf.mxu0  ;;  %v3170_v30 = vsel %vm14907_vm4, %v3153_v35, 0  ;;  %v3208_v39 = vunpack.c.l.b16 %v3169_v4  ;;  %vm14910_vm4 = vsmask.f32 7424  ;;  %v14912_v35 = vld [vmem:[#allocation19_spill] sm:$0xff] }
 0x130   : > { %8870 = vmatmul.msk.bf16.gmra.mxu0 %vm14902_vm6, %v3247_v33  ;;  %v2760_v60 = vsel %vm14903_vm12, %v10950_v20, 0  ;;  %v3209_v3 = vunpack.c.l.b16 %v3170_v30  ;;  %v1489_v20 = vadd.f32 %v11231_v18, %v11114_v36  ;;  %v1523_v38 = vpop.f32.mrf.mxu3  ;;  %v3248_v33 = vshrl.u32 %v3221_v12, 16  ;;  %v14914_v30 = vld [vmem:[#allocation61_spill] sm:$0xff] }
 0x131   : > { %v2799_v58 = vunpack.c.l.b16 %v2760_v60  ;;  %v11453_v14 = vadd.f32 %v1523_v38, %v1314_v17  ;;  %vm14913_vm0 = vnez %v14912_v35 }
 0x132   : > { %v3222_v23 = vpack.c.b16 %v3209_v3, %v3208_v39  ;;  %v2092_v7 = vadd.f32 %v2053_v9, %v1489_v20  ;;  %v3250_v52 = vor.u32 %v3248_v33, %v3246_v16  ;;  %v2762_v4 = vsel %vm14913_vm0, %v11015_v61, 0  ;;  %v14915_v39 = vld [vmem:[#allocation20_spill] sm:$0xff]  ;;  %v14919_v9 = vld [vmem:[#allocation58_spill] sm:$0xff] }
 0x133   : > { %v2813_v8 = vpack.c.b16 %v2800_v62, %v2799_v58  ;;  %v3155_v58 = vld [vmem:[#allocation2 + $0x30] sm:$0xf]  ;;  %v14917_v62 = vld [vmem:[#allocation57_spill] sm:$0xff]  ;;  %v1494_v33 = vadd.f32 %v11325_v53, %v11217_v25 }
 0x134   : > { %v3252_v28 = vshll.u32 %v3222_v23, 16 }
 0x135   : > { %v2846_v36 = vshrl.u32 %v2813_v8, 16  ;;  %v2849_v22 = vshll.u32 %v2813_v8, 16  ;;  %v2056_v17 = vpop.f32.mrf.mxu2 }
 0x136   : > { %v3254_v50 = vrot.slane %v3252_v28, 1  ;;  %v2093_v26 = vadd.f32 %v2056_v17, %v11285_v41  ;;  %v3154_v41 = vld [vmem:[#allocation2 + $0x2c] sm:$0xf]  ;;  %v2801_v28 = vunpack.c.l.b16 %v2762_v4  ;;  %v9605_v17 = vld [vmem:[#allocation2 + $0x14] sm:$0xff] }
 0x137   : > { %v11456_v47 = vpop.f32.mrf.mxu0  ;;  %v2848_v60 = vrot.slane %v2846_v36, 3  ;;  %v2851_v24 = vrot.slane %v2849_v22, 4 }
 0x138   : > { %v3255_v18 = vsel %vm14910_vm4, %v3250_v52, %v3254_v50  ;;  %v2299_v12 = vpop.f32.mrf.mxu3  ;;  %vm14916_vm4 = vnez %v14915_v39 }
 0x139   : > { %v2339_v59 = vadd.f32 %v2299_v12, %v2091_v15  ;;  %v2763_v3 = vsel %vm14916_vm4, %v14914_v30, 0  ;;  %v2852_v61 = vor.u32 %v2851_v24, %v2848_v60  ;;  %v3256_v12 = vshrl.u32 %v3222_v23, 16 }
 0x13a   : > { %vm14924_vm4 = vsmask.f32 7424 }
 0x13b   : > { %v11464_v16 = vadd.f32 %v11389_v21, %v2339_v59  ;;  %v3258_v25 = vor.u32 %v3256_v12, %v3254_v50  ;;  %v9622_v50 = vld [vmem:[%s14218_s4 + $0x10] sm:$0xff] }
 0x13c   : > { %3507 = vmatpush.bf16.msra.mxu1 %v9622_v50 }
 0x13d   : > { %8798 = vmatmul.msk.bf16.gmra.mxu2 %vm14909_vm14, %v2844_v11  ;;  %vm14920_vm14 = vnez %v14919_v9  ;;  %v2802_v11 = vunpack.c.l.b16 %v2763_v3  ;;  %v2058_v8 = vpop.f32.mrf.mxu2 }
 0x13e   : > { %8849 = vmatmul.msk.bf16.vlgmr.msra.gmra.mxu3 %vm14902_vm6, %v9604_v42  ;;  %v3172_v38 = vsel %vm14920_vm14, %v3155_v58, 0  ;;  %vm14921_vm6 = vsmask.f32 4352  ;;  %vm14922_vm14 = vcmask 261120  }
 0x13f   : > { %v11472_v20 = vpop.f32.mrf.mxu0  ;;  %v3211_v42 = vunpack.c.l.b16 %v3172_v38  ;;  %v2853_v30 = vsel %vm14921_vm6, %v2843_v54, %v2852_v61  ;;  %vm14925_vm0 = vmmov %vm14922_vm14 }
 0x140   : > { %8871 = vmatmul.msk.bf16.gmra.mxu0 %vm14911_vm15, %v3255_v18  ;;  %vm14918_vm15 = vnez %v14917_v62  ;;  %v2094_v18 = vadd.f32 %v2058_v8, %v1494_v33  ;;  %v2301_v36 = vpop.f32.mrf.mxu3  ;;  %v2764_v33 = vsel %vm14815_vm7, %v11130_v40, 0 }
 0x141   : > { %v3171_v15 = vsel %vm14918_vm15, %v3154_v41, 0  ;;  %v2340_v22 = vadd.f32 %v2301_v36, %v2092_v7  ;;  %v2814_v41 = vpack.c.b16 %v2802_v11, %v2801_v28  ;;  %vm14923_vm15 = vmmov %vm14922_vm14  ;;  %v14927_v28 = vld [vmem:[#allocation22_spill] sm:$0xff]  ;;  %v14929_v36 = vld [vmem:[#allocation63_spill] sm:$0xff] }
 0x142   : > { %v3210_v21 = vunpack.c.l.b16 %v3171_v15 }
 0x143   : > { %v11482_v58 = vadd.f32 %v11406_v48, %v2340_v22  ;;  %v2855_v7 = vshrl.u32 %v2814_v41, 16  ;;  %v2858_v24 = vshll.u32 %v2814_v41, 16  ;;  %v2803_v41 = vunpack.c.l.b16 %v2764_v33 }
 0x144   : > { %v3223_v52 = vpack.c.b16 %v3211_v42, %v3210_v21 }
 0x145   : > { %v2857_v3 = vrot.slane %v2855_v7, 3  ;;  %v2860_v38 = vrot.slane %v2858_v24, 4 }
 0x146   : > { %v3260_v59 = vshll.u32 %v3223_v52, 16 }
 0x147   : > { %v11484_v15 = vpop.f32.mrf.mxu0 }
 0x148   : > { %v3262_v53 = vrot.slane %v3260_v59, 1  ;;  %v2061_v23 = vpop.f32.mrf.mxu2 }
 0x149   : > { %v2304_v4 = vpop.f32.mrf.mxu3  ;;  %v2095_v54 = vadd.f32 %v2061_v23, %v11362_v19  ;;  %v3156_v19 = vld [vmem:[#allocation2 + $0x34] sm:$0xf] }
 0x14a   : > { %v3263_v60 = vsel %vm14924_vm4, %v3258_v25, %v3262_v53  ;;  %v2341_v48 = vadd.f32 %v2304_v4, %v2093_v26  ;;  %vm14928_vm4 = vnez %v14927_v28  ;;  %v3157_v26 = vld [vmem:[#allocation2 + $0x38] sm:$0xf]  ;;  %v1499_v25 = vadd.f32 %v11387_v55, %v11296_v57  ;;  %v9606_v4 = vld [vmem:[#allocation2 + $0x1c] sm:$0xff] }
 0x14b   : > { %v2765_v11 = vsel %vm14928_vm4, %v11135_v13, 0 }
 0x14c   : > { %v11495_v21 = vadd.f32 %v11425_v34, %v2341_v48  ;;  %v2804_v40 = vunpack.c.l.b16 %v2765_v11  ;;  %v3264_v48 = vshrl.u32 %v3223_v52, 16 }
 0x14d   : > { %8799 = vmatmul.msk.bf16.gmra.mxu2 %vm14922_vm14, %v2853_v30  ;;  %v2861_v30 = vor.u32 %v2860_v38, %v2857_v3  ;;  %vm14933_vm14 = vmmov %vm14921_vm6  ;;  %vm14934_vm6 = vcmask 261120  }
 0x14e   : > { %8850 = vmatmul.msk.bf16.gmra.mxu3 %vm14923_vm15, %v9605_v17  ;;  %v14931_v17 = vld [vmem:[#allocation65_spill] sm:$0xff]  ;;  %v3266_v38 = vor.u32 %v3264_v48, %v3262_v53  ;;  %vm14937_vm4 = vmmov %vm14934_vm6 }
 0x14f   : > { %v11503_v8 = vpop.f32.mrf.mxu0  ;;  %vm14932_vm15 = vnez %v14931_v17  ;;  %v2815_v17 = vpack.c.b16 %v2804_v40, %v2803_v41  ;;  %v14940_v41 = vld [vmem:[#allocation33_spill] sm:$0xff] }
 0x150   : > { %8872 = vmatmul.msk.bf16.gmra.mxu0 %vm14925_vm0, %v3263_v60  ;;  %vm14930_vm0 = vnez %v14929_v36  ;;  %v3174_v34 = vsel %vm14932_vm15, %v3157_v26, 0  ;;  %v2063_v60 = vpop.f32.mrf.mxu2  ;;  %vm14935_vm15 = vmmov %vm14934_vm6 }
 0x151   : > { %v3173_v22 = vsel %vm14930_vm0, %v3156_v19, 0  ;;  %v3213_v59 = vunpack.c.l.b16 %v3174_v34  ;;  %v2306_v7 = vpop.f32.mrf.mxu3  ;;  %v2096_v24 = vadd.f32 %v2063_v60, %v1499_v25  ;;  %v2862_v19 = vsel %vm14933_vm14, %v2852_v61, %v2861_v30  ;;  %v3158_v25 = vld [vmem:[#allocation2 + $0x3c] sm:$0xf]  ;;  %v3159_v60 = vld [vmem:[#allocation2 + $0x40] sm:$0xf] }
 0x152   : > { %v3212_v12 = vunpack.c.l.b16 %v3173_v22  ;;  %v2342_v23 = vadd.f32 %v2306_v7, %v2094_v18  ;;  %vm14936_vm0 = vsmask.f32 7424  ;;  %v2864_v55 = vshrl.u32 %v2815_v17, 16  ;;  %v1503_v7 = vpop.f32.mrf.mxu1 }
 0x153   : > { %v2867_v18 = vshll.u32 %v2815_v17, 16 }
 0x154   : > { %v3224_v13 = vpack.c.b16 %v3213_v59, %v3212_v12  ;;  %v11513_v26 = vadd.f32 %v11445_v43, %v2342_v23  ;;  %v2866_v22 = vrot.slane %v2864_v55, 3  ;;  %v14938_v12 = vld [vmem:[#allocation29_spill] sm:$0xff] }
 0x155   : > { %v2869_v34 = vrot.slane %v2867_v18, 4  ;;  %vm14939_vm14 = vnez %v14938_v12 }
 0x156   : > { %v3268_v50 = vshll.u32 %v3224_v13, 16  ;;  %v2766_v59 = vsel %vm14939_vm14, %v11237_v0, 0 }
 0x157   : > { %v2870_v48 = vor.u32 %v2869_v34, %v2866_v22 }
 0x158   : > { %v3270_v33 = vrot.slane %v3268_v50, 1  ;;  %v2805_v50 = vunpack.c.l.b16 %v2766_v59 }
 0x15a   : > { %v11515_v3 = vpop.f32.mrf.mxu0  ;;  %v3271_v57 = vsel %vm14936_vm0, %v3266_v38, %v3270_v33  ;;  %v2066_v52 = vpop.f32.mrf.mxu2  ;;  %vm14941_vm0 = vnez %v14940_v41 }
 0x15b   : > { %v2309_v11 = vpop.f32.mrf.mxu3  ;;  %v2097_v61 = vadd.f32 %v2066_v52, %v11409_v51  ;;  %v2767_v17 = vsel %vm14941_vm0, %v11244_v29, 0  ;;  %v9607_v52 = vld [vmem:[#allocation2 + $0x24] sm:$0xff]  ;;  %vm14947_vm0 = vmmov %vm14934_vm6 }
 0x15c   : > { %v2343_v43 = vadd.f32 %v2309_v11, %v2095_v54  ;;  %v2806_v0 = vunpack.c.l.b16 %v2767_v17  ;;  %v3272_v11 = vshrl.u32 %v3224_v13, 16 }
 0x15d   : > { %8800 = vmatmul.msk.bf16.gmra.mxu2 %vm14934_vm6, %v2862_v19  ;;  %v1504_v19 = vadd.f32 %v1503_v7, %v11351_v31 }
 0x15e   : > { %8851 = vmatmul.msk.bf16.gmra.mxu3 %vm14935_vm15, %v9606_v4  ;;  %v11523_v53 = vadd.f32 %v11456_v47, %v2343_v43  ;;  %v3176_v47 = vsel %vm11179_vm10, %v3159_v60, 0  ;;  %vm14944_vm15 = vsmask.f32 4352  ;;  %v3274_v22 = vor.u32 %v3272_v11, %v3270_v33  ;;  %vm14945_vm10 = vmmov %vm14934_vm6  ;;  %v9621_v33 = vld [vmem:[%s14218_s4 + $0x8] sm:$0xff]  ;;  %v14952_v11 = vld [vmem:[#allocation73_spill] sm:$0xff] }
 0x15f   : > { %v3215_v4 = vunpack.c.l.b16 %v3176_v47  ;;  %3508 = vmatpush.bf16.msra.mxu1 %v9621_v33 }
 0x160   : > { %8873 = vmatmul.msk.bf16.gmra.mxu0 %vm14937_vm4, %v3271_v57  ;;  %vm14942_vm4 = vnez %v14818_v44  ;;  %v2816_v44 = vpack.c.b16 %v2806_v0, %v2805_v50  ;;  %v14949_v50 = vld [vmem:[#allocation77_spill] sm:$0xff] }
 0x161   : > { %v3175_v51 = vsel %vm14942_vm4, %v3158_v25, 0  ;;  %v2871_v25 = vsel %vm14944_vm15, %v2861_v30, %v2870_v48  ;;  %vm14946_vm4 = vsmask.f32 7424  ;;  %v14948_v30 = vld [vmem:[#allocation71_spill] sm:$0xff] }
 0x162   : > { %v11531_v40 = vpop.f32.mrf.mxu0  ;;  %v3214_v23 = vunpack.c.l.b16 %v3175_v51  ;;  %v2068_v29 = vpop.f32.mrf.mxu2  ;;  %v2876_v59 = vshll.u32 %v2816_v44, 16 }
 0x163   : > { %v2311_v57 = vpop.f32.mrf.mxu3  ;;  %v2098_v55 = vadd.f32 %v2068_v29, %v1504_v19  ;;  %v2769_v19 = vsel %vm14857_vm13, %v14949_v50, 0  ;;  %vm14995_vm13 = vcmask 261120  }
 0x164   : > { %v3225_v38 = vpack.c.b16 %v3215_v4, %v3214_v23  ;;  %v2344_v18 = vadd.f32 %v2311_v57, %v2096_v24  ;;  %v2873_v24 = vshrl.u32 %v2816_v44, 16  ;;  %v2878_v23 = vrot.slane %v2876_v59, 4  ;;  %v3161_v57 = vld [vmem:[#allocation2 + $0x48] sm:$0xf] }
 0x165   : > { %v2768_v44 = vsel %vm10625_vm1, %v11308_v1, 0  ;;  %v2808_v1 = vunpack.c.l.b16 %v2769_v19  ;;  %v2753_v19 = vld [vmem:[#allocation2 + $0x48] sm:$0xf]  ;;  %vm15002_vm1 = vcmask 257024  }
 0x166   : > { %v3276_v43 = vshll.u32 %v3225_v38, 16  ;;  %v11540_v60 = vadd.f32 %v11472_v20, %v2344_v18  ;;  %v2875_v47 = vrot.slane %v2873_v24, 3 }
 0x168   : > { %v3278_v34 = vrot.slane %v3276_v43, 1 }
 0x16a   : > { %v3279_v31 = vsel %vm14946_vm4, %v3274_v22, %v3278_v34  ;;  %v2879_v22 = vor.u32 %v2878_v23, %v2875_v47  ;;  %vm14955_vm4 = vmmov %vm14934_vm6 }
 0x16d   : > { %v11542_v51 = vpop.f32.mrf.mxu0  ;;  %8801 = vmatmul.msk.bf16.gmra.mxu2 %vm14934_vm6, %v2871_v25  ;;  %vm14957_vm6 = vsmask.f32 7424 }
 0x16e   : > { %8852 = vmatmul.msk.bf16.gmra.mxu3 %vm14945_vm10, %v9607_v52  ;;  %v2071_v13 = vpop.f32.mrf.mxu2  ;;  %vm14953_vm10 = vnez %v14952_v11 }
 0x16f   : > { %v2099_v7 = vadd.f32 %v2071_v13, %v14948_v30  ;;  %v9608_v30 = vld [vmem:[#allocation2 + $0x2c] sm:$0xff] }
 0x170   : > { %v2314_v17 = vpop.f32.mrf.mxu3  ;;  %8874 = vmatmul.msk.bf16.gmra.mxu0 %vm14947_vm0, %v3279_v31  ;;  %v2807_v31 = vunpack.c.l.b16 %v2768_v44  ;;  %vm14954_vm0 = vmmov %vm14944_vm15 }
 0x171   : > { %v2345_v20 = vadd.f32 %v2314_v17, %v2097_v61  ;;  %v3160_v61 = vld [vmem:[#allocation2 + $0x44] sm:$0xf]  ;;  %v2880_v50 = vsel %vm14954_vm0, %v2870_v48, %v2879_v22  ;;  %vm14956_vm15 = vmmov %vm14955_vm4 }
 0x172   : > { %v3177_v52 = vsel %vm11262_vm11, %v3160_v61, 0  ;;  %v2817_v18 = vpack.c.b16 %v2808_v1, %v2807_v31  ;;  %v14959_v48 = vld [vmem:[#allocation78_spill] sm:$0xff] }
 0x173   : > { %v11553_v4 = vadd.f32 %v11484_v15, %v2345_v20  ;;  %v3178_v15 = vsel %vm14953_vm10, %v3161_v57, 0  ;;  %v3216_v43 = vunpack.c.l.b16 %v3177_v52  ;;  %v3280_v20 = vshrl.u32 %v3225_v38, 16  ;;  %vm14958_vm10 = vmmov %vm14955_vm4 }
 0x174   : > { %v3217_v25 = vunpack.c.l.b16 %v3178_v15  ;;  %v2882_v23 = vshrl.u32 %v2817_v18, 16 }
 0x175   : > { %v11561_v29 = vpop.f32.mrf.mxu0  ;;  %v3282_v57 = vor.u32 %v3280_v20, %v3278_v34 }
 0x176   : > { %v3226_v24 = vpack.c.b16 %v3217_v25, %v3216_v43  ;;  %v11567_v59 = vpop.f32.mrf.mxu2  ;;  %v2884_v25 = vrot.slane %v2882_v23, 3  ;;  %v9609_v23 = vld [vmem:[#allocation2 + $0x34] sm:$0xff] }
 0x178   : > { %v2316_v13 = vpop.f32.mrf.mxu3  ;;  %v3284_v33 = vshll.u32 %v3226_v24, 16 }
 0x179   : > { %v2346_v17 = vadd.f32 %v2316_v13, %v2098_v55  ;;  %v2885_v55 = vshll.u32 %v2817_v18, 16  ;;  %v2770_v13 = vsel %vm14869_vm5, %v2753_v19, 0  ;;  %vm14990_vm5 = vcmask 261120  }
 0x17a   : > { %v3286_v52 = vrot.slane %v3284_v33, 1 }
 0x17b   : > { %v11571_v61 = vadd.f32 %v11503_v8, %v2346_v17  ;;  %v2887_v34 = vrot.slane %v2885_v55, 4  ;;  %v3162_v17 = vld [vmem:[#allocation2 + $0x4c] sm:$0x1] }
 0x17c   : > { %v3287_v47 = vsel %vm14957_vm6, %v3282_v57, %v3286_v52  ;;  %v3179_v18 = vsel %vm11302_vm8, %v3162_v17, 0 }
 0x17d   : > { %v2475_v15 = vpop.f32.mrf.mxu0  ;;  %8802 = vmatmul.msk.bf16.gmra.mxu2 %vm14955_vm4, %v2880_v50  ;;  %v3218_v20 = vunpack.c.l.b16 %v3179_v18  ;;  %v2888_v33 = vor.u32 %v2887_v34, %v2884_v25  ;;  %v2809_v50 = vunpack.c.l.b16 %v2770_v13 }
 0x17e   : > { %8853 = vmatmul.msk.bf16.gmra.mxu3 %vm14956_vm15, %v9608_v30  ;;  %vm14964_vm15 = vmmov %vm14957_vm6 }
 0x17f   : > { %v3227_v57 = vpack.c.b16 %v3218_v20, %v3218_v20 }
 0x180   : > { %v2076_v44 = vpop.f32.mrf.mxu2  ;;  %8875 = vmatmul.msk.bf16.gmra.mxu0 %vm14958_vm10, %v3287_v47  ;;  %vm14961_vm10 = vmmov %vm14954_vm0 }
 0x181   : > { %v2319_v38 = vpop.f32.mrf.mxu3  ;;  %v2101_v43 = vadd.f32 %v2076_v44, %v14959_v48  ;;  %v3292_v55 = vshll.u32 %v3227_v57, 16  ;;  %v2889_v44 = vsel %vm14961_vm10, %v2879_v22, %v2888_v33  ;;  %vm14962_vm0 = vmmov %vm14955_vm4  ;;  %v9620_v22 = vld [vmem:[%s14218_s4] sm:$0xff] }
 0x182   : > { %v2347_v8 = vadd.f32 %v2319_v38, %v2099_v7  ;;  %v2818_v38 = vpack.c.b16 %v2809_v50, %v2809_v50  ;;  %vm14963_vm4 = vmmov %vm14962_vm0  ;;  %3509 = vmatpush.bf16.msra.mxu1 %v9620_v22  ;;  %v9613_v22 = vld [vmem:[#allocation2 + $0x44] sm:$0xff] }
 0x183   : > { %v3294_v48 = vrot.slane %v3292_v55, 1  ;;  %vm14965_vm6 = vmmov %vm14962_vm0 }
 0x184   : > { %v11579_v31 = vadd.f32 %v11515_v3, %v2347_v8  ;;  %v3288_v3 = vshrl.u32 %v3226_v24, 16  ;;  %v2891_v25 = vshrl.u32 %v2818_v38, 16  ;;  %v2894_v34 = vshll.u32 %v2818_v38, 16 }
 0x185   : > { %v11585_v30 = vpop.f32.mrf.mxu0 }
 0x186   : > { %v3290_v19 = vor.u32 %v3288_v3, %v3286_v52  ;;  %v2893_v52 = vrot.slane %v2891_v25, 3  ;;  %v2896_v50 = vrot.slane %v2894_v34, 4 }
 0x188   : > { %v11587_v47 = vpop.f32.mrf.mxu2  ;;  %v3295_v8 = vsel %vm14964_vm15, %v3290_v19, %v3294_v48  ;;  %vm14967_vm15 = vmmov %vm14962_vm0 }
 0x189   : > { %v11589_v7 = vpop.f32.mrf.mxu3 }
 0x18d   : > { %8803 = vmatmul.msk.bf16.gmra.mxu2 %vm14962_vm0, %v2889_v44  ;;  %v2480_v13 = vpop.f32.mrf.mxu0  ;;  %v9610_v44 = vld [vmem:[#allocation2 + $0x3c] sm:$0xff] }
 0x18e   : > { %8854 = vmatmul.msk.bf16.gmra.mxu3 %vm14963_vm4, %v9609_v23  ;;  %v2897_v23 = vor.u32 %v2896_v50, %v2893_v52  ;;  %vm14966_vm4 = vmmov %vm14962_vm0 }
 0x190   : > { %v2081_v17 = vpop.f32.mrf.mxu2  ;;  %8876 = vmatmul.msk.bf16.gmra.mxu0 %vm14965_vm6, %v3295_v8  ;;  %vm14434_vm6 = vcmask 523264  }
 0x191   : > { %v2324_v18 = vpop.f32.mrf.mxu3  ;;  %v2103_v24 = vadd.f32 %v2081_v17, %v11400_v5  ;;  %v2898_v5 = vsel %vm14961_vm10, %v2888_v33, %v2897_v23  ;;  %vm14972_vm10 = vcmask 257024  }
 0x192   : > { %v2349_v20 = vadd.f32 %v2324_v18, %v2101_v43  ;;  %v2696_v43 = vpop.f32.mrf.mxu1 }
 0x194   : > { %v11601_v57 = vadd.f32 %v11542_v51, %v2349_v20 }
 0x195   : > { %v11607_v38 = vpop.f32.mrf.mxu0 }
 0x198   : > { %v11603_v3 = vpop.f32.mrf.mxu2 }
 0x199   : > { %v11605_v55 = vpop.f32.mrf.mxu3 }
 0x19a   : > { %v2698_v17 = vpop.f32.mrf.mxu1 }
 0x19b   : > { %v2737_v54 = vadd.f32 %v2698_v17, %v11482_v58 }
 0x19d   : > { %8804 = vmatmul.msk.bf16.gmra.mxu2 %vm14962_vm0, %v2898_v5  ;;  %v3341_v34 = vpop.f32.mrf.mxu0  ;;  %vm14975_vm0 = vmmov %vm14972_vm10 }
 0x19e   : > { %8855 = vmatmul.msk.bf16.gmra.mxu3 %vm14966_vm4, %v9610_v44 }
 0x1a0   : > { %v2086_v19 = vpop.f32.mrf.mxu2 }
 0x1a1   : > { %v2329_v48 = vpop.f32.mrf.mxu3  ;;  %v2105_v51 = vadd.f32 %v2086_v19, %v11434_v6 }
 0x1a2   : > { %v2351_v8 = vadd.f32 %v2329_v48, %v2103_v24  ;;  %v2701_v52 = vpop.f32.mrf.mxu1  ;;  %v2736_v48 = vadd.f32 %v2696_v43, %v11464_v16 }
 0x1a4   : > { %v11613_v25 = vadd.f32 %v2475_v15, %v2351_v8  ;;  %v9635_v8 = vld [vmem:[#allocation3 + $0x18] sm:$0xff] }
 0x1a5   : > { %v3343_v33 = vpop.f32.mrf.mxu0  ;;  %3708 = vmatpush.bf16.msrb.mxu2 %v9635_v8 }
 0x1a8   : > { %v11615_v18 = vpop.f32.mrf.mxu2 }
 0x1a9   : > { %v11617_v20 = vpop.f32.mrf.mxu3 }
 0x1aa   : > { %v2703_v19 = vpop.f32.mrf.mxu1 }
 0x1ad   : > { %v3346_v6 = vpop.f32.mrf.mxu0 }
 0x1ae   : > { %8856 = vmatmul.msk.bf16.gmra.mxu3 %vm14967_vm15, %v9613_v22  ;;  %vm14976_vm15 = vmmov %vm14975_vm0 }
 0x1b0   : > { %v2944_v23 = vpop.f32.mrf.mxu2 }
 0x1b1   : > { %v2334_v50 = vpop.f32.mrf.mxu3  ;;  %v2984_v11 = vadd.f32 %v2944_v23, %v2736_v48 }
 0x1b2   : > { %v2353_v44 = vadd.f32 %v2334_v50, %v2105_v51  ;;  %v2706_v22 = vpop.f32.mrf.mxu1  ;;  %v11629_v50 = vld [vmem:[%s14217_s3] ss:$0 sm:$0xff] }
 0x1b4   : > { %v11620_v5 = vadd.f32 %v2480_v13, %v2353_v44 }
 0x1b5   : > { %v3348_v0 = vpop.f32.mrf.mxu0 }
 0x1b8   : > { %v2946_v15 = vpop.f32.mrf.mxu2 }
 0x1b9   : > { %v11622_v24 = vpop.f32.mrf.mxu3  ;;  %v2985_v51 = vadd.f32 %v2946_v15, %v2737_v54 }
 0x1ba   : > { %v2708_v48 = vpop.f32.mrf.mxu1 }
 0x1bd   : > { %v3351_v23 = vpop.f32.mrf.mxu0 }
 0x1c0   : > { %v2949_v63 = vpop.f32.mrf.mxu2 }
 0x1c1   : > { %v3090_v1 = vpop.f32.mrf.mxu3 }
 0x1c2   : > { %v3130_v45 = vadd.f32 %v3090_v1, %v2984_v11  ;;  %v2738_v11 = vadd.f32 %v2701_v52, %v11495_v21 }
 0x1c4   : > { %v3381_v13 = vadd.f32 %v3341_v34, %v3130_v45  ;;  %v2986_v34 = vadd.f32 %v2949_v63, %v2738_v11  ;;  %v2740_v63 = vadd.f32 %v2706_v22, %v11523_v53 }
 0x1c6   : > { %v3401_v43 = vadd.f32 %v11629_v50, %v3381_v13 }
 0x1c8   : > { %v2951_v44 = vpop.f32.mrf.mxu2  ;;  %v3417_v58 = vmax.f32 %v3401_v43, 0.0 }
 0x1c9   : > { %v3092_v41 = vpop.f32.mrf.mxu3 }
 0x1ca   : > { %v3131_v16 = vadd.f32 %v3092_v41, %v2985_v51  ;;  %v2739_v41 = vadd.f32 %v2703_v19, %v11513_v26  ;;  %v3353_v51 = vpop.f32.mrf.mxu0 }
 0x1cc   : > { %v3382_v12 = vadd.f32 %v3343_v33, %v3131_v16  ;;  %v2711_v33 = vpop.f32.mrf.mxu1  ;;  %v2987_v13 = vadd.f32 %v2951_v44, %v2739_v41 }
 0x1ce   : > { %v3402_v8 = vadd.f32 %v11629_v50, %v3382_v12 }
 0x1d0   : > { %v3418_v54 = vmax.f32 %v3402_v8, 0.0  ;;  %v2954_v45 = vpop.f32.mrf.mxu2 }
 0x1d1   : > { %v3095_v1 = vpop.f32.mrf.mxu3  ;;  %v2988_v26 = vadd.f32 %v2954_v45, %v2740_v63  ;;  %v2742_v45 = vadd.f32 %v2711_v33, %v11553_v4 }
 0x1d2   : > { %v3433_v17 = vpack.c.bf16 %v3418_v54, %v3417_v58  ;;  %v3132_v15 = vadd.f32 %v3095_v1, %v2986_v34  ;;  %v3356_v58 = vpop.f32.mrf.mxu0 }
 0x1d4   : > { %8893 = vmatmul.msk.bf16.vlgmr.msra.gmra.mxu1 %vm14434_vm6, %v3433_v17  ;;  %v3383_v16 = vadd.f32 %v3346_v6, %v3132_v15  ;;  %v2713_v34 = vpop.f32.mrf.mxu1  ;;  %v2741_v6 = vadd.f32 %v2708_v48, %v11540_v60 }
 0x1d5   : > { %v2743_v48 = vadd.f32 %v2713_v34, %v11571_v61 }
 0x1d6   : > { %v3403_v21 = vadd.f32 %v11629_v50, %v3383_v16 }
 0x1d8   : > { %v2956_v36 = vpop.f32.mrf.mxu2  ;;  %v3419_v8 = vmax.f32 %v3403_v21, 0.0 }
 0x1d9   : > { %v3097_v12 = vpop.f32.mrf.mxu3  ;;  %v2989_v17 = vadd.f32 %v2956_v36, %v2741_v6  ;;  %v14969_v6 = vld [vmem:[#allocation76_spill] sm:$0xff] }
 0x1da   : > { %v3133_v28 = vadd.f32 %v3097_v12, %v2987_v13  ;;  %v3358_v13 = vpop.f32.mrf.mxu0 }
 0x1dc   : > { %v3384_v52 = vadd.f32 %v3348_v0, %v3133_v28  ;;  %v2716_v16 = vpop.f32.mrf.mxu1 }
 0x1dd   : > { %v2744_v61 = vadd.f32 %v2716_v16, %v11579_v31  ;;  %v14970_v31 = vld [vmem:[#allocation74_spill] sm:$0xff] }
 0x1de   : > { %v3404_v43 = vadd.f32 %v11629_v50, %v3384_v52  ;;  %v1514_v16 = vadd.f32 %v11374_v10, %v14970_v31 }
 0x1e0   : > { %v3420_v11 = vmax.f32 %v3404_v43, 0.0  ;;  %v2959_v54 = vpop.f32.mrf.mxu2 }
 0x1e1   : > { %v3100_v1 = vpop.f32.mrf.mxu3 }
 0x1e2   : > { %v3434_v19 = vpack.c.bf16 %v3420_v11, %v3419_v8  ;;  %v3134_v44 = vadd.f32 %v3100_v1, %v2988_v26  ;;  %v2990_v8 = vadd.f32 %v2959_v54, %v2742_v45 }
 0x1e4   : > { %8894 = vmatmul.msk.bf16.gmra.mxu1 %vm14434_vm6, %v3434_v19  ;;  %v3385_v15 = vadd.f32 %v3351_v23, %v3134_v44  ;;  %v3361_v23 = vpop.f32.mrf.mxu0  ;;  %v2718_v11 = vpop.f32.mrf.mxu1  ;;  %v14968_v44 = vld [vmem:[#allocation67_spill] sm:$0xff] }
 0x1e5   : > { %v1509_v4 = vadd.f32 %v14969_v6, %v14968_v44 }
 0x1e6   : > { %v3405_v53 = vadd.f32 %v11629_v50, %v3385_v15 }
 0x1e8   : > { %v2961_v28 = vpop.f32.mrf.mxu2  ;;  %v3421_v21 = vmax.f32 %v3405_v53, 0.0 }
 0x1e9   : > { %v3102_v0 = vpop.f32.mrf.mxu3  ;;  %v2991_v1 = vadd.f32 %v2961_v28, %v2743_v48  ;;  %v9634_v28 = vld [vmem:[#allocation3 + $0x10] sm:$0xff] }
 0x1ea   : > { %v3135_v41 = vadd.f32 %v3102_v0, %v2989_v17  ;;  %v2100_v17 = vadd.f32 %v11567_v59, %v1509_v4  ;;  %3709 = vmatpush.bf16.msrb.mxu2 %v9634_v28 }
 0x1ec   : > { %v3386_v22 = vadd.f32 %v3353_v51, %v3135_v41  ;;  %v2348_v0 = vadd.f32 %v11589_v7, %v2100_v17  ;;  %v3363_v53 = vpop.f32.mrf.mxu0 }
 0x1ee   : > { %v3406_v12 = vadd.f32 %v11629_v50, %v3386_v22  ;;  %v2721_v22 = vpop.f32.mrf.mxu1  ;;  %v2494_v45 = vadd.f32 %v11531_v40, %v2348_v0 }
 0x1f0   : > { %v3422_v52 = vmax.f32 %v3406_v12, 0.0  ;;  %v2964_v43 = vpop.f32.mrf.mxu2  ;;  %v2745_v7 = vadd.f32 %v2718_v11, %v2494_v45  ;;  %v2746_v11 = vadd.f32 %v2721_v22, %v11601_v57 }
 0x1f1   : > { %v3105_v63 = vpop.f32.mrf.mxu3 }
 0x1f2   : > { %v3435_v60 = vpack.c.bf16 %v3422_v52, %v3421_v21  ;;  %v3136_v36 = vadd.f32 %v3105_v63, %v2990_v8  ;;  %v2992_v21 = vadd.f32 %v2964_v43, %v2744_v61 }
 0x1f4   : > { %8895 = vmatmul.msk.bf16.gmra.mxu1 %vm14434_vm6, %v3435_v60  ;;  %v3387_v51 = vadd.f32 %v3356_v58, %v3136_v36  ;;  %v3366_v36 = vpop.f32.mrf.mxu0 }
 0x1f6   : > { %v3407_v54 = vadd.f32 %v11629_v50, %v3387_v51  ;;  %v2102_v51 = vadd.f32 %v11587_v47, %v1514_v16 }
 0x1f8   : > { %v2966_v26 = vpop.f32.mrf.mxu2  ;;  %v3423_v34 = vmax.f32 %v3407_v54, 0.0  ;;  %v2350_v44 = vadd.f32 %v11605_v55, %v2102_v51 }
 0x1f9   : > { %v3107_v19 = vpop.f32.mrf.mxu3 }
 0x1fa   : > { %v3137_v33 = vadd.f32 %v3107_v19, %v2991_v1  ;;  %v2723_v1 = vpop.f32.mrf.mxu1 }
 0x1fc   : > { %v3388_v15 = vadd.f32 %v3358_v13, %v3137_v33  ;;  %v2993_v13 = vadd.f32 %v2966_v26, %v2745_v7  ;;  %v2496_v33 = vadd.f32 %v11561_v29, %v2350_v44  ;;  %v3368_v54 = vpop.f32.mrf.mxu0 }
 0x1fe   : > { %v3408_v41 = vadd.f32 %v11629_v50, %v3388_v15  ;;  %v2747_v0 = vadd.f32 %v2723_v1, %v2496_v33 }
 0x200   : > { %v3424_v58 = vmax.f32 %v3408_v41, 0.0  ;;  %v2969_v59 = vpop.f32.mrf.mxu2 }
 0x201   : > { %v3110_v12 = vpop.f32.mrf.mxu3  ;;  %v2994_v10 = vadd.f32 %v2969_v59, %v2746_v11 }
 0x202   : > { %v3436_v52 = vpack.c.bf16 %v3424_v58, %v3423_v34  ;;  %v3138_v63 = vadd.f32 %v3110_v12, %v2992_v21  ;;  %v2726_v47 = vpop.f32.mrf.mxu1  ;;  %v14971_v34 = vld [vmem:[#allocation79_spill] sm:$0xff] }
 0x203   : > { %v1519_v57 = vadd.f32 %v11418_v32, %v14971_v34  ;;  %v2748_v59 = vadd.f32 %v2726_v47, %v11613_v25  ;;  %v2106_v25 = vadd.f32 %v11615_v18, %v11453_v14 }
 0x204   : > { %8896 = vmatmul.msk.bf16.gmra.mxu1 %vm14434_vm6, %v3436_v52  ;;  %v3389_v8 = vadd.f32 %v3361_v23, %v3138_v63  ;;  %v3371_v12 = vpop.f32.mrf.mxu0 }
 0x205   : > { %v2104_v28 = vadd.f32 %v11603_v3, %v1519_v57  ;;  %v9633_v57 = vld [vmem:[#allocation3 + $0x8] sm:$0xff] }
 0x206   : > { %v3409_v40 = vadd.f32 %v11629_v50, %v3389_v8  ;;  %3916 = vmatpush.bf16.msrb.mxu3 %v9633_v57 }
 0x207   : > { %v2352_v45 = vadd.f32 %v11617_v20, %v2104_v28 }
 0x208   : > { %v2971_v19 = vpop.f32.mrf.mxu2  ;;  %v3425_v23 = vmax.f32 %v3409_v40, 0.0 }
 0x209   : > { %v3112_v60 = vpop.f32.mrf.mxu3  ;;  %v2498_v32 = vadd.f32 %v11585_v30, %v2352_v45  ;;  %v2354_v30 = vadd.f32 %v11622_v24, %v2106_v25  ;;  %v11687_v45 = vld [vmem:[%s14219_s5] ss:$0 sm:$0xff] }
 0x20a   : > { %v3139_v48 = vadd.f32 %v3112_v60, %v2993_v13  ;;  %v2728_v52 = vpop.f32.mrf.mxu1 }
 0x20b   : > { %v2749_v31 = vadd.f32 %v2728_v52, %v2498_v32  ;;  %v5685_v32 = vld [vmem:[%s11694_s30] sm:$0xff] }
 0x20c   : > { %v3390_v43 = vadd.f32 %v3363_v53, %v3139_v48  ;;  %v2995_v53 = vadd.f32 %v2971_v19, %v2747_v0  ;;  %v3373_v16 = vpop.f32.mrf.mxu0 }
 0x20e   : > { %v3410_v6 = vadd.f32 %v11629_v50, %v3390_v43 }
 0x210   : > { %v3426_v26 = vmax.f32 %v3410_v6, 0.0  ;;  %v2974_v41 = vpop.f32.mrf.mxu2 }
 0x211   : > { %v3115_v4 = vpop.f32.mrf.mxu3  ;;  %v2996_v60 = vadd.f32 %v2974_v41, %v2748_v59 }
 0x212   : > { %v3437_v17 = vpack.c.bf16 %v3426_v26, %v3425_v23  ;;  %v3140_v15 = vadd.f32 %v3115_v4, %v2994_v10  ;;  %v2731_v1 = vpop.f32.mrf.mxu1  ;;  %v2500_v10 = vadd.f32 %v11607_v38, %v2354_v30  ;;  %v9649_v38 = vld [vmem:[#allocation3 + $0x48] sm:$0xff] }
 0x213   : > { %v2750_v11 = vadd.f32 %v2731_v1, %v11620_v5  ;;  %4545 = vmatpush.bf16.msra.mxu2 %v9649_v38 }
 0x214   : > { %8897 = vmatmul.msk.bf16.gmra.mxu1 %vm14434_vm6, %v3437_v17  ;;  %v3391_v55 = vadd.f32 %v3366_v36, %v3140_v15  ;;  %v3376_v4 = vpop.f32.mrf.mxu0 }
 0x216   : > { %v3411_v29 = vadd.f32 %v11629_v50, %v3391_v55 }
 0x218   : > { %v3427_v63 = vmax.f32 %v3411_v29, 0.0  ;;  %v2976_v13 = vpop.f32.mrf.mxu2 }
 0x219   : > { %v3117_v61 = vpop.f32.mrf.mxu3  ;;  %v2997_v48 = vadd.f32 %v2976_v13, %v2749_v31  ;;  %v3583_v13 = vld [vmem:[#allocation2] sm:$0x8] }
 0x21a   : > { %v3141_v58 = vadd.f32 %v3117_v61, %v2995_v53  ;;  %v2733_v15 = vpop.f32.mrf.mxu1  ;;  %v3600_v31 = vsel %vm10235_vm3, %v3583_v13, 0 }
 0x21b   : > { %v2751_v18 = vadd.f32 %v2733_v15, %v2500_v10 }
 0x21c   : > { %v3392_v22 = vadd.f32 %v3368_v54, %v3141_v58  ;;  %v3378_v55 = vpop.f32.mrf.mxu0 }
 0x21e   : > { %v3412_v21 = vadd.f32 %v11629_v50, %v3392_v22  ;;  %v9644_v22 = vld [vmem:[#allocation3 + $0x28] sm:$0xff] }
 0x21f   : > { %4151 = vmatpush.bf16.msrb.mxu0 %v9644_v22  ;;  %v14985_v22 = vld [vmem:[#allocation18_spill] sm:$0xff] }
 0x220   : > { %v3428_v7 = vmax.f32 %v3412_v21, 0.0  ;;  %v2979_v43 = vpop.f32.mrf.mxu2 }
 0x221   : > { %v3120_v8 = vpop.f32.mrf.mxu3  ;;  %v2998_v17 = vadd.f32 %v2979_v43, %v2750_v11 }
 0x222   : > { %v3438_v36 = vpack.c.bf16 %v3428_v7, %v3427_v63  ;;  %v3142_v3 = vadd.f32 %v3120_v8, %v2996_v60  ;;  %v9643_v63 = vld [vmem:[#allocation3 + $0x20] sm:$0xff]  ;;  %v9646_v7 = vld [vmem:[#allocation3 + $0x30] sm:$0xff] }
 0x223   : > { %4152 = vmatpush.bf16.msrb.mxu0 %v9643_v63  ;;  %v3584_v8 = vld [vmem:[#allocation2 + $0x4] sm:$0xf] }
 0x224   : > { %8898 = vmatmul.msk.bf16.gmra.mxu1 %vm14434_vm6, %v3438_v36  ;;  %v3393_v20 = vadd.f32 %v3371_v12, %v3142_v3  ;;  %v9647_v12 = vld [vmem:[#allocation3 + $0x38] sm:$0xff] }
 0x225   : > { %4399 = vmatpush.bf16.msrb.mxu1 %v9647_v12 }
 0x226   : > { %v3413_v19 = vadd.f32 %v11629_v50, %v3393_v20  ;;  %v5693_v20 = vpack.c.bf16 %v5685_v32, %v5685_v32 }
 0x228   : > { %v3429_v23 = vmax.f32 %v3413_v19, 0.0  ;;  %v2981_v14 = vpop.f32.mrf.mxu2 }
 0x229   : > { %v3122_v51 = vpop.f32.mrf.mxu3  ;;  %v2999_v0 = vadd.f32 %v2981_v14, %v2751_v18  ;;  %4400 = vmatpush.bf16.msrb.mxu1 %v9646_v7 }
 0x22a   : > { %v3143_v40 = vadd.f32 %v3122_v51, %v2997_v48  ;;  %v3601_v48 = vsel %vm10265_vm2, %v3584_v8, 0  ;;  %v3959_v51 = vld [vmem:[#allocation2 + $0x4] sm:$0xf] }
 0x22b   : > { %v3769_v30 = vunpack.c.l.b16 %v3601_v48 }
 0x22c   : > { %v3394_v44 = vadd.f32 %v3373_v16, %v3143_v40  ;;  %v4210_v40 = vld [vmem:[#allocation2 + $0x4] sm:$0x8] }
 0x22d   : > { %v4212_v15 = vsel %vm10235_vm3, %v4210_v40, 0 }
 0x22e   : > { %v3414_v6 = vadd.f32 %v11629_v50, %v3394_v44  ;;  %v3768_v44 = vunpack.c.l.b16 %v3600_v31 }
 0x230   : > { %v3430_v26 = vmax.f32 %v3414_v6, 0.0 }
 0x231   : > { %v3125_v33 = vpop.f32.mrf.mxu3 }
 0x232   : > { %v3439_v54 = vpack.c.bf16 %v3430_v26, %v3429_v23  ;;  %v3144_v47 = vadd.f32 %v3125_v33, %v2998_v17  ;;  %v5686_v23 = vld [vmem:[%s11694_s30 + $0x8] sm:$0xff]  ;;  %v14979_v17 = vld [vmem:[#allocation44_spill] sm:$0xff] }
 0x233   : > { %v14977_v33 = vld [vmem:[#allocation43_spill] sm:$0xff]  ;;  %v5694_v18 = vpack.c.bf16 %v5686_v23, %v5686_v23 }
 0x234   : > { %8899 = vmatmul.msk.bf16.gmra.mxu1 %vm14434_vm6, %v3439_v54  ;;  %v3395_v24 = vadd.f32 %v3376_v4, %v3144_v47  ;;  %v3785_v4 = vpack.c.b16 %v3769_v30, %v3768_v44  ;;  %v14988_v30 = vld [vmem:[#allocation45_spill] sm:$0xff] }
 0x236   : > { %v3415_v5 = vadd.f32 %v11629_v50, %v3395_v24  ;;  %v3798_v57 = vshll.u32 %v3785_v4, 16 }
 0x238   : > { %v3431_v58 = vmax.f32 %v3415_v5, 0.0  ;;  %v14981_v5 = vld [vmem:[#allocation17_spill] sm:$0xff]  ;;  %v3800_v31 = vrot.slane %v3798_v57, 4 }
 0x239   : > { %v3127_v41 = vpop.f32.mrf.mxu3 }
 0x23a   : > { %v3145_v53 = vadd.f32 %v3127_v41, %v2999_v0 }
 0x23c   : > { %v3396_v61 = vadd.f32 %v3378_v55, %v3145_v53  ;;  %v4251_v53 = vunpack.c.l.b16 %v4212_v15 }
 0x23e   : > { %v3416_v34 = vadd.f32 %v11629_v50, %v3396_v61  ;;  %v9632_v50 = vld [vmem:[#allocation3] sm:$0xff] }
 0x23f   : > { %3917 = vmatpush.bf16.msrb.mxu3 %v9632_v50 }
 0x240   : > { %v3432_v28 = vmax.f32 %v3416_v34, 0.0  ;;  %v3795_v34 = vshrl.u32 %v3785_v4, 16 }
 0x242   : > { %v3440_v29 = vpack.c.bf16 %v3432_v28, %v3431_v58 }
 0x244   : > { %8900 = vmatmul.msk.bf16.gmra.mxu1 %vm14434_vm6, %v3440_v29  ;;  %vm14980_vm6 = vnez %v14979_v17 }
 0x251   : > { %v3511_v21 = vpop.f32.mrf.mxu1 }
 0x252   : > { %v3512_v52 = vadd.f32 %v11687_v45, %v3511_v21 }
 0x254   : > { %v3551_v59 = vpack.c.bf16 %v3512_v52, %v3512_v52  ;;  %v5687_v52 = vld [vmem:[%s11694_s30 + $0x10] sm:$0xff] }
 0x255   : > { %v5695_v48 = vpack.c.bf16 %v5687_v52, %v5687_v52 }
 0x256   : > { %3567 = vst.msk [vmem:[#allocation2 + $0x8] sm:$0xf] %vm14972_vm10, %v3551_v59  ;;  %vm14978_vm10 = vnez %v14977_v33 }
 0x257   : > { %v3976_v10 = vsel %vm14978_vm10, %v3959_v51, 0 }
 0x258   : > { %v4015_v24 = vunpack.c.l.b16 %v3976_v10 }
 0x259   : > { %v3513_v60 = vpop.f32.mrf.mxu1 }
 0x25a   : > { %v3514_v36 = vadd.f32 %v11687_v45, %v3513_v60 }
 0x25c   : > { %v3552_v1 = vpack.c.bf16 %v3514_v36, %v3514_v36  ;;  %v3797_v36 = vrot.slane %v3795_v34, 3 }
 0x25d   : > { %v11703_v43 = vld [vmem:[#allocation2 + $0x8] sm:$0xf] }
 0x25e   : > { %v11705_v25 = vld [vmem:[#allocation2 + $0x8] sm:$0x8]  ;;  %3568 = vst.msk [vmem:[#allocation2 + $0xc] sm:$0xf] %vm14975_vm0, %v3552_v1  ;;  %vm14982_vm0 = vnez %v14981_v5  ;;  %v3801_v4 = vor.u32 %v3800_v31, %v3797_v36 }
 0x25f   : > { %v9624_v19 = vld [vmem:[#allocation2 + $0x4] sm:$0xff] }
 0x260   : > { %v3585_v6 = vld [vmem:[#allocation2 + $0x8] sm:$0xf]  ;;  %8941 = vmatmul.msk.bf16.vlgmr.msrb.gmra.mxu2 %vm14966_vm4, %v9624_v19  ;;  %vm14983_vm4 = vmmov %vm14976_vm15 }
 0x261   : > { %v3960_v11 = vld [vmem:[#allocation2 + $0x8] sm:$0xf]  ;;  %v3516_v26 = vpop.f32.mrf.mxu1  ;;  %v3602_v61 = vsel %vm14982_vm0, %v3585_v6, 0  ;;  %vm14987_vm8 = vmmov %vm14983_vm4 }
 0x262   : > { %5701 = vst.msk [vmem:[#allocation2 + $0x8] sm:$0xf] %vm14976_vm15, %v5693_v20  ;;  %v3977_v54 = vsel %vm14980_vm6, %v3960_v11, 0  ;;  %v3517_v47 = vadd.f32 %v11687_v45, %v3516_v26  ;;  %v4213_v14 = vsel %vm10265_vm2, %v3960_v11, 0  ;;  %vm14986_vm15 = vnez %v14985_v22 }
 0x263   : > { %v4016_v41 = vunpack.c.l.b16 %v3977_v54  ;;  %v4252_v38 = vunpack.c.l.b16 %v4213_v14  ;;  %v3770_v59 = vunpack.c.l.b16 %v3602_v61 }
 0x264   : > { %v3553_v0 = vpack.c.bf16 %v3517_v47, %v3517_v47 }
 0x265   : > { %v11720_v55 = vld [vmem:[#allocation2 + $0xc] sm:$0xf]  ;;  %v4032_v7 = vpack.c.b16 %v4016_v41, %v4015_v24  ;;  %v4268_v8 = vpack.c.b16 %v4252_v38, %v4251_v53  ;;  %v14992_v24 = vld [vmem:[#allocation46_spill] sm:$0xff] }
 0x266   : > { %3569 = vst.msk [vmem:[#allocation2 + $0x10] sm:$0xf] %vm14983_vm4, %v3553_v0  ;;  %v11725_v58 = vld [vmem:[#allocation2 + $0xc] sm:$0xf]  ;;  %vm14989_vm4 = vnez %v14988_v30  ;;  %vm14993_vm11 = vnez %v14992_v24 }
 0x267   : > { %v3586_v28 = vld [vmem:[#allocation2 + $0xc] sm:$0xf]  ;;  %v4044_v40 = vshll.u32 %v4032_v7, 16  ;;  %v4278_v23 = vshrl.u32 %v4268_v8, 16  ;;  %v4281_v61 = vshll.u32 %v4268_v8, 16 }
 0x268   : > { %v11727_v29 = vld [vmem:[#allocation2 + $0xc] sm:$0xf]  ;;  %v3603_v12 = vsel %vm14986_vm15, %v3586_v28, 0 }
 0x269   : > { %14984 = vst [vmem:[#allocation49_spill] sm:$0xff] %v11727_v29  ;;  %v3961_v50 = vld [vmem:[#allocation2 + $0xc] sm:$0xf]  ;;  %v3771_v63 = vunpack.c.l.b16 %v3603_v12  ;;  %v3518_v13 = vpop.f32.mrf.mxu1  ;;  %v4280_v36 = vrot.slane %v4278_v23, 3  ;;  %v4283_v31 = vrot.slane %v4281_v61, 4 }
 0x26a   : > { %v11731_v21 = vld [vmem:[#allocation2 + $0x8] sm:$0xff]  ;;  %v3519_v32 = vadd.f32 %v11687_v45, %v3518_v13  ;;  %v3978_v6 = vsel %vm14989_vm4, %v3961_v50, 0  ;;  %v4214_v11 = vsel %vm14982_vm0, %v3961_v50, 0  ;;  %v4046_v13 = vrot.slane %v4044_v40, 1 }
 0x26b   : > { %5702 = vst.msk [vmem:[#allocation2 + $0xc] sm:$0xf] %vm14987_vm8, %v5694_v18  ;;  %v3786_v60 = vpack.c.b16 %v3771_v63, %v3770_v59  ;;  %v5688_v18 = vld [vmem:[%s11694_s30 + $0x18] sm:$0xff]  ;;  %v4017_v57 = vunpack.c.l.b16 %v3978_v6  ;;  %v4253_v28 = vunpack.c.l.b16 %v4214_v11 }
 0x26c   : > { %v3554_v20 = vpack.c.bf16 %v3519_v32, %v3519_v32  ;;  %v5696_v59 = vpack.c.bf16 %v5688_v18, %v5688_v18 }
 0x26d   : > { %v3803_v1 = vshrl.u32 %v3786_v60, 16  ;;  %v3806_v51 = vshll.u32 %v3786_v60, 16  ;;  %v11736_v44 = vld [vmem:[#allocation2 + $0x10] sm:$0xf]  ;;  %v4042_v60 = vshrl.u32 %v4032_v7, 16 }
 0x26e   : > { %3570 = vst.msk [vmem:[#allocation2 + $0x14] sm:$0xf] %vm14987_vm8, %v3554_v20  ;;  %v11743_v26 = vld [vmem:[#allocation2 + $0xc] sm:$0xf0] }
 0x26f   : > { %v3805_v10 = vrot.slane %v3803_v1, 3  ;;  %v3808_v54 = vrot.slane %v3806_v51, 4  ;;  %v11746_v15 = vld [vmem:[#allocation2 + $0x10] sm:$0xf]  ;;  %v4047_v40 = vor.u32 %v4046_v13, %v4042_v60 }
 0x270   : > { %14991 = vst [vmem:[#allocation56_spill] sm:$0xff] %v11746_v15  ;;  %v3962_v47 = vld [vmem:[#allocation2 + $0x10] sm:$0xf] }
 0x271   : > { %v3587_v14 = vld [vmem:[#allocation2 + $0x10] sm:$0xf]  ;;  %v11749_v0 = vor.u32 %v3808_v54, %v3805_v10  ;;  %v3979_v41 = vsel %vm14993_vm11, %v3962_v47, 0  ;;  %v4215_v53 = vsel %vm14986_vm15, %v3962_v47, 0  ;;  %v3521_v34 = vpop.f32.mrf.mxu1  ;;  %v4284_v10 = vor.u32 %v4283_v31, %v4280_v36 }
 0x272   : > { %v9625_v19 = vld [vmem:[#allocation2 + $0xc] sm:$0xff]  ;;  %v4018_v38 = vunpack.c.l.b16 %v3979_v41  ;;  %v4254_v12 = vunpack.c.l.b16 %v4215_v53  ;;  %v3522_v50 = vadd.f32 %v11687_v45, %v3521_v34  ;;  %v5689_v53 = vld [vmem:[%s11694_s30 + $0x20] sm:$0xff]  ;;  %vm15003_vm15 = vcmask 261120  }
 0x273   : > { %8942 = vmatmul.msk.bf16.gmra.mxu2 %vm14990_vm5, %v9625_v19  ;;  %5703 = vst.msk [vmem:[#allocation2 + $0x10] sm:$0xf] %vm14987_vm8, %v5695_v48  ;;  %vm14994_vm5 = vsmask.f32 4352  ;;  %vm14996_vm8 = vnez %v14627_v46  ;;  %v14999_v47 = vld [vmem:[#allocation28_spill] sm:$0xff]  ;;  %v5697_v13 = vpack.c.bf16 %v5689_v53, %v5689_v53  ;;  %vm15005_vm14 = vmmov %vm15003_vm15 }
 0x274   : > { %v3810_v52 = vsel %vm14994_vm5, %v3801_v4, %v11749_v0  ;;  %v11760_v63 = vpack.c.b16 %v4018_v38, %v4017_v57  ;;  %v4269_v32 = vpack.c.b16 %v4254_v12, %v4253_v28  ;;  %v3555_v8 = vpack.c.bf16 %v3522_v50, %v3522_v50 }
 0x275   : > { %8957 = vmatmul.msk.bf16.vlgmr.msrb.gmra.mxu3 %vm14995_vm13, %v3810_v52  ;;  %v3604_v51 = vsel %vm14996_vm8, %v3587_v14, 0  ;;  %vm14997_vm5 = vcmask 257024   ;;  %v11766_v19 = vld [vmem:[#allocation2 + $0x14] sm:$0xf]  ;;  %vm15000_vm13 = vnez %v14999_v47  ;;  %vm15004_vm11 = vsmask.f32 4352 }
 0x276   : > { %v4049_v48 = vshll.u32 %v11760_v63, 16  ;;  %v4286_v20 = vshrl.u32 %v4269_v32, 16  ;;  %v4289_v1 = vshll.u32 %v4269_v32, 16  ;;  %3571 = vst.msk [vmem:[#allocation2 + $0x18] sm:$0xf] %vm14997_vm5, %v3555_v8  ;;  %v3772_v38 = vunpack.c.l.b16 %v3604_v51  ;;  %v15006_v8 = vld [vmem:[#allocation50_spill] sm:$0xff] }
 0x277   : > { %v11768_v6 = vld [vmem:[#allocation2 + $0x14] sm:$0xf]  ;;  %vm15001_vm5 = vsmask.f32 7424 }
 0x278   : > { %v11770_v11 = vrot.slane %v4049_v48, 1  ;;  %v4288_v7 = vrot.slane %v4286_v20, 3  ;;  %v4291_v23 = vrot.slane %v4289_v1, 4  ;;  %v3588_v4 = vld [vmem:[#allocation2 + $0x14] sm:$0xf] }
 0x279   : > { %v11772_v54 = vld [vmem:[#allocation2 + $0x14] sm:$0xf]  ;;  %v3605_v18 = vsel %vm15000_vm13, %v3588_v4, 0  ;;  %v3523_v34 = vpop.f32.mrf.mxu1 }
 0x27a   : > { %14998 = vst [vmem:[#allocation61_spill] sm:$0xff] %v11772_v54  ;;  %v3963_v41 = vld [vmem:[#allocation2 + $0x14] sm:$0xf]  ;;  %v4052_v61 = vsel %vm15001_vm5, %v4047_v40, %v11770_v11  ;;  %v11781_v57 = vor.u32 %v4291_v23, %v4288_v7  ;;  %v3773_v28 = vunpack.c.l.b16 %v3605_v18  ;;  %v3524_v12 = vadd.f32 %v11687_v45, %v3523_v34 }
 0x27b   : > { %v11776_v14 = vld [vmem:[#allocation2 + $0x10] sm:$0xff]  ;;  %8973 = vmatmul.msk.bf16.vlgmr.msrb.gmra.mxu0 %vm15003_vm15, %v4052_v61  ;;  %vm15007_vm5 = vnez %v15006_v8  ;;  %v4216_v51 = vsel %vm14996_vm8, %v3963_v41, 0  ;;  %vm15011_vm15 = vmmov %vm15002_vm1  ;;  %v5690_v61 = vld [vmem:[%s11694_s30 + $0x28] sm:$0xff]  ;;  %vm15018_vm8 = vsmask.f32 4352 }
 0x27c   : > { %5704 = vst.msk [vmem:[#allocation2 + $0x14] sm:$0xf] %vm15002_vm1, %v5696_v59  ;;  %v4293_v50 = vsel %vm15004_vm11, %v4284_v10, %v11781_v57  ;;  %v3787_v52 = vpack.c.b16 %v3773_v28, %v3772_v38  ;;  %v3556_v32 = vpack.c.bf16 %v3524_v12, %v3524_v12  ;;  %v3980_v60 = vsel %vm15007_vm5, %v3963_v41, 0  ;;  %vm15009_vm11 = vmmov %vm15005_vm14  ;;  %v9648_v4 = vld [vmem:[#allocation3 + $0x40] sm:$0xff] }
 0x27d   : > { %8989 = vmatmul.msk.bf16.vlgmr.msrb.gmra.mxu1 %vm15005_vm14, %v4293_v50  ;;  %v11791_v31 = vld [vmem:[#allocation2 + $0x18] sm:$0xf]  ;;  %vm15010_vm14 = vnez %v14893_v27  ;;  %v4019_v38 = vunpack.c.l.b16 %v3980_v60  ;;  %v4255_v41 = vunpack.c.l.b16 %v4216_v51  ;;  %4546 = vmatpush.bf16.msra.mxu2 %v9648_v4 }
 0x27e   : > { %v11793_v59 = vld [vmem:[#allocation2 + $0x14] sm:$0xf0]  ;;  %v3812_v48 = vshrl.u32 %v3787_v52, 16  ;;  %3572 = vst.msk [vmem:[#allocation2 + $0x1c] sm:$0xf] %vm15002_vm1, %v3556_v32  ;;  %v3815_v1 = vshll.u32 %v3787_v52, 16 }
 0x27f   : > { %v11796_v20 = vld [vmem:[#allocation2 + $0x18] sm:$0xf]  ;;  %vm15012_vm1 = vsmask.f32 4352 }
 0x280   : > { %15008 = vst [vmem:[#allocation57_spill] sm:$0xff] %v11796_v20  ;;  %v3814_v40 = vrot.slane %v3812_v48, 3  ;;  %v3964_v7 = vld [vmem:[#allocation2 + $0x18] sm:$0xf]  ;;  %v3817_v10 = vrot.slane %v3815_v1, 4  ;;  %v5698_v48 = vpack.c.bf16 %v5690_v61, %v5690_v61 }
 0x281   : > { %v3589_v23 = vld [vmem:[#allocation2 + $0x18] sm:$0xf]  ;;  %v3981_v18 = vsel %vm15010_vm14, %v3964_v7, 0  ;;  %v4217_v53 = vsel %vm15000_vm13, %v3964_v7, 0  ;;  %v3526_v34 = vpop.f32.mrf.mxu1  ;;  %v4053_v7 = vshrl.u32 %v11760_v63, 16 }
 0x282   : > { %v4020_v28 = vunpack.c.l.b16 %v3981_v18  ;;  %v4256_v12 = vunpack.c.l.b16 %v4217_v53  ;;  %v3527_v50 = vadd.f32 %v11687_v45, %v3526_v34  ;;  %v11808_v52 = vor.u32 %v3817_v10, %v3814_v40 }
 0x283   : > { %v9626_v36 = vld [vmem:[#allocation2 + $0x14] sm:$0xff]  ;;  %v3606_v40 = vsel %vm14903_vm12, %v3589_v23, 0 }
 0x284   : > { %8943 = vmatmul.msk.bf16.gmra.mxu2 %vm15009_vm11, %v9626_v36  ;;  %5705 = vst.msk [vmem:[#allocation2 + $0x18] sm:$0xf] %vm15011_vm15, %v5697_v13  ;;  %v11810_v32 = vpack.c.b16 %v4020_v28, %v4019_v38  ;;  %v4270_v36 = vpack.c.b16 %v4256_v12, %v4255_v41  ;;  %v3557_v1 = vpack.c.bf16 %v3527_v50, %v3527_v50  ;;  %v5691_v23 = vld [vmem:[%s11694_s30 + $0x30] sm:$0xff] }
 0x285   : > { %v3819_v13 = vsel %vm15012_vm1, %v11749_v0, %v11808_v52  ;;  %v11821_v10 = vld [vmem:[#allocation2 + $0x1c] sm:$0xf]  ;;  %v4055_v0 = vor.u32 %v4053_v7, %v11770_v11  ;;  %vm15015_vm1 = vsmask.f32 7424 }
 0x286   : > { %8958 = vmatmul.msk.bf16.gmra.mxu3 %vm15009_vm11, %v3819_v13  ;;  %v4057_v60 = vshll.u32 %v11810_v32, 16  ;;  %v4295_v51 = vshrl.u32 %v4270_v36, 16  ;;  %v4298_v4 = vshll.u32 %v4270_v36, 16  ;;  %3573 = vst.msk [vmem:[#allocation2 + $0x20] sm:$0xf] %vm15011_vm15, %v3557_v1  ;;  %v3774_v13 = vunpack.c.l.b16 %v3606_v40  ;;  %vm15016_vm11 = vmmov %vm15011_vm15 }
 0x287   : > { %v11823_v18 = vld [vmem:[#allocation2 + $0x1c] sm:$0xf]  ;;  %vm15017_vm15 = vcmask 261120  }
 0x288   : > { %15013 = vst [vmem:[#allocation71_spill] sm:$0xff] %v11823_v18  ;;  %v4059_v53 = vrot.slane %v4057_v60, 1  ;;  %v4297_v63 = vrot.slane %v4295_v51, 3  ;;  %v4300_v61 = vrot.slane %v4298_v4, 4  ;;  %v3590_v34 = vld [vmem:[#allocation2 + $0x1c] sm:$0xf]  ;;  %v5699_v4 = vpack.c.bf16 %v5691_v23, %v5691_v23  ;;  %vm15019_vm13 = vmmov %vm15017_vm15 }
 0x289   : > { %v11826_v38 = vld [vmem:[#allocation2 + $0x1c] sm:$0xf]  ;;  %v3607_v28 = vsel %vm14904_vm9, %v3590_v34, 0  ;;  %v3528_v36 = vpop.f32.mrf.mxu1 }
 0x28a   : > { %15014 = vst [vmem:[#allocation77_spill] sm:$0xff] %v11826_v38  ;;  %v3965_v41 = vld [vmem:[#allocation2 + $0x1c] sm:$0xf]  ;;  %v4060_v50 = vsel %vm15015_vm1, %v4055_v0, %v4059_v53  ;;  %v11834_v1 = vor.u32 %v4300_v61, %v4297_v63  ;;  %v3775_v11 = vunpack.c.l.b16 %v3607_v28  ;;  %v3529_v7 = vadd.f32 %v11687_v45, %v3528_v36 }
 0x28b   : > { %v11830_v12 = vld [vmem:[#allocation2 + $0x18] sm:$0xff]  ;;  %8974 = vmatmul.msk.bf16.gmra.mxu0 %vm15017_vm15, %v4060_v50  ;;  %vm15020_vm1 = vnez %v14761_v56  ;;  %v4218_v23 = vsel %vm14903_vm12, %v3965_v41, 0  ;;  %vm15025_vm15 = vmmov %vm15016_vm11  ;;  %vm15028_vm12 = vcmask 257024  }
 0x28c   : > { %5706 = vst.msk [vmem:[#allocation2 + $0x1c] sm:$0xf] %vm15016_vm11, %v5698_v48  ;;  %v4302_v60 = vsel %vm15018_vm8, %v11781_v57, %v11834_v1  ;;  %v3788_v51 = vpack.c.b16 %v3775_v11, %v3774_v13  ;;  %v3558_v34 = vpack.c.bf16 %v3529_v7, %v3529_v7  ;;  %v3982_v0 = vsel %vm15020_vm1, %v3965_v41, 0  ;;  %vm15023_vm8 = vmmov %vm15019_vm13 }
 0x28d   : > { %8990 = vmatmul.msk.bf16.gmra.mxu1 %vm15019_vm13, %v4302_v60  ;;  %v11845_v63 = vld [vmem:[#allocation2 + $0x20] sm:$0xf]  ;;  %vm15024_vm13 = vnez %v14906_v2  ;;  %v4257_v54 = vunpack.c.l.b16 %v4218_v23  ;;  %vm15033_vm1 = vcmask 261120  }
 0x28e   : > { %v11847_v48 = vld [vmem:[#allocation2 + $0x1c] sm:$0xf0]  ;;  %v3821_v61 = vshrl.u32 %v3788_v51, 16  ;;  %3574 = vst.msk [vmem:[#allocation2 + $0x24] sm:$0xf] %vm15016_vm11, %v3558_v34  ;;  %v3824_v57 = vshll.u32 %v3788_v51, 16  ;;  %v4021_v51 = vunpack.c.l.b16 %v3982_v0 }
 0x28f   : > { %15021 = vst [vmem:[#allocation78_spill] sm:$0xff] %v11847_v48  ;;  %v11850_v28 = vld [vmem:[#allocation2 + $0x20] sm:$0xf]  ;;  %v5692_v34 = vld [vmem:[%s11694_s30 + $0x38] sm:$0xff]  ;;  %vm15026_vm11 = vsmask.f32 4352 }
 0x290   : > { %15022 = vst [vmem:[#allocation67_spill] sm:$0xff] %v11850_v28  ;;  %v3823_v50 = vrot.slane %v3821_v61, 3  ;;  %v3966_v36 = vld [vmem:[#allocation2 + $0x20] sm:$0xf]  ;;  %v3826_v11 = vrot.slane %v3824_v57, 4  ;;  %v5700_v29 = vpack.c.bf16 %v5692_v34, %v5692_v34 }
 0x291   : > { %v3591_v13 = vld [vmem:[#allocation2 + $0x20] sm:$0xf]  ;;  %v3983_v7 = vsel %vm15024_vm13, %v3966_v36, 0  ;;  %v4219_v60 = vsel %vm14904_vm9, %v3966_v36, 0  ;;  %v3531_v38 = vpop.f32.mrf.mxu1  ;;  %v4061_v36 = vshrl.u32 %v11810_v32, 16  ;;  %vm15035_vm13 = vmmov %vm15033_vm1 }
 0x292   : > { %v4022_v28 = vunpack.c.l.b16 %v3983_v7  ;;  %v4258_v41 = vunpack.c.l.b16 %v4219_v60  ;;  %v3827_v61 = vor.u32 %v3826_v11, %v3823_v50  ;;  %vm15034_vm9 = vsmask.f32 4352 }
 0x293   : > { %v9627_v40 = vld [vmem:[#allocation2 + $0x1c] sm:$0xff]  ;;  %v4063_v50 = vor.u32 %v4061_v36, %v4059_v53 }
 0x294   : > { %8944 = vmatmul.msk.bf16.gmra.mxu2 %vm15023_vm8, %v9627_v40  ;;  %5707 = vst.msk [vmem:[#allocation2 + $0x20] sm:$0xf] %vm15025_vm15, %v5699_v4  ;;  %v3532_v40 = vadd.f32 %v11687_v45, %v3531_v38  ;;  %v11862_v20 = vpack.c.b16 %v4022_v28, %v4021_v51  ;;  %v4271_v57 = vpack.c.b16 %v4258_v41, %v4257_v54 }
 0x295   : > { %v3828_v48 = vsel %vm15026_vm11, %v11808_v52, %v3827_v61  ;;  %vm15027_vm15 = vnez %v14912_v35  ;;  %v11872_v28 = vld [vmem:[#allocation2 + $0x24] sm:$0xf]  ;;  %vm15031_vm11 = vnez %v14915_v39 }
 0x296   : > { %v3559_v15 = vpack.c.bf16 %v3532_v40, %v3532_v40  ;;  %8959 = vmatmul.msk.bf16.gmra.mxu3 %vm15023_vm8, %v3828_v48  ;;  %v4065_v4 = vshll.u32 %v11862_v20, 16  ;;  %v4304_v0 = vshrl.u32 %v4271_v57, 16  ;;  %v4307_v23 = vshll.u32 %v4271_v57, 16  ;;  %v11874_v54 = vld [vmem:[#allocation2 + $0x24] sm:$0xf] }
 0x297   : > { %v3608_v38 = vsel %vm15027_vm15, %v3591_v13, 0  ;;  %15029 = vst [vmem:[#allocation76_spill] sm:$0xff] %v11874_v54  ;;  %v3592_v32 = vld [vmem:[#allocation2 + $0x24] sm:$0xf]  ;;  %vm15032_vm8 = vsmask.f32 7424 }
 0x298   : > { %3575 = vst.msk [vmem:[#allocation2 + $0x28] sm:$0xf] %vm15028_vm12, %v3559_v15  ;;  %v4067_v11 = vrot.slane %v4065_v4, 1  ;;  %v4306_v52 = vrot.slane %v4304_v0, 3  ;;  %v4309_v7 = vrot.slane %v4307_v23, 4  ;;  %v3609_v48 = vsel %vm15031_vm11, %v3592_v32, 0 }
 0x299   : > { %v11876_v60 = vld [vmem:[#allocation2 + $0x24] sm:$0xf]  ;;  %v3533_v15 = vpop.f32.mrf.mxu1  ;;  %v3776_v40 = vunpack.c.l.b16 %v3608_v38  ;;  %v3777_v57 = vunpack.c.l.b16 %v3609_v48 }
 0x29a   : > { %15030 = vst [vmem:[#allocation74_spill] sm:$0xff] %v11876_v60  ;;  %v3967_v34 = vld [vmem:[#allocation2 + $0x24] sm:$0xf]  ;;  %v4068_v13 = vsel %vm15032_vm8, %v4063_v50, %v4067_v11  ;;  %v4310_v41 = vor.u32 %v4309_v7, %v4306_v52  ;;  %v3534_v53 = vadd.f32 %v11687_v45, %v3533_v15  ;;  %vm15036_vm8 = vnez %v14917_v62 }
 0x29b   : > { %v11880_v51 = vld [vmem:[#allocation2 + $0x20] sm:$0xff]  ;;  %8975 = vmatmul.msk.bf16.gmra.mxu0 %vm15033_vm1, %v4068_v13  ;;  %v3789_v4 = vpack.c.b16 %v3777_v57, %v3776_v40  ;;  %v3984_v38 = vsel %vm15036_vm8, %v3967_v34, 0 }
 0x29c   : > { %5708 = vst.msk [vmem:[#allocation2 + $0x24] sm:$0xf] %vm15028_vm12, %v5700_v29  ;;  %v4311_v36 = vsel %vm15034_vm9, %v11834_v1, %v4310_v41  ;;  %v3560_v0 = vpack.c.bf16 %v3534_v53, %v3534_v53  ;;  %v4220_v29 = vsel %vm15027_vm15, %v3967_v34, 0  ;;  %vm15037_vm9 = vnez %v14919_v9  ;;  %v15525_v9 = vld [vmem:[#allocation73_spill] sm:$0xff] }
 0x29d   : > { %8991 = vmatmul.msk.bf16.gmra.mxu1 %vm15035_vm13, %v4311_v36  ;;  %v3830_v32 = vshrl.u32 %v3789_v4, 16  ;;  %v3833_v50 = vshll.u32 %v3789_v4, 16  ;;  %v4023_v15 = vunpack.c.l.b16 %v3984_v38  ;;  %v4259_v57 = vunpack.c.l.b16 %v4220_v29 }
 0x29e   : > { %3576 = vst.msk [vmem:[#allocation2 + $0x2c] sm:$0xf] %vm15028_vm12, %v3560_v0  ;;  %vm15038_vm13 = vsmask.f32 4352  ;;  %vm15039_vm12 = vmmov %vm15033_vm1 }
 0x29f   : > { %v3968_v52 = vld [vmem:[#allocation2 + $0x28] sm:$0xf]  ;;  %v3832_v7 = vrot.slane %v3830_v32, 3  ;;  %v3835_v1 = vrot.slane %v3833_v50, 4  ;;  %v4069_v50 = vshrl.u32 %v11862_v20, 16 }
 0x2a0   : > { %v3985_v48 = vsel %vm15037_vm9, %v3968_v52, 0  ;;  %v4221_v13 = vsel %vm15031_vm11, %v3968_v52, 0  ;;  %v3593_v36 = vld [vmem:[#allocation2 + $0x28] sm:$0xf] }
 0x2a1   : > { %v4024_v40 = vunpack.c.l.b16 %v3985_v48  ;;  %v4260_v53 = vunpack.c.l.b16 %v4221_v13  ;;  %v3536_v4 = vpop.f32.mrf.mxu1  ;;  %v11899_v34 = vor.u32 %v3835_v1, %v3832_v7  ;;  %v3610_v38 = vsel %vm14815_vm7, %v3593_v36, 0 }
 0x2a2   : > { %v3537_v0 = vadd.f32 %v11687_v45, %v3536_v4  ;;  %v4071_v7 = vor.u32 %v4069_v50, %v4067_v11  ;;  %v3778_v36 = vunpack.c.l.b16 %v3610_v38 }
 0x2a3   : > { %v9628_v23 = vld [vmem:[#allocation2 + $0x24] sm:$0xff]  ;;  %v11902_v60 = vpack.c.b16 %v4024_v40, %v4023_v15  ;;  %v3837_v32 = vsel %vm15038_vm13, %v3827_v61, %v11899_v34  ;;  %v4622_v15 = vsel %vm14980_vm6, %v11720_v55, 0  ;;  %vm15045_vm6 = vsmask.f32 4352 }
 0x2a4   : > { %8945 = vmatmul.msk.bf16.gmra.mxu2 %vm15033_vm1, %v9628_v23  ;;  %v4272_v23 = vpack.c.b16 %v4260_v53, %v4259_v57  ;;  %v3561_v52 = vpack.c.bf16 %v3537_v0, %v3537_v0  ;;  %vm15040_vm1 = vcmask 257024   ;;  %v15041_v57 = vld [vmem:[#allocation22_spill] sm:$0xff]  ;;  %v4621_v0 = vsel %vm14978_vm10, %v11703_v43, 0 }
 0x2a5   : > { %v4073_v29 = vshll.u32 %v11902_v60, 16  ;;  %v3594_v1 = vld [vmem:[#allocation2 + $0x2c] sm:$0xf]  ;;  %vm15042_vm13 = vnez %v15041_v57  ;;  %v4660_v43 = vunpack.c.l.b16 %v4621_v0 }
 0x2a6   : > { %v4313_v48 = vshrl.u32 %v4272_v23, 16  ;;  %v4316_v13 = vshll.u32 %v4272_v23, 16  ;;  %8960 = vmatmul.msk.bf16.gmra.mxu3 %vm15039_vm12, %v3837_v32  ;;  %3577 = vst.msk [vmem:[#allocation2 + $0x30] sm:$0xf] %vm15040_vm1, %v3561_v52  ;;  %v3611_v53 = vsel %vm15042_vm13, %v3594_v1, 0  ;;  %v4661_v32 = vunpack.c.l.b16 %v4622_v15 }
 0x2a7   : > { %v4075_v61 = vrot.slane %v4073_v29, 1  ;;  %v3779_v4 = vunpack.c.l.b16 %v3611_v53  ;;  %vm15043_vm12 = vsmask.f32 7424  ;;  %v4858_v52 = vsel %vm10265_vm2, %v11720_v55, 0 }
 0x2a8   : > { %v4315_v20 = vrot.slane %v4313_v48, 3  ;;  %v4318_v40 = vrot.slane %v4316_v13, 4  ;;  %vm15044_vm1 = vcmask 261120   ;;  %v3969_v48 = vld [vmem:[#allocation2 + $0x2c] sm:$0xf]  ;;  %v4857_v1 = vsel %vm10235_vm3, %v11705_v25, 0 }
 0x2a9   : > { %v4076_v11 = vsel %vm15043_vm12, %v4071_v7, %v4075_v61  ;;  %v3538_v50 = vpop.f32.mrf.mxu1  ;;  %v3790_v17 = vpack.c.b16 %v3779_v4, %v3778_v36  ;;  %vm15046_vm12 = vmmov %vm15044_vm1  ;;  %v4897_v55 = vunpack.c.l.b16 %v4858_v52  ;;  %v15047_v4 = vld [vmem:[#allocation63_spill] sm:$0xff]  ;;  %v4222_v0 = vsel %vm14815_vm7, %v3969_v48, 0 }
 0x2aa   : > { %v11921_v23 = vor.u32 %v4318_v40, %v4315_v20  ;;  %v3539_v38 = vadd.f32 %v11687_v45, %v3538_v50  ;;  %v11934_v20 = vpack.c.b16 %v4661_v32, %v4660_v43  ;;  %v4623_v25 = vsel %vm14989_vm4, %v11736_v44, 0  ;;  %v15050_v50 = vld [vmem:[#allocation65_spill] sm:$0xff] }
 0x2ab   : > { %8976 = vmatmul.msk.bf16.gmra.mxu0 %vm15044_vm1, %v4076_v11  ;;  %v3839_v13 = vshrl.u32 %v3790_v17, 16  ;;  %v3842_v7 = vshll.u32 %v3790_v17, 16  ;;  %vm15048_vm1 = vnez %v15047_v4  ;;  %v4896_v11 = vunpack.c.l.b16 %v4857_v1 }
 0x2ac   : > { %v4320_v29 = vsel %vm15045_vm6, %v4310_v41, %v11921_v23  ;;  %v3562_v15 = vpack.c.bf16 %v3539_v38, %v3539_v38  ;;  %v3986_v41 = vsel %vm15048_vm1, %v3969_v48, 0  ;;  %vm15049_vm6 = vcmask 257024  }
 0x2ad   : > { %8992 = vmatmul.msk.bf16.gmra.mxu1 %vm15046_vm12, %v4320_v29  ;;  %v9629_v40 = vld [vmem:[#allocation2 + $0x2c] sm:$0xff]  ;;  %v3841_v53 = vrot.slane %v3839_v13, 3  ;;  %v3844_v36 = vrot.slane %v3842_v7, 4  ;;  %vm15051_vm2 = vnez %v15050_v50  ;;  %v4859_v29 = vsel %vm14982_vm0, %v11736_v44, 0 }
 0x2ae   : > { %3578 = vst.msk [vmem:[#allocation2 + $0x34] sm:$0xf] %vm15049_vm6, %v3562_v15  ;;  %v3970_v17 = vld [vmem:[#allocation2 + $0x30] sm:$0xf]  ;;  %v4025_v48 = vunpack.c.l.b16 %v3986_v41  ;;  %v4261_v13 = vunpack.c.l.b16 %v4222_v0  ;;  %v11954_v16 = vunpack.c.l.b16 %v4623_v25  ;;  %vm15052_vm6 = vsmask.f32 4352 }
 0x2af   : > { %v11945_v32 = vor.u32 %v3844_v36, %v3841_v53  ;;  %v3987_v52 = vsel %vm15051_vm2, %v3970_v17, 0  ;;  %v4223_v38 = vsel %vm15042_vm13, %v3970_v17, 0  ;;  %v3595_v15 = vld [vmem:[#allocation2 + $0x30] sm:$0xf]  ;;  %v11957_v53 = vpack.c.b16 %v4897_v55, %v4896_v11  ;;  %v15053_v0 = vld [vmem:[#allocation29_spill] sm:$0xff]  ;;  %v9786_v25 = vld [vmem:[#allocation2 + $0x8] sm:$0xff]  }
 0x2b0   : > { %v4026_v43 = vunpack.c.l.b16 %v3987_v52  ;;  %v4262_v7 = vunpack.c.l.b16 %v4223_v38  ;;  %v4077_v41 = vshrl.u32 %v11902_v60, 16  ;;  %v4689_v38 = vshll.u32 %v11934_v20, 16  ;;  %v9660_v50 = vld [vmem:[#allocation3 + $0x60] sm:$0xff] }
 0x2b1   : > { %v3541_v1 = vpop.f32.mrf.mxu1  ;;  %v3846_v17 = vsel %vm15052_vm6, %v11899_v34, %v11945_v32  ;;  %vm15055_vm0 = vcmask 261120   ;;  %vm15056_vm6 = vnez %v14992_v24  ;;  %vm15057_vm3 = vcmask 257024   ;;  %v11987_v24 = vld [vmem:[#allocation2 + $0x10] sm:$0xff]  }
 0x2b2   : > { %v3542_v36 = vadd.f32 %v11687_v45, %v3541_v1  ;;  %v11963_v5 = vpack.c.b16 %v4026_v43, %v4025_v48  ;;  %v4273_v44 = vpack.c.b16 %v4262_v7, %v4261_v13  ;;  %v4079_v34 = vor.u32 %v4077_v41, %v4075_v61 }
 0x2b3   : > { %v9740_v43 = vunpack.c.l.bf16 %v9786_v25  ;;  %v9741_v13 = vunpack.c.h.bf16 %v9786_v25  ;;  %v4624_v60 = vsel %vm15056_vm6, %v11766_v19, 0  ;;  %vm15061_vm6 = vnez %v14985_v22 }
 0x2b4   : > { %8946 = vmatmul.msk.bf16.gmra.mxu2 %vm15046_vm12, %v9629_v40  ;;  %vm15054_vm12 = vnez %v15053_v0  ;;  %v4898_v40 = vunpack.c.l.b16 %v4859_v29  ;;  %v3563_v55 = vpack.c.bf16 %v3542_v36, %v3542_v36  ;;  %v4081_v11 = vshll.u32 %v11963_v5, 16  ;;  %v15058_v36 = vld [vmem:[#allocation33_spill] sm:$0xff]  ;;  %v9663_v0 = vld [vmem:[#allocation3 + $0x78] sm:$0xff] }
 0x2b5   : > { %v3612_v52 = vsel %vm15054_vm12, %v3595_v15, 0  ;;  %v4322_v1 = vshrl.u32 %v4273_v44, 16  ;;  %v4325_v3 = vshll.u32 %v4273_v44, 16  ;;  %v3596_v48 = vld [vmem:[#allocation2 + $0x34] sm:$0xf]  ;;  %vm15059_vm4 = vnez %v15058_v36  ;;  %5190 = vmatpush.bf16.msra.mxu1 %v9663_v0 }
 0x2b6   : > { %8961 = vmatmul.msk.bf16.gmra.mxu3 %vm15055_vm0, %v3846_v17  ;;  %3579 = vst.msk [vmem:[#allocation2 + $0x38] sm:$0xf] %vm15057_vm3, %v3563_v55  ;;  %v11975_v7 = vrot.slane %v4081_v11, 1  ;;  %v3613_v30 = vsel %vm15059_vm4, %v3596_v48, 0  ;;  %v3780_v44 = vunpack.c.l.b16 %v3612_v52  ;;  %v5729_v17 = vmul.f32 0.75, %v9740_v43 }
 0x2b7   : > { %v4324_v29 = vrot.slane %v4322_v1, 3  ;;  %v4327_v15 = vrot.slane %v4325_v3, 4  ;;  %v3781_v33 = vunpack.c.l.b16 %v3613_v30  ;;  %v5769_v61 = vmul.f32 0.25, %v9740_v43 }
 0x2b8   : > { %vm15060_vm0 = vsmask.f32 7424  ;;  %v4860_v55 = vsel %vm15061_vm6, %v11766_v19, 0  ;;  %v4923_v11 = vshrl.u32 %v11957_v53, 16  ;;  %v4663_v48 = vunpack.c.l.b16 %v4624_v60  ;;  %v3971_v19 = vld [vmem:[#allocation2 + $0x34] sm:$0xf] }
 0x2b9   : > { %v4084_v41 = vsel %vm15060_vm0, %v4079_v34, %v11975_v7  ;;  %v11981_v25 = vor.u32 %v4327_v15, %v4324_v29  ;;  %v3543_v1 = vpop.f32.mrf.mxu1  ;;  %v3791_v3 = vpack.c.b16 %v3781_v33, %v3780_v44  ;;  %v11989_v52 = vrot.slane %v4689_v38, 1 }
 0x2ba   : > { %v4926_v30 = vshll.u32 %v11957_v53, 16  ;;  %vm15062_vm3 = vcmask 261120   ;;  %v3544_v34 = vadd.f32 %v11687_v45, %v3543_v1  ;;  %vm15063_vm0 = vsmask.f32 4352  ;;  %v9658_v53 = vld [vmem:[#allocation3 + $0x58] sm:$0xff] }
 0x2bb   : > { %8977 = vmatmul.msk.bf16.gmra.mxu0 %vm15062_vm3, %v4084_v41  ;;  %v4329_v43 = vsel %vm15063_vm0, %v11921_v23, %v11981_v25  ;;  %v11997_v29 = vmul.f32 0.25, %v9741_v13  ;;  %v5777_v15 = vadd.f32 %v5769_v61, %v5729_v17  ;;  %v3848_v33 = vshrl.u32 %v3791_v3, 16  ;;  %vm15064_vm6 = vmmov %vm15062_vm3  ;;  %v15065_v23 = vld [vmem:[#allocation66_spill] sm:$0xff]  ;;  %4796 = vmatpush.bf16.msra.mxu3 %v9658_v53 }
 0x2bc   : > { %v3851_v44 = vshll.u32 %v3791_v3, 16  ;;  %v14466_v60 = vunpack.c.l.bf16 %v11987_v24  ;;  %v4899_v38 = vunpack.c.l.b16 %v4860_v55  ;;  %v3564_v22 = vpack.c.bf16 %v3544_v34, %v3544_v34 }
 0x2bd   : > { %8993 = vmatmul.msk.bf16.gmra.mxu1 %vm15064_vm6, %v4329_v43  ;;  %v5730_v41 = vmul.f32 0.75, %v9741_v13  ;;  %v5825_v1 = vadd.f32 %v11997_v29, %v5729_v17  ;;  %v5833_v54 = vpack.c.bf16 %v5777_v15, %v5777_v15  ;;  %v9630_v57 = vld [vmem:[#allocation2 + $0x34] sm:$0xff]  ;;  %v3850_v42 = vrot.slane %v3848_v33, 3 }
 0x2be   : > { %vm15066_vm3 = vnez %v15065_v23  ;;  %v4224_v4 = vsel %vm15054_vm12, %v3971_v19, 0  ;;  %v12006_v3 = vrot.slane %v4923_v11, 3  ;;  %vm15067_vm0 = vcmask 257024   ;;  %v3972_v17 = vld [vmem:[#allocation2 + $0x38] sm:$0xf]  ;;  %v15069_v33 = vld [vmem:[#allocation68_spill] sm:$0xff] }
 0x2bf   : > { %v3988_v18 = vsel %vm15066_vm3, %v3971_v19, 0  ;;  %3580 = vst.msk [vmem:[#allocation2 + $0x3c] sm:$0xf] %vm15067_vm0, %v3564_v22  ;;  %v3853_v55 = vrot.slane %v3851_v44, 4  ;;  %v5778_v34 = vadd.f32 %v5769_v61, %v5730_v41  ;;  %v5835_v43 = vpack.c.bf16 %v5825_v1, %v5825_v1  ;;  %vm15068_vm10 = vmmov %vm15067_vm0  ;;  %v3597_v8 = vld [vmem:[#allocation2 + $0x38] sm:$0xf] }
 0x2c0   : > { %v12011_v13 = vmul.f32 0.25, %v14466_v60  ;;  %5834 = vst.msk [vmem:[#allocation2 + $0x8] sm:$0xf] %vm15068_vm10, %v5833_v54  ;;  %v12016_v15 = vpack.c.b16 %v4663_v48, %v11954_v16  ;;  %v12018_v11 = vpack.c.b16 %v4899_v38, %v4898_v40  ;;  %v12020_v19 = vrot.slane %v4926_v30, 4  ;;  %v9665_v16 = vld [vmem:[#allocation3 + $0x88] sm:$0xff] }
 0x2c1   : > { %v4625_v22 = vsel %vm15007_vm5, %v11791_v31, 0  ;;  %v12025_v61 = vor.u32 %v3853_v55, %v3850_v42  ;;  %vm15070_vm0 = vnez %v15069_v33  ;;  %v4225_v54 = vsel %vm15059_vm4, %v3972_v17, 0  ;;  %5836 = vst.msk [vmem:[#allocation2 + $0xc] sm:$0xf] %vm15068_vm10, %v5835_v43  ;;  %v3546_v40 = vpop.f32.mrf.mxu1  ;;  %5441 = vmatpush.bf16.msrb.mxu2 %v9665_v16 }
 0x2c2   : > { %v3989_v44 = vsel %vm15070_vm0, %v3972_v17, 0  ;;  %v4263_v30 = vunpack.c.l.b16 %v4224_v4  ;;  %v4264_v38 = vunpack.c.l.b16 %v4225_v54  ;;  %v5837_v53 = vpack.c.bf16 %v5778_v34, %v5778_v34 }
 0x2c3   : > { %v4028_v48 = vunpack.c.l.b16 %v3989_v44  ;;  %v3547_v1 = vadd.f32 %v11687_v45, %v3546_v40  ;;  %v4664_v55 = vunpack.c.l.b16 %v4625_v22  ;;  %v4694_v43 = vshll.u32 %v12016_v15, 16  ;;  %v15074_v40 = vld [vmem:[#allocation40_spill] sm:$0xff] }
 0x2c4   : > { %8947 = vmatmul.msk.bf16.gmra.mxu2 %vm15064_vm6, %v9630_v57  ;;  %v4027_v57 = vunpack.c.l.b16 %v3988_v18  ;;  %vm15071_vm6 = vsmask.f32 4352  ;;  %v5826_v18 = vadd.f32 %v12011_v13, %v5730_v41  ;;  %v4274_v17 = vpack.c.b16 %v4264_v38, %v4263_v30  ;;  %5838 = vst.msk [vmem:[#allocation2 + $0x10] sm:$0xf] %vm15068_vm10, %v5837_v53 }
 0x2c5   : > { %v3855_v42 = vsel %vm15071_vm6, %v11945_v32, %v12025_v61  ;;  %v4626_v4 = vsel %vm15010_vm14, %v11821_v10, 0  ;;  %v3565_v34 = vpack.c.bf16 %v3547_v1, %v3547_v1  ;;  %v4085_v44 = vshrl.u32 %v11963_v5, 16 }
 0x2c6   : > { %v4038_v60 = vpack.c.b16 %v4028_v48, %v4027_v57  ;;  %v4931_v32 = vshrl.u32 %v12018_v11, 16  ;;  %vm15072_vm6 = vnez %v14999_v47  ;;  %vm15073_vm5 = vcmask 261120   ;;  %v3598_v47 = vld [vmem:[#allocation2 + $0x3c] sm:$0xf] }
 0x2c7   : > { %v4862_v41 = vsel %vm15072_vm6, %v11821_v10, 0  ;;  %8962 = vmatmul.msk.bf16.gmra.mxu3 %vm15073_vm5, %v3855_v42  ;;  %v4331_v57 = vshrl.u32 %v4274_v17, 16  ;;  %v4334_v54 = vshll.u32 %v4274_v17, 16  ;;  %v5839_v16 = vpack.c.bf16 %v5826_v18, %v5826_v18  ;;  %3581 = vst.msk [vmem:[#allocation2 + $0x40] sm:$0xf] %vm15068_vm10, %v3565_v34  ;;  %v9661_v17 = vld [vmem:[#allocation3 + $0x68] sm:$0xff] }
 0x2c8   : > { %v4089_v22 = vshll.u32 %v4038_v60, 16  ;;  %vm15075_vm12 = vnez %v15074_v40  ;;  %v4934_v30 = vshll.u32 %v12018_v11, 16  ;;  %v4665_v5 = vunpack.c.l.b16 %v4626_v4  ;;  %v15077_v18 = vld [vmem:[#allocation41_spill] sm:$0xff]  ;;  %5044 = vmatpush.bf16.msra.mxu0 %v9661_v17 }
 0x2c9   : > { %v3614_v48 = vsel %vm15075_vm12, %v3597_v8, 0  ;;  %vm15076_vm14 = vnez %v14627_v46  ;;  %v4087_v10 = vor.u32 %v4085_v44, %v11975_v7  ;;  %v4333_v1 = vrot.slane %v4331_v57, 3  ;;  %v3973_v27 = vld [vmem:[#allocation2 + $0x3c] sm:$0xf] }
 0x2ca   : > { %v4861_v38 = vsel %vm15076_vm14, %v11791_v31, 0  ;;  %v4091_v53 = vrot.slane %v4089_v22, 1  ;;  %v4336_v42 = vrot.slane %v4334_v54, 4  ;;  %vm15078_vm5 = vnez %v15077_v18  ;;  %v3548_v31 = vpop.f32.mrf.mxu1  ;;  %v15082_v22 = vld [vmem:[#allocation72_spill] sm:$0xff] }
 0x2cb   : > { %v3615_v34 = vsel %vm15078_vm5, %v3598_v47, 0  ;;  %v12058_v8 = vrot.slane %v4694_v43, 1  ;;  %v12060_v11 = vrot.slane %v4931_v32, 3  ;;  %v4901_v4 = vunpack.c.l.b16 %v4862_v41  ;;  %v5897_v32 = vld [vmem:[#allocation2 + $0x4] sm:$0x8] }
 0x2cc   : > { %vm15079_vm10 = vsmask.f32 7424  ;;  %v12063_v36 = vor.u32 %v4336_v42, %v4333_v1  ;;  %v3782_v7 = vunpack.c.l.b16 %v3614_v48  ;;  %v3783_v44 = vunpack.c.l.b16 %v3615_v34  ;;  %v9790_v1 = vld [vmem:[#allocation2 + $0x8] sm:$0xff]   ;;  %v9657_v42 = vld [vmem:[#allocation3 + $0x50] sm:$0xff]  ;;  %5045 = vmatpush.bf16.msra.mxu0 %v9660_v50 }
 0x2cd   : > { %v4092_v46 = vsel %vm15079_vm10, %v4087_v10, %v4091_v53  ;;  %vm15080_vm6 = vcmask 257024   ;;  %vm15081_vm14 = vcmask 261120   ;;  %v3549_v47 = vadd.f32 %v11687_v45, %v3548_v31  ;;  %4797 = vmatpush.bf16.msra.mxu3 %v9657_v42 }
 0x2ce   : > { %5840 = vst.msk [vmem:[#allocation2 + $0x14] sm:$0xf] %vm15080_vm6, %v5839_v16  ;;  %8978 = vmatmul.msk.bf16.gmra.mxu0 %vm15081_vm14, %v4092_v46  ;;  %vm15083_vm4 = vnez %v15082_v22  ;;  %v12070_v41 = vrot.slane %v4934_v30, 4  ;;  %v4900_v57 = vunpack.c.l.b16 %v4861_v38  ;;  %vm15084_vm10 = vsmask.f32 4352  ;;  %v9631_v38 = vld [vmem:[#allocation2 + $0x3c] sm:$0xff] }
 0x2cf   : > { %v3990_v43 = vsel %vm15083_vm4, %v3973_v27, 0  ;;  %v4338_v54 = vsel %vm15084_vm10, %v11981_v25, %v12063_v36  ;;  %v3792_v48 = vpack.c.b16 %v3783_v44, %v3782_v7  ;;  %v4093_v10 = vshrl.u32 %v4038_v60, 16  ;;  %vm15085_vm10 = vmmov %vm15080_vm6  ;;  %v3599_v7 = vld [vmem:[#allocation2 + $0x40] sm:$0xf] }
 0x2d0   : > { %v12075_v16 = vpack.c.b16 %v4665_v5, %v4664_v55  ;;  %v3566_v46 = vpack.c.bf16 %v3549_v47, %v3549_v47  ;;  %8994 = vmatmul.msk.bf16.gmra.mxu1 %vm15081_vm14, %v4338_v54  ;;  %v4226_v45 = vsel %vm15075_vm12, %v3973_v27, 0  ;;  %v5898_v0 = vunpack.c.l.bf16 %v5897_v32  ;;  %v3974_v5 = vld [vmem:[#allocation2 + $0x40] sm:$0xf] }
 0x2d1   : > { %v12080_v30 = vpack.c.b16 %v4901_v4, %v4900_v57  ;;  %v3857_v17 = vshrl.u32 %v3792_v48, 16  ;;  %v4029_v34 = vunpack.c.l.b16 %v3990_v43  ;;  %v4095_v31 = vor.u32 %v4093_v10, %v4091_v53  ;;  %v15087_v43 = vld [vmem:[#allocation73_spill] sm:$0xff]  ;;  %v15089_v54 = vld [vmem:[#allocation42_spill] sm:$0xff] }
 0x2d2   : > { %3582 = vst.msk [vmem:[#allocation2 + $0x44] sm:$0xf] %vm15085_vm10, %v3566_v46  ;;  %v3860_v25 = vshll.u32 %v3792_v48, 16  ;;  %v12083_v60 = vunpack.c.l.bf16 %v9790_v1  ;;  %v12085_v55 = vunpack.c.h.bf16 %v9790_v1  ;;  %vm14484_vm14 = vcmask 1040384  }
 0x2d3   : > { %vm15086_vm4 = vcmask 261120   ;;  %v3859_v27 = vrot.slane %v3857_v17, 3  ;;  %v4265_v4 = vunpack.c.l.b16 %v4226_v45  ;;  %v5935_v44 = vrot.slane %v5898_v0, 7 }
 0x2d4   : > { %8948 = vmatmul.msk.bf16.gmra.mxu2 %vm15086_vm4, %v9631_v38  ;;  %v9745_v47 = vunpack.c.h.bf16 %v11987_v24  ;;  %v3862_v53 = vrot.slane %v3860_v25, 4  ;;  %vm15088_vm6 = vnez %v15087_v43  ;;  %v4227_v57 = vsel %vm15078_vm5, %v3974_v5, 0 }
 0x2d5   : > { %v3991_v32 = vsel %vm15088_vm6, %v3974_v5, 0  ;;  %vm15090_vm10 = vnez %v15089_v54  ;;  %v4266_v1 = vunpack.c.l.b16 %v4227_v57  ;;  %v14481_v42 = vrot.slane %v12083_v60, 7  ;;  %v15166_v54 = vld [vmem:[#allocation30_spill] sm:$0xff] }
 0x2d6   : > { %v3616_v48 = vsel %vm15090_vm10, %v3599_v7, 0  ;;  %v4030_v10 = vunpack.c.l.b16 %v3991_v32  ;;  %v3863_v45 = vor.u32 %v3862_v53, %v3859_v27  ;;  %v5901_v0 = vmul.f32 0.75, %v12083_v60  ;;  %v15092_v32 = vld [vmem:[#allocation6_spill] sm:$0xff] }
 0x2d7   : > { %v3784_v46 = vunpack.c.l.b16 %v3616_v48  ;;  %v6034_v38 = vrot.slane %v12083_v60, 1  ;;  %v14483_v17 = vrot.slane %v12085_v55, 1  ;;  %v4275_v40 = vpack.c.b16 %v4266_v1, %v4265_v4 }
 0x2d8   : > { %v4039_v25 = vpack.c.b16 %v4030_v10, %v4029_v34  ;;  %v5937_v5 = vsel %vm14484_vm14, %v5935_v44, %v14481_v42  ;;  %vm15091_vm4 = vsmask.f32 4352  ;;  %vm15093_vm12 = vnez %v15092_v32 }
 0x2d9   : > { %v3793_v22 = vpack.c.b16 %v3784_v46, %v3784_v46  ;;  %v3864_v7 = vsel %vm15091_vm4, %v12025_v61, %v3863_v45  ;;  %v5984_v27 = vsel %vm15093_vm12, %v5937_v5, %v12083_v60  ;;  %vm15094_vm5 = vcmask 1046528   ;;  %v3975_v1 = vld [vmem:[#allocation2 + $0x44] sm:$0x1]  ;;  %v15097_v61 = vld [vmem:[#allocation75_spill] sm:$0xff] }
 0x2da   : > { %v6036_v53 = vsel %vm15094_vm5, %v6034_v38, %v14483_v17  ;;  %v15095_v57 = vunpack.c.l.bf16 %v11987_v24  ;;  %vm15096_vm6 = vcmask 261120   ;;  %v4097_v4 = vshll.u32 %v4039_v25, 16  ;;  %v4211_v23 = vld [vmem:[#allocation2 + $0x44] sm:$0xf] }
 0x2db   : > { %8963 = vmatmul.msk.bf16.gmra.mxu3 %vm15096_vm6, %v3864_v7  ;;  %v4340_v48 = vshrl.u32 %v4275_v40, 16  ;;  %v4343_v10 = vshll.u32 %v4275_v40, 16  ;;  %v3866_v44 = vshrl.u32 %v3793_v22, 16  ;;  %v3869_v46 = vshll.u32 %v3793_v22, 16  ;;  %v15099_v7 = vld [vmem:[#allocation34_spill] sm:$0xff] }
 0x2dc   : > { %v5731_v34 = vmul.f32 0.75, %v15095_v57  ;;  %vm15098_vm4 = vnez %v15097_v61  ;;  %v6000_v32 = vmul.f32 0.25, %v5984_v27  ;;  %v12115_v5 = vmul.f32 0.75, %v9745_v47 }
 0x2dd   : > { %v3992_v42 = vsel %vm15098_vm4, %v3975_v1, 0  ;;  %v4099_v18 = vrot.slane %v4097_v4, 1  ;;  %v4342_v43 = vrot.slane %v4340_v48, 3  ;;  %v4345_v38 = vrot.slane %v4343_v10, 4 }
 0x2de   : > { %v3868_v17 = vrot.slane %v3866_v44, 3  ;;  %v3871_v24 = vrot.slane %v3869_v46, 4  ;;  %v4031_v57 = vunpack.c.l.b16 %v3992_v42  ;;  %vm15100_vm12 = vnez %v15099_v7 }
 0x2df   : > { %v6083_v33 = vsel %vm15100_vm12, %v6036_v53, %v12083_v60  ;;  %v12120_v40 = vadd.f32 %v6000_v32, %v5901_v0  ;;  %vm15102_vm5 = vsmask.f32 7424  ;;  %v12123_v61 = vor.u32 %v4345_v38, %v4342_v43  ;;  %v9791_v53 = vld [vmem:[#allocation2 + $0x10] sm:$0xff]   ;;  %v9788_v32 = vld [vmem:[#allocation2 + $0x18] sm:$0xff]  }
 0x2e0   : > { %v4100_v22 = vsel %vm15102_vm5, %v4095_v31, %v4099_v18  ;;  %v4101_v27 = vshrl.u32 %v4039_v25, 16  ;;  %v6099_v1 = vmul.f32 0.25, %v6083_v33  ;;  %v3872_v4 = vor.u32 %v3871_v24, %v3868_v17  ;;  %v9662_v33 = vld [vmem:[#allocation3 + $0x70] sm:$0xff]  ;;  %vm15104_vm5 = vmmov %vm15096_vm6 }
 0x2e1   : > { %15101 = vst [vmem:[#allocation79_spill] sm:$0xff] %v12120_v40  ;;  %8979 = vmatmul.msk.bf16.gmra.mxu0 %vm15096_vm6, %v4100_v22  ;;  %v4040_v48 = vpack.c.b16 %v4031_v57, %v4031_v57  ;;  %v4228_v42 = vsel %vm15090_vm10, %v4211_v23, 0  ;;  %v12128_v10 = vmul.f32 0.25, %v9745_v47  ;;  %vm15103_vm12 = vsmask.f32 4352  ;;  %5191 = vmatpush.bf16.msra.mxu1 %v9662_v33 }
 0x2e2   : > { %v4347_v44 = vsel %vm15103_vm12, %v12063_v36, %v12123_v61  ;;  %v6115_v31 = vadd.f32 %v6099_v1, %v5901_v0  ;;  %v4267_v43 = vunpack.c.l.b16 %v4228_v42  ;;  %v5779_v25 = vadd.f32 %v11997_v29, %v5731_v34  ;;  %vm15105_vm6 = vmmov %vm15103_vm12 }
 0x2e3   : > { %8995 = vmatmul.msk.bf16.gmra.mxu1 %vm15104_vm5, %v4347_v44  ;;  %v4103_v17 = vor.u32 %v4101_v27, %v4099_v18  ;;  %v4105_v46 = vshll.u32 %v4040_v48, 16  ;;  %v12137_v23 = vadd.f32 %v12011_v13, %v12115_v5  ;;  %v5827_v47 = vadd.f32 %v12128_v10, %v5731_v34  ;;  %vm15106_vm12 = vmmov %vm15104_vm5 }
 0x2e4   : > { %6147 = vrot.lane.b32.xlu0 %v6115_v31, %s9939_s15  ;;  %v4276_v36 = vpack.c.b16 %v4267_v43, %v4267_v43  ;;  %v5841_v0 = vpack.c.bf16 %v5779_v25, %v5779_v25  ;;  %v12141_v38 = vunpack.c.l.bf16 %v9791_v53  ;;  %v12143_v50 = vunpack.c.h.bf16 %v9791_v53  ;;  %9037 = vmatmul.msk.bf16.vlgmr.msra.gmra.mxu2 %vm15106_vm12, %v11731_v21  ;;  %v12162_v31 = vpop.f32.mrf.mxu2 }
 0x2e5   : > { %v3873_v29 = vsel %vm15105_vm6, %v3863_v45, %v3872_v4  ;;  %v4107_v18 = vrot.slane %v4105_v46, 1  ;;  %v5843_v24 = vpack.c.bf16 %v5827_v47, %v5827_v47  ;;  %v5845_v13 = vpack.c.bf16 %v12137_v23, %v12137_v23 }
 0x2e6   : > { %v4349_v34 = vshrl.u32 %v4276_v36, 16  ;;  %v4352_v57 = vshll.u32 %v4276_v36, 16  ;;  %v5902_v7 = vmul.f32 0.75, %v12085_v55  ;;  %v5938_v22 = vrot.slane %v12085_v55, 7 }
 0x2e7   : > { %vm15107_vm5 = vcmask 257024   ;;  %v5903_v27 = vmul.f32 0.75, %v12141_v38  ;;  %v5940_v45 = vrot.slane %v12141_v38, 7  ;;  %v6037_v1 = vrot.slane %v12141_v38, 1 }
 0x2e8   : > { %5842 = vst.msk [vmem:[#allocation2 + $0x18] sm:$0xf] %vm15107_vm5, %v5841_v0  ;;  %v6039_v4 = vrot.slane %v12143_v50, 1  ;;  %vm15108_vm6 = vmmov %vm15107_vm5  ;;  %vm15109_vm14 = vsmask.f32 7424  ;;  %v4351_v48 = vrot.slane %v4349_v34, 3 }
 0x2e9   : > { %5844 = vst.msk [vmem:[#allocation2 + $0x1c] sm:$0xf] %vm15108_vm6, %v5843_v24  ;;  %v4108_v21 = vsel %vm15109_vm14, %v4103_v17, %v4107_v18  ;;  %v4354_v42 = vrot.slane %v4352_v57, 4  ;;  %v15110_v53 = vrot.slane %v12083_v60, 7  ;;  %vm15111_vm12 = vcmask 1040384   ;;  %v15116_v17 = vld [vmem:[#allocation7_spill] sm:$0xff] }
 0x2ea   : > { %vm15112_vm5 = vmmov %vm15111_vm12  ;;  %v15113_v25 = vrot.slane %v12085_v55, 1  ;;  %vm15114_vm10 = vcmask 1046528   ;;  %vm15117_vm14 = vnez %v15116_v17  ;;  %v15118_v60 = vld [vmem:[#allocation8_spill] sm:$0xff]  ;;  %v15120_v18 = vld [vmem:[#allocation35_spill] sm:$0xff] }
 0x2eb   : > { %v5939_v44 = vsel %vm15111_vm12, %v15110_v53, %v5938_v22  ;;  %v5941_v43 = vsel %vm15112_vm5, %v5938_v22, %v5940_v45  ;;  %vm15115_vm4 = vmmov %vm15114_vm10  ;;  %v4355_v36 = vor.u32 %v4354_v42, %v4351_v48  ;;  %vm15119_vm6 = vnez %v15118_v60  ;;  %v15122_v34 = vld [vmem:[#allocation36_spill] sm:$0xff] }
 0x2ec   : > { %v6038_v33 = vsel %vm15114_vm10, %v15113_v25, %v6037_v1  ;;  %v6040_v46 = vsel %vm15115_vm4, %v6037_v1, %v6039_v4  ;;  %v5985_v47 = vsel %vm15117_vm14, %v5939_v44, %v12085_v55  ;;  %v5986_v0 = vsel %vm15119_vm6, %v5941_v43, %v12141_v38 }
 0x2ed   : > { %vm15121_vm12 = vnez %v15120_v18  ;;  %vm15123_vm5 = vnez %v15122_v34  ;;  %v6002_v22 = vmul.f32 0.25, %v5986_v0  ;;  %v6001_v25 = vmul.f32 0.25, %v5985_v47 }
 0x2ee   : > { %v6084_v24 = vsel %vm15121_vm12, %v6038_v33, %v12085_v55  ;;  %v6085_v57 = vsel %vm15123_vm5, %v6040_v46, %v12141_v38  ;;  %vm15124_vm10 = vcmask 261120   ;;  %vm15125_vm4 = vsmask.f32 4352  ;;  %v15142_v38 = vld [vmem:[#allocation47_spill] sm:$0xff] }
 0x2ef   : > { %v6100_v53 = vmul.f32 0.25, %v6084_v24  ;;  %v6101_v1 = vmul.f32 0.25, %v6085_v57  ;;  %8964 = vmatmul.msk.bf16.gmra.mxu3 %vm15124_vm10, %v3873_v29  ;;  %v4356_v48 = vsel %vm15125_vm4, %v12123_v61, %v4355_v36  ;;  %v9748_v42 = vunpack.c.l.bf16 %v9788_v32  ;;  %vm15128_vm14 = vmmov %vm15124_vm10 }
 0x2f0   : > { %v9749_v44 = vunpack.c.h.bf16 %v9788_v32  ;;  %v5904_v43 = vmul.f32 0.75, %v12143_v50  ;;  %v12187_v17 = vadd.f32 %v6002_v22, %v5903_v27  ;;  %v12189_v60 = vadd.f32 %v6001_v25, %v5902_v7  ;;  %v9792_v29 = vld [vmem:[#allocation2 + $0x18] sm:$0xff]   ;;  %v12205_v22 = vpop.f32.mrf.mxu2  ;;  %vm15132_vm12 = vmmov %vm15124_vm10 }
 0x2f1   : > { %v6116_v55 = vadd.f32 %v6100_v53, %v5902_v7  ;;  %v6117_v33 = vadd.f32 %v6101_v1, %v5903_v27  ;;  %v5733_v46 = vmul.f32 0.75, %v9748_v42  ;;  %v5774_v18 = vmul.f32 0.25, %v9748_v42  ;;  %8980 = vmatmul.msk.bf16.gmra.mxu0 %vm15128_vm14, %v4108_v21  ;;  %v12212_v42 = vld [vmem:[#allocation2 + $0x20] sm:$0xff]   ;;  %v12218_v21 = vld [vmem:[#allocation2 + $0x28] sm:$0xf] }
 0x2f2   : > { %15126 = vst [vmem:[#allocation6_spill] sm:$0xff] %v12187_v17  ;;  %v12191_v0 = vmul.f32 0.75, %v9749_v44  ;;  %v12193_v47 = vmul.f32 0.25, %v9749_v44  ;;  %v12195_v34 = vunpack.c.l.bf16 %v9792_v29  ;;  %v12197_v61 = vunpack.c.h.bf16 %v9792_v29 }
 0x2f3   : > { %15127 = vst [vmem:[#allocation34_spill] sm:$0xff] %v12189_v60  ;;  %v9825_v24 = vpack.i.bf16 %v6117_v33, %v6116_v55  ;;  %v5942_v32 = vrot.slane %v12143_v50, 7  ;;  %v5781_v36 = vadd.f32 %v12128_v10, %v5733_v46  ;;  %v5828_v7 = vadd.f32 %v5774_v18, %v12115_v5  ;;  %8996 = vmatmul.msk.bf16.gmra.mxu1 %vm15132_vm12, %v4356_v48  ;;  %v12241_v48 = vld [vmem:[#allocation2 + $0x30] sm:$0xf]  ;;  %v12341_v60 = vld [vmem:[#allocation2 + $0x3c] sm:$0xf] }
 0x2f4   : > { %v5782_v27 = vadd.f32 %v5774_v18, %v12191_v0  ;;  %v5829_v57 = vadd.f32 %v12193_v47, %v5733_v46  ;;  %v5905_v53 = vmul.f32 0.75, %v12195_v34  ;;  %v14486_v1 = vrot.slane %v12195_v34, 7  ;;  %15130 = vst [vmem:[#allocation7_spill] sm:$0xff] %v12218_v21  ;;  %v12220_v46 = vld [vmem:[#allocation2 + $0x2c] sm:$0xf] }
 0x2f5   : > { %9826 = vrot.lane.b32.xlu0 %v9825_v24, %s9939_s15  ;;  %v6041_v25 = vrot.slane %v12195_v34, 1  ;;  %v14487_v10 = vrot.slane %v12197_v61, 1  ;;  %v5847_v44 = vpack.c.bf16 %v5828_v7, %v5828_v7  ;;  %v5849_v5 = vpack.c.bf16 %v5781_v36, %v5781_v36  ;;  %v12222_v18 = vld [vmem:[#allocation2 + $0x2c] sm:$0xf]  ;;  %v12239_v7 = vld [vmem:[#allocation2 + $0x24] sm:$0xf0] }
 0x2f6   : > { %v5851_v55 = vpack.c.bf16 %v5829_v57, %v5829_v57  ;;  %v5853_v33 = vpack.c.bf16 %v5782_v27, %v5782_v27  ;;  %vm15129_vm6 = vcmask 257024   ;;  %15131 = vst [vmem:[#allocation8_spill] sm:$0xff] %v12222_v18  ;;  %vm15133_vm5 = vcmask 1040384   ;;  %v12235_v36 = vld [vmem:[#allocation2 + $0x28] sm:$0xff] }
 0x2f7   : > { %5846 = vst.msk [vmem:[#allocation2 + $0x20] sm:$0xf] %vm15129_vm6, %v5845_v13  ;;  %v5945_v29 = vsel %vm15133_vm5, %v5942_v32, %v14486_v1  ;;  %vm15134_vm10 = vcmask 1046528   ;;  %vm15136_vm14 = vmmov %vm15133_vm5  ;;  %v12237_v27 = vld [vmem:[#allocation2 + $0x28] sm:$0xf]  ;;  %vm15143_vm5 = vnez %v15142_v38 }
 0x2f8   : > { %v6042_v24 = vsel %vm15134_vm10, %v6039_v4, %v6041_v25  ;;  %vm15135_vm4 = vmmov %vm15134_vm10  ;;  %v5943_v13 = vsel %vm15136_vm14, %v5940_v45, %v5942_v32  ;;  %15137 = vst [vmem:[#allocation35_spill] sm:$0xff] %v12241_v48  ;;  %v15138_v57 = vld [vmem:[#allocation23_spill] sm:$0xff]  ;;  %v15144_v32 = vld [vmem:[#allocation9_spill] sm:$0xff]  ;;  %v3919_v38 = vpop.f32.mrf.mxu3 }
 0x2f9   : > { %v6044_v23 = vsel %vm15135_vm4, %v6041_v25, %v14487_v10  ;;  %vm15139_vm6 = vnez %v15138_v57  ;;  %v15140_v1 = vld [vmem:[#allocation39_spill] sm:$0xff]  ;;  %vm15145_vm10 = vnez %v15144_v32  ;;  %vm15146_vm4 = vcmask 257024   ;;  %15164 = vst [vmem:[#allocation81_spill] sm:$0xff] %v12341_v60 }
 0x2fa   : > { %v5988_v4 = vsel %vm15139_vm6, %v5945_v29, %v12195_v34  ;;  %vm15141_vm12 = vnez %v15140_v1  ;;  %v6087_v45 = vsel %vm15143_vm5, %v6044_v23, %v12195_v34  ;;  %v5987_v10 = vsel %vm15145_vm10, %v5943_v13, %v12143_v50  ;;  %5848 = vst.msk [vmem:[#allocation2 + $0x24] sm:$0xf] %vm15146_vm4, %v5847_v44  ;;  %v12256_v18 = vld [vmem:[#allocation2 + $0x2c] sm:$0xf]  ;;  %vm15147_vm14 = vmmov %vm15146_vm4  ;;  %v12268_v44 = vld [vmem:[#allocation2 + $0x2c] sm:$0xf0] }
 0x2fb   : > { %v6086_v25 = vsel %vm15141_vm12, %v6042_v24, %v12143_v50  ;;  %v6004_v48 = vmul.f32 0.25, %v5988_v4  ;;  %v6103_v57 = vmul.f32 0.25, %v6087_v45  ;;  %v6003_v29 = vmul.f32 0.25, %v5987_v10  ;;  %5852 = vst.msk [vmem:[#allocation2 + $0x2c] sm:$0xf] %vm15147_vm14, %v5851_v55  ;;  %vm15149_vm12 = vmmov %vm15146_vm4 }
 0x2fc   : > { %v6102_v21 = vmul.f32 0.25, %v6086_v25  ;;  %vm15148_vm6 = vcmask 261120   ;;  %v12263_v1 = vor.u32 %v12070_v41, %v12060_v11  ;;  %5850 = vst.msk [vmem:[#allocation2 + $0x28] sm:$0xf] %vm15149_vm12, %v5849_v5  ;;  %v12266_v50 = vld [vmem:[#allocation2 + $0x30] sm:$0xf]  ;;  %vm15152_vm5 = vmmov %vm15146_vm4  ;;  %v12279_v41 = vpop.f32.mrf.mxu2  ;;  %v4929_v5 = vor.u32 %v12020_v19, %v12006_v3 }
 0x2fd   : > { %9038 = vmatmul.msk.bf16.gmra.mxu2 %vm15148_vm6, %v11776_v14  ;;  %v12270_v24 = vadd.f32 %v6004_v48, %v5905_v53  ;;  %v6119_v13 = vadd.f32 %v6103_v57, %v5905_v53  ;;  %v12272_v10 = vadd.f32 %v6003_v29, %v5904_v43  ;;  %5854 = vst.msk [vmem:[#allocation2 + $0x30] sm:$0xf] %vm15152_vm5, %v5853_v33  ;;  %v4702_v14 = vshll.u32 %v12075_v16, 16  ;;  %vm15156_vm14 = vmmov %vm15148_vm6  ;;  %v4154_v29 = vpop.f32.mrf.mxu0 }
 0x2fe   : > { %v6118_v23 = vadd.f32 %v6102_v21, %v5904_v43  ;;  %v15153_v55 = vshrl.u32 %v11934_v20, 16  ;;  %v4940_v48 = vshrl.u32 %v12080_v30, 16  ;;  %vm15154_vm10 = vsmask.f32 7424 }
 0x2ff   : > { %15150 = vst [vmem:[#allocation36_spill] sm:$0xff] %v12270_v24  ;;  %vm15155_vm4 = vsmask.f32 4352  ;;  %v9080_v33 = vor.u32 %v11743_v26, %v11725_v58  ;;  %v12293_v3 = vrot.slane %v4702_v14, 1  ;;  %v9752_v19 = vunpack.c.l.bf16 %v12212_v42  ;;  %v12313_v58 = vld [vmem:[#allocation2 + $0x34] sm:$0xf] }
 0x300   : > { %15151 = vst [vmem:[#allocation23_spill] sm:$0xff] %v12272_v10  ;;  %v4692_v11 = vor.u32 %v11989_v52, %v15153_v55  ;;  %v9830_v4 = vpack.i.bf16 %v6119_v13, %v6118_v23  ;;  %v4938_v53 = vsel %vm15155_vm4, %v4929_v5, %v12263_v1  ;;  %v9753_v21 = vunpack.c.h.bf16 %v12212_v42  ;;  %v12326_v10 = vld [vmem:[#allocation2 + $0x34] sm:$0xf]  ;;  %v12337_v24 = vld [vmem:[#allocation2 + $0x3c] sm:$0xf] }
 0x301   : > { %v9793_v52 = vld [vmem:[#allocation2 + $0x20] sm:$0xff]   ;;  %v12299_v45 = vrot.slane %v4940_v48, 3  ;;  %v12305_v32 = vmul.f32 0.75, %v12197_v61  ;;  %v3920_v57 = vadd.f32 %v3919_v38, %v12162_v31  ;;  %v5735_v23 = vmul.f32 0.75, %v9752_v19  ;;  %v4402_v48 = vpop.f32.mrf.mxu1  ;;  %v12315_v31 = vld [vmem:[#allocation2 + $0x34] sm:$0xf]  ;;  %9069 = vmatmul.msk.bf16.vlgmr.msra.gmra.mxu0 %vm15148_vm6, %v4938_v53 }
 0x302   : > { %v4697_v43 = vsel %vm15154_vm10, %v4692_v11, %v12058_v8  ;;  %9831 = vrot.lane.b32.xlu1 %v9830_v4, %s9939_s15  ;;  %v12297_v25 = vunpack.c.l.bf16 %v9793_v52  ;;  %v12302_v26 = vunpack.c.h.bf16 %v9793_v52  ;;  %v5736_v13 = vmul.f32 0.75, %v9753_v21  ;;  %15157 = vst [vmem:[#allocation39_spill] sm:$0xff] %v12315_v31  ;;  %v12332_v31 = vld [vmem:[#allocation2 + $0x38] sm:$0xf]  ;;  %vm15165_vm10 = vmmov %vm15148_vm6 }
 0x303   : > { %9053 = vmatmul.msk.bf16.vlgmr.msra.gmra.mxu3 %vm15156_vm14, %v4697_v43  ;;  %v5776_v14 = vmul.f32 0.25, %v9752_v19  ;;  %v5823_v55 = vmul.f32 0.25, %v9753_v21  ;;  %v5946_v42 = vrot.slane %v12197_v61, 7  ;;  %v4194_v4 = vadd.f32 %v4154_v29, %v3920_v57  ;;  %15161 = vst [vmem:[#allocation47_spill] sm:$0xff] %v12332_v31  ;;  %9117 = vmatmul.msk.bf16.vlgmr.msra.gmra.mxu1 %vm15165_vm10, %v9080_v33  ;;  %v15170_v33 = vld [vmem:[#allocation48_spill] sm:$0xff] }
 0x304   : > { %v14488_v11 = vrot.slane %v12297_v25, 7  ;;  %v6045_v5 = vrot.slane %v12297_v25, 1  ;;  %v5783_v43 = vadd.f32 %v12193_v47, %v5735_v23  ;;  %v12318_v19 = vpop.f32.mrf.mxu2  ;;  %vm15158_vm12 = vcmask 1040384  }
 0x305   : > { %v5784_v52 = vadd.f32 %v5776_v14, %v5736_v13  ;;  %v5830_v20 = vadd.f32 %v5776_v14, %v12191_v0  ;;  %v5831_v21 = vadd.f32 %v5823_v55, %v5735_v23  ;;  %v5832_v38 = vadd.f32 %v5823_v55, %v5736_v13  ;;  %v12328_v0 = vld [vmem:[#allocation2 + $0x38] sm:$0xf]  ;;  %vm15173_vm6 = vmmov %vm15158_vm12 }
 0x306   : > { %v5949_v57 = vsel %vm15158_vm12, %v5946_v42, %v14488_v11  ;;  %v15159_v29 = vrot.slane %v12197_v61, 1  ;;  %vm15160_vm5 = vcmask 1046528   ;;  %v12330_v14 = vld [vmem:[#allocation2 + $0x34] sm:$0xf0]  ;;  %v12334_v53 = vadd.f32 %v4402_v48, %v4194_v4  ;;  %v12339_v11 = vld [vmem:[#allocation2 + $0x3c] sm:$0xf]  ;;  %v3921_v4 = vpop.f32.mrf.mxu3 }
 0x307   : > { %v5855_v23 = vpack.c.bf16 %v5830_v20, %v5830_v20  ;;  %v5857_v13 = vpack.c.bf16 %v5783_v43, %v5783_v43  ;;  %v5907_v55 = vmul.f32 0.75, %v12297_v25  ;;  %15163 = vst [vmem:[#allocation80_spill] sm:$0xff] %v12339_v11  ;;  %v5861_v17 = vpack.c.bf16 %v5784_v52, %v5784_v52  ;;  %v12348_v20 = vld [vmem:[#allocation2 + $0x30] sm:$0xff]  ;;  %v12350_v48 = vld [vmem:[#allocation2 + $0x40] sm:$0xf] }
 0x308   : > { %v6046_v47 = vsel %vm15160_vm5, %v15159_v29, %v6045_v5  ;;  %15162 = vst [vmem:[#allocation9_spill] sm:$0xff] %v12334_v53  ;;  %v5859_v29 = vpack.c.bf16 %v5831_v21, %v5831_v21  ;;  %vm15167_vm4 = vnez %v15166_v54  ;;  %v12352_v43 = vld [vmem:[#allocation2 + $0x3c] sm:$0xf0]  ;;  %v5863_v11 = vpack.c.bf16 %v5832_v38, %v5832_v38 }
 0x309   : > { %v5990_v31 = vsel %vm15167_vm4, %v5949_v57, %v12297_v25  ;;  %15168 = vst [vmem:[#allocation30_spill] sm:$0xff] %v12352_v43  ;;  %v12354_v53 = vld [vmem:[#allocation2 + $0x40] sm:$0xf]  ;;  %vm15171_vm14 = vnez %v15170_v33  ;;  %v15172_v21 = vrot.slane %v12195_v34, 7  ;;  %vm15174_vm12 = vcmask 257024   ;;  %v12371_v33 = vld [vmem:[#allocation2 + $0x38] sm:$0xff] }
 0x30a   : > { %15169 = vst [vmem:[#allocation82_spill] sm:$0xff] %v12354_v53  ;;  %v6006_v60 = vmul.f32 0.25, %v5990_v31  ;;  %v6088_v52 = vsel %vm15171_vm14, %v6046_v47, %v12197_v61  ;;  %v12363_v57 = vld [vmem:[#allocation2 + $0x44] sm:$0xf]  ;;  %v15175_v40 = vrot.slane %v12302_v26, 1  ;;  %v15176_v31 = vld [vmem:[#allocation24_spill] sm:$0xff]  ;;  %vm15178_vm4 = vmmov %vm15174_vm12  ;;  %v4156_v47 = vpop.f32.mrf.mxu0 }
 0x30b   : > { %v5947_v54 = vsel %vm15173_vm6, %v15172_v21, %v5946_v42  ;;  %5856 = vst.msk [vmem:[#allocation2 + $0x34] sm:$0xf] %vm15174_vm12, %v5855_v23  ;;  %v6104_v53 = vmul.f32 0.25, %v6088_v52  ;;  %vm15177_vm10 = vnez %v15176_v31  ;;  %v12374_v34 = vld [vmem:[#allocation2 + $0x44] sm:$0xf]  ;;  %v3922_v42 = vadd.f32 %v3921_v4, %v12205_v22  ;;  %vm15182_vm12 = vmmov %vm15178_vm4 }
 0x30c   : > { %v6048_v43 = vsel %vm15160_vm5, %v6045_v5, %v15175_v40  ;;  %v5989_v38 = vsel %vm15177_vm10, %v5947_v54, %v12197_v61  ;;  %5858 = vst.msk [vmem:[#allocation2 + $0x38] sm:$0xf] %vm15178_vm4, %v5857_v13  ;;  %vm15179_vm14 = vcmask 261120   ;;  %v12379_v23 = vadd.f32 %v6006_v60, %v5907_v55  ;;  %v15180_v40 = vld [vmem:[#allocation52_spill] sm:$0xff]  ;;  %v12385_v61 = vld [vmem:[#allocation2 + $0x44] sm:$0xf]  ;;  %vm15184_vm5 = vmmov %vm15178_vm4 }
 0x30d   : > { %9039 = vmatmul.msk.bf16.gmra.mxu2 %vm15179_vm14, %v11830_v12  ;;  %vm15181_vm6 = vnez %v15180_v40  ;;  %v6005_v52 = vmul.f32 0.25, %v5989_v38  ;;  %5860 = vst.msk [vmem:[#allocation2 + $0x3c] sm:$0xf] %vm15182_vm12, %v5859_v29  ;;  %v6120_v21 = vadd.f32 %v6104_v53, %v12305_v32  ;;  %v12388_v54 = vld [vmem:[#allocation2 + $0x40] sm:$0xff]  ;;  %v4195_v22 = vadd.f32 %v4156_v47, %v3922_v42  ;;  %v4404_v12 = vpop.f32.mrf.mxu1  ;;  %v12403_v38 = vpop.f32.mrf.mxu2 }
 0x30e   : > { %v6089_v5 = vsel %vm15181_vm6, %v6048_v43, %v12297_v25  ;;  %15183 = vst [vmem:[#allocation48_spill] sm:$0xff] %v12385_v61  ;;  %v15185_v60 = vshll.u32 %v12080_v30, 16  ;;  %vm15186_vm10 = vnez %v14906_v2  ;;  %v15187_v53 = vshrl.u32 %v12016_v15, 16 }
 0x30f   : > { %v6105_v13 = vmul.f32 0.25, %v6089_v5  ;;  %5862 = vst.msk [vmem:[#allocation2 + $0x40] sm:$0xf] %vm15184_vm5, %v5861_v17  ;;  %v12394_v31 = vadd.f32 %v6005_v52, %v12305_v32  ;;  %v4628_v29 = vsel %vm15186_vm10, %v11872_v28, 0  ;;  %vm15188_vm14 = vnez %v14674_v37 }
 0x310   : > { %v4945_v4 = vrot.slane %v15185_v60, 4  ;;  %5864 = vst.msk [vmem:[#allocation2 + $0x44] sm:$0xf] %vm15178_vm4, %v5863_v11  ;;  %v4700_v43 = vor.u32 %v15187_v53, %v12058_v8  ;;  %v4864_v30 = vsel %vm15188_vm14, %v11872_v28, 0  ;;  %v12408_v42 = vadd.f32 %v4404_v12, %v4195_v22  ;;  %v3924_v22 = vpop.f32.mrf.mxu3 }
 0x311   : > { %v6121_v17 = vadd.f32 %v6105_v13, %v5907_v55  ;;  %vm15189_vm6 = vnez %v14761_v56  ;;  %vm15190_vm12 = vsmask.f32 7424  ;;  %v4667_v40 = vunpack.c.l.b16 %v4628_v29  ;;  %v9664_v55 = vld [vmem:[#allocation3 + $0x80] sm:$0xff] }
 0x312   : > { %v4627_v32 = vsel %vm15189_vm6, %v11845_v63, 0  ;;  %v4705_v11 = vsel %vm15190_vm12, %v4700_v43, %v12293_v3  ;;  %vm15191_vm5 = vnez %v14671_v49  ;;  %vm15192_vm4 = vcmask 261120   ;;  %v4159_v52 = vpop.f32.mrf.mxu0  ;;  %5442 = vmatpush.bf16.msrb.mxu2 %v9664_v55 }
 0x313   : > { %v9835_v47 = vpack.i.bf16 %v6121_v17, %v6120_v21  ;;  %v4863_v15 = vsel %vm15191_vm5, %v11845_v63, 0  ;;  %9054 = vmatmul.msk.bf16.gmra.mxu3 %vm15192_vm4, %v4705_v11  ;;  %v4946_v8 = vor.u32 %v4945_v4, %v12299_v45  ;;  %v4903_v28 = vunpack.c.l.b16 %v4864_v30  ;;  %vm15194_vm14 = vmmov %vm15192_vm4 }
 0x314   : > { %v4666_v5 = vunpack.c.l.b16 %v4627_v32  ;;  %v4902_v13 = vunpack.c.l.b16 %v4863_v15  ;;  %v3925_v21 = vadd.f32 %v3924_v22, %v12279_v41  ;;  %vm15193_vm12 = vsmask.f32 4352 }
 0x315   : > { %9836 = vrot.lane.b32.xlu1 %v9835_v47, %s9939_s15  ;;  %v4407_v60 = vpop.f32.mrf.mxu1  ;;  %v4947_v63 = vsel %vm15193_vm12, %v12263_v1, %v4946_v8  ;;  %v9084_v45 = vor.u32 %v11793_v59, %v11768_v6  ;;  %v12429_v4 = vpop.f32.mrf.mxu2  ;;  %v4630_v43 = vsel %vm15037_vm9, %v12256_v18, 0  ;;  %v4866_v1 = vsel %vm15031_vm11, %v12256_v18, 0 }
 0x316   : > { %v12421_v12 = vpack.c.b16 %v4667_v40, %v4666_v5  ;;  %v4916_v29 = vpack.c.b16 %v4903_v28, %v4902_v13  ;;  %9070 = vmatmul.msk.bf16.gmra.mxu0 %vm15192_vm4, %v4947_v63  ;;  %v4196_v53 = vadd.f32 %v4159_v52, %v3925_v21  ;;  %v4629_v6 = vsel %vm15036_vm8, %v12237_v27, 0 }
 0x317   : > { %9118 = vmatmul.msk.bf16.gmra.mxu1 %vm15194_vm14, %v9084_v45  ;;  %v4669_v59 = vunpack.c.l.b16 %v4630_v43  ;;  %v4865_v11 = vsel %vm15027_vm15, %v12237_v27, 0  ;;  %vm15195_vm14 = vmmov %vm15192_vm4  ;;  %v4905_v40 = vunpack.c.l.b16 %v4866_v1  ;;  %v4706_v18 = vshrl.u32 %v12075_v16, 16 }
 0x318   : > { %v4710_v41 = vshll.u32 %v12421_v12, 16  ;;  %v12439_v17 = vadd.f32 %v4407_v60, %v4196_v53  ;;  %v4949_v30 = vshrl.u32 %v4916_v29, 16  ;;  %v4952_v32 = vshll.u32 %v4916_v29, 16  ;;  %v3926_v15 = vpop.f32.mrf.mxu3 }
 0x319   : > { %v4668_v55 = vunpack.c.l.b16 %v4629_v6  ;;  %v3927_v5 = vadd.f32 %v3926_v15, %v12318_v19  ;;  %v4904_v21 = vunpack.c.l.b16 %v4865_v11  ;;  %v4708_v60 = vor.u32 %v4706_v18, %v12293_v3 }
 0x31a   : > { %v4161_v47 = vpop.f32.mrf.mxu0  ;;  %v4712_v28 = vrot.slane %v4710_v41, 1  ;;  %v4951_v13 = vrot.slane %v4949_v30, 3  ;;  %v4954_v22 = vrot.slane %v4952_v32, 4  ;;  %vm15196_vm12 = vsmask.f32 7424 }
 0x31b   : > { %v12454_v27 = vpack.c.b16 %v4669_v59, %v4668_v55  ;;  %v4197_v29 = vadd.f32 %v4161_v47, %v3927_v5  ;;  %v4632_v53 = vsel %vm15051_vm2, %v12326_v10, 0  ;;  %v4631_v1 = vsel %vm15048_vm1, %v12266_v50, 0  ;;  %v15201_v55 = vld [vmem:[#allocation71_spill] sm:$0xff]  ;;  %v15202_v5 = vld [vmem:[#allocation78_spill] sm:$0xff] }
 0x31c   : > { %v4713_v45 = vsel %vm15196_vm12, %v4708_v60, %v4712_v28  ;;  %v12463_v19 = vor.u32 %v4954_v22, %v4951_v13  ;;  %v4671_v59 = vunpack.c.l.b16 %v4632_v53  ;;  %v4670_v18 = vunpack.c.l.b16 %v4631_v1  ;;  %vm15200_vm12 = vmmov %vm15192_vm4 }
 0x31d   : > { %9040 = vmatmul.msk.bf16.gmra.mxu2 %vm15195_vm14, %v11880_v51  ;;  %v4409_v52 = vpop.f32.mrf.mxu1  ;;  %v12452_v63 = vpop.f32.mrf.mxu2  ;;  %v4917_v51 = vpack.c.b16 %v4905_v40, %v4904_v21  ;;  %v4718_v3 = vshll.u32 %v12454_v27, 16  ;;  %vm15199_vm14 = vsmask.f32 4352  ;;  %v4714_v22 = vshrl.u32 %v12421_v12, 16  ;;  %v15215_v12 = vld [vmem:[#allocation11_spill] sm:$0xff] }
 0x31e   : > { %v12460_v43 = vadd.f32 %v4409_v52, %v4197_v29  ;;  %v4956_v15 = vsel %vm15199_vm14, %v4946_v8, %v12463_v19  ;;  %v9088_v52 = vor.u32 %v15202_v5, %v15201_v55  ;;  %v4867_v53 = vsel %vm14815_vm7, %v12266_v50, 0 }
 0x31f   : > { %v4958_v32 = vshrl.u32 %v4917_v51, 16  ;;  %v4961_v6 = vshll.u32 %v4917_v51, 16  ;;  %v4720_v21 = vrot.slane %v4718_v3, 1  ;;  %v4868_v3 = vsel %vm15042_vm13, %v12326_v10, 0 }
 0x320   : > { %v3929_v11 = vpop.f32.mrf.mxu3  ;;  %vm15205_vm14 = vsmask.f32 7424  ;;  %vm15216_vm7 = vnez %v15215_v12  ;;  %v4722_v12 = vshrl.u32 %v12454_v27, 16 }
 0x321   : > { %v3930_v47 = vadd.f32 %v3929_v11, %v12403_v38  ;;  %v4960_v29 = vrot.slane %v4958_v32, 3  ;;  %v4963_v51 = vrot.slane %v4961_v6, 4  ;;  %v4716_v38 = vor.u32 %v4714_v22, %v4712_v28  ;;  %v9794_v11 = vld [vmem:[#allocation2 + $0x28] sm:$0xff]  }
 0x322   : > { %v4164_v30 = vpop.f32.mrf.mxu0  ;;  %v12491_v32 = vunpack.c.l.bf16 %v9794_v11  ;;  %v12493_v6 = vunpack.c.h.bf16 %v9794_v11  ;;  %v4907_v22 = vunpack.c.l.b16 %v4868_v3 }
 0x323   : > { %9055 = vmatmul.msk.bf16.gmra.mxu3 %vm15192_vm4, %v4713_v45  ;;  %v4198_v60 = vadd.f32 %v4164_v30, %v3930_v47  ;;  %v12478_v45 = vpack.c.b16 %v4671_v59, %v4670_v18  ;;  %v4721_v30 = vsel %vm15205_vm14, %v4716_v38, %v4720_v21  ;;  %v12497_v50 = vor.u32 %v4963_v51, %v4960_v29 }
 0x324   : > { %v15207_v47 = vrot.slane %v12297_v25, 7  ;;  %v4906_v18 = vunpack.c.l.b16 %v4867_v53  ;;  %v14492_v55 = vrot.slane %v12491_v32, 7  ;;  %v6049_v5 = vrot.slane %v12491_v32, 1  ;;  %v15209_v25 = vld [vmem:[#allocation10_spill] sm:$0xff] }
 0x325   : > { %v4412_v40 = vpop.f32.mrf.mxu1  ;;  %v12475_v13 = vpop.f32.mrf.mxu2  ;;  %v4726_v59 = vshll.u32 %v12478_v45, 16  ;;  %v5908_v29 = vmul.f32 0.75, %v12302_v26  ;;  %v5909_v51 = vmul.f32 0.75, %v12491_v32  ;;  %vm15210_vm14 = vnez %v15209_v25  ;;  %v15217_v25 = vld [vmem:[#allocation53_spill] sm:$0xff] }
 0x326   : > { %9071 = vmatmul.msk.bf16.gmra.mxu0 %vm15200_vm12, %v4956_v15  ;;  %v12484_v1 = vadd.f32 %v4412_v40, %v4198_v60  ;;  %v5950_v15 = vrot.slane %v12302_v26, 7  ;;  %vm15206_vm12 = vmmov %vm15192_vm4 }
 0x327   : > { %9119 = vmatmul.msk.bf16.gmra.mxu1 %vm15192_vm4, %v9088_v52  ;;  %vm15208_vm4 = vcmask 1040384   ;;  %v14496_v52 = vrot.slane %v12493_v6, 1 }
 0x328   : > { %v5951_v40 = vsel %vm15208_vm4, %v15207_v47, %v5950_v15  ;;  %v3931_v10 = vpop.f32.mrf.mxu3  ;;  %v15212_v47 = vrot.slane %v12302_v26, 1 }
 0x329   : > { %v3932_v60 = vadd.f32 %v3931_v10, %v12429_v4  ;;  %v5991_v38 = vsel %vm15210_vm14, %v5951_v40, %v12302_v26  ;;  %vm15218_vm14 = vnez %v15217_v25 }
 0x32a   : > { %v4166_v28 = vpop.f32.mrf.mxu0  ;;  %v6007_v10 = vmul.f32 0.25, %v5991_v38  ;;  %v9796_v38 = vld [vmem:[#allocation2 + $0x38] sm:$0xff]  }
 0x32b   : > { %v4199_v61 = vadd.f32 %v4166_v28, %v3932_v60  ;;  %v4918_v28 = vpack.c.b16 %v4907_v22, %v4906_v18  ;;  %v9795_v60 = vld [vmem:[#allocation2 + $0x30] sm:$0xff]  }
 0x32c   : > { %v12532_v41 = vadd.f32 %v6007_v10, %v5908_v29  ;;  %v12540_v25 = vunpack.c.h.bf16 %v9795_v60  ;;  %v4724_v10 = vor.u32 %v4722_v12, %v4720_v21  ;;  %v4634_v12 = vsel %vm15070_vm0, %v12337_v24, 0 }
 0x32d   : > { %9041 = vmatmul.msk.bf16.gmra.mxu2 %vm15206_vm12, %v12235_v36  ;;  %v4414_v36 = vpop.f32.mrf.mxu1  ;;  %v12512_v53 = vpop.f32.mrf.mxu2  ;;  %vm15211_vm12 = vmmov %vm15208_vm4  ;;  %vm15213_vm4 = vcmask 1046528   ;;  %v12588_v16 = vunpack.c.l.bf16 %v9795_v60 }
 0x32e   : > { %v5953_v11 = vsel %vm15211_vm12, %v5950_v15, %v14492_v55  ;;  %v6050_v3 = vsel %vm15213_vm4, %v15212_v47, %v6049_v5  ;;  %vm15214_vm13 = vmmov %vm15213_vm4  ;;  %v15219_v15 = vld [vmem:[#allocation54_spill] sm:$0xff]  ;;  %15222 = vst [vmem:[#allocation24_spill] sm:$0xff] %v12540_v25 }
 0x32f   : > { %v6052_v4 = vsel %vm15214_vm13, %v6049_v5, %v14496_v52  ;;  %v5992_v40 = vsel %vm15216_vm7, %v5953_v11, %v12491_v32  ;;  %v6090_v8 = vsel %vm15218_vm14, %v6050_v3, %v12302_v26  ;;  %vm15220_vm12 = vnez %v15219_v15 }
 0x330   : > { %v6091_v55 = vsel %vm15220_vm12, %v6052_v4, %v12491_v32  ;;  %v6008_v39 = vmul.f32 0.25, %v5992_v40  ;;  %v6106_v47 = vmul.f32 0.25, %v6090_v8  ;;  %v12534_v5 = vadd.f32 %v4414_v36, %v4199_v61  ;;  %v15223_v8 = vld [vmem:[#allocation76_spill] sm:$0xff] }
 0x331   : > { %v6107_v35 = vmul.f32 0.25, %v6091_v55  ;;  %vm15221_vm13 = vcmask 261120   ;;  %v9092_v55 = vor.u32 %v12239_v7, %v15223_v8  ;;  %v12544_v61 = vunpack.c.l.bf16 %v9796_v38 }
 0x332   : > { %v12538_v11 = vadd.f32 %v6008_v39, %v5909_v51  ;;  %v6122_v26 = vadd.f32 %v6106_v47, %v5908_v29  ;;  %v4169_v4 = vpop.f32.mrf.mxu0  ;;  %v12546_v36 = vunpack.c.h.bf16 %v9796_v38  ;;  %vm15225_vm7 = vsmask.f32 4352  ;;  %vm15227_vm4 = vmmov %vm15221_vm13 }
 0x333   : > { %9056 = vmatmul.msk.bf16.gmra.mxu3 %vm15221_vm13, %v4721_v30  ;;  %v6123_v3 = vadd.f32 %v6107_v35, %v5909_v51  ;;  %15224 = vst [vmem:[#allocation52_spill] sm:$0xff] %v12544_v61  ;;  %v3934_v30 = vpop.f32.mrf.mxu3  ;;  %v4965_v27 = vsel %vm15225_vm7, %v12463_v19, %v12497_v50  ;;  %v12551_v39 = vrot.slane %v4726_v59, 1  ;;  %v6055_v35 = vrot.slane %v12540_v25, 1  ;;  %vm15233_vm13 = vmmov %vm15227_vm4 }
 0x334   : > { %v3935_v22 = vadd.f32 %v3934_v30, %v12452_v63  ;;  %v6057_v7 = vrot.slane %v12544_v61, 1  ;;  %v14497_v21 = vrot.slane %v12546_v36, 1  ;;  %v4633_v40 = vsel %vm15066_vm3, %v12328_v0, 0  ;;  %v15235_v30 = vld [vmem:[#allocation60_spill] sm:$0xff] }
 0x335   : > { %v9840_v18 = vpack.i.bf16 %v6123_v3, %v6122_v26  ;;  %v4417_v29 = vpop.f32.mrf.mxu1  ;;  %v12561_v15 = vpop.f32.mrf.mxu2  ;;  %v4967_v19 = vshrl.u32 %v4918_v28, 16  ;;  %v4970_v59 = vshll.u32 %v4918_v28, 16  ;;  %v12565_v47 = vmul.f32 0.75, %v12540_v25 }
 0x336   : > { %9072 = vmatmul.msk.bf16.gmra.mxu0 %vm15227_vm4, %v4965_v27  ;;  %v4200_v38 = vadd.f32 %v4169_v4, %v3935_v22  ;;  %v12571_v26 = vmul.f32 0.75, %v12544_v61  ;;  %vm15231_vm14 = vcmask 1046528   ;;  %vm15234_vm7 = vsmask.f32 7424  ;;  %v15237_v4 = vld [vmem:[#allocation62_spill] sm:$0xff] }
 0x337   : > { %9841 = vrot.lane.b32.xlu2 %v9840_v18, %s9939_s15  ;;  %15228 = vst [vmem:[#allocation71_spill] sm:$0xff] %v12565_v47  ;;  %v6058_v3 = vsel %vm15231_vm14, %v6055_v35, %v6057_v7  ;;  %vm15232_vm12 = vmmov %vm15231_vm14  ;;  %9120 = vmatmul.msk.bf16.gmra.mxu1 %vm15233_vm13, %v9092_v55  ;;  %v4729_v28 = vsel %vm15234_vm7, %v4724_v10, %v12551_v39  ;;  %vm15236_vm4 = vnez %v15235_v30  ;;  %v4672_v22 = vunpack.c.l.b16 %v4633_v40  ;;  %v15239_v10 = vld [vmem:[#allocation33_spill] sm:$0xff] }
 0x338   : > { %15230 = vst [vmem:[#allocation78_spill] sm:$0xff] %v12571_v26  ;;  %v6060_v8 = vsel %vm15232_vm12, %v6057_v7, %v14497_v21  ;;  %v6094_v27 = vsel %vm15236_vm4, %v6058_v3, %v12540_v25  ;;  %vm15238_vm3 = vnez %v15237_v4  ;;  %v12586_v52 = vadd.f32 %v4417_v29, %v4200_v38  ;;  %vm15241_vm12 = vmmov %vm15233_vm13 }
 0x339   : > { %v6095_v18 = vsel %vm15238_vm3, %v6060_v8, %v12544_v61  ;;  %v6110_v51 = vmul.f32 0.25, %v6094_v27  ;;  %v4969_v7 = vrot.slane %v4967_v19, 3  ;;  %v4673_v55 = vunpack.c.l.b16 %v4634_v12 }
 0x33a   : > { %v6111_v63 = vmul.f32 0.25, %v6095_v18  ;;  %v5954_v21 = vrot.slane %v12493_v6, 7  ;;  %vm15240_vm14 = vnez %v15239_v10  ;;  %v4171_v3 = vpop.f32.mrf.mxu0  ;;  %v4972_v8 = vrot.slane %v4970_v59, 4 }
 0x33b   : > { %v4870_v30 = vsel %vm15240_vm14, %v12337_v24, 0  ;;  %v6126_v29 = vadd.f32 %v6110_v51, %v12565_v47  ;;  %v14500_v60 = vrot.slane %v12588_v16, 7  ;;  %v3936_v38 = vpop.f32.mrf.mxu3  ;;  %v5910_v19 = vmul.f32 0.75, %v12493_v6  ;;  %v15247_v47 = vld [vmem:[#allocation13_spill] sm:$0xff] }
 0x33c   : > { %v6127_v40 = vadd.f32 %v6111_v63, %v12571_v26  ;;  %v5911_v12 = vmul.f32 0.75, %v12588_v16  ;;  %v6053_v27 = vrot.slane %v12588_v16, 1  ;;  %v15242_v24 = vrot.slane %v12491_v32, 7  ;;  %v15245_v63 = vld [vmem:[#allocation12_spill] sm:$0xff] }
 0x33d   : > { %9042 = vmatmul.msk.bf16.gmra.mxu2 %vm15241_vm12, %v12348_v20  ;;  %vm15243_vm3 = vcmask 1040384   ;;  %v3937_v20 = vadd.f32 %v3936_v38, %v12475_v13  ;;  %v4419_v59 = vpop.f32.mrf.mxu1  ;;  %vm15246_vm7 = vnez %v15245_v63  ;;  %v12612_v26 = vpop.f32.mrf.mxu2  ;;  %vm15248_vm4 = vnez %v15247_v47  ;;  %v15252_v63 = vld [vmem:[#allocation55_spill] sm:$0xff] }
 0x33e   : > { %v5955_v4 = vsel %vm15243_vm3, %v15242_v24, %v5954_v21  ;;  %v9850_v18 = vpack.i.bf16 %v6127_v40, %v6126_v29  ;;  %vm15244_vm13 = vmmov %vm15243_vm3  ;;  %v15249_v24 = vrot.slane %v12493_v6, 1  ;;  %vm15250_vm12 = vcmask 1046528  }
 0x33f   : > { %v5957_v51 = vsel %vm15244_vm13, %v5954_v21, %v14500_v60  ;;  %v5993_v10 = vsel %vm15246_vm7, %v5955_v4, %v12493_v6  ;;  %vm15251_vm3 = vmmov %vm15250_vm12  ;;  %v4201_v38 = vadd.f32 %v4171_v3, %v3937_v20  ;;  %vm15253_vm13 = vnez %v15252_v63  ;;  %v15254_v60 = vld [vmem:[#allocation59_spill] sm:$0xff]  ;;  %v9797_v20 = vld [vmem:[#allocation2 + $0x40] sm:$0xff]  }
 0x340   : > { %v5994_v32 = vsel %vm15248_vm4, %v5957_v51, %v12588_v16  ;;  %v6054_v13 = vsel %vm15250_vm12, %v15249_v24, %v6053_v27  ;;  %v6056_v29 = vsel %vm15251_vm3, %v6053_v27, %v6055_v35  ;;  %v6009_v40 = vmul.f32 0.25, %v5993_v10  ;;  %9851 = vrot.lane.b32.xlu0 %v9850_v18, %s9939_s15  ;;  %v15256_v24 = vld [vmem:[#allocation29_spill] sm:$0xff] }
 0x341   : > { %v6010_v21 = vmul.f32 0.25, %v5994_v32  ;;  %v6092_v4 = vsel %vm15253_vm13, %v6054_v13, %v12493_v6  ;;  %vm15255_vm7 = vnez %v15254_v60  ;;  %vm15257_vm4 = vnez %v15256_v24 }
 0x342   : > { %v6093_v47 = vsel %vm15255_vm7, %v6056_v29, %v12588_v16  ;;  %v6108_v51 = vmul.f32 0.25, %v6092_v4  ;;  %v12628_v25 = vadd.f32 %v6009_v40, %v5910_v19  ;;  %v4869_v35 = vsel %vm15257_vm4, %v12328_v0, 0  ;;  %v4174_v29 = vpop.f32.mrf.mxu0 }
 0x343   : > { %v6109_v61 = vmul.f32 0.25, %v6093_v47  ;;  %v12633_v10 = vadd.f32 %v4419_v59, %v4201_v38  ;;  %vm15258_vm12 = vcmask 261120   ;;  %v12636_v3 = vor.u32 %v4972_v8, %v4969_v7  ;;  %v3939_v63 = vpop.f32.mrf.mxu3  ;;  %v15268_v47 = vld [vmem:[#allocation69_spill] sm:$0xff] }
 0x344   : > { %9057 = vmatmul.msk.bf16.gmra.mxu3 %vm15258_vm12, %v4729_v28  ;;  %v12638_v27 = vadd.f32 %v6010_v21, %v5911_v12  ;;  %v4909_v6 = vunpack.c.l.b16 %v4870_v30  ;;  %v6124_v60 = vadd.f32 %v6108_v51, %v5910_v19  ;;  %v12640_v32 = vunpack.c.l.bf16 %v9797_v20  ;;  %vm15261_vm13 = vmmov %vm15258_vm12  ;;  %v15266_v21 = vld [vmem:[#allocation64_spill] sm:$0xff] }
 0x345   : > { %v6125_v18 = vadd.f32 %v6109_v61, %v5911_v12  ;;  %v12642_v13 = vunpack.c.h.bf16 %v9797_v20  ;;  %v4908_v40 = vunpack.c.l.b16 %v4869_v35  ;;  %v12644_v0 = vpack.c.b16 %v4673_v55, %v4672_v22  ;;  %v4422_v30 = vpop.f32.mrf.mxu1  ;;  %v12655_v22 = vpop.f32.mrf.mxu2 }
 0x346   : > { %v6061_v28 = vrot.slane %v12640_v32, 1  ;;  %v3940_v8 = vadd.f32 %v3939_v63, %v12512_v53  ;;  %vm15260_vm3 = vsmask.f32 4352  ;;  %v9096_v19 = vor.u32 %v12268_v44, %v12220_v46 }
 0x347   : > { %15259 = vst [vmem:[#allocation10_spill] sm:$0xff] %v12642_v13  ;;  %v9845_v59 = vpack.i.bf16 %v6125_v18, %v6124_v60  ;;  %v14505_v7 = vrot.slane %v12642_v13, 1  ;;  %v4974_v61 = vsel %vm15260_vm3, %v12497_v50, %v12636_v3  ;;  %v4919_v12 = vpack.c.b16 %v4909_v6, %v4908_v40  ;;  %v4856_v13 = vld [vmem:[#allocation2 + $0x48] sm:$0xf] }
 0x348   : > { %9073 = vmatmul.msk.bf16.gmra.mxu0 %vm15261_vm13, %v4974_v61  ;;  %v12659_v55 = vmul.f32 0.75, %v12546_v36  ;;  %v12662_v53 = vmul.f32 0.75, %v12640_v32  ;;  %v15263_v38 = vrot.slane %v12546_v36, 1  ;;  %vm15264_vm7 = vcmask 1046528  }
 0x349   : > { %9846 = vrot.lane.b32.xlu2 %v9845_v59, %s9939_s15  ;;  %vm15265_vm12 = vmmov %vm15264_vm7  ;;  %v4202_v44 = vadd.f32 %v4174_v29, %v3940_v8  ;;  %vm15267_vm3 = vnez %v15266_v21  ;;  %vm15269_vm13 = vnez %v15268_v47  ;;  %vm15270_vm14 = vcmask 261120   ;;  %v15274_v21 = vld [vmem:[#allocation41_spill] sm:$0xff] }
 0x34a   : > { %15262 = vst [vmem:[#allocation11_spill] sm:$0xff] %v12662_v53  ;;  %v6062_v50 = vsel %vm15264_vm7, %v15263_v38, %v6061_v28  ;;  %v6064_v46 = vsel %vm15265_vm12, %v6061_v28, %v14505_v7  ;;  %9121 = vmatmul.msk.bf16.gmra.mxu1 %vm15270_vm14, %v9096_v19  ;;  %v4734_v35 = vshll.u32 %v12644_v0, 16  ;;  %v4976_v18 = vshrl.u32 %v4919_v12, 16  ;;  %v4176_v59 = vpop.f32.mrf.mxu0  ;;  %vm15271_vm7 = vmmov %vm15270_vm14  ;;  %v15272_v38 = vld [vmem:[#allocation73_spill] sm:$0xff] }
 0x34b   : > { %v6096_v4 = vsel %vm15267_vm3, %v6062_v50, %v12546_v36  ;;  %v6097_v51 = vsel %vm15269_vm13, %v6064_v46, %v12640_v32  ;;  %v12678_v60 = vadd.f32 %v4422_v30, %v4202_v44  ;;  %v4979_v40 = vshll.u32 %v4919_v12, 16  ;;  %v3941_v28 = vpop.f32.mrf.mxu3 }
 0x34c   : > { %v6112_v6 = vmul.f32 0.25, %v6096_v4  ;;  %v6113_v20 = vmul.f32 0.25, %v6097_v51  ;;  %v4730_v8 = vshrl.u32 %v12478_v45, 16  ;;  %v12685_v61 = vrot.slane %v4734_v35, 1  ;;  %v15276_v45 = vld [vmem:[#allocation72_spill] sm:$0xff] }
 0x34d   : > { %9043 = vmatmul.msk.bf16.gmra.mxu2 %vm15271_vm7, %v12371_v33  ;;  %vm15273_vm14 = vnez %v15272_v38  ;;  %v3942_v12 = vadd.f32 %v3941_v28, %v12561_v15  ;;  %v4424_v50 = vpop.f32.mrf.mxu1  ;;  %v4978_v46 = vrot.slane %v4976_v18, 3  ;;  %v4981_v44 = vrot.slane %v4979_v40, 4  ;;  %v12695_v47 = vpop.f32.mrf.mxu2  ;;  %v15278_v15 = vld [vmem:[#allocation40_spill] sm:$0xff] }
 0x34e   : > { %v6128_v29 = vadd.f32 %v6112_v6, %v12659_v55  ;;  %v6129_v63 = vadd.f32 %v6113_v20, %v12662_v53  ;;  %v4636_v30 = vsel %vm15273_vm14, %v12363_v57, 0  ;;  %vm15275_vm12 = vnez %v15274_v21 }
 0x34f   : > { %v4872_v4 = vsel %vm15275_vm12, %v12363_v57, 0  ;;  %v4732_v33 = vor.u32 %v4730_v8, %v12551_v39  ;;  %vm15277_vm3 = vnez %v15276_v45  ;;  %v4203_v35 = vadd.f32 %v4176_v59, %v3942_v12 }
 0x350   : > { %v9855_v19 = vpack.i.bf16 %v6129_v63, %v6128_v29  ;;  %v4635_v51 = vsel %vm15277_vm3, %v12350_v48, 0  ;;  %v4675_v6 = vunpack.c.l.b16 %v4636_v30  ;;  %vm15279_vm13 = vnez %v15278_v15 }
 0x351   : > { %v4871_v20 = vsel %vm15279_vm13, %v12350_v48, 0  ;;  %vm15280_vm7 = vsmask.f32 7424  ;;  %v4911_v57 = vunpack.c.l.b16 %v4872_v4  ;;  %v12706_v40 = vadd.f32 %v4424_v50, %v4203_v35  ;;  %v15283_v50 = vld [vmem:[#allocation56_spill] sm:$0xff] }
 0x352   : > { %9856 = vrot.lane.b32.xlu1 %v9855_v19, %s9939_s15  ;;  %v4737_v18 = vsel %vm15280_vm7, %v4732_v33, %v12685_v61  ;;  %vm15281_vm12 = vcmask 261120   ;;  %v12709_v39 = vor.u32 %v4981_v44, %v4978_v46  ;;  %v4674_v29 = vunpack.c.l.b16 %v4635_v51  ;;  %v4179_v28 = vpop.f32.mrf.mxu0  ;;  %v15284_v4 = vld [vmem:[#allocation44_spill] sm:$0xff] }
 0x353   : > { %v4910_v63 = vunpack.c.l.b16 %v4871_v20  ;;  %v3944_v59 = vpop.f32.mrf.mxu3  ;;  %vm15282_vm7 = vsmask.f32 4352  ;;  %vm15285_vm13 = vnez %v15284_v4  ;;  %v9100_v46 = vor.u32 %v12330_v14, %v12313_v58  ;;  %vm15292_vm14 = vmmov %vm15281_vm12 }
 0x354   : > { %9058 = vmatmul.msk.bf16.gmra.mxu3 %vm15281_vm12, %v4737_v18  ;;  %v12711_v8 = vpack.c.b16 %v4675_v6, %v4674_v29  ;;  %v3945_v30 = vadd.f32 %v3944_v59, %v12612_v26  ;;  %v4983_v12 = vsel %vm15282_vm7, %v12636_v3, %v12709_v39  ;;  %v5267_v33 = vsel %vm15285_vm13, %v15283_v50, 0  ;;  %v15286_v26 = vld [vmem:[#allocation49_spill] sm:$0xff]  ;;  %v15287_v6 = vld [vmem:[#allocation43_spill] sm:$0xff]  ;;  %v15290_v3 = vld [vmem:[#allocation46_spill] sm:$0xff] }
 0x355   : > { %v4920_v19 = vpack.c.b16 %v4911_v57, %v4910_v63  ;;  %v4427_v48 = vpop.f32.mrf.mxu1  ;;  %v12723_v44 = vpop.f32.mrf.mxu2  ;;  %vm15288_vm4 = vnez %v15287_v6  ;;  %v15289_v18 = vld [vmem:[#allocation57_spill] sm:$0xff]  ;;  %vm15291_vm7 = vnez %v15290_v3  ;;  %v5306_v14 = vunpack.c.l.b16 %v5267_v33 }
 0x356   : > { %v4204_v51 = vadd.f32 %v4179_v28, %v3945_v30  ;;  %v4742_v35 = vshll.u32 %v12711_v8, 16  ;;  %v5266_v20 = vsel %vm15288_vm4, %v15286_v26, 0  ;;  %v5269_v57 = vsel %vm15291_vm7, %v15289_v18, 0  ;;  %v15293_v63 = vld [vmem:[#allocation61_spill] sm:$0xff]  ;;  %v4620_v30 = vld [vmem:[#allocation2 + $0x48] sm:$0x1]  ;;  %v6148_v33 = vpop.permute.xlu0 %6147  ;;  %vm15297_vm7 = vmmov %vm15292_vm14 }
 0x357   : > { %v4985_v29 = vshrl.u32 %v4920_v19, 16  ;;  %v15294_v59 = vld [vmem:[#allocation45_spill] sm:$0xff]  ;;  %v4988_v28 = vshll.u32 %v4920_v19, 16  ;;  %v5305_v26 = vunpack.c.l.b16 %v5266_v20  ;;  %v5308_v7 = vunpack.c.l.b16 %v5269_v57  ;;  %v15298_v20 = vld [vmem:[#allocation75_spill] sm:$0xff] }
 0x358   : > { %9074 = vmatmul.msk.bf16.gmra.mxu0 %vm15281_vm12, %v4983_v12  ;;  %vm15295_vm12 = vnez %v15294_v59  ;;  %v12736_v12 = vadd.f32 %v4427_v48, %v4204_v51  ;;  %v9685_v50 = vld [vmem:[%s14224_s10 + $0x38] sm:$0xff]  ;;  %v12744_v3 = vrot.slane %v4742_v35, 1  ;;  %vm15305_vm13 = vcmask 261120  }
 0x359   : > { %v5268_v58 = vsel %vm15295_vm12, %v15293_v63, 0  ;;  %6386 = vmatpush.bf16.msrb.mxu0 %v9685_v50  ;;  %v4987_v51 = vrot.slane %v4985_v29, 3  ;;  %v15296_v63 = vld [vmem:[#allocation79_spill] sm:$0xff]  ;;  %v5322_v4 = vpack.c.b16 %v5306_v14, %v5305_v26  ;;  %vm15299_vm12 = vnez %v15298_v20  ;;  %v15324_v20 = vld [vmem:[#allocation16_spill] sm:$0xff] }
 0x35a   : > { %9122 = vmatmul.msk.bf16.gmra.mxu1 %vm15292_vm14, %v9100_v46  ;;  %v4181_v18 = vpop.f32.mrf.mxu0  ;;  %v4738_v46 = vshrl.u32 %v12644_v0, 16  ;;  %v5307_v48 = vunpack.c.l.b16 %v5268_v58  ;;  %v6195_v59 = vsel %vm15297_vm7, %v15296_v63, %v6148_v33  ;;  %v4637_v57 = vsel %vm15299_vm12, %v4620_v30, 0  ;;  %v15300_v0 = vld [vmem:[#allocation42_spill] sm:$0xff]  ;;  %v15307_v33 = vld [vmem:[#allocation51_spill] sm:$0xff] }
 0x35b   : > { %v3946_v19 = vpop.f32.mrf.mxu3  ;;  %v6211_v15 = vpack.c.bf16 %v6195_v59, %v6195_v59  ;;  %vm15302_vm7 = vcmask 519168   ;;  %v4676_v14 = vunpack.c.l.b16 %v4637_v57  ;;  %v9681_v59 = vld [vmem:[%s14224_s10 + $0x18] sm:$0xff]  ;;  %vm15313_vm4 = vcmask 261120  }
 0x35c   : > { %v3947_v6 = vadd.f32 %v3946_v19, %v12655_v22  ;;  %v4740_v58 = vor.u32 %v4738_v46, %v12685_v61  ;;  %v12756_v29 = vpack.c.b16 %v5308_v7, %v5307_v48  ;;  %v9684_v22 = vld [vmem:[%s14224_s10 + $0x30] sm:$0xff]  ;;  %v5334_v61 = vshll.u32 %v5322_v4, 16  ;;  %6606 = vmatpush.bf16.msrb.mxu1 %v9681_v59  ;;  %v15306_v46 = vld [vmem:[#allocation67_spill] sm:$0xff] }
 0x35d   : > { %9044 = vmatmul.msk.bf16.gmra.mxu2 %vm15292_vm14, %v12388_v54  ;;  %v4429_v21 = vpop.f32.mrf.mxu1  ;;  %v4990_v54 = vrot.slane %v4988_v28, 4  ;;  %vm15301_vm14 = vnez %v15300_v0  ;;  %v12754_v50 = vpop.f32.mrf.mxu2  ;;  %6227 = vst.msk [vmem:[#allocation2 + $0x8] sm:$0xf] %vm15302_vm7, %v6211_v15  ;;  %6387 = vmatpush.bf16.msrb.mxu0 %v9684_v22  ;;  %v9683_v15 = vld [vmem:[%s14224_s10 + $0x28] sm:$0xff]  ;;  %v15311_v22 = vld [vmem:[#allocation50_spill] sm:$0xff] }
 0x35e   : > { %v4873_v35 = vsel %vm15301_vm14, %v4856_v13, 0  ;;  %v4205_v53 = vadd.f32 %v4181_v18, %v3947_v6  ;;  %vm15303_vm14 = vsmask.f32 7424  ;;  %v9669_v6 = vld [vmem:[%s14222_s8 + $0x18] sm:$0xff]  ;;  %v5339_v26 = vshll.u32 %v12756_v29, 16 }
 0x35f   : > { %v4745_v13 = vsel %vm15303_vm14, %v4740_v58, %v12744_v3  ;;  %v4912_v28 = vunpack.c.l.b16 %v4873_v35  ;;  %v12770_v7 = vor.u32 %v4990_v54, %v4987_v51  ;;  %v4685_v18 = vpack.c.b16 %v4676_v14, %v4676_v14  ;;  %5608 = vmatpush.bf16.msrb.mxu3 %v9669_v6  ;;  %v15310_v58 = vld [vmem:[#allocation77_spill] sm:$0xff]  ;;  %v15314_v14 = vld [vmem:[#allocation80_spill] sm:$0xff] }
 0x360   : > { %v12767_v30 = vadd.f32 %v4429_v21, %v4205_v53  ;;  %v9680_v53 = vld [vmem:[%s14224_s10 + $0x10] sm:$0xff]  ;;  %v5336_v51 = vrot.slane %v5334_v61, 1  ;;  %vm15309_vm14 = vsmask.f32 4352  ;;  %vm15312_vm7 = vnez %v15311_v22 }
 0x361   : > { %v4921_v63 = vpack.c.b16 %v4912_v28, %v4912_v28  ;;  %v4992_v35 = vsel %vm15309_vm14, %v12709_v39, %v12770_v7  ;;  %v5270_v59 = vsel %vm15312_vm7, %v15310_v58, 0  ;;  %6388 = vmatpush.bf16.msrb.mxu0 %v9683_v15  ;;  %v5332_v61 = vshrl.u32 %v5322_v4, 16  ;;  %6607 = vmatpush.bf16.msrb.mxu1 %v9680_v53  ;;  %v9682_v39 = vld [vmem:[%s14224_s10 + $0x20] sm:$0xff]  ;;  %v9679_v15 = vld [vmem:[%s14224_s10 + $0x8] sm:$0xff]  ;;  %vm15321_vm7 = vmmov %vm15313_vm4 }
 0x362   : > { %15304 = vst [vmem:[#allocation53_spill] sm:$0xff] %v12767_v30  ;;  %v4184_v21 = vpop.f32.mrf.mxu0  ;;  %v12797_v28 = vrot.slane %v5339_v26, 1  ;;  %v5309_v26 = vunpack.c.l.b16 %v5270_v59  ;;  %vm15317_vm14 = vsmask.f32 7424  ;;  %v15322_v30 = vld [vmem:[#allocation15_spill] sm:$0xff] }
 0x363   : > { %v3949_v19 = vpop.f32.mrf.mxu3  ;;  %v4997_v4 = vshll.u32 %v4921_v63, 16  ;;  %vm15329_vm12 = vsmask.f32 7424 }
 0x364   : > { %9059 = vmatmul.msk.bf16.gmra.mxu3 %vm15305_vm13, %v4745_v13  ;;  %vm15308_vm13 = vnez %v15307_v33  ;;  %v3950_v57 = vadd.f32 %v3949_v19, %v12695_v47  ;;  %v15315_v13 = vld [vmem:[#allocation30_spill] sm:$0xff]  ;;  %v4750_v33 = vshll.u32 %v4685_v18, 16  ;;  %v4746_v18 = vshrl.u32 %v12711_v8, 16 }
 0x365   : > { %v5271_v48 = vsel %vm15308_vm13, %v15306_v46, 0  ;;  %v4432_v54 = vpop.f32.mrf.mxu1  ;;  %v9104_v6 = vor.u32 %v15315_v13, %v15314_v14  ;;  %v12795_v46 = vpop.f32.mrf.mxu2  ;;  %v4994_v14 = vshrl.u32 %v4921_v63, 16  ;;  %6389 = vmatpush.bf16.msrb.mxu0 %v9682_v39  ;;  %6608 = vmatpush.bf16.msrb.mxu1 %v9679_v15  ;;  %v6244_v63 = vld [vmem:[#allocation2 + $0x4] sm:$0xf]  ;;  %vm15319_vm13 = vmmov %vm15313_vm4  ;;  %v4999_v22 = vrot.slane %v4997_v4, 4 }
 0x366   : > { %v5310_v47 = vunpack.c.l.b16 %v5271_v48  ;;  %v4206_v19 = vadd.f32 %v4184_v21, %v3950_v57  ;;  %v15320_v8 = vld [vmem:[#allocation34_spill] sm:$0xff]  ;;  %v4748_v39 = vor.u32 %v4746_v18, %v12744_v3 }
 0x367   : > { %v9827_v58 = vpop.permute.xlu0 %9826 }
 0x368   : > { %9075 = vmatmul.msk.bf16.gmra.mxu0 %vm15313_vm4, %v4992_v35  ;;  %v5337_v35 = vor.u32 %v5336_v51, %v5332_v61  ;;  %v12806_v13 = vadd.f32 %v4432_v54, %v4206_v19  ;;  %v9829_v53 = vunpack.i.h.bf16 %v9827_v58  ;;  %v9828_v21 = vunpack.i.l.bf16 %v9827_v58  ;;  %v9678_v51 = vld [vmem:[%s14224_s10] sm:$0xff] }
 0x369   : > { %v12811_v57 = vpack.c.b16 %v5310_v47, %v5309_v26  ;;  %v15318_v54 = vld [vmem:[#allocation6_spill] sm:$0xff]  ;;  %v4752_v47 = vrot.slane %v4750_v33, 1  ;;  %v4996_v26 = vrot.slane %v4994_v14, 3  ;;  %6609 = vmatpush.bf16.msrb.mxu1 %v9678_v51  ;;  %v15328_v33 = vld [vmem:[#allocation9_spill] sm:$0xff] }
 0x36a   : > { %9123 = vmatmul.msk.bf16.gmra.mxu1 %vm15313_vm4, %v9104_v6  ;;  %15316 = vst [vmem:[#allocation54_spill] sm:$0xff] %v12806_v13  ;;  %v5342_v48 = vsel %vm15317_vm14, %v5337_v35, %v12797_v28  ;;  %v6243_v6 = vld [vmem:[#allocation2] sm:$0x8]  ;;  %v4186_v59 = vpop.f32.mrf.mxu0  ;;  %v6197_v61 = vsel %vm15319_vm13, %v15318_v54, %v9829_v53  ;;  %v6196_v19 = vsel %vm15321_vm7, %v15320_v8, %v9828_v21  ;;  %vm15326_vm13 = vcmask 519168   ;;  %v15331_v51 = vld [vmem:[#allocation17_spill] sm:$0xff] }
 0x36b   : > { %v3951_v35 = vpop.f32.mrf.mxu3  ;;  %v6213_v15 = vpack.c.bf16 %v6197_v61, %v6197_v61  ;;  %v6212_v58 = vpack.c.bf16 %v6196_v19, %v6196_v19  ;;  %vm15323_vm14 = vnez %v15322_v30  ;;  %vm15327_vm7 = vmmov %vm15326_vm13  ;;  %v5347_v14 = vshll.u32 %v12811_v57, 16  ;;  %v9659_v19 = vld [vmem:[#allocation2 + $0x44] sm:$0xf0] }
 0x36c   : > { %v3952_v0 = vadd.f32 %v3951_v35, %v12723_v44  ;;  %v6245_v44 = vld [vmem:[#allocation2 + $0x8] sm:$0xf]  ;;  %v4753_v4 = vsel %vm15329_vm12, %v4748_v39, %v4752_v47  ;;  %v5000_v54 = vor.u32 %v4999_v22, %v4996_v26  ;;  %v5343_v22 = vshrl.u32 %v12756_v29, 16 }
 0x36d   : > { %9133 = vmatmul.msk.bf16.vlgmr.msrb.gmra.mxu2 %vm15313_vm4, %v5342_v48  ;;  %v4434_v13 = vpop.f32.mrf.mxu1  ;;  %v6260_v48 = vsel %vm15323_vm14, %v6243_v6, 0  ;;  %vm15325_vm4 = vnez %v15324_v20  ;;  %6228 = vst.msk [vmem:[#allocation2 + $0xc] sm:$0xf] %vm15326_vm13, %v6212_v58  ;;  %v4548_v21 = vpop.f32.mrf.mxu2  ;;  %vm15332_vm13 = vnez %v15331_v51  ;;  %v12842_v39 = vrot.slane %v5347_v14, 1 }
 0x36e   : > { %v6261_v53 = vsel %vm15325_vm4, %v6244_v63, 0  ;;  %v4207_v3 = vadd.f32 %v4186_v59, %v3952_v0  ;;  %6229 = vst.msk [vmem:[#allocation2 + $0x10] sm:$0xf] %vm15327_vm7, %v6213_v15  ;;  %v12830_v18 = vadd.f32 %v4548_v21, %v15328_v33  ;;  %v6448_v6 = vunpack.c.l.b16 %v6260_v48  ;;  %v15334_v48 = vld [vmem:[#allocation36_spill] sm:$0xff] }
 0x36f   : > { %v6449_v61 = vunpack.c.l.b16 %v6261_v53  ;;  %vm15330_vm4 = vcmask 261120   ;;  %v6262_v0 = vsel %vm15332_vm13, %v6245_v44, 0  ;;  %vm15333_vm7 = vsmask.f32 4352 }
 0x370   : > { %v12834_v8 = vadd.f32 %v4434_v13, %v4207_v3  ;;  %v5001_v21 = vsel %vm15333_vm7, %v12770_v7, %v5000_v54  ;;  %vm15335_vm12 = vmmov %vm15330_vm4  ;;  %v15336_v3 = vld [vmem:[#allocation23_spill] sm:$0xff]  ;;  %v9108_v7 = vor.u32 %v9659_v19, %v12374_v34  ;;  %vm15463_vm14 = vsmask.f32 4352 }
 0x371   : > { %v6465_v13 = vpack.c.b16 %v6449_v61, %v6448_v6  ;;  %vm15337_vm13 = vmmov %vm15330_vm4 }
 0x372   : > { %v4189_v59 = vpop.f32.mrf.mxu0 }
 0x373   : > { %v3954_v58 = vpop.f32.mrf.mxu3  ;;  %v6475_v34 = vshrl.u32 %v6465_v13, 16  ;;  %v6478_v19 = vshll.u32 %v6465_v13, 16 }
 0x374   : > { %9060 = vmatmul.msk.bf16.gmra.mxu3 %vm15330_vm4, %v4753_v4  ;;  %v9832_v63 = vpop.permute.xlu1 %9831  ;;  %v3955_v47 = vadd.f32 %v3954_v58, %v12754_v50  ;;  %v6246_v44 = vld [vmem:[#allocation2 + $0xc] sm:$0xf]  ;;  %v6450_v4 = vunpack.c.l.b16 %v6262_v0  ;;  %v5345_v0 = vor.u32 %v5343_v22, %v12797_v28 }
 0x375   : > { %v9834_v35 = vunpack.i.h.bf16 %v9832_v63  ;;  %v9833_v15 = vunpack.i.l.bf16 %v9832_v63  ;;  %v4437_v26 = vpop.f32.mrf.mxu1  ;;  %v4550_v54 = vpop.f32.mrf.mxu2  ;;  %v15338_v63 = vld [vmem:[#allocation18_spill] sm:$0xff]  ;;  %v15340_v58 = vld [vmem:[#allocation7_spill] sm:$0xff] }
 0x376   : > { %vm15339_vm7 = vnez %v15338_v63  ;;  %v4208_v50 = vadd.f32 %v4189_v59, %v3955_v47  ;;  %v12854_v61 = vadd.f32 %v4550_v54, %v12408_v42  ;;  %v15344_v42 = vld [vmem:[#allocation74_spill] sm:$0xff] }
 0x377   : > { %v6199_v53 = vsel %vm15335_vm12, %v15334_v48, %v9834_v35  ;;  %v6198_v33 = vsel %vm15330_vm4, %v15336_v3, %v9833_v15  ;;  %v6263_v6 = vsel %vm15339_vm7, %v6246_v44, 0  ;;  %v5273_v15 = vsel %vm15186_vm10, %v15340_v58, 0  ;;  %vm15341_vm12 = vmmov %vm15330_vm4 }
 0x378   : > { %9076 = vmatmul.msk.bf16.gmra.mxu0 %vm15337_vm13, %v5001_v21  ;;  %v6215_v29 = vpack.c.bf16 %v6199_v53, %v6199_v53  ;;  %v6214_v14 = vpack.c.bf16 %v6198_v33, %v6198_v33  ;;  %v6451_v35 = vunpack.c.l.b16 %v6263_v6  ;;  %vm15342_vm13 = vcmask 519168   ;;  %v6247_v33 = vld [vmem:[#allocation2 + $0x10] sm:$0xf] }
 0x379   : > { %v12862_v21 = vadd.f32 %v4437_v26, %v4208_v50  ;;  %vm15343_vm4 = vmmov %vm15342_vm13  ;;  %v5272_v47 = vsel %vm15189_vm6, %v15344_v42, 0  ;;  %vm15345_vm7 = vsmask.f32 7424  ;;  %v5312_v53 = vunpack.c.l.b16 %v5273_v15 }
 0x37a   : > { %9124 = vmatmul.msk.bf16.gmra.mxu1 %vm15341_vm12, %v9108_v7  ;;  %6230 = vst.msk [vmem:[#allocation2 + $0x14] sm:$0xf] %vm15342_vm13, %v6214_v14  ;;  %v6466_v59 = vpack.c.b16 %v6451_v35, %v6450_v4  ;;  %v5350_v48 = vsel %vm15345_vm7, %v5345_v0, %v12842_v39  ;;  %v4191_v3 = vpop.f32.mrf.mxu0  ;;  %v6477_v26 = vrot.slane %v6475_v34, 3  ;;  %v6480_v44 = vrot.slane %v6478_v19, 4  ;;  %v15346_v35 = vld [vmem:[#allocation27_spill] sm:$0xff]  ;;  %v15348_v34 = vld [vmem:[#allocation28_spill] sm:$0xff] }
 0x37b   : > { %6231 = vst.msk [vmem:[#allocation2 + $0x18] sm:$0xf] %vm15343_vm4, %v6215_v29  ;;  %v3956_v13 = vpop.f32.mrf.mxu3  ;;  %v5311_v7 = vunpack.c.l.b16 %v5272_v47  ;;  %vm15347_vm7 = vnez %v15346_v35  ;;  %vm15349_vm13 = vnez %v15348_v34  ;;  %vm15350_vm4 = vsmask.f32 4352 }
 0x37c   : > { %v6483_v28 = vshrl.u32 %v6466_v59, 16  ;;  %v6486_v22 = vshll.u32 %v6466_v59, 16  ;;  %v3957_v4 = vadd.f32 %v3956_v13, %v12795_v46  ;;  %v6264_v58 = vsel %vm15347_vm7, %v6247_v33, 0 }
 0x37d   : > { %9134 = vmatmul.msk.bf16.gmra.mxu2 %vm15341_vm12, %v5350_v48  ;;  %v4439_v54 = vpop.f32.mrf.mxu1  ;;  %v12872_v50 = vpack.c.b16 %v5312_v53, %v5311_v7  ;;  %v6481_v42 = vor.u32 %v6480_v44, %v6477_v26  ;;  %v6452_v48 = vunpack.c.l.b16 %v6264_v58  ;;  %v9668_v53 = vld [vmem:[%s14222_s8 + $0x10] sm:$0xff]  ;;  %vm15351_vm12 = vcmask 523264  }
 0x37e   : > { %v6485_v29 = vrot.slane %v6483_v28, 3  ;;  %v6488_v14 = vrot.slane %v6486_v22, 4  ;;  %v4209_v15 = vadd.f32 %v4191_v3, %v3957_v4  ;;  %v9670_v22 = vld [vmem:[#allocation2 + $0x4] sm:$0xff]  ;;  %5609 = vmatpush.bf16.msrb.mxu3 %v9668_v53 }
 0x37f   : > { %v5355_v3 = vshll.u32 %v12872_v50, 16 }
 0x380   : > { %v4553_v6 = vpop.f32.mrf.mxu2  ;;  %v12881_v47 = vadd.f32 %v4439_v54, %v4209_v15  ;;  %v6489_v46 = vor.u32 %v6488_v14, %v6485_v29  ;;  %v5351_v29 = vshrl.u32 %v12811_v57, 16 }
 0x381   : > { %v12877_v0 = vadd.f32 %v4553_v6, %v12439_v17  ;;  %v6248_v59 = vld [vmem:[#allocation2 + $0x14] sm:$0xf]  ;;  %v5357_v14 = vrot.slane %v5355_v3, 1 }
 0x382   : > { %v6265_v19 = vsel %vm15349_vm13, %v6248_v59, 0  ;;  %v12887_v33 = vpop.f32.mrf.mxu0  ;;  %v6490_v26 = vsel %vm15350_vm4, %v6481_v42, %v6489_v46  ;;  %vm15352_vm13 = vcmask 261120   ;;  %v15354_v59 = vld [vmem:[#allocation35_spill] sm:$0xff]  ;;  %vm15355_vm4 = vmmov %vm15351_vm12 }
 0x383   : > { %v6453_v28 = vunpack.c.l.b16 %v6265_v19  ;;  %vm15353_vm7 = vmmov %vm15352_vm13  ;;  %v5275_v42 = vsel %vm15037_vm9, %v15354_v59, 0  ;;  %v5353_v19 = vor.u32 %v5351_v29, %v12842_v39  ;;  %v6249_v39 = vld [vmem:[#allocation2 + $0x18] sm:$0xf] }
 0x384   : > { %v6266_v29 = vsel %vm15191_vm5, %v6249_v39, 0  ;;  %vm15363_vm5 = vcmask 523264  }
 0x385   : > { %v12889_v13 = vpop.f32.mrf.mxu1  ;;  %v6467_v4 = vpack.c.b16 %v6453_v28, %v6452_v48 }
 0x387   : > { %v9837_v17 = vpop.permute.xlu1 %9836  ;;  %v6492_v28 = vshrl.u32 %v6467_v4, 16  ;;  %v6495_v53 = vshll.u32 %v6467_v4, 16 }
 0x388   : > { %v9839_v44 = vunpack.i.h.bf16 %v9837_v17  ;;  %v9838_v7 = vunpack.i.l.bf16 %v9837_v17  ;;  %9221 = vmatmul.msk.bf16.vlgmr.msrb.gmra.mxu0 %vm15351_vm12, %v9670_v22  ;;  %v4555_v54 = vpop.f32.mrf.mxu2  ;;  %vm15358_vm12 = vcmask 519168  }
 0x389   : > { %v12895_v6 = vadd.f32 %v4555_v54, %v12460_v43  ;;  %v15356_v43 = vld [vmem:[#allocation8_spill] sm:$0xff] }
 0x38a   : > { %v6201_v58 = vsel %vm15352_vm13, %v12379_v23, %v9839_v44  ;;  %v6200_v15 = vsel %vm15353_vm7, %v12394_v31, %v9838_v7  ;;  %9245 = vmatmul.msk.bf16.vlgmr.msrb.gmra.mxu1 %vm15355_vm4, %v6490_v26  ;;  %v5274_v22 = vsel %vm15036_vm8, %v15356_v43, 0  ;;  %vm15357_vm13 = vsmask.f32 7424  ;;  %v12911_v3 = vpop.f32.mrf.mxu0  ;;  %vm15359_vm4 = vmmov %vm15358_vm12  ;;  %v9671_v43 = vld [vmem:[#allocation2 + $0xc] sm:$0xff] }
 0x38b   : > { %v6217_v48 = vpack.c.bf16 %v6201_v58, %v6201_v58  ;;  %v6216_v57 = vpack.c.bf16 %v6200_v15, %v6200_v15  ;;  %v5358_v23 = vsel %vm15357_vm13, %v5353_v19, %v5357_v14  ;;  %v5314_v31 = vunpack.c.l.b16 %v5275_v42 }
 0x38c   : > { %v5313_v17 = vunpack.c.l.b16 %v5274_v22  ;;  %v6494_v44 = vrot.slane %v6492_v28, 3  ;;  %v6497_v7 = vrot.slane %v6495_v53, 4  ;;  %vm15360_vm13 = vnez %v14674_v37 }
 0x38d   : > { %6232 = vst.msk [vmem:[#allocation2 + $0x1c] sm:$0xf] %vm15358_vm12, %v6216_v57  ;;  %9135 = vmatmul.msk.bf16.gmra.mxu2 %vm15353_vm7, %v5358_v23  ;;  %v12915_v26 = vpop.f32.mrf.mxu1  ;;  %v6454_v57 = vunpack.c.l.b16 %v6266_v29  ;;  %vm15361_vm12 = vmmov %vm15353_vm7 }
 0x38e   : > { %6233 = vst.msk [vmem:[#allocation2 + $0x20] sm:$0xf] %vm15359_vm4, %v6217_v48  ;;  %v12917_v54 = vpack.c.b16 %v5314_v31, %v5313_v17  ;;  %v12924_v59 = vor.u32 %v6497_v7, %v6494_v44  ;;  %vm15362_vm4 = vsmask.f32 4352 }
 0x390   : > { %v4558_v4 = vpop.f32.mrf.mxu2  ;;  %v5363_v28 = vshll.u32 %v12917_v54, 16  ;;  %v6499_v7 = vsel %vm15362_vm4, %v6489_v46, %v12924_v59  ;;  %v5367_v51 = vshrl.u32 %v12917_v54, 16 }
 0x391   : > { %v12922_v58 = vadd.f32 %v4558_v4, %v12484_v1  ;;  %v9842_v15 = vpop.permute.xlu2 %9841 }
 0x392   : > { %v9844_v42 = vunpack.i.h.bf16 %v9842_v15  ;;  %v9843_v19 = vunpack.i.l.bf16 %v9842_v15  ;;  %v5359_v15 = vshrl.u32 %v12872_v50, 16 }
 0x393   : > { %v12929_v22 = vpop.f32.mrf.mxu0 }
 0x394   : > { %v6250_v48 = vld [vmem:[#allocation2 + $0x1c] sm:$0xf]  ;;  %v6203_v23 = vsel %vm15361_vm12, %v12538_v11, %v9844_v42  ;;  %v6202_v1 = vsel %vm15353_vm7, %v12532_v41, %v9843_v19  ;;  %v15366_v41 = vld [vmem:[#allocation47_spill] sm:$0xff]  ;;  %vm15368_vm7 = vmmov %vm15363_vm5  ;;  %v5361_v46 = vor.u32 %v5359_v15, %v5357_v14 }
 0x395   : > { %v6267_v53 = vsel %vm15360_vm13, %v6250_v48, 0  ;;  %v6219_v39 = vpack.c.bf16 %v6203_v23, %v6203_v23  ;;  %v6218_v17 = vpack.c.bf16 %v6202_v1, %v6202_v1  ;;  %v12935_v44 = vpop.f32.mrf.mxu1  ;;  %v5365_v48 = vrot.slane %v5363_v28, 1  ;;  %v6251_v28 = vld [vmem:[#allocation2 + $0x20] sm:$0xf]  ;;  %v15523_v42 = vld [vmem:[#allocation72_spill] sm:$0xff] }
 0x396   : > { %v6455_v31 = vunpack.c.l.b16 %v6267_v53  ;;  %vm15364_vm13 = vcmask 519168   ;;  %v5277_v19 = vsel %vm15051_vm2, %v15366_v41, 0  ;;  %v15369_v53 = vld [vmem:[#allocation39_spill] sm:$0xff] }
 0x397   : > { %6234 = vst.msk [vmem:[#allocation2 + $0x24] sm:$0xf] %vm15364_vm13, %v6218_v17  ;;  %vm15365_vm12 = vmmov %vm15364_vm13  ;;  %v5276_v50 = vsel %vm15048_vm1, %v15369_v53, 0  ;;  %vm15372_vm13 = vcmask 261120  }
 0x398   : > { %v6468_v4 = vpack.c.b16 %v6455_v31, %v6454_v57  ;;  %9222 = vmatmul.msk.bf16.gmra.mxu0 %vm15363_vm5, %v9671_v43  ;;  %v4560_v29 = vpop.f32.mrf.mxu2  ;;  %6235 = vst.msk [vmem:[#allocation2 + $0x28] sm:$0xf] %vm15365_vm12, %v6219_v39  ;;  %vm15371_vm5 = vsmask.f32 7424  ;;  %v5315_v39 = vunpack.c.l.b16 %v5276_v50  ;;  %vm15377_vm4 = vmmov %vm15372_vm13 }
 0x399   : > { %v12943_v11 = vadd.f32 %v4560_v29, %v12534_v5  ;;  %v5366_v1 = vsel %vm15371_vm5, %v5361_v46, %v5365_v48  ;;  %v5316_v5 = vunpack.c.l.b16 %v5277_v19  ;;  %v6268_v29 = vsel %vm15027_vm15, %v6251_v28, 0  ;;  %vm15378_vm12 = vmmov %vm15377_vm4 }
 0x39a   : > { %9246 = vmatmul.msk.bf16.gmra.mxu1 %vm15368_vm7, %v6499_v7  ;;  %v6501_v57 = vshrl.u32 %v6468_v4, 16  ;;  %v6504_v43 = vshll.u32 %v6468_v4, 16  ;;  %v6456_v49 = vunpack.c.l.b16 %v6268_v29  ;;  %vm15379_vm7 = vsmask.f32 4352 }
 0x39b   : > { %v12954_v31 = vpop.f32.mrf.mxu0  ;;  %v12961_v37 = vpack.c.b16 %v5316_v5, %v5315_v39  ;;  %v15375_v39 = vld [vmem:[#allocation24_spill] sm:$0xff]  ;;  %vm15380_vm5 = vcmask 523264   ;;  %vm15412_vm15 = vcmask 523264  }
 0x39c   : > { %v6503_v14 = vrot.slane %v6501_v57, 3  ;;  %v6506_v4 = vrot.slane %v6504_v43, 4  ;;  %v9667_v57 = vld [vmem:[%s14222_s8 + $0x8] sm:$0xff]  ;;  %v9672_v43 = vld [vmem:[#allocation2 + $0x14] sm:$0xff]  ;;  %v5958_v53 = vrot.slane %v15375_v39, 7 }
 0x39d   : > { %9136 = vmatmul.msk.bf16.gmra.mxu2 %vm15372_vm13, %v5366_v1  ;;  %v12959_v7 = vpop.f32.mrf.mxu1  ;;  %v5371_v5 = vshll.u32 %v12961_v37, 16  ;;  %5610 = vmatpush.bf16.msrb.mxu3 %v9667_v57  ;;  %vm15381_vm13 = vcmask 519168   ;;  %v15388_v57 = vld [vmem:[#allocation82_spill] sm:$0xff] }
 0x39e   : > { %v6252_v15 = vld [vmem:[#allocation2 + $0x24] sm:$0xf]  ;;  %v12968_v34 = vor.u32 %v6506_v4, %v6503_v14 }
 0x39f   : > { %v6269_v46 = vsel %vm15031_vm11, %v6252_v15, 0  ;;  %v15376_v15 = vld [vmem:[#allocation52_spill] sm:$0xff]  ;;  %v5373_v20 = vrot.slane %v5371_v5, 1  ;;  %v15390_v5 = vld [vmem:[#allocation81_spill] sm:$0xff] }
 0x3a0   : > { %v4563_v41 = vpop.f32.mrf.mxu2  ;;  %v6457_v1 = vunpack.c.l.b16 %v6269_v46  ;;  %v6508_v63 = vsel %vm15379_vm7, %v12924_v59, %v12968_v34  ;;  %vm15387_vm7 = vmmov %vm15381_vm13 }
 0x3a1   : > { %v12966_v19 = vadd.f32 %v4563_v41, %v12586_v52 }
 0x3a2   : > { %v6469_v4 = vpack.c.b16 %v6457_v1, %v6456_v49 }
 0x3a3   : > { %v9847_v50 = vpop.permute.xlu2 %9846  ;;  %v12976_v52 = vpop.f32.mrf.mxu0 }
 0x3a4   : > { %v9849_v28 = vunpack.i.h.bf16 %v9847_v50  ;;  %v9848_v17 = vunpack.i.l.bf16 %v9847_v50  ;;  %v6510_v59 = vshrl.u32 %v6469_v4, 16 }
 0x3a5   : > { %v12982_v50 = vpop.f32.mrf.mxu1 }
 0x3a6   : > { %v6205_v29 = vsel %vm15377_vm4, %v12638_v27, %v9849_v28  ;;  %v6204_v14 = vsel %vm15378_vm12, %v12628_v25, %v9848_v17  ;;  %v15382_v25 = vrot.slane %v12588_v16, 7  ;;  %vm15383_vm4 = vcmask 1040384  }
 0x3a7   : > { %v6221_v41 = vpack.c.bf16 %v6205_v29, %v6205_v29  ;;  %v6220_v46 = vpack.c.bf16 %v6204_v14, %v6204_v14  ;;  %v15384_v27 = vrot.slane %v15376_v15, 7  ;;  %vm15385_vm12 = vmmov %vm15383_vm4  ;;  %v6513_v28 = vshll.u32 %v6469_v4, 16  ;;  %v15391_v29 = vld [vmem:[#allocation66_spill] sm:$0xff] }
 0x3a8   : > { %9223 = vmatmul.msk.bf16.gmra.mxu0 %vm15380_vm5, %v9672_v43  ;;  %v4565_v35 = vpop.f32.mrf.mxu2  ;;  %v5959_v49 = vsel %vm15383_vm4, %v15382_v25, %v5958_v53  ;;  %v5279_v43 = vsel %vm15070_vm0, %v15388_v57, 0  ;;  %v5369_v16 = vor.u32 %v5367_v51, %v5365_v48  ;;  %v6253_v25 = vld [vmem:[#allocation2 + $0x28] sm:$0xf]  ;;  %v6512_v51 = vrot.slane %v6510_v59, 3 }
 0x3a9   : > { %6236 = vst.msk [vmem:[#allocation2 + $0x2c] sm:$0xf] %vm15381_vm13, %v6220_v46  ;;  %v5961_v17 = vsel %vm15385_vm12, %v5958_v53, %v15384_v27  ;;  %v12997_v1 = vadd.f32 %v4565_v35, %v12633_v10  ;;  %vm15392_vm13 = vnez %v15391_v29  ;;  %v15393_v53 = vld [vmem:[#allocation14_spill] sm:$0xff]  ;;  %v15395_v35 = vld [vmem:[#allocation25_spill] sm:$0xff]  ;;  %v5318_v46 = vunpack.c.l.b16 %v5279_v43 }
 0x3aa   : > { %6237 = vst.msk [vmem:[#allocation2 + $0x30] sm:$0xf] %vm15387_vm7, %v6221_v41  ;;  %9247 = vmatmul.msk.bf16.gmra.mxu1 %vm15380_vm5, %v6508_v63  ;;  %v5278_v14 = vsel %vm15392_vm13, %v15390_v5, 0  ;;  %vm15394_vm4 = vnez %v15393_v53  ;;  %vm15396_vm12 = vnez %v15395_v35  ;;  %vm15397_vm7 = vsmask.f32 7424  ;;  %v15401_v43 = vld [vmem:[#allocation22_spill] sm:$0xff] }
 0x3ab   : > { %15386 = vst [vmem:[#allocation76_spill] sm:$0xff] %v12997_v1  ;;  %v5995_v10 = vsel %vm15394_vm4, %v5959_v49, %v15375_v39  ;;  %v5996_v41 = vsel %vm15396_vm12, %v5961_v17, %v15376_v15  ;;  %v5374_v4 = vsel %vm15397_vm7, %v5369_v16, %v5373_v20  ;;  %v13014_v27 = vpop.f32.mrf.mxu0  ;;  %vm15398_vm5 = vcmask 261120   ;;  %v15399_v49 = vld [vmem:[#allocation21_spill] sm:$0xff] }
 0x3ac   : > { %v6515_v63 = vrot.slane %v6513_v28, 4  ;;  %v5317_v48 = vunpack.c.l.b16 %v5278_v14  ;;  %v6011_v57 = vmul.f32 0.25, %v5995_v10  ;;  %v6012_v5 = vmul.f32 0.25, %v5996_v41  ;;  %v15404_v28 = vld [vmem:[#allocation71_spill] sm:$0xff]  ;;  %v15405_v10 = vld [vmem:[#allocation78_spill] sm:$0xff] }
 0x3ad   : > { %9137 = vmatmul.msk.bf16.gmra.mxu2 %vm15398_vm5, %v5374_v4  ;;  %v13017_v30 = vpop.f32.mrf.mxu1  ;;  %vm15400_vm4 = vnez %v15399_v49  ;;  %vm15402_vm12 = vnez %v15401_v43  ;;  %vm15406_vm7 = vsmask.f32 4352 }
 0x3ae   : > { %v6270_v53 = vsel %vm15400_vm4, %v6253_v25, 0  ;;  %v13021_v35 = vpack.c.b16 %v5318_v46, %v5317_v48  ;;  %v13028_v59 = vor.u32 %v6515_v63, %v6512_v51  ;;  %v6027_v14 = vadd.f32 %v6011_v57, %v15404_v28  ;;  %v9673_v48 = vld [vmem:[#allocation2 + $0x1c] sm:$0xff] }
 0x3af   : > { %v6028_v41 = vadd.f32 %v6012_v5, %v15405_v10  ;;  %v6458_v4 = vunpack.c.l.b16 %v6270_v53  ;;  %v5962_v25 = vrot.slane %v12546_v36, 7  ;;  %v5375_v51 = vshrl.u32 %v12961_v37, 16 }
 0x3b0   : > { %v6254_v39 = vld [vmem:[#allocation2 + $0x2c] sm:$0xf]  ;;  %v4568_v17 = vpop.f32.mrf.mxu2  ;;  %v5379_v43 = vshll.u32 %v13021_v35, 16  ;;  %v6517_v63 = vsel %vm15406_vm7, %v12968_v34, %v13028_v59  ;;  %vm15409_vm4 = vcmask 1040384   ;;  %v15410_v37 = vrot.slane %v12640_v32, 7  ;;  %vm15417_vm7 = vmmov %vm15412_vm15 }
 0x3b1   : > { %v6271_v16 = vsel %vm15402_vm12, %v6254_v39, 0  ;;  %v13026_v54 = vadd.f32 %v4568_v17, %v12678_v60  ;;  %vm15407_vm12 = vmmov %vm15398_vm5  ;;  %v5264_v17 = vld [vmem:[#allocation2 + $0x48] sm:$0xf] }
 0x3b2   : > { %v6459_v29 = vunpack.c.l.b16 %v6271_v16  ;;  %v9852_v1 = vpop.permute.xlu0 %9851  ;;  %vm15411_vm11 = vmmov %vm15409_vm4 }
 0x3b3   : > { %15403 = vst [vmem:[#allocation60_spill] sm:$0xff] %v13026_v54  ;;  %v9854_v39 = vunpack.i.h.bf16 %v9852_v1  ;;  %v9853_v49 = vunpack.i.l.bf16 %v9852_v1  ;;  %v13035_v60 = vpop.f32.mrf.mxu0  ;;  %v15408_v1 = vrot.slane %v15376_v15, 7  ;;  %v5965_v54 = vsel %vm15411_vm11, %v5962_v25, %v15410_v37 }
 0x3b4   : > { %v6470_v53 = vpack.c.b16 %v6459_v29, %v6458_v4 }
 0x3b5   : > { %v6207_v57 = vsel %vm15398_vm5, %v6028_v41, %v9854_v39  ;;  %v6206_v5 = vsel %vm15407_vm12, %v6027_v14, %v9853_v49  ;;  %v13043_v16 = vpop.f32.mrf.mxu1  ;;  %v5963_v46 = vsel %vm15409_vm4, %v15408_v1, %v5962_v25  ;;  %v13052_v41 = vrot.slane %v5379_v43, 1  ;;  %v15415_v14 = vld [vmem:[#allocation48_spill] sm:$0xff] }
 0x3b6   : > { %v6223_v28 = vpack.c.bf16 %v6207_v57, %v6207_v57  ;;  %v6222_v10 = vpack.c.bf16 %v6206_v5, %v6206_v5  ;;  %v5377_v49 = vor.u32 %v5375_v51, %v5373_v20  ;;  %vm15414_vm12 = vcmask 519168   ;;  %v15421_v20 = vld [vmem:[#allocation31_spill] sm:$0xff] }
 0x3b7   : > { %v5280_v15 = vsel %vm15277_vm3, %v15415_v14, 0  ;;  %vm15416_vm4 = vnez %v15272_v38  ;;  %vm15418_vm11 = vmmov %vm15414_vm12  ;;  %v6519_v25 = vshrl.u32 %v6470_v53, 16  ;;  %v6522_v43 = vshll.u32 %v6470_v53, 16  ;;  %v6255_v53 = vld [vmem:[#allocation2 + $0x30] sm:$0xf] }
 0x3b8   : > { %9224 = vmatmul.msk.bf16.gmra.mxu0 %vm15412_vm15, %v9673_v48  ;;  %v4570_v34 = vpop.f32.mrf.mxu2  ;;  %6238 = vst.msk [vmem:[#allocation2 + $0x34] sm:$0xf] %vm15414_vm12, %v6222_v10  ;;  %v5281_v4 = vsel %vm15416_vm4, %v5264_v17, 0  ;;  %v15419_v48 = vld [vmem:[#allocation26_spill] sm:$0xff]  ;;  %vm15422_vm5 = vnez %v15421_v20  ;;  %vm15423_vm12 = vsmask.f32 7424  ;;  %v5319_v57 = vunpack.c.l.b16 %v5280_v15 }
 0x3b9   : > { %v13055_v29 = vadd.f32 %v4570_v34, %v12706_v40  ;;  %6239 = vst.msk [vmem:[#allocation2 + $0x38] sm:$0xf] %vm15418_vm11, %v6223_v28  ;;  %vm15420_vm15 = vnez %v15419_v48  ;;  %v5998_v39 = vsel %vm15422_vm5, %v5965_v54, %v12640_v32  ;;  %v5382_v51 = vsel %vm15423_vm12, %v5377_v49, %v13052_v41  ;;  %v15427_v15 = vld [vmem:[#allocation11_spill] sm:$0xff]  ;;  %v15428_v48 = vld [vmem:[#allocation33_spill] sm:$0xff] }
 0x3ba   : > { %9248 = vmatmul.msk.bf16.gmra.mxu1 %vm15417_vm7, %v6517_v63  ;;  %v5997_v40 = vsel %vm15420_vm15, %v5963_v46, %v12546_v36  ;;  %v5320_v5 = vunpack.c.l.b16 %v5281_v4  ;;  %vm15424_vm7 = vcmask 261120   ;;  %v6014_v28 = vmul.f32 0.25, %v5998_v39  ;;  %v6652_v38 = vld [vmem:[#allocation2 + $0x8] sm:$0xf] }
 0x3bb   : > { %15413 = vst [vmem:[#allocation62_spill] sm:$0xff] %v13055_v29  ;;  %v13073_v17 = vpop.f32.mrf.mxu0  ;;  %v6013_v63 = vmul.f32 0.25, %v5997_v40  ;;  %v6521_v10 = vrot.slane %v6519_v25, 3  ;;  %v6524_v1 = vrot.slane %v6522_v43, 4  ;;  %vm15425_vm11 = vnez %v15256_v24  ;;  %vm15431_vm5 = vmmov %vm15424_vm7 }
 0x3bc   : > { %v13078_v46 = vpack.c.b16 %v5320_v5, %v5319_v57  ;;  %v6272_v34 = vsel %vm15425_vm11, %v6255_v53, 0  ;;  %v6030_v4 = vadd.f32 %v6014_v28, %v15427_v15  ;;  %vm15429_vm15 = vnez %v15428_v48  ;;  %v9696_v5 = vld [vmem:[%s14224_s10 + $0x58] sm:$0xff]  ;;  %v13098_v28 = vpop.f32.mrf.mxu3  ;;  %vm15432_vm12 = vmmov %vm15431_vm5 }
 0x3bd   : > { %9138 = vmatmul.msk.bf16.gmra.mxu2 %vm15424_vm7, %v5382_v51  ;;  %v13076_v37 = vpop.f32.mrf.mxu1  ;;  %v6029_v14 = vadd.f32 %v6013_v63, %v12659_v55  ;;  %v13089_v43 = vor.u32 %v6524_v1, %v6521_v10  ;;  %v6460_v51 = vunpack.c.l.b16 %v6272_v34  ;;  %v9666_v55 = vld [vmem:[%s14222_s8] sm:$0xff]  ;;  %vm15434_vm7 = vsmask.f32 4352 }
 0x3be   : > { %v5387_v63 = vshll.u32 %v13078_v46, 16  ;;  %6857 = vmatpush.bf16.msra.mxu2 %v9696_v5  ;;  %5611 = vmatpush.bf16.msrb.mxu3 %v9666_v55  ;;  %v5383_v24 = vshrl.u32 %v13021_v35, 16  ;;  %vm15467_vm4 = vcmask 1046528   ;;  %vm15473_vm3 = vcmask 261120  }
 0x3bf   : > { %v6256_v54 = vld [vmem:[#allocation2 + $0x34] sm:$0xf] }
 0x3c0   : > { %v4573_v36 = vpop.f32.mrf.mxu2  ;;  %v6273_v25 = vsel %vm15429_vm15, %v6256_v54, 0  ;;  %vm15435_vm15 = vcmask 523264  }
 0x3c1   : > { %v13083_v49 = vadd.f32 %v4573_v36, %v12736_v12  ;;  %v6461_v57 = vunpack.c.l.b16 %v6273_v25  ;;  %v9674_v12 = vld [vmem:[#allocation2 + $0x24] sm:$0xff]  ;;  %v5265_v36 = vld [vmem:[#allocation2 + $0x4c] sm:$0x1]  ;;  %v6526_v25 = vsel %vm15434_vm7, %v13028_v59, %v13089_v43  ;;  %v9695_v59 = vld [vmem:[%s14224_s10 + $0x50] sm:$0xff] }
 0x3c2   : > { %vm15442_vm7 = vmmov %vm15435_vm15  ;;  %6858 = vmatpush.bf16.msra.mxu2 %v9695_v59 }
 0x3c3   : > { %15426 = vst [vmem:[#allocation12_spill] sm:$0xff] %v13083_v49  ;;  %v5899_v49 = vld [vmem:[#allocation2 + $0x48] sm:$0x1] }
 0x3c4   : > { %v9857_v40 = vpop.permute.xlu1 %9856 }
 0x3c5   : > { %v9859_v20 = vunpack.i.h.bf16 %v9857_v40  ;;  %v9858_v39 = vunpack.i.l.bf16 %v9857_v40  ;;  %v13100_v53 = vpop.f32.mrf.mxu0  ;;  %v6471_v40 = vpack.c.b16 %v6461_v57, %v6460_v51  ;;  %v5385_v51 = vor.u32 %v5383_v24, %v13052_v41 }
 0x3c6   : > { %15430 = vst [vmem:[#allocation13_spill] sm:$0xff] %v13100_v53  ;;  %v15465_v53 = vld [vmem:[#allocation10_spill] sm:$0xff] }
 0x3c7   : > { %v6209_v10 = vsel %vm15431_vm5, %v6030_v4, %v9859_v20  ;;  %v6208_v1 = vsel %vm15432_vm12, %v6029_v14, %v9858_v39  ;;  %v13104_v15 = vpop.f32.mrf.mxu1  ;;  %v5389_v4 = vrot.slane %v5387_v63, 1  ;;  %vm15436_vm5 = vcmask 519168   ;;  %v15437_v14 = vld [vmem:[#allocation75_spill] sm:$0xff]  ;;  %v15439_v39 = vld [vmem:[#allocation53_spill] sm:$0xff] }
 0x3c8   : > { %v6225_v54 = vpack.c.bf16 %v6209_v10, %v6209_v10  ;;  %v6224_v34 = vpack.c.bf16 %v6208_v1, %v6208_v1  ;;  %15433 = vst [vmem:[#allocation55_spill] sm:$0xff] %v13104_v15  ;;  %9225 = vmatmul.msk.bf16.gmra.mxu0 %vm15435_vm15, %v9674_v12  ;;  %v4575_v48 = vpop.f32.mrf.mxu2  ;;  %vm15438_vm12 = vnez %v15437_v14  ;;  %vm15441_vm11 = vmmov %vm15436_vm5  ;;  %v6528_v35 = vshrl.u32 %v6471_v40, 16  ;;  %v9694_v12 = vld [vmem:[%s14224_s10 + $0x48] sm:$0xff]  ;;  %v6257_v10 = vld [vmem:[#allocation2 + $0x38] sm:$0xf]  ;;  %v13130_v1 = vpop.f32.mrf.mxu3 }
 0x3c9   : > { %v5282_v20 = vsel %vm15438_vm12, %v5265_v36, 0  ;;  %v13115_v5 = vadd.f32 %v4575_v48, %v15439_v39  ;;  %v6531_v57 = vshll.u32 %v6471_v40, 16  ;;  %vm15443_vm15 = vsmask.f32 7424  ;;  %6859 = vmatpush.bf16.msra.mxu2 %v9694_v12  ;;  %v15447_v40 = vld [vmem:[#allocation40_spill] sm:$0xff]  ;;  %v15449_v39 = vld [vmem:[#allocation41_spill] sm:$0xff] }
 0x3ca   : > { %6240 = vst.msk [vmem:[#allocation2 + $0x3c] sm:$0xf] %vm15436_vm5, %v6224_v34  ;;  %9249 = vmatmul.msk.bf16.gmra.mxu1 %vm15442_vm7, %v6526_v25  ;;  %v5321_v55 = vunpack.c.l.b16 %v5282_v20  ;;  %v5390_v48 = vsel %vm15443_vm15, %v5385_v51, %v5389_v4  ;;  %v6530_v24 = vrot.slane %v6528_v35, 3  ;;  %vm15448_vm5 = vnez %v15447_v40  ;;  %v15451_v51 = vld [vmem:[#allocation54_spill] sm:$0xff] }
 0x3cb   : > { %15440 = vst [vmem:[#allocation59_spill] sm:$0xff] %v13115_v5  ;;  %v6533_v41 = vrot.slane %v6531_v57, 4  ;;  %v6274_v20 = vsel %vm15448_vm5, %v6257_v10, 0  ;;  %vm15450_vm7 = vnez %v15449_v39  ;;  %v9675_v5 = vld [vmem:[#allocation2 + $0x2c] sm:$0xff]  ;;  %v6651_v40 = vld [vmem:[#allocation2 + $0x4] sm:$0xf]  ;;  %v5900_v10 = vunpack.c.l.bf16 %v5899_v49 }
 0x3cc   : > { %6241 = vst.msk [vmem:[#allocation2 + $0x40] sm:$0xf] %vm15441_vm11, %v6225_v54  ;;  %vm15445_vm11 = vcmask 261120   ;;  %v5330_v54 = vpack.c.b16 %v5321_v55, %v5321_v55  ;;  %v6462_v55 = vunpack.c.l.b16 %v6274_v20  ;;  %v6653_v39 = vld [vmem:[#allocation2 + $0xc] sm:$0xf]  ;;  %vm15464_vm12 = vcmask 523264  }
 0x3cd   : > { %v13127_v63 = vpop.f32.mrf.mxu0  ;;  %9139 = vmatmul.msk.bf16.gmra.mxu2 %vm15445_vm11, %v5390_v48  ;;  %v9693_v48 = vld [vmem:[%s14224_s10 + $0x40] sm:$0xff]  ;;  %v13144_v35 = vor.u32 %v6533_v41, %v6530_v24  ;;  %v6065_v41 = vrot.slane %v5900_v10, 1  ;;  %v13164_v29 = vmul.f32 0.75, %v15465_v53 }
 0x3ce   : > { %15444 = vst [vmem:[#allocation64_spill] sm:$0xff] %v13127_v63  ;;  %v5395_v57 = vshll.u32 %v5330_v54, 16  ;;  %6860 = vmatpush.bf16.msra.mxu2 %v9693_v48  ;;  %v15458_v54 = vld [vmem:[#allocation45_spill] sm:$0xff] }
 0x3cf   : > { %v13132_v36 = vpop.f32.mrf.mxu1 }
 0x3d0   : > { %15446 = vst [vmem:[#allocation69_spill] sm:$0xff] %v13132_v36  ;;  %v4578_v25 = vpop.f32.mrf.mxu2  ;;  %v15456_v36 = vld [vmem:[#allocation44_spill] sm:$0xff]  ;;  %v5397_v10 = vrot.slane %v5395_v57, 1 }
 0x3d1   : > { %v6258_v34 = vld [vmem:[#allocation2 + $0x3c] sm:$0xf]  ;;  %v13139_v14 = vadd.f32 %v4578_v25, %v15451_v51  ;;  %v5391_v25 = vshrl.u32 %v13078_v46, 16  ;;  %v15454_v51 = vld [vmem:[#allocation43_spill] sm:$0xff]  ;;  %vm15457_vm11 = vnez %v15456_v36  ;;  %v6535_v46 = vsel %vm15463_vm14, %v13089_v43, %v13144_v35  ;;  %v15469_v43 = vld [vmem:[#allocation70_spill] sm:$0xff] }
 0x3d2   : > { %v6275_v59 = vsel %vm15450_vm7, %v6258_v34, 0  ;;  %v6654_v34 = vld [vmem:[#allocation2 + $0x10] sm:$0xf]  ;;  %vm15455_vm15 = vnez %v15454_v51  ;;  %v6669_v24 = vsel %vm15457_vm11, %v6652_v38, 0  ;;  %vm15459_vm7 = vnez %v15458_v54  ;;  %v6658_v36 = vld [vmem:[#allocation2 + $0x20] sm:$0xf] }
 0x3d3   : > { %15452 = vst [vmem:[#allocation56_spill] sm:$0xff] %v13139_v14  ;;  %v6463_v12 = vunpack.c.l.b16 %v6275_v59  ;;  %v6668_v14 = vsel %vm15455_vm15, %v6651_v40, 0  ;;  %v6670_v20 = vsel %vm15459_vm7, %v6653_v39, 0  ;;  %v15460_v59 = vld [vmem:[#allocation46_spill] sm:$0xff]  ;;  %v6712_v63 = vunpack.c.l.b16 %v6669_v24 }
 0x3d4   : > { %vm15461_vm5 = vnez %v15460_v59  ;;  %v6711_v48 = vunpack.c.l.b16 %v6668_v14  ;;  %v5393_v38 = vor.u32 %v5391_v25, %v5389_v4  ;;  %v15466_v39 = vrot.slane %v15465_v53, 1  ;;  %v9677_v51 = vld [vmem:[#allocation2 + $0x3c] sm:$0xff] }
 0x3d5   : > { %v13146_v45 = vpop.f32.mrf.mxu0  ;;  %v6671_v49 = vsel %vm15461_vm5, %v6654_v34, 0  ;;  %v13169_v34 = vpop.f32.mrf.mxu3  ;;  %vm15470_vm14 = vnez %v15469_v43  ;;  %v15475_v43 = vld [vmem:[#allocation42_spill] sm:$0xff] }
 0x3d6   : > { %15453 = vst [vmem:[#allocation49_spill] sm:$0xff] %v13146_v45  ;;  %v6472_v45 = vpack.c.b16 %v6463_v12, %v6462_v55  ;;  %v6066_v14 = vsel %vm15467_vm4, %v15466_v39, %v6065_v41  ;;  %v6714_v12 = vunpack.c.l.b16 %v6671_v49  ;;  %v6728_v57 = vpack.c.b16 %v6712_v63, %v6711_v48  ;;  %v9705_v41 = vld [vmem:[%s14224_s10 + $0x98] sm:$0xff] }
 0x3d7   : > { %v13157_v15 = vpop.f32.mrf.mxu1  ;;  %v6098_v55 = vsel %vm15470_vm14, %v6066_v14, %v15465_v53  ;;  %vm15471_vm4 = vsmask.f32 7424  ;;  %7283 = vmatpush.bf16.msra.mxu0 %v9705_v41  ;;  %vm15476_vm14 = vnez %v15475_v43 }
 0x3d8   : > { %15462 = vst [vmem:[#allocation57_spill] sm:$0xff] %v13157_v15  ;;  %9226 = vmatmul.msk.bf16.gmra.mxu0 %vm15464_vm12, %v9675_v5  ;;  %v4580_v40 = vpop.f32.mrf.mxu2  ;;  %v6713_v5 = vunpack.c.l.b16 %v6670_v20  ;;  %v6114_v4 = vmul.f32 0.25, %v6098_v55  ;;  %v6537_v25 = vshrl.u32 %v6472_v45, 16  ;;  %v6540_v24 = vshll.u32 %v6472_v45, 16 }
 0x3d9   : > { %v13172_v15 = vadd.f32 %v4580_v40, %v12834_v8  ;;  %v5398_v39 = vsel %vm15471_vm4, %v5393_v38, %v5397_v10  ;;  %v6740_v49 = vshll.u32 %v6728_v57, 16  ;;  %v6738_v55 = vshrl.u32 %v6728_v57, 16  ;;  %v6655_v57 = vld [vmem:[#allocation2 + $0x14] sm:$0xf] }
 0x3da   : > { %9250 = vmatmul.msk.bf16.gmra.mxu1 %vm15464_vm12, %v6535_v46  ;;  %v6130_v8 = vadd.f32 %v6114_v4, %v13164_v29  ;;  %v13186_v20 = vpack.c.b16 %v6714_v12, %v6713_v5  ;;  %v6539_v45 = vrot.slane %v6537_v25, 3  ;;  %v6542_v48 = vrot.slane %v6540_v24, 4  ;;  %v6259_v46 = vld [vmem:[#allocation2 + $0x40] sm:$0xf]  ;;  %v9704_v12 = vld [vmem:[%s14224_s10 + $0x90] sm:$0xff]  ;;  %v9716_v25 = vld [vmem:[%s14224_s10 + $0xb8] sm:$0xff] }
 0x3db   : > { %15468 = vst [vmem:[#allocation61_spill] sm:$0xff] %v13172_v15  ;;  %v6276_v38 = vsel %vm15476_vm14, %v6259_v46, 0  ;;  %v6742_v4 = vrot.slane %v6740_v49, 1  ;;  %7284 = vmatpush.bf16.msra.mxu0 %v9704_v12  ;;  %7550 = vmatpush.bf16.msra.mxu1 %v9716_v25  ;;  %v6656_v49 = vld [vmem:[#allocation2 + $0x18] sm:$0xf]  ;;  %v9715_v46 = vld [vmem:[%s14224_s10 + $0xb0] sm:$0xff] }
 0x3dc   : > { %6177 = vrot.lane.b32.xlu2 %v6130_v8, %s9939_s15  ;;  %v6745_v5 = vshll.u32 %v13186_v20, 16  ;;  %v6464_v24 = vunpack.c.l.b16 %v6276_v38  ;;  %v13205_v8 = vor.u32 %v6542_v48, %v6539_v45  ;;  %v9701_v45 = vld [vmem:[%s14224_s10 + $0x78] sm:$0xff]  ;;  %vm15484_vm14 = vcmask 523264  }
 0x3dd   : > { %v13183_v40 = vpop.f32.mrf.mxu0  ;;  %9140 = vmatmul.msk.bf16.gmra.mxu2 %vm15473_vm3, %v5398_v39  ;;  %v13203_v41 = vpop.f32.mrf.mxu3  ;;  %v9676_v39 = vld [vmem:[#allocation2 + $0x34] sm:$0xff]  ;;  %v6743_v38 = vor.u32 %v6742_v4, %v6738_v55  ;;  %vm15479_vm3 = vsmask.f32 4352  ;;  %v9702_v55 = vld [vmem:[%s14224_s10 + $0x80] sm:$0xff]  ;;  %v9714_v4 = vld [vmem:[%s14224_s10 + $0xa8] sm:$0xff]  ;;  %7121 = vmatpush.bf16.msra.mxu3 %v9701_v45 }
 0x3de   : > { %15472 = vst [vmem:[#allocation79_spill] sm:$0xff] %v13183_v40  ;;  %v6747_v43 = vrot.slane %v6745_v5, 1  ;;  %v6473_v48 = vpack.c.b16 %v6464_v24, %v6464_v24  ;;  %v6544_v25 = vsel %vm15479_vm3, %v13144_v35, %v13205_v8  ;;  %vm15486_vm3 = vsmask.f32 7424  ;;  %vm15487_vm0 = vmmov %vm15484_vm14 }
 0x3df   : > { %v13189_v63 = vpop.f32.mrf.mxu1  ;;  %7551 = vmatpush.bf16.msra.mxu1 %v9715_v46 }
 0x3e0   : > { %15474 = vst [vmem:[#allocation67_spill] sm:$0xff] %v13189_v63  ;;  %v4583_v14 = vpop.f32.mrf.mxu2  ;;  %v15482_v63 = vld [vmem:[#allocation51_spill] sm:$0xff]  ;;  %v6748_v24 = vsel %vm15486_vm3, %v6743_v38, %v6747_v43  ;;  %vm15490_vm3 = vmmov %vm15487_vm0 }
 0x3e1   : > { %v13194_v10 = vadd.f32 %v4583_v14, %v12862_v21  ;;  %v9703_v21 = vld [vmem:[%s14224_s10 + $0x88] sm:$0xff]  ;;  %vm15483_vm4 = vnez %v15482_v63 }
 0x3e2   : > { %v6673_v40 = vsel %vm15483_vm4, %v6656_v49, 0  ;;  %7285 = vmatpush.bf16.msra.mxu0 %v9703_v21  ;;  %v6546_v21 = vshrl.u32 %v6473_v48, 16 }
 0x3e3   : > { %15477 = vst [vmem:[#allocation77_spill] sm:$0xff] %v13194_v10  ;;  %v15480_v10 = vld [vmem:[#allocation50_spill] sm:$0xff]  ;;  %v6716_v46 = vunpack.c.l.b16 %v6673_v40  ;;  %7552 = vmatpush.bf16.msra.mxu1 %v9714_v4 }
 0x3e4   : > { %vm15481_vm12 = vnez %v15480_v10 }
 0x3e5   : > { %v13213_v14 = vpop.f32.mrf.mxu0  ;;  %v6672_v15 = vsel %vm15481_vm12, %v6655_v57, 0  ;;  %v6549_v57 = vshll.u32 %v6473_v48, 16  ;;  %v13246_v45 = vpop.f32.mrf.mxu3 }
 0x3e6   : > { %v6715_v49 = vunpack.c.l.b16 %v6672_v15  ;;  %7286 = vmatpush.bf16.msra.mxu0 %v9702_v55  ;;  %v6548_v15 = vrot.slane %v6546_v21, 3  ;;  %v13256_v55 = vld [vmem:[#allocation2 + $0xc] sm:$0xf]  ;;  %v13266_v21 = vld [vmem:[#allocation2 + $0x14] sm:$0xf] }
 0x3e7   : > { %v13218_v12 = vpop.f32.mrf.mxu1  ;;  %v6551_v40 = vrot.slane %v6549_v57, 4 }
 0x3e8   : > { %15478 = vst [vmem:[#allocation80_spill] sm:$0xff] %v13218_v12  ;;  %9227 = vmatmul.msk.bf16.gmra.mxu0 %vm15484_vm14, %v9676_v39  ;;  %v4585_v5 = vpop.f32.mrf.mxu2  ;;  %v4839_v12 = vadd.f32 %v13098_v28, %v12830_v18  ;;  %v9713_v39 = vld [vmem:[%s14224_s10 + $0xa0] sm:$0xff]  ;;  %v13251_v48 = vpack.c.b16 %v6716_v46, %v6715_v49  ;;  %vm15489_vm14 = vsmask.f32 4352 }
 0x3e9   : > { %v13235_v35 = vadd.f32 %v4585_v5, %v12881_v47  ;;  %v4840_v47 = vadd.f32 %v13130_v1, %v12854_v61  ;;  %7553 = vmatpush.bf16.msra.mxu1 %v9713_v39  ;;  %v13258_v61 = vld [vmem:[#allocation2 + $0x10] sm:$0xf]  ;;  %v7362_v5 = vsel %vm15457_vm11, %v13256_v55, 0 }
 0x3ea   : > { %9251 = vmatmul.msk.bf16.gmra.mxu1 %vm15487_vm0, %v6544_v25  ;;  %v5087_v18 = vadd.f32 %v12887_v33, %v4839_v12  ;;  %v7344_v25 = vld [vmem:[#allocation2 + $0x8] sm:$0xf]  ;;  %v6552_v33 = vor.u32 %v6551_v40, %v6548_v15  ;;  %v6749_v12 = vshrl.u32 %v13186_v20, 16  ;;  %v6753_v57 = vshll.u32 %v13251_v48, 16 }
 0x3eb   : > { %15485 = vst [vmem:[#allocation30_spill] sm:$0xff] %v13235_v35  ;;  %v7361_v1 = vsel %vm15455_vm15, %v7344_v25, 0  ;;  %v7363_v46 = vsel %vm15459_vm7, %v13258_v61, 0  ;;  %v7405_v25 = vunpack.c.l.b16 %v7362_v5 }
 0x3ec   : > { %v5233_v49 = vadd.f32 %v12889_v13, %v5087_v18  ;;  %v7404_v39 = vunpack.c.l.b16 %v7361_v1  ;;  %v13281_v13 = vld [vmem:[%s14221_s7] ss:$0 sm:$0xff]  ;;  %v6553_v18 = vsel %vm15489_vm14, %v13205_v8, %v6552_v33  ;;  %v6751_v1 = vor.u32 %v6749_v12, %v6747_v43 }
 0x3ed   : > { %v13248_v38 = vpop.f32.mrf.mxu0  ;;  %9277 = vmatmul.msk.bf16.vlgmr.msra.gmra.mxu2 %vm15487_vm0, %v6748_v24  ;;  %v5088_v24 = vadd.f32 %v12911_v3, %v4840_v47  ;;  %v7364_v3 = vsel %vm15461_vm5, %v13266_v21, 0  ;;  %v6657_v47 = vld [vmem:[#allocation2 + $0x1c] sm:$0xf]  ;;  %v6755_v5 = vrot.slane %v6753_v57, 1  ;;  %v7406_v54 = vunpack.c.l.b16 %v7363_v46  ;;  %v13287_v59 = vpop.f32.mrf.mxu3 }
 0x3ee   : > { %v4841_v33 = vadd.f32 %v13169_v34, %v12877_v0  ;;  %vm15491_vm14 = vsmask.f32 7424  ;;  %v4842_v0 = vadd.f32 %v13203_v41, %v12895_v6  ;;  %v6757_v41 = vshrl.u32 %v13251_v48, 16 }
 0x3ef   : > { %v13254_v28 = vpop.f32.mrf.mxu1  ;;  %v5234_v15 = vadd.f32 %v12915_v26, %v5088_v24  ;;  %v7421_v26 = vpack.c.b16 %v7405_v25, %v7404_v39  ;;  %v6675_v24 = vsel %vm15186_vm10, %v6658_v36, 0  ;;  %v6756_v12 = vsel %vm15491_vm14, %v6751_v1, %v6755_v5 }
 0x3f0   : > { %15488 = vst [vmem:[#allocation6_spill] sm:$0xff] %v13254_v28  ;;  %v5444_v4 = vpop.f32.mrf.mxu2  ;;  %v7407_v28 = vunpack.c.l.b16 %v7364_v3  ;;  %v6718_v46 = vunpack.c.l.b16 %v6675_v24  ;;  %v13315_v24 = vld [vmem:[#allocation2 + $0x18] sm:$0xf]  ;;  %v6759_v48 = vor.u32 %v6757_v41, %v6755_v5 }
 0x3f1   : > { %v5484_v20 = vadd.f32 %v5444_v4, %v5233_v49  ;;  %v6674_v4 = vsel %vm15189_vm6, %v6657_v47, 0  ;;  %v7433_v36 = vshll.u32 %v7421_v26, 16  ;;  %v7431_v1 = vshrl.u32 %v7421_v26, 16 }
 0x3f2   : > { %v6717_v57 = vunpack.c.l.b16 %v6674_v4  ;;  %v13302_v25 = vpack.c.b16 %v7407_v28, %v7406_v54 }
 0x3f3   : > { %v5504_v8 = vadd.f32 %v13281_v13, %v5484_v20  ;;  %v7435_v54 = vrot.slane %v7433_v36, 1  ;;  %v6660_v36 = vld [vmem:[#allocation2 + $0x28] sm:$0xf] }
 0x3f4   : > { %v13310_v34 = vpack.c.b16 %v6718_v46, %v6717_v57  ;;  %v7438_v28 = vshll.u32 %v13302_v25, 16  ;;  %v9686_v46 = vld [vmem:[#allocation2 + $0x8] sm:$0xff] }
 0x3f5   : > { %v13283_v40 = vpop.f32.mrf.mxu0  ;;  %v5520_v3 = vmax.f32 %v5504_v8, 0.0  ;;  %v13319_v8 = vpop.f32.mrf.mxu3 }
 0x3f6   : > { %v6761_v26 = vshll.u32 %v13310_v34, 16 }
 0x3f7   : > { %v13289_v35 = vpop.f32.mrf.mxu1 }
 0x3f8   : > { %9228 = vmatmul.msk.bf16.gmra.mxu0 %vm15490_vm3, %v9677_v51  ;;  %v5446_v49 = vpop.f32.mrf.mxu2  ;;  %vm15492_vm3 = vmmov %vm15487_vm0 }
 0x3f9   : > { %v5485_v43 = vadd.f32 %v5446_v49, %v5234_v15  ;;  %v5089_v15 = vadd.f32 %v12929_v22, %v4841_v33  ;;  %v13317_v49 = vld [vmem:[#allocation2 + $0x1c] sm:$0xf]  ;;  %v5090_v22 = vadd.f32 %v12954_v31, %v4842_v0  ;;  %v7440_v33 = vrot.slane %v7438_v28, 1  ;;  %v9700_v31 = vld [vmem:[%s14224_s10 + $0x70] sm:$0xff] }
 0x3fa   : > { %9252 = vmatmul.msk.bf16.gmra.mxu1 %vm15487_vm0, %v6553_v18  ;;  %v7366_v57 = vsel %vm15483_vm4, %v13317_v49, 0  ;;  %7122 = vmatpush.bf16.msra.mxu3 %v9700_v31  ;;  %vm15494_vm4 = vmmov %vm15491_vm14 }
 0x3fb   : > { %v5505_v39 = vadd.f32 %v13281_v13, %v5485_v43  ;;  %v5235_v6 = vadd.f32 %v12935_v44, %v5089_v15  ;;  %v7436_v43 = vor.u32 %v7435_v54, %v7431_v1  ;;  %v7409_v0 = vunpack.c.l.b16 %v7366_v57 }
 0x3fc   : > { %v4843_v57 = vadd.f32 %v13246_v45, %v12922_v58 }
 0x3fd   : > { %v5521_v51 = vmax.f32 %v5505_v39, 0.0  ;;  %v13304_v47 = vpop.f32.mrf.mxu0  ;;  %9278 = vmatmul.msk.bf16.gmra.mxu2 %vm15492_vm3, %v6756_v12  ;;  %v7365_v12 = vsel %vm15481_vm12, %v13315_v24, 0  ;;  %v6659_v39 = vld [vmem:[#allocation2 + $0x24] sm:$0xf]  ;;  %v7441_v54 = vsel %vm15491_vm14, %v7436_v43, %v7440_v33  ;;  %vm15493_vm3 = vmmov %vm15487_vm0 }
 0x3fe   : > { %v7408_v15 = vunpack.c.l.b16 %v7365_v12  ;;  %v6676_v28 = vsel %vm15036_vm8, %v6659_v39, 0  ;;  %v4816_v39 = vpop.f32.mrf.mxu3  ;;  %vm15495_vm14 = vmmov %vm15487_vm0 }
 0x3ff   : > { %v5536_v20 = vpack.c.bf16 %v5521_v51, %v5520_v3  ;;  %v13312_v18 = vpop.f32.mrf.mxu1  ;;  %v6763_v51 = vrot.slane %v6761_v26, 1  ;;  %v6719_v43 = vunpack.c.l.b16 %v6676_v28  ;;  %v13366_v28 = vld [vmem:[#allocation2 + $0x24] sm:$0xf] }
 0x400   : > { %v5449_v4 = vpop.f32.mrf.mxu2 }
 0x401   : > { %9157 = vmatmul.msk.bf16.vlgmr.msrb.gmra.mxu3 %vm15487_vm0, %v5536_v20  ;;  %v5486_v44 = vadd.f32 %v5449_v4, %v5235_v6  ;;  %v5236_v20 = vadd.f32 %v12959_v7, %v5090_v22  ;;  %v6677_v4 = vsel %vm15037_vm9, %v6660_v36, 0  ;;  %v6764_v7 = vsel %vm15494_vm4, %v6759_v48, %v6763_v51  ;;  %vm15496_vm4 = vmmov %vm15487_vm0 }
 0x402   : > { %v13347_v22 = vpack.c.b16 %v7409_v0, %v7408_v15  ;;  %v6720_v12 = vunpack.c.l.b16 %v6677_v4  ;;  %v4844_v36 = vadd.f32 %v13287_v59, %v12943_v11  ;;  %v7442_v48 = vshrl.u32 %v13302_v25, 16  ;;  %v13364_v59 = vld [vmem:[#allocation2 + $0x20] sm:$0xf] }
 0x403   : > { %v5506_v41 = vadd.f32 %v13281_v13, %v5486_v44 }
 0x404   : > { %v7446_v15 = vshll.u32 %v13347_v22, 16  ;;  %v13357_v0 = vpack.c.b16 %v6720_v12, %v6719_v43  ;;  %v5092_v11 = vadd.f32 %v13014_v27, %v4844_v36  ;;  %v7444_v25 = vor.u32 %v7442_v48, %v7440_v33  ;;  %v6661_v43 = vld [vmem:[#allocation2 + $0x2c] sm:$0xf]  ;;  %v6662_v12 = vld [vmem:[#allocation2 + $0x30] sm:$0xf] }
 0x405   : > { %v6391_v3 = vpop.f32.mrf.mxu0  ;;  %v7368_v27 = vsel %vm15186_vm10, %v13366_v28, 0 }
 0x406   : > { %v7448_v4 = vrot.slane %v7446_v15, 1  ;;  %v7411_v48 = vunpack.c.l.b16 %v7368_v27  ;;  %v6678_v15 = vsel %vm15048_vm1, %v6661_v43, 0 }
 0x407   : > { %v6611_v1 = vpop.f32.mrf.mxu1 }
 0x408   : > { %9373 = vmatmul.msk.bf16.vlgmr.msra.gmra.mxu0 %vm15493_vm3, %v9686_v46  ;;  %v13342_v6 = vadd.f32 %v6611_v1, %v6391_v3  ;;  %v5451_v5 = vpop.f32.mrf.mxu2  ;;  %v5522_v3 = vmax.f32 %v5506_v41, 0.0  ;;  %v6769_v41 = vshll.u32 %v13357_v0, 16  ;;  %vm15497_vm3 = vsmask.f32 7424 }
 0x409   : > { %v5487_v26 = vadd.f32 %v5451_v5, %v5236_v20  ;;  %v5091_v20 = vadd.f32 %v12976_v52, %v4843_v57  ;;  %v6765_v5 = vshrl.u32 %v13310_v34, 16  ;;  %v13377_v57 = vpop.f32.mrf.mxu3  ;;  %v5238_v34 = vadd.f32 %v13017_v30, %v5092_v11 }
 0x40a   : > { %9405 = vmatmul.msk.bf16.vlgmr.msra.gmra.mxu1 %vm15487_vm0, %v7441_v54  ;;  %v7449_v36 = vsel %vm15497_vm3, %v7444_v25, %v7448_v4  ;;  %v6721_v25 = vunpack.c.l.b16 %v6678_v15  ;;  %v13407_v15 = vld [vmem:[#allocation2 + $0x2c] sm:$0xf] }
 0x40b   : > { %v5507_v46 = vadd.f32 %v13281_v13, %v5487_v26  ;;  %v5237_v52 = vadd.f32 %v12982_v50, %v5091_v20  ;;  %v9687_v26 = vld [vmem:[#allocation2 + $0x10] sm:$0xff]  ;;  %v6767_v50 = vor.u32 %v6765_v5, %v6763_v51  ;;  %v6679_v20 = vsel %vm15051_vm2, %v6662_v12, 0 }
 0x40c   : > { %v4845_v51 = vadd.f32 %v13319_v8, %v12966_v19  ;;  %v6722_v5 = vunpack.c.l.b16 %v6679_v20  ;;  %v15501_v12 = vld [vmem:[#allocation76_spill] sm:$0xff]  ;;  %v6773_v20 = vshrl.u32 %v13357_v0, 16  ;;  %v9699_v0 = vld [vmem:[%s14224_s10 + $0x68] sm:$0xff] }
 0x40d   : > { %v5523_v44 = vmax.f32 %v5507_v46, 0.0  ;;  %v6393_v31 = vpop.f32.mrf.mxu0  ;;  %9279 = vmatmul.msk.bf16.gmra.mxu2 %vm15495_vm14, %v6764_v7  ;;  %v7367_v7 = vsel %vm15189_vm6, %v13364_v59, 0  ;;  %vm15498_vm14 = vmmov %vm15487_vm0  ;;  %7123 = vmatpush.bf16.msra.mxu3 %v9699_v0  ;;  %v15510_v0 = vrot.slane %v12640_v32, 7  ;;  %v15515_v32 = vld [vmem:[#allocation13_spill] sm:$0xff] }
 0x40e   : > { %v5093_v43 = vadd.f32 %v13035_v60, %v4845_v51  ;;  %v13399_v19 = vpack.c.b16 %v6722_v5, %v6721_v25  ;;  %v7370_v51 = vsel %vm15037_vm9, %v13407_v15, 0  ;;  %v13420_v25 = vld [vmem:[#allocation2 + $0x34] sm:$0xf]  ;;  %vm15531_vm9 = vsmask.f32 7424 }
 0x40f   : > { %v5537_v58 = vpack.c.bf16 %v5523_v44, %v5522_v3  ;;  %v6613_v45 = vpop.f32.mrf.mxu1  ;;  %v6771_v3 = vrot.slane %v6769_v41, 1  ;;  %15502 = vst [vmem:[#allocation34_spill] sm:$0xff] %v13420_v25 }
 0x410   : > { %v13360_v1 = vadd.f32 %v6613_v45, %v6393_v31  ;;  %v5454_v54 = vpop.f32.mrf.mxu2  ;;  %v7410_v31 = vunpack.c.l.b16 %v7367_v7  ;;  %v5239_v60 = vadd.f32 %v13043_v16, %v5093_v43  ;;  %v13422_v16 = vld [vmem:[#allocation2 + $0x38] sm:$0xf] }
 0x411   : > { %9158 = vmatmul.msk.bf16.gmra.mxu3 %vm15496_vm4, %v5537_v58  ;;  %v5488_v33 = vadd.f32 %v5454_v54, %v5237_v52  ;;  %vm15499_vm4 = vmmov %vm15497_vm3  ;;  %v4821_v8 = vpop.f32.mrf.mxu3  ;;  %15503 = vst [vmem:[#allocation9_spill] sm:$0xff] %v13422_v16 }
 0x412   : > { %v6772_v11 = vsel %vm15499_vm4, %v6767_v50, %v6771_v3  ;;  %v13394_v52 = vpack.c.b16 %v7411_v48, %v7410_v31  ;;  %vm15500_vm3 = vmmov %vm15487_vm0  ;;  %v13405_v48 = vld [vmem:[#allocation2 + $0x28] sm:$0xf] }
 0x413   : > { %v5508_v30 = vadd.f32 %v13281_v13, %v5488_v33  ;;  %v4846_v33 = vadd.f32 %v4816_v39, %v15501_v12 }
 0x414   : > { %v7454_v50 = vshll.u32 %v13394_v52, 16 }
 0x415   : > { %v6396_v46 = vpop.f32.mrf.mxu0  ;;  %v5094_v39 = vadd.f32 %v13073_v17, %v4846_v33 }
 0x417   : > { %v6616_v44 = vpop.f32.mrf.mxu1 }
 0x418   : > { %9374 = vmatmul.msk.bf16.gmra.mxu0 %vm15487_vm0, %v9687_v26  ;;  %v13386_v58 = vadd.f32 %v6616_v44, %v6396_v46  ;;  %v5456_v45 = vpop.f32.mrf.mxu2  ;;  %v5524_v26 = vmax.f32 %v5508_v30, 0.0  ;;  %v7456_v30 = vrot.slane %v7454_v50, 1 }
 0x419   : > { %v5489_v54 = vadd.f32 %v5456_v45, %v5238_v34  ;;  %v6777_v45 = vshll.u32 %v13399_v19, 16 }
 0x41a   : > { %9406 = vmatmul.msk.bf16.gmra.mxu1 %vm15498_vm14, %v7449_v36  ;;  %v7450_v36 = vshrl.u32 %v13347_v22, 16  ;;  %vm15504_vm14 = vmmov %vm15499_vm4 }
 0x41b   : > { %v5509_v41 = vadd.f32 %v13281_v13, %v5489_v54  ;;  %v7369_v54 = vsel %vm15036_vm8, %v13405_v48, 0 }
 0x41c   : > { %v7452_v22 = vor.u32 %v7450_v36, %v7448_v4  ;;  %v6775_v4 = vor.u32 %v6773_v20, %v6771_v3 }
 0x41d   : > { %v5525_v7 = vmax.f32 %v5509_v41, 0.0  ;;  %v6398_v27 = vpop.f32.mrf.mxu0  ;;  %9280 = vmatmul.msk.bf16.gmra.mxu2 %vm15500_vm3, %v6772_v11  ;;  %v9688_v11 = vld [vmem:[#allocation2 + $0x18] sm:$0xff]  ;;  %v6779_v41 = vrot.slane %v6777_v45, 1  ;;  %vm15508_vm3 = vmmov %vm15487_vm0 }
 0x41e   : > { %v7457_v12 = vsel %vm15504_vm14, %v7452_v22, %v7456_v30 }
 0x41f   : > { %v5538_v46 = vpack.c.bf16 %v5525_v7, %v5524_v26  ;;  %v6618_v34 = vpop.f32.mrf.mxu1  ;;  %v7412_v26 = vunpack.c.l.b16 %v7369_v54  ;;  %v7413_v7 = vunpack.c.l.b16 %v7370_v51  ;;  %v6780_v20 = vsel %vm15504_vm14, %v6775_v4, %v6779_v41  ;;  %v15509_v51 = vld [vmem:[#allocation60_spill] sm:$0xff] }
 0x420   : > { %v13403_v44 = vadd.f32 %v6618_v34, %v6398_v27  ;;  %v5459_v31 = vpop.f32.mrf.mxu2  ;;  %v5240_v27 = vadd.f32 %v13076_v37, %v5094_v39  ;;  %v15506_v34 = vld [vmem:[#allocation68_spill] sm:$0xff]  ;;  %v4824_v37 = vpop.f32.mrf.mxu3  ;;  %v7458_v4 = vshrl.u32 %v13394_v52, 16 }
 0x421   : > { %9159 = vmatmul.msk.bf16.gmra.mxu3 %vm15487_vm0, %v5538_v46  ;;  %v5490_v17 = vadd.f32 %v5459_v31, %v5239_v60  ;;  %v6680_v46 = vsel %vm15392_vm13, %v13420_v25, 0  ;;  %vm15507_vm4 = vnez %v15506_v34  ;;  %v5966_v31 = vrot.slane %v15465_v53, 7 }
 0x422   : > { %v6681_v36 = vsel %vm15507_vm4, %v13422_v16, 0  ;;  %v13442_v45 = vpack.c.b16 %v7413_v7, %v7412_v26  ;;  %v6723_v22 = vunpack.c.l.b16 %v6680_v46  ;;  %v15512_v16 = vld [vmem:[#allocation62_spill] sm:$0xff] }
 0x423   : > { %v5510_v60 = vadd.f32 %v13281_v13, %v5490_v17  ;;  %v6724_v54 = vunpack.c.l.b16 %v6681_v36  ;;  %v4848_v17 = vadd.f32 %v4821_v8, %v15512_v16 }
 0x424   : > { %v7462_v26 = vshll.u32 %v13442_v45, 16 }
 0x425   : > { %v6401_v5 = vpop.f32.mrf.mxu0  ;;  %v13454_v7 = vpack.c.b16 %v6724_v54, %v6723_v22  ;;  %v13466_v22 = vld [vmem:[#allocation2 + $0x34] sm:$0xf]  ;;  %v7460_v54 = vor.u32 %v7458_v4, %v7456_v30  ;;  %v13479_v30 = vld [vmem:[#allocation2 + $0x40] sm:$0xf] }
 0x426   : > { %15520 = vst [vmem:[#allocation23_spill] sm:$0xff] %v13479_v30 }
 0x427   : > { %v6621_v43 = vpop.f32.mrf.mxu1 }
 0x428   : > { %9375 = vmatmul.msk.bf16.gmra.mxu0 %vm15508_vm3, %v9688_v11  ;;  %v13436_v3 = vadd.f32 %v6621_v43, %v6401_v5  ;;  %v5461_v50 = vpop.f32.mrf.mxu2  ;;  %v4847_v11 = vadd.f32 %v13377_v57, %v15509_v51  ;;  %vm15511_vm3 = vcmask 1040384   ;;  %v15513_v57 = vld [vmem:[#allocation32_spill] sm:$0xff] }
 0x429   : > { %v5491_v39 = vadd.f32 %v5461_v50, %v5240_v27  ;;  %v5967_v43 = vsel %vm15511_vm3, %v15510_v0, %v5966_v31  ;;  %v5526_v27 = vmax.f32 %v5510_v60, 0.0  ;;  %vm15514_vm14 = vnez %v15513_v57  ;;  %v15516_v60 = vld [vmem:[#allocation64_spill] sm:$0xff]  ;;  %vm15517_vm3 = vmmov %vm15487_vm0  ;;  %v15518_v0 = vld [vmem:[#allocation55_spill] sm:$0xff] }
 0x42a   : > { %9407 = vmatmul.msk.bf16.gmra.mxu1 %vm15487_vm0, %v7457_v12  ;;  %v5999_v46 = vsel %vm15514_vm14, %v5967_v43, %v15465_v53  ;;  %v5095_v36 = vadd.f32 %v15515_v32, %v4847_v11  ;;  %v5096_v51 = vadd.f32 %v15516_v60, %v4848_v17  ;;  %v6781_v53 = vshrl.u32 %v13399_v19, 16  ;;  %v13477_v57 = vld [vmem:[#allocation2 + $0x3c] sm:$0xf] }
 0x42b   : > { %v5511_v5 = vadd.f32 %v13281_v13, %v5491_v39  ;;  %v6015_v52 = vmul.f32 0.25, %v5999_v46  ;;  %v6785_v11 = vshll.u32 %v13454_v7, 16  ;;  %15519 = vst [vmem:[#allocation36_spill] sm:$0xff] %v13477_v57  ;;  %v15521_v46 = vld [vmem:[#allocation69_spill] sm:$0xff]  ;;  %vm15524_vm14 = vnez %v15523_v42 }
 0x42c   : > { %v5241_v43 = vadd.f32 %v15518_v0, %v5095_v36  ;;  %v5242_v32 = vadd.f32 %v15521_v46, %v5096_v51  ;;  %v6682_v23 = vsel %vm15524_vm14, %v13477_v57, 0 }
 0x42d   : > { %v5527_v50 = vmax.f32 %v5511_v5, 0.0  ;;  %v6403_v12 = vpop.f32.mrf.mxu0  ;;  %9281 = vmatmul.msk.bf16.gmra.mxu2 %vm15487_vm0, %v6780_v20  ;;  %v13464_v20 = vld [vmem:[#allocation2 + $0x30] sm:$0xf]  ;;  %v7464_v5 = vrot.slane %v7462_v26, 1  ;;  %v6031_v26 = vadd.f32 %v6015_v52, %v13164_v29  ;;  %vm15522_vm0 = vsmask.f32 7424 }
 0x42e   : > { %v7371_v17 = vsel %vm15048_vm1, %v13464_v20, 0  ;;  %v6725_v46 = vunpack.c.l.b16 %v6682_v23 }
 0x42f   : > { %v5539_v31 = vpack.c.bf16 %v5527_v50, %v5526_v27  ;;  %v6623_v39 = vpop.f32.mrf.mxu1  ;;  %v4826_v27 = vpop.f32.mrf.mxu3  ;;  %v9689_v50 = vld [vmem:[#allocation2 + $0x20] sm:$0xff]  ;;  %v7465_v36 = vsel %vm15522_vm0, %v7460_v54, %v7464_v5  ;;  %v7414_v0 = vunpack.c.l.b16 %v7371_v17  ;;  %v15528_v54 = vld [vmem:[#allocation12_spill] sm:$0xff]  ;;  %vm15529_vm0 = vcmask 261120  }
 0x430   : > { %v13460_v8 = vadd.f32 %v6623_v39, %v6403_v12  ;;  %v5464_v16 = vpop.f32.mrf.mxu2  ;;  %v7372_v12 = vsel %vm15051_vm2, %v13466_v22, 0  ;;  %v6787_v39 = vrot.slane %v6785_v11, 1  ;;  %vm15527_vm2 = vcmask 523264  }
 0x431   : > { %9160 = vmatmul.msk.bf16.gmra.mxu3 %vm15517_vm3, %v5539_v31  ;;  %v5492_v4 = vadd.f32 %v5464_v16, %v5241_v43  ;;  %v6783_v31 = vor.u32 %v6781_v53, %v6779_v41  ;;  %v7415_v25 = vunpack.c.l.b16 %v7372_v12  ;;  %vm15526_vm3 = vnez %v15525_v9  ;;  %vm15530_vm1 = vmmov %vm15527_vm2 }
 0x432   : > { %v6683_v16 = vsel %vm15526_vm3, %v13479_v30, 0  ;;  %v4849_v41 = vadd.f32 %v4824_v37, %v15528_v54  ;;  %vm15533_vm8 = vmmov %vm15530_vm1 }
 0x433   : > { %v5512_v53 = vadd.f32 %v13281_v13, %v5492_v4  ;;  %v6788_v17 = vsel %vm15531_vm9, %v6783_v31, %v6787_v39  ;;  %v6726_v30 = vunpack.c.l.b16 %v6683_v16 }
 0x435   : > { %v6406_v19 = vpop.f32.mrf.mxu0  ;;  %v5528_v37 = vmax.f32 %v5512_v53, 0.0  ;;  %v13505_v31 = vpack.c.b16 %v6726_v30, %v6725_v46  ;;  %v13511_v53 = vld [vmem:[#allocation2 + $0x38] sm:$0xf] }
 0x436   : > { %v6178_v52 = vpop.permute.xlu2 %6177 }
 0x437   : > { %v6626_v60 = vpop.f32.mrf.mxu1  ;;  %v6210_v43 = vsel %vm15529_vm0, %v6031_v26, %v6178_v52  ;;  %v15534_v26 = vld [vmem:[#allocation49_spill] sm:$0xff]  ;;  %v7466_v52 = vshrl.u32 %v13442_v45, 16  ;;  %v6789_v45 = vshrl.u32 %v13454_v7, 16  ;;  %v6793_v46 = vshll.u32 %v13505_v31, 16  ;;  %v9698_v7 = vld [vmem:[%s14224_s10 + $0x60] sm:$0xff] }
 0x438   : > { %9376 = vmatmul.msk.bf16.gmra.mxu0 %vm15527_vm2, %v9689_v50  ;;  %v13491_v29 = vadd.f32 %v6626_v60, %v6406_v19  ;;  %v5466_v51 = vpop.f32.mrf.mxu2  ;;  %v6226_v12 = vpack.c.bf16 %v6210_v43, %v6210_v43  ;;  %v13499_v19 = vpack.c.b16 %v7415_v25, %v7414_v0  ;;  %vm15532_vm2 = vcmask 519168   ;;  %v4829_v60 = vpop.f32.mrf.mxu3  ;;  %v13513_v43 = vld [vmem:[#allocation2 + $0x3c] sm:$0xf]  ;;  %7124 = vmatpush.bf16.msra.mxu3 %v9698_v7 }
 0x439   : > { %v5493_v11 = vadd.f32 %v5466_v51, %v5242_v32  ;;  %v5097_v32 = vadd.f32 %v15534_v26, %v4849_v41  ;;  %15537 = vst [vmem:[#allocation74_spill] sm:$0xff] %v13513_v43  ;;  %v9721_v41 = vld [vmem:[%s14224_s10 + $0xd8] sm:$0xff]  ;;  %v9690_v26 = vld [vmem:[#allocation2 + $0x28] sm:$0xff] }
 0x43a   : > { %9408 = vmatmul.msk.bf16.gmra.mxu1 %vm15530_vm1, %v7465_v36  ;;  %6242 = vst.msk [vmem:[#allocation2 + $0x44] sm:$0xf] %vm15532_vm2, %v6226_v12  ;;  %v15535_v36 = vld [vmem:[#allocation59_spill] sm:$0xff]  ;;  %v7470_v25 = vshll.u32 %v13499_v19, 16  ;;  %7814 = vmatpush.bf16.msrb.mxu2 %v9721_v41 }
 0x43b   : > { %v5513_v50 = vadd.f32 %v13281_v13, %v5493_v11  ;;  %v4850_v51 = vadd.f32 %v4826_v27, %v15535_v36  ;;  %v15539_v27 = vld [vmem:[#allocation57_spill] sm:$0xff]  ;;  %v15541_v41 = vld [vmem:[#allocation67_spill] sm:$0xff] }
 0x43c   : > { %v5243_v30 = vadd.f32 %v15539_v27, %v5097_v32 }
 0x43d   : > { %v5529_v54 = vmax.f32 %v5513_v50, 0.0  ;;  %v6408_v4 = vpop.f32.mrf.mxu0  ;;  %9282 = vmatmul.msk.bf16.gmra.mxu2 %vm15533_vm8, %v6788_v17  ;;  %vm15538_vm8 = vmmov %vm15530_vm1  ;;  %v15540_v17 = vld [vmem:[#allocation79_spill] sm:$0xff]  ;;  %v7468_v50 = vor.u32 %v7466_v52, %v7464_v5  ;;  %v9720_v5 = vld [vmem:[%s14224_s10 + $0xd0] sm:$0xff] }
 0x43e   : > { %v5098_v12 = vadd.f32 %v15540_v17, %v4850_v51  ;;  %v6791_v51 = vor.u32 %v6789_v45, %v6787_v39  ;;  %7815 = vmatpush.bf16.msrb.mxu2 %v9720_v5  ;;  %vm15544_vm0 = vmmov %vm15538_vm8  ;;  %v9719_v39 = vld [vmem:[%s14224_s10 + $0xc8] sm:$0xff] }
 0x43f   : > { %v5540_v23 = vpack.c.bf16 %v5529_v54, %v5528_v37  ;;  %v6628_v16 = vpop.f32.mrf.mxu1  ;;  %v7472_v37 = vrot.slane %v7470_v25, 1  ;;  %v7373_v54 = vsel %vm15392_vm13, %v13511_v53, 0  ;;  %vm15546_vm2 = vmmov %vm15544_vm0 }
 0x440   : > { %v13509_v0 = vadd.f32 %v6628_v16, %v6408_v4  ;;  %v5469_v11 = vpop.f32.mrf.mxu2  ;;  %v7374_v4 = vsel %vm15507_vm4, %v13513_v43, 0  ;;  %v6795_v16 = vrot.slane %v6793_v46, 1  ;;  %v7416_v52 = vunpack.c.l.b16 %v7373_v54  ;;  %v4831_v17 = vpop.f32.mrf.mxu3 }
 0x441   : > { %9161 = vmatmul.msk.bf16.gmra.mxu3 %vm15538_vm8, %v5540_v23  ;;  %v6667_v36 = vld [vmem:[#allocation2 + $0x44] sm:$0x1]  ;;  %v5494_v32 = vadd.f32 %v5469_v11, %v5243_v30  ;;  %v7417_v25 = vunpack.c.l.b16 %v7374_v4  ;;  %v5244_v27 = vadd.f32 %v15541_v41, %v5098_v12  ;;  %v7473_v34 = vsel %vm15531_vm9, %v7468_v50, %v7472_v37  ;;  %v15542_v11 = vld [vmem:[#allocation75_spill] sm:$0xff]  ;;  %vm15547_vm8 = vmmov %vm15531_vm9 }
 0x442   : > { %15536 = vst [vmem:[#allocation7_spill] sm:$0xff] %v13509_v0  ;;  %vm15543_vm1 = vnez %v15542_v11  ;;  %v6796_v46 = vsel %vm15547_vm8, %v6791_v51, %v6795_v16  ;;  %v15548_v4 = vld [vmem:[#allocation56_spill] sm:$0xff]  ;;  %7816 = vmatpush.bf16.msrb.mxu2 %v9719_v39  ;;  %vm15551_vm9 = vmmov %vm15544_vm0  ;;  %vm15569_vm4 = vsmask.f32 7424 }
 0x443   : > { %v6684_v30 = vsel %vm15543_vm1, %v6667_v36, 0  ;;  %v5514_v12 = vadd.f32 %v13281_v13, %v5494_v32  ;;  %v13548_v50 = vpack.c.b16 %v7417_v25, %v7416_v52  ;;  %v4851_v36 = vadd.f32 %v4829_v60, %v15548_v4  ;;  %v9718_v25 = vld [vmem:[%s14224_s10 + $0xc0] sm:$0xff]  ;;  %v15555_v4 = vld [vmem:[#allocation80_spill] sm:$0xff] }
 0x444   : > { %v6727_v54 = vunpack.c.l.b16 %v6684_v30  ;;  %v13566_v30 = vld [vmem:[#allocation2 + $0x44] sm:$0xf] }
 0x445   : > { %v6411_v23 = vpop.f32.mrf.mxu0  ;;  %v5530_v7 = vmax.f32 %v5514_v12, 0.0  ;;  %v5099_v51 = vadd.f32 %v13213_v14, %v4851_v36  ;;  %15554 = vst [vmem:[#allocation24_spill] sm:$0xff] %v13566_v30  ;;  %v6797_v12 = vshrl.u32 %v13505_v31, 16  ;;  %v7611_v14 = vld [vmem:[#allocation2 + $0x8] sm:$0x8] }
 0x446   : > { %v6736_v32 = vpack.c.b16 %v6727_v54, %v6727_v54  ;;  %7817 = vmatpush.bf16.msrb.mxu2 %v9718_v25 }
 0x447   : > { %v6631_v57 = vpop.f32.mrf.mxu1  ;;  %v5245_v36 = vadd.f32 %v15555_v4, %v5099_v51  ;;  %v15564_v51 = vld [vmem:[#allocation6_spill] sm:$0xff]  ;;  %v6799_v9 = vor.u32 %v6797_v12, %v6795_v16  ;;  %v9729_v16 = vld [vmem:[%s14224_s10 + $0x118] sm:$0xff] }
 0x448   : > { %9377 = vmatmul.msk.bf16.gmra.mxu0 %vm15544_vm0, %v9690_v26  ;;  %v13540_v33 = vadd.f32 %v6631_v57, %v6411_v23  ;;  %v5471_v0 = vpop.f32.mrf.mxu2  ;;  %v15549_v26 = vld [vmem:[#allocation61_spill] sm:$0xff]  ;;  %v6801_v54 = vshll.u32 %v6736_v32, 16 }
 0x449   : > { %v5495_v45 = vadd.f32 %v5471_v0, %v5244_v27  ;;  %v4852_v23 = vadd.f32 %v4831_v17, %v15549_v26  ;;  %v7478_v0 = vshll.u32 %v13548_v50, 16  ;;  %v13564_v17 = vld [vmem:[#allocation2 + $0x40] sm:$0xf]  ;;  %v9691_v26 = vld [vmem:[#allocation2 + $0x30] sm:$0xff]  ;;  %v15567_v12 = vld [vmem:[#allocation77_spill] sm:$0xff]  ;;  %8243 = vmatpush.bf16.msrb.mxu0 %v9729_v16 }
 0x44a   : > { %15545 = vst [vmem:[#allocation35_spill] sm:$0xff] %v13540_v33  ;;  %9409 = vmatmul.msk.bf16.gmra.mxu1 %vm15546_vm2, %v7473_v34  ;;  %v7474_v34 = vshrl.u32 %v13499_v19, 16  ;;  %v4834_v19 = vpop.f32.mrf.mxu3  ;;  %v6803_v42 = vrot.slane %v6801_v54, 1  ;;  %v15575_v16 = vld [vmem:[#allocation28_spill] sm:$0xff] }
 0x44b   : > { %v5515_v57 = vadd.f32 %v13281_v13, %v5495_v45  ;;  %15553 = vst [vmem:[#allocation39_spill] sm:$0xff] %v13564_v17  ;;  %v5100_v39 = vadd.f32 %v13248_v38, %v4852_v23  ;;  %v7376_v38 = vsel %vm15526_vm3, %v13566_v30, 0  ;;  %v15556_v23 = vld [vmem:[#allocation15_spill] sm:$0xff]  ;;  %vm15565_vm3 = vsmask.f32 7424 }
 0x44c   : > { %v7476_v45 = vor.u32 %v7474_v34, %v7472_v37  ;;  %vm15557_vm2 = vnez %v15556_v23  ;;  %v6804_v54 = vsel %vm15569_vm4, %v6799_v9, %v6803_v42  ;;  %v15571_v42 = vld [vmem:[#allocation30_spill] sm:$0xff] }
 0x44d   : > { %v5531_v5 = vmax.f32 %v5515_v57, 0.0  ;;  %v13553_v41 = vpop.f32.mrf.mxu0  ;;  %9283 = vmatmul.msk.bf16.gmra.mxu2 %vm15551_vm9, %v6796_v46  ;;  %v13571_v46 = vrot.slane %v7478_v0, 1  ;;  %v7375_v57 = vsel %vm15524_vm14, %v13564_v17, 0  ;;  %v7613_v31 = vsel %vm15557_vm2, %v7611_v14, 0  ;;  %v15562_v0 = vld [vmem:[#allocation18_spill] sm:$0xff] }
 0x44e   : > { %15550 = vst [vmem:[#allocation8_spill] sm:$0xff] %v13553_v41  ;;  %v7419_v41 = vunpack.c.l.b16 %v7376_v38  ;;  %v7656_v30 = vunpack.c.l.b16 %v7613_v31  ;;  %vm15566_vm14 = vcmask 523264  }
 0x44f   : > { %v5541_v52 = vpack.c.bf16 %v5531_v5, %v5530_v7  ;;  %v13559_v60 = vpop.f32.mrf.mxu1  ;;  %v15558_v7 = vld [vmem:[#allocation16_spill] sm:$0xff]  ;;  %v15560_v5 = vld [vmem:[#allocation17_spill] sm:$0xff]  ;;  %v7481_v14 = vsel %vm15565_vm3, %v7476_v45, %v13571_v46  ;;  %v4853_v45 = vadd.f32 %v4834_v19, %v15567_v12  ;;  %vm15568_vm3 = vmmov %vm15566_vm14 }
 0x450   : > { %15552 = vst [vmem:[#allocation47_spill] sm:$0xff] %v13559_v60  ;;  %v5474_v27 = vpop.f32.mrf.mxu2  ;;  %vm15559_vm8 = vnez %v15558_v7  ;;  %vm15561_vm9 = vnez %v15560_v5  ;;  %v7418_v60 = vunpack.c.l.b16 %v7375_v57  ;;  %v9728_v19 = vld [vmem:[%s14224_s10 + $0x110] sm:$0xff]  ;;  %vm15572_vm4 = vmmov %vm15568_vm3  ;;  %v8037_v5 = vld [vmem:[#allocation2 + $0xc] sm:$0xf] }
 0x451   : > { %9162 = vmatmul.msk.bf16.gmra.mxu3 %vm15544_vm0, %v5541_v52  ;;  %v7614_v37 = vsel %vm15559_vm8, %v13256_v55, 0  ;;  %v7615_v34 = vsel %vm15561_vm9, %v13258_v61, 0  ;;  %vm15563_vm0 = vnez %v15562_v0  ;;  %v5246_v52 = vadd.f32 %v15564_v51, %v5100_v39  ;;  %8244 = vmatpush.bf16.msrb.mxu0 %v9728_v19 }
 0x452   : > { %v7616_v32 = vsel %vm15563_vm0, %v13266_v21, 0  ;;  %v5496_v25 = vadd.f32 %v5474_v27, %v5245_v36  ;;  %v7657_v17 = vunpack.c.l.b16 %v7614_v37  ;;  %v7658_v33 = vunpack.c.l.b16 %v7615_v34  ;;  %v4836_v57 = vpop.f32.mrf.mxu3 }
 0x453   : > { %v7659_v61 = vunpack.c.l.b16 %v7616_v32  ;;  %v13604_v36 = vpack.c.b16 %v7419_v41, %v7418_v60  ;;  %v5101_v9 = vadd.f32 %v13283_v40, %v4853_v45  ;;  %v4854_v41 = vadd.f32 %v4836_v57, %v15571_v42  ;;  %v9727_v40 = vld [vmem:[%s14224_s10 + $0x108] sm:$0xff]  ;;  %v6918_v42 = vld [vmem:[#allocation2 + $0x4] sm:$0x8] }
 0x454   : > { %v5516_v27 = vadd.f32 %v13281_v13, %v5496_v25  ;;  %v7482_v60 = vshrl.u32 %v13548_v50, 16 }
 0x455   : > { %v6416_v4 = vpop.f32.mrf.mxu0  ;;  %v7674_v31 = vpack.c.b16 %v7659_v61, %v7658_v33  ;;  %v7486_v51 = vshll.u32 %v13604_v36, 16  ;;  %v15573_v61 = vld [vmem:[#allocation27_spill] sm:$0xff]  ;;  %v5247_v12 = vadd.f32 %v13289_v35, %v5101_v9  ;;  %v5102_v45 = vadd.f32 %v13304_v47, %v4854_v41  ;;  %8245 = vmatpush.bf16.msrb.mxu0 %v9727_v40  ;;  %v9726_v35 = vld [vmem:[%s14224_s10 + $0x100] sm:$0xff] }
 0x456   : > { %v5532_v37 = vmax.f32 %v5516_v27, 0.0 }
 0x457   : > { %v6636_v55 = vpop.f32.mrf.mxu1  ;;  %v7488_v57 = vrot.slane %v7486_v51, 1  ;;  %v5248_v47 = vadd.f32 %v13312_v18, %v5102_v45  ;;  %v9866_v51 = vld [vmem:[#allocation2 + $0x8] sm:$0xf] }
 0x458   : > { %9378 = vmatmul.msk.bf16.gmra.mxu0 %vm15566_vm14, %v9691_v26  ;;  %v13595_v43 = vadd.f32 %v6636_v55, %v6416_v4  ;;  %v5476_v21 = vpop.f32.mrf.mxu2  ;;  %v7673_v26 = vpack.c.b16 %v7657_v17, %v7656_v30  ;;  %vm15570_vm14 = vmmov %vm15568_vm3  ;;  %v7360_v17 = vld [vmem:[#allocation2 + $0x48] sm:$0x1]  ;;  %v7691_v4 = vshrl.u32 %v7674_v31, 16  ;;  %v7694_v55 = vshll.u32 %v7674_v31, 16 }
 0x459   : > { %v5497_v39 = vadd.f32 %v5476_v21, %v5246_v52  ;;  %v7377_v50 = vsel %vm15543_vm1, %v7360_v17, 0  ;;  %8246 = vmatpush.bf16.msrb.mxu0 %v9726_v35  ;;  %vm15578_vm1 = vcmask 523264   ;;  %v8054_v35 = vsel %vm15455_vm15, %v8037_v5, 0 }
 0x45a   : > { %9410 = vmatmul.msk.bf16.gmra.mxu1 %vm15568_vm3, %v7481_v14  ;;  %v7683_v52 = vshrl.u32 %v7673_v26, 16  ;;  %v7686_v25 = vshll.u32 %v7673_v26, 16  ;;  %vm15574_vm3 = vnez %v15573_v61  ;;  %v7693_v31 = vrot.slane %v7691_v4, 3 }
 0x45b   : > { %v5517_v38 = vadd.f32 %v13281_v13, %v5497_v39  ;;  %v7617_v21 = vsel %vm15574_vm3, %v13315_v24, 0  ;;  %v9725_v39 = vld [vmem:[%s14224_s10 + $0xf8] sm:$0xff] }
 0x45c   : > { %v7688_v26 = vrot.slane %v7686_v25, 4  ;;  %7976 = vmatpush.bf16.msrb.mxu3 %v9725_v39  ;;  %v9692_v24 = vld [vmem:[#allocation2 + $0x38] sm:$0xff] }
 0x45d   : > { %v5533_v34 = vmax.f32 %v5517_v38, 0.0  ;;  %v13607_v32 = vpop.f32.mrf.mxu0  ;;  %9284 = vmatmul.msk.bf16.gmra.mxu2 %vm15570_vm14, %v6804_v54  ;;  %vm15576_vm14 = vnez %v15575_v16  ;;  %v7484_v54 = vor.u32 %v7482_v60, %v13571_v46  ;;  %v7685_v38 = vrot.slane %v7683_v52, 3 }
 0x45e   : > { %v7618_v27 = vsel %vm15576_vm14, %v13317_v49, 0  ;;  %v7660_v49 = vunpack.c.l.b16 %v7617_v21  ;;  %v6920_v60 = vsel %vm15557_vm2, %v6918_v42, 0  ;;  %v6921_v52 = vsel %vm15559_vm8, %v9866_v51, 0  ;;  %v9867_v21 = vld [vmem:[#allocation2 + $0xc] sm:$0xf]  ;;  %vm15579_vm2 = vmmov %vm15578_vm1 }
 0x45f   : > { %v5542_v33 = vpack.c.bf16 %v5533_v34, %v5532_v37  ;;  %v13617_v30 = vpop.f32.mrf.mxu1  ;;  %v7696_v37 = vrot.slane %v7694_v55, 4  ;;  %v7420_v34 = vunpack.c.l.b16 %v7377_v50  ;;  %v7661_v19 = vunpack.c.l.b16 %v7618_v27  ;;  %v9868_v27 = vld [vmem:[#allocation2 + $0x10] sm:$0xf]  ;;  %vm15581_vm8 = vmmov %vm15579_vm2  ;;  %v8039_v51 = vld [vmem:[#allocation2 + $0x14] sm:$0xf] }
 0x460   : > { %v5479_v14 = vpop.f32.mrf.mxu2  ;;  %v7689_v41 = vor.u32 %v7688_v26, %v7685_v38  ;;  %v6922_v23 = vsel %vm15561_vm9, %v9867_v21, 0  ;;  %v6923_v7 = vsel %vm15563_vm0, %v9868_v27, 0  ;;  %v6963_v39 = vunpack.c.l.b16 %v6920_v60  ;;  %vm15584_vm9 = vmmov %vm15579_vm2 }
 0x461   : > { %9163 = vmatmul.msk.bf16.gmra.mxu3 %vm15572_vm4, %v5542_v33  ;;  %v5498_v17 = vadd.f32 %v5479_v14, %v5247_v12  ;;  %vm15577_vm4 = vsmask.f32 7424  ;;  %v13649_v14 = vor.u32 %v7696_v37, %v7693_v31  ;;  %v7429_v18 = vpack.c.b16 %v7420_v34, %v7420_v34  ;;  %v8038_v37 = vld [vmem:[#allocation2 + $0x10] sm:$0xf] }
 0x462   : > { %v7489_v9 = vsel %vm15577_vm4, %v7484_v54, %v7488_v57  ;;  %v7675_v55 = vpack.c.b16 %v7661_v19, %v7660_v49  ;;  %v6964_v12 = vunpack.c.l.b16 %v6921_v52  ;;  %v7490_v54 = vshrl.u32 %v13604_v36, 16  ;;  %v8040_v52 = vld [vmem:[#allocation2 + $0x18] sm:$0xf]  ;;  %vm15591_vm0 = vmmov %vm15577_vm4 }
 0x463   : > { %v5518_v40 = vadd.f32 %v13281_v13, %v5498_v17  ;;  %v7494_v26 = vshll.u32 %v7429_v18, 16  ;;  %v6965_v31 = vunpack.c.l.b16 %v6922_v23  ;;  %v8097_v21 = vunpack.c.l.b16 %v8054_v35 }
 0x464   : > { %v7700_v19 = vshrl.u32 %v7675_v55, 16  ;;  %v7703_v42 = vshll.u32 %v7675_v55, 16  ;;  %v6980_v17 = vpack.c.b16 %v6964_v12, %v6963_v39  ;;  %v8056_v39 = vsel %vm15459_vm7, %v8039_v51, 0  ;;  %vm15593_vm7 = vmmov %vm15579_vm2 }
 0x465   : > { %v6421_v33 = vpop.f32.mrf.mxu0  ;;  %v5534_v34 = vmax.f32 %v5518_v40, 0.0  ;;  %v7496_v18 = vrot.slane %v7494_v26, 1  ;;  %v15589_v26 = vld [vmem:[#allocation38_spill] sm:$0xff] }
 0x466   : > { %v7702_v55 = vrot.slane %v7700_v19, 3  ;;  %v7705_v40 = vrot.slane %v7703_v42, 4  ;;  %v6993_v27 = vshll.u32 %v6980_v17, 16 }
 0x467   : > { %v6641_v46 = vpop.f32.mrf.mxu1 }
 0x468   : > { %9379 = vmatmul.msk.bf16.gmra.mxu0 %vm15578_vm1, %v9692_v24  ;;  %v13647_v25 = vadd.f32 %v6641_v46, %v6421_v33  ;;  %v5481_v4 = vpop.f32.mrf.mxu2  ;;  %vm15580_vm1 = vsmask.f32 4352  ;;  %v6966_v24 = vunpack.c.l.b16 %v6923_v7  ;;  %v8055_v46 = vsel %vm15457_vm11, %v8038_v37, 0 }
 0x469   : > { %v5499_v50 = vadd.f32 %v5481_v4, %v5248_v47  ;;  %v7698_v38 = vsel %vm15580_vm1, %v7689_v41, %v13649_v14  ;;  %v7492_v41 = vor.u32 %v7490_v54, %v7488_v57  ;;  %v8098_v23 = vunpack.c.l.b16 %v8055_v46  ;;  %v9869_v47 = vld [vmem:[#allocation2 + $0x14] sm:$0xf]  ;;  %v9870_v46 = vld [vmem:[#allocation2 + $0x18] sm:$0xf]  ;;  %vm15596_vm4 = vmmov %vm15580_vm1 }
 0x46a   : > { %9411 = vmatmul.msk.bf16.gmra.mxu1 %vm15579_vm2, %v7489_v9  ;;  %v6981_v60 = vpack.c.b16 %v6966_v24, %v6965_v31  ;;  %v8057_v57 = vsel %vm15461_vm5, %v8040_v52, 0  ;;  %vm15590_vm11 = vnez %v15589_v26  ;;  %v13685_v37 = vor.u32 %v7705_v40, %v7702_v55  ;;  %vm15592_vm5 = vmmov %vm15579_vm2 }
 0x46b   : > { %v5519_v45 = vadd.f32 %v13281_v13, %v5499_v50  ;;  %v6990_v50 = vshrl.u32 %v6980_v17, 16  ;;  %v7620_v24 = vsel %vm15590_vm11, %v13366_v28, 0  ;;  %v7497_v5 = vsel %vm15591_vm0, %v7492_v41, %v7496_v18 }
 0x46c   : > { %v6998_v54 = vshrl.u32 %v6981_v60, 16  ;;  %v8100_v19 = vunpack.c.l.b16 %v8057_v57  ;;  %v8114_v42 = vpack.c.b16 %v8098_v23, %v8097_v21  ;;  %v7663_v35 = vunpack.c.l.b16 %v7620_v24  ;;  %v8042_v24 = vld [vmem:[#allocation2 + $0x20] sm:$0xf] }
 0x46d   : > { %v5535_v49 = vmax.f32 %v5519_v45, 0.0  ;;  %v13661_v0 = vpop.f32.mrf.mxu0  ;;  %9437 = vmatmul.msk.bf16.vlgmr.msrb.gmra.mxu2 %vm15581_vm8, %v7698_v38  ;;  %v9697_v45 = vld [vmem:[#allocation2 + $0x40] sm:$0xff]  ;;  %v7001_v38 = vshll.u32 %v6981_v60, 16  ;;  %v6925_v28 = vsel %vm15576_vm14, %v9870_v46, 0  ;;  %v6995_v60 = vrot.slane %v6993_v27, 4  ;;  %vm15595_vm14 = vmmov %vm15579_vm2  ;;  %v15600_v46 = vld [vmem:[#allocation20_spill] sm:$0xff] }
 0x46e   : > { %v7000_v51 = vrot.slane %v6998_v54, 3  ;;  %v8126_v61 = vshll.u32 %v8114_v42, 16  ;;  %v8124_v27 = vshrl.u32 %v8114_v42, 16 }
 0x46f   : > { %v5543_v13 = vpack.c.bf16 %v5535_v49, %v5534_v34  ;;  %v13664_v33 = vpop.f32.mrf.mxu1  ;;  %v6992_v34 = vrot.slane %v6990_v50, 3  ;;  %v8099_v49 = vunpack.c.l.b16 %v8056_v39  ;;  %v7003_v52 = vrot.slane %v7001_v38, 4 }
 0x470   : > { %v6862_v9 = vpop.f32.mrf.mxu2  ;;  %v6968_v50 = vunpack.c.l.b16 %v6925_v28  ;;  %v8128_v39 = vrot.slane %v8126_v61, 1 }
 0x471   : > { %v13671_v4 = vadd.f32 %v6862_v9, %v13342_v6  ;;  %9164 = vmatmul.msk.bf16.gmra.mxu3 %vm15584_vm9, %v5543_v13  ;;  %v15587_v6 = vld [vmem:[#allocation37_spill] sm:$0xff]  ;;  %v13698_v55 = vpack.c.b16 %v8100_v19, %v8099_v49  ;;  %v6996_v23 = vor.u32 %v6995_v60, %v6992_v34  ;;  %v7004_v7 = vor.u32 %v7003_v52, %v7000_v51 }
 0x472   : > { %vm15588_vm15 = vnez %v15587_v6  ;;  %v8129_v34 = vor.u32 %v8128_v39, %v8124_v27  ;;  %vm15601_vm9 = vnez %v15600_v46 }
 0x473   : > { %v7619_v31 = vsel %vm15588_vm15, %v13364_v59, 0  ;;  %v6924_v59 = vsel %vm15574_vm3, %v9869_v47, 0  ;;  %vm15594_vm3 = vmmov %vm15580_vm1  ;;  %v7005_v38 = vsel %vm15596_vm4, %v6996_v23, %v7004_v7  ;;  %vm15597_vm1 = vnez %v15482_v63  ;;  %v15598_v47 = vld [vmem:[#allocation19_spill] sm:$0xff] }
 0x474   : > { %v7662_v36 = vunpack.c.l.b16 %v7619_v31  ;;  %v6967_v40 = vunpack.c.l.b16 %v6924_v59  ;;  %v7707_v21 = vsel %vm15594_vm3, %v13649_v14, %v13685_v37  ;;  %v8041_v31 = vld [vmem:[#allocation2 + $0x1c] sm:$0xf]  ;;  %v9724_v14 = vld [vmem:[%s14224_s10 + $0xf0] sm:$0xff]  ;;  %vm15599_vm8 = vnez %v15598_v47  ;;  %vm15611_vm4 = vmmov %vm15591_vm0 }
 0x475   : > { %v6426_v17 = vpop.f32.mrf.mxu0  ;;  %7977 = vmatpush.bf16.msrb.mxu3 %v9724_v14  ;;  %v7621_v59 = vsel %vm15599_vm8, %v13405_v48, 0  ;;  %v7622_v28 = vsel %vm15601_vm9, %v13407_v15, 0  ;;  %v8135_v6 = vshrl.u32 %v13698_v55, 16 }
 0x476   : > { %v7676_v16 = vpack.c.b16 %v7663_v35, %v7662_v36  ;;  %v6982_v12 = vpack.c.b16 %v6968_v50, %v6967_v40  ;;  %v8058_v36 = vsel %vm15481_vm12, %v8041_v31, 0  ;;  %v8059_v35 = vsel %vm15597_vm1, %v8042_v24, 0  ;;  %vm15602_vm12 = vmmov %vm15579_vm2 }
 0x477   : > { %v6646_v13 = vpop.f32.mrf.mxu1  ;;  %v8102_v60 = vunpack.c.l.b16 %v8059_v35  ;;  %v7664_v40 = vunpack.c.l.b16 %v7621_v59  ;;  %v7665_v50 = vunpack.c.l.b16 %v7622_v28 }
 0x478   : > { %9380 = vmatmul.msk.bf16.gmra.mxu0 %vm15592_vm5, %v9697_v45  ;;  %v13692_v9 = vadd.f32 %v6646_v13, %v6426_v17  ;;  %v6864_v41 = vpop.f32.mrf.mxu2  ;;  %v7709_v57 = vshrl.u32 %v7676_v16, 16  ;;  %v7712_v45 = vshll.u32 %v7676_v16, 16  ;;  %v7007_v19 = vshrl.u32 %v6982_v12, 16  ;;  %v9871_v16 = vld [vmem:[#allocation2 + $0x1c] sm:$0xf]  ;;  %vm15603_vm5 = vmmov %vm15594_vm3 }
 0x479   : > { %v13695_v18 = vadd.f32 %v6864_v41, %v13360_v1  ;;  %v8131_v1 = vshll.u32 %v13698_v55, 16  ;;  %v7010_v42 = vshll.u32 %v6982_v12, 16  ;;  %v8101_v41 = vunpack.c.l.b16 %v8058_v36  ;;  %vm15614_vm1 = vmmov %vm15603_vm5 }
 0x47a   : > { %9412 = vmatmul.msk.bf16.gmra.mxu1 %vm15593_vm7, %v7497_v5  ;;  %v7711_v17 = vrot.slane %v7709_v57, 3  ;;  %v7714_v13 = vrot.slane %v7712_v45, 4  ;;  %v7009_v52 = vrot.slane %v7007_v19, 3  ;;  %v6926_v48 = vsel %vm15588_vm15, %v9871_v16, 0  ;;  %vm15604_vm7 = vmmov %vm15579_vm2  ;;  %v8044_v19 = vld [vmem:[#allocation2 + $0x28] sm:$0xf] }
 0x47b   : > { %v8133_v49 = vrot.slane %v8131_v1, 1  ;;  %v7012_v61 = vrot.slane %v7010_v42, 4  ;;  %v13734_v27 = vpack.c.b16 %v8102_v60, %v8101_v41  ;;  %v6969_v39 = vunpack.c.l.b16 %v6926_v48  ;;  %vm15605_vm15 = vmmov %vm15594_vm3  ;;  %v15607_v41 = vld [vmem:[#allocation21_spill] sm:$0xff]  ;;  %v15609_v60 = vld [vmem:[#allocation22_spill] sm:$0xff] }
 0x47c   : > { %v7715_v10 = vor.u32 %v7714_v13, %v7711_v17  ;;  %v8061_v35 = vsel %vm15186_vm10, %v8044_v19, 0  ;;  %vm15608_vm3 = vnez %v15607_v41  ;;  %vm15613_vm10 = vmmov %vm15603_vm5  ;;  %v8046_v19 = vld [vmem:[#allocation2 + $0x30] sm:$0xf] }
 0x47d   : > { %9438 = vmatmul.msk.bf16.gmra.mxu2 %vm15595_vm14, %v7707_v21  ;;  %v8134_v51 = vsel %vm15591_vm0, %v8129_v34, %v8133_v49  ;;  %v9872_v21 = vld [vmem:[#allocation2 + $0x20] sm:$0xf]  ;;  %v7013_v45 = vor.u32 %v7012_v61, %v7009_v52  ;;  %v8139_v26 = vshll.u32 %v13734_v27, 16  ;;  %v8043_v34 = vld [vmem:[#allocation2 + $0x24] sm:$0xf]  ;;  %vm15610_vm14 = vnez %v15609_v60 }
 0x47e   : > { %v6927_v15 = vsel %vm15590_vm11, %v9872_v21, 0  ;;  %v7716_v57 = vsel %vm15603_vm5, %v13685_v37, %v7715_v10  ;;  %vm15606_vm11 = vmmov %vm15579_vm2  ;;  %v8137_v37 = vor.u32 %v8135_v6, %v8133_v49  ;;  %v8060_v55 = vsel %vm15189_vm6, %v8043_v34, 0  ;;  %v8045_v34 = vld [vmem:[#allocation2 + $0x2c] sm:$0xf] }
 0x47f   : > { %v6970_v1 = vunpack.c.l.b16 %v6927_v15  ;;  %v7014_v31 = vsel %vm15605_vm15, %v7004_v7, %v7013_v45  ;;  %v8141_v17 = vrot.slane %v8139_v26, 1  ;;  %v7624_v49 = vsel %vm15610_vm14, %v13466_v22, 0  ;;  %vm15612_vm6 = vmmov %vm15579_vm2  ;;  %v9874_v22 = vld [vmem:[#allocation2 + $0x28] sm:$0xf] }
 0x480   : > { %v6867_v54 = vpop.f32.mrf.mxu2  ;;  %v8104_v52 = vunpack.c.l.b16 %v8061_v35  ;;  %v6929_v15 = vsel %vm15601_vm9, %v9874_v22, 0  ;;  %vm15616_vm9 = vnez %v14917_v62  ;;  %vm15625_vm15 = vmmov %vm15579_vm2 }
 0x481   : > { %v13707_v5 = vadd.f32 %v6867_v54, %v13386_v58  ;;  %9309 = vmatmul.msk.bf16.vlgmr.msra.gmra.mxu3 %vm15579_vm2, %v7005_v38  ;;  %v7677_v54 = vpack.c.b16 %v7665_v50, %v7664_v40  ;;  %v6983_v38 = vpack.c.b16 %v6970_v1, %v6969_v39  ;;  %v8142_v56 = vsel %vm15611_vm4, %v8137_v37, %v8141_v17 }
 0x482   : > { %v8062_v35 = vsel %vm15616_vm9, %v8045_v34, 0 }
 0x483   : > { %v7718_v24 = vshrl.u32 %v7677_v54, 16  ;;  %v7721_v14 = vshll.u32 %v7677_v54, 16  ;;  %v7016_v13 = vshrl.u32 %v6983_v38, 16  ;;  %v7019_v36 = vshll.u32 %v6983_v38, 16 }
 0x484   : > { %v13717_v58 = vpop.f32.mrf.mxu3  ;;  %v6972_v38 = vunpack.c.l.b16 %v6929_v15 }
 0x485   : > { %v7720_v59 = vrot.slane %v7718_v24, 3  ;;  %v7723_v28 = vrot.slane %v7721_v14, 4  ;;  %v7018_v50 = vrot.slane %v7016_v13, 3  ;;  %v7021_v16 = vrot.slane %v7019_v36, 4 }
 0x487   : > { %v7724_v40 = vor.u32 %v7723_v28, %v7720_v59  ;;  %v7022_v6 = vor.u32 %v7021_v16, %v7018_v50  ;;  %v13798_v16 = vpop.f32.mrf.mxu0 }
 0x488   : > { %9533 = vmatmul.msk.bf16.vlgmr.msrb.gmra.mxu0 %vm15602_vm12, %v8134_v51  ;;  %v6869_v63 = vpop.f32.mrf.mxu2  ;;  %v8103_v51 = vunpack.c.l.b16 %v8060_v55 }
 0x489   : > { %v13732_v23 = vadd.f32 %v6869_v63, %v13403_v44  ;;  %v7667_v63 = vunpack.c.l.b16 %v7624_v49  ;;  %v7725_v54 = vsel %vm15613_vm10, %v7715_v10, %v7724_v40  ;;  %v7023_v24 = vsel %vm15614_vm1, %v7013_v45, %v7022_v6  ;;  %v9723_v10 = vld [vmem:[%s14224_s10 + $0xe8] sm:$0xff]  ;;  %v15617_v45 = vld [vmem:[#allocation58_spill] sm:$0xff]  ;;  %v15619_v49 = vld [vmem:[#allocation29_spill] sm:$0xff] }
 0x48a   : > { %v13769_v39 = vpack.c.b16 %v8104_v52, %v8103_v51  ;;  %vm15618_vm0 = vnez %v15617_v45  ;;  %7978 = vmatpush.bf16.msrb.mxu3 %v9723_v10  ;;  %vm15620_vm12 = vnez %v15619_v49  ;;  %v15621_v52 = vld [vmem:[#allocation74_spill] sm:$0xff]  ;;  %v8048_v45 = vld [vmem:[#allocation2 + $0x38] sm:$0xf] }
 0x48b   : > { %v8063_v59 = vsel %vm15618_vm0, %v8046_v19, 0  ;;  %v7625_v51 = vsel %vm15620_vm12, %v13511_v53, 0 }
 0x48c   : > { %v13736_v12 = vpop.f32.mrf.mxu3  ;;  %v8147_v47 = vshll.u32 %v13769_v39, 16  ;;  %v8151_v19 = vshrl.u32 %v13769_v39, 16 }
 0x48d   : > { %9439 = vmatmul.msk.bf16.gmra.mxu2 %vm15604_vm7, %v7716_v57  ;;  %vm15624_vm7 = vmmov %vm15611_vm4 }
 0x48e   : > { %v8149_v13 = vrot.slane %v8147_v47, 1  ;;  %vm15628_vm4 = vmmov %vm15579_vm2 }
 0x48f   : > { %vm15645_vm9 = vmmov %vm15628_vm4 }
 0x490   : > { %v6872_v44 = vpop.f32.mrf.mxu2 }
 0x491   : > { %v13745_v42 = vadd.f32 %v6872_v44, %v13436_v3  ;;  %9310 = vmatmul.msk.bf16.gmra.mxu3 %vm15606_vm11, %v7014_v31  ;;  %v7623_v3 = vsel %vm15608_vm3, %v13464_v20, 0  ;;  %v9873_v20 = vld [vmem:[#allocation2 + $0x24] sm:$0xf]  ;;  %vm15627_vm11 = vmmov %vm15614_vm1 }
 0x492   : > { %v7666_v61 = vunpack.c.l.b16 %v7623_v3  ;;  %v6928_v21 = vsel %vm15599_vm8, %v9873_v20, 0  ;;  %vm15615_vm8 = vmmov %vm15579_vm2 }
 0x493   : > { %v6971_v26 = vunpack.c.l.b16 %v6928_v21 }
 0x494   : > { %v13752_v7 = vpop.f32.mrf.mxu3  ;;  %v7678_v1 = vpack.c.b16 %v7667_v63, %v7666_v61  ;;  %v8105_v61 = vunpack.c.l.b16 %v8062_v35  ;;  %v8106_v63 = vunpack.c.l.b16 %v8063_v59  ;;  %v8047_v35 = vld [vmem:[#allocation2 + $0x34] sm:$0xf]  ;;  %v15630_v59 = vld [vmem:[#allocation35_spill] sm:$0xff] }
 0x495   : > { %v6984_v14 = vpack.c.b16 %v6972_v38, %v6971_v26  ;;  %v9876_v38 = vld [vmem:[#allocation2 + $0x30] sm:$0xf] }
 0x496   : > { %v7727_v44 = vshrl.u32 %v7678_v1, 16  ;;  %v7730_v31 = vshll.u32 %v7678_v1, 16  ;;  %v15626_v1 = vld [vmem:[#allocation7_spill] sm:$0xff]  ;;  %v13808_v47 = vpack.c.b16 %v8106_v63, %v8105_v61  ;;  %v15634_v63 = vld [vmem:[#allocation65_spill] sm:$0xff] }
 0x497   : > { %v7028_v3 = vshll.u32 %v6984_v14, 16  ;;  %vm15635_vm10 = vnez %v15634_v63 }
 0x498   : > { %9534 = vmatmul.msk.bf16.gmra.mxu0 %vm15612_vm6, %v8142_v56  ;;  %v6874_v2 = vpop.f32.mrf.mxu2  ;;  %v7729_v36 = vrot.slane %v7727_v44, 3  ;;  %v7732_v55 = vrot.slane %v7730_v31, 4  ;;  %v8155_v41 = vshll.u32 %v13808_v47, 16  ;;  %v8159_v49 = vshrl.u32 %v13808_v47, 16 }
 0x499   : > { %v13763_v48 = vadd.f32 %v6874_v2, %v13460_v8  ;;  %v8143_v8 = vshrl.u32 %v13734_v27, 16  ;;  %v7668_v2 = vunpack.c.l.b16 %v7625_v51  ;;  %v7030_v15 = vrot.slane %v7028_v3, 4 }
 0x49a   : > { %v7733_v21 = vor.u32 %v7732_v55, %v7729_v36  ;;  %v8153_v3 = vor.u32 %v8151_v19, %v8149_v13  ;;  %v8157_v51 = vrot.slane %v8155_v41, 1 }
 0x49b   : > { %v8145_v27 = vor.u32 %v8143_v8, %v8141_v17  ;;  %v15622_v17 = vld [vmem:[#allocation33_spill] sm:$0xff]  ;;  %v6931_v8 = vsel %vm15610_vm14, %v9876_v38, 0  ;;  %vm15631_vm14 = vmmov %vm15579_vm2  ;;  %v15643_v38 = vld [vmem:[#allocation47_spill] sm:$0xff] }
 0x49c   : > { %v13771_v57 = vpop.f32.mrf.mxu3  ;;  %vm15623_vm5 = vnez %v15622_v17  ;;  %v6974_v34 = vunpack.c.l.b16 %v6931_v8  ;;  %v8161_v47 = vor.u32 %v8159_v49, %v8157_v51 }
 0x49d   : > { %9440 = vmatmul.msk.bf16.gmra.mxu2 %vm15579_vm2, %v7725_v54  ;;  %v7626_v56 = vsel %vm15623_vm5, %v15621_v52, 0  ;;  %v8150_v62 = vsel %vm15624_vm7, %v8145_v27, %v8149_v13  ;;  %v9875_v54 = vld [vmem:[#allocation2 + $0x2c] sm:$0xf] }
 0x49e   : > { %v7669_v50 = vunpack.c.l.b16 %v7626_v56  ;;  %v6930_v26 = vsel %vm15608_vm3, %v9875_v54, 0  ;;  %vm15629_vm3 = vmmov %vm15614_vm1  ;;  %v15632_v56 = vld [vmem:[#allocation63_spill] sm:$0xff]  ;;  %v15640_v54 = vld [vmem:[#allocation41_spill] sm:$0xff] }
 0x49f   : > { %vm15633_vm6 = vnez %v15632_v56  ;;  %vm15641_vm1 = vnez %v15640_v54  ;;  %vm15649_vm0 = vmmov %vm15629_vm3 }
 0x4a0   : > { %v6877_v46 = vpop.f32.mrf.mxu2  ;;  %v7679_v44 = vpack.c.b16 %v7669_v50, %v7668_v2  ;;  %v8064_v61 = vsel %vm15633_vm6, %v8047_v35, 0  ;;  %v15647_v35 = vld [vmem:[#allocation9_spill] sm:$0xff]  ;;  %vm15666_vm6 = vmmov %vm15649_vm0 }
 0x4a1   : > { %v13779_v37 = vadd.f32 %v6877_v46, %v13491_v29  ;;  %9311 = vmatmul.msk.bf16.gmra.mxu3 %vm15615_vm8, %v7023_v24  ;;  %v7025_v29 = vshrl.u32 %v6984_v14, 16  ;;  %v7734_v46 = vsel %vm15627_vm11, %v7724_v40, %v7733_v21  ;;  %v6973_v14 = vunpack.c.l.b16 %v6930_v26  ;;  %v13821_v40 = vpop.f32.mrf.mxu0  ;;  %v15642_v26 = vld [vmem:[#allocation8_spill] sm:$0xff]  ;;  %vm15644_vm8 = vmmov %vm15624_vm7 }
 0x4a2   : > { %v7736_v10 = vshrl.u32 %v7679_v44, 16  ;;  %v7739_v27 = vshll.u32 %v7679_v44, 16  ;;  %v6634_v8 = vadd.f32 %v15643_v38, %v15642_v26  ;;  %v8107_v44 = vunpack.c.l.b16 %v8064_v61  ;;  %vm15650_vm7 = vmmov %vm15628_vm4  ;;  %v8049_v38 = vld [vmem:[#allocation2 + $0x3c] sm:$0xf] }
 0x4a3   : > { %v7027_v22 = vrot.slane %v7025_v29, 3  ;;  %v6985_v55 = vpack.c.b16 %v6974_v34, %v6973_v14  ;;  %v8158_v14 = vsel %vm15644_vm8, %v8153_v3, %v8157_v51 }
 0x4a4   : > { %v13789_v28 = vpop.f32.mrf.mxu3  ;;  %v7738_v39 = vrot.slane %v7736_v10, 3  ;;  %v7741_v52 = vrot.slane %v7739_v27, 4 }
 0x4a5   : > { %v7031_v24 = vor.u32 %v7030_v15, %v7027_v22  ;;  %v7034_v2 = vshrl.u32 %v6985_v55, 16  ;;  %v7037_v50 = vshll.u32 %v6985_v55, 16  ;;  %v15637_v22 = vld [vmem:[#allocation40_spill] sm:$0xff] }
 0x4a6   : > { %vm15638_vm2 = vnez %v15637_v22  ;;  %v7742_v34 = vor.u32 %v7741_v52, %v7738_v39 }
 0x4a7   : > { %v7032_v36 = vsel %vm15629_vm3, %v7022_v6, %v7031_v24  ;;  %v8065_v6 = vsel %vm15635_vm10, %v8048_v45, 0  ;;  %v7036_v27 = vrot.slane %v7034_v2, 3  ;;  %v6933_v45 = vsel %vm15623_vm5, %v15647_v35, 0  ;;  %vm15652_vm5 = vmmov %vm15628_vm4  ;;  %v15657_v35 = vld [vmem:[#allocation42_spill] sm:$0xff] }
 0x4a8   : > { %9535 = vmatmul.msk.bf16.gmra.mxu0 %vm15625_vm15, %v8150_v62  ;;  %v6879_v20 = vpop.f32.mrf.mxu2  ;;  %v6976_v52 = vunpack.c.l.b16 %v6933_v45  ;;  %vm15658_vm11 = vnez %v15657_v35  ;;  %vm15660_vm3 = vmmov %vm15652_vm5 }
 0x4a9   : > { %v13802_v53 = vadd.f32 %v6879_v20, %v15626_v1  ;;  %v15636_v20 = vld [vmem:[#allocation39_spill] sm:$0xff]  ;;  %v15639_v1 = vld [vmem:[#allocation24_spill] sm:$0xff]  ;;  %v13849_v61 = vpop.f32.mrf.mxu0  ;;  %vm15667_vm10 = vmmov %vm15660_vm3 }
 0x4aa   : > { %v7627_v15 = vsel %vm15638_vm2, %v15636_v20, 0  ;;  %v7628_v13 = vsel %vm15641_vm1, %v15639_v1, 0 }
 0x4ab   : > { %v7670_v19 = vunpack.c.l.b16 %v7627_v15  ;;  %v7671_v41 = vunpack.c.l.b16 %v7628_v13 }
 0x4ac   : > { %v13810_v31 = vpop.f32.mrf.mxu3 }
 0x4ad   : > { %9441 = vmatmul.msk.bf16.gmra.mxu2 %vm15628_vm4, %v7734_v46  ;;  %v8108_v46 = vunpack.c.l.b16 %v8065_v6  ;;  %v7680_v3 = vpack.c.b16 %v7671_v41, %v7670_v19  ;;  %v7743_v6 = vsel %vm15649_vm0, %v7733_v21, %v7742_v34  ;;  %v8050_v21 = vld [vmem:[#allocation2 + $0x40] sm:$0xf]  ;;  %vm15659_vm4 = vmmov %vm15644_vm8 }
 0x4ae   : > { %vm15673_vm8 = vmmov %vm15659_vm4 }
 0x4af   : > { %v13847_v56 = vpack.c.b16 %v8108_v46, %v8107_v44  ;;  %v7748_v20 = vshll.u32 %v7680_v3, 16  ;;  %v7612_v46 = vld [vmem:[#allocation2 + $0x48] sm:$0xf] }
 0x4b0   : > { %v6882_v60 = vpop.f32.mrf.mxu2  ;;  %v7629_v51 = vsel %vm15658_vm11, %v7612_v46, 0 }
 0x4b1   : > { %v13818_v29 = vadd.f32 %v6882_v60, %v15630_v59  ;;  %9312 = vmatmul.msk.bf16.gmra.mxu3 %vm15631_vm14, %v7032_v36  ;;  %v7039_v60 = vrot.slane %v7037_v50, 4  ;;  %v15646_v36 = vld [vmem:[#allocation34_spill] sm:$0xff]  ;;  %v8163_v17 = vshll.u32 %v13847_v56, 16  ;;  %v7745_v50 = vshrl.u32 %v7680_v3, 16  ;;  %v13875_v45 = vpop.f32.mrf.mxu0  ;;  %vm15665_vm14 = vmmov %vm15660_vm3 }
 0x4b2   : > { %v6932_v55 = vsel %vm15620_vm12, %v15646_v36, 0  ;;  %vm15651_vm12 = vmmov %vm15649_vm0  ;;  %v7750_v19 = vrot.slane %v7748_v20, 4  ;;  %v7672_v20 = vunpack.c.l.b16 %v7629_v51  ;;  %v8167_v22 = vshrl.u32 %v13847_v56, 16  ;;  %v8052_v51 = vld [vmem:[#allocation2 + $0x48] sm:$0xf] }
 0x4b3   : > { %v6975_v39 = vunpack.c.l.b16 %v6932_v55  ;;  %v7040_v2 = vor.u32 %v7039_v60, %v7036_v27  ;;  %v8165_v44 = vrot.slane %v8163_v17, 1  ;;  %v8066_v27 = vsel %vm15392_vm13, %v8049_v38, 0  ;;  %v15655_v60 = vld [vmem:[#allocation68_spill] sm:$0xff]  ;;  %vm15664_vm13 = vmmov %vm15649_vm0 }
 0x4b4   : > { %v13827_v62 = vpop.f32.mrf.mxu3  ;;  %vm15656_vm15 = vnez %v15655_v60  ;;  %v6639_v55 = vadd.f32 %v13617_v30, %v13607_v32  ;;  %v15662_v30 = vld [vmem:[#allocation23_spill] sm:$0xff] }
 0x4b5   : > { %v6986_v15 = vpack.c.b16 %v6976_v52, %v6975_v39  ;;  %v7041_v13 = vsel %vm15651_vm12, %v7031_v24, %v7040_v2  ;;  %v8067_v36 = vsel %vm15656_vm15, %v8050_v21, 0  ;;  %v8166_v3 = vsel %vm15659_vm4, %v8161_v47, %v8165_v44  ;;  %vm15677_vm12 = vmmov %vm15649_vm0 }
 0x4b6   : > { %v8110_v49 = vunpack.c.l.b16 %v8067_v36  ;;  %vm15680_vm15 = vnez %v15542_v11 }
 0x4b7   : > { %v7043_v41 = vshrl.u32 %v6986_v15, 16  ;;  %v7046_v24 = vshll.u32 %v6986_v15, 16  ;;  %v15661_v15 = vld [vmem:[#allocation36_spill] sm:$0xff] }
 0x4b8   : > { %9536 = vmatmul.msk.bf16.gmra.mxu0 %vm15645_vm9, %v8158_v14  ;;  %v6884_v10 = vpop.f32.mrf.mxu2  ;;  %v7747_v14 = vrot.slane %v7745_v50, 3  ;;  %v6934_v32 = vsel %vm15638_vm2, %v15661_v15, 0  ;;  %v15671_v15 = vld [vmem:[#allocation73_spill] sm:$0xff]  ;;  %vm15674_vm9 = vmmov %vm15660_vm3 }
 0x4b9   : > { %v13845_v59 = vadd.f32 %v6884_v10, %v6634_v8  ;;  %v9722_v8 = vld [vmem:[%s14224_s10 + $0xe0] sm:$0xff]  ;;  %v7045_v52 = vrot.slane %v7043_v41, 3  ;;  %v7048_v50 = vrot.slane %v7046_v24, 4  ;;  %v6977_v21 = vunpack.c.l.b16 %v6934_v32 }
 0x4ba   : > { %7979 = vmatpush.bf16.msrb.mxu3 %v9722_v8  ;;  %v7751_v39 = vor.u32 %v7750_v19, %v7747_v14  ;;  %v7681_v19 = vpack.c.b16 %v7672_v20, %v7672_v20  ;;  %v15669_v20 = vld [vmem:[#allocation72_spill] sm:$0xff] }
 0x4bb   : > { %v7049_v14 = vor.u32 %v7048_v50, %v7045_v52  ;;  %vm15670_vm2 = vnez %v15669_v20 }
 0x4bc   : > { %v13851_v63 = vpop.f32.mrf.mxu3  ;;  %v7752_v46 = vsel %vm15664_vm13, %v7742_v34, %v7751_v39  ;;  %v7754_v60 = vshrl.u32 %v7681_v19, 16  ;;  %v7757_v36 = vshll.u32 %v7681_v19, 16  ;;  %v8051_v34 = vld [vmem:[#allocation2 + $0x44] sm:$0xf] }
 0x4bd   : > { %15648 = vst [vmem:[#allocation52_spill] sm:$0xff] %v13851_v63  ;;  %9442 = vmatmul.msk.bf16.gmra.mxu2 %vm15650_vm7, %v7743_v6  ;;  %v8109_v6 = vunpack.c.l.b16 %v8066_v27  ;;  %v7050_v27 = vsel %vm15666_vm6, %v7040_v2, %v7049_v14  ;;  %v8068_v2 = vsel %vm15670_vm2, %v8051_v34, 0  ;;  %vm15676_vm7 = vmmov %vm15660_vm3 }
 0x4be   : > { %v7759_v50 = vrot.slane %v7757_v36, 4 }
 0x4bf   : > { %v8120_v38 = vpack.c.b16 %v8110_v49, %v8109_v6 }
 0x4c0   : > { %v6887_v1 = vpop.f32.mrf.mxu2 }
 0x4c1   : > { %v13859_v26 = vadd.f32 %v6887_v1, %v13595_v43  ;;  %9313 = vmatmul.msk.bf16.gmra.mxu3 %vm15652_vm5, %v7041_v13  ;;  %v6935_v1 = vsel %vm15641_vm1, %v15662_v30, 0  ;;  %v8171_v41 = vshll.u32 %v8120_v38, 16  ;;  %v13892_v43 = vpop.f32.mrf.mxu0  ;;  %vm15672_vm1 = vnez %v15671_v15  ;;  %v6919_v30 = vld [vmem:[#allocation2 + $0x44] sm:$0xf]  ;;  %vm15678_vm5 = vmmov %vm15660_vm3 }
 0x4c2   : > { %v6978_v8 = vunpack.c.l.b16 %v6935_v1  ;;  %v8069_v32 = vsel %vm15672_vm1, %v8052_v51, 0  ;;  %v8175_v34 = vshrl.u32 %v8120_v38, 16 }
 0x4c3   : > { %v8173_v52 = vrot.slane %v8171_v41, 1 }
 0x4c4   : > { %v13865_v10 = vpop.f32.mrf.mxu3  ;;  %v6987_v24 = vpack.c.b16 %v6978_v8, %v6977_v21  ;;  %v8112_v21 = vunpack.c.l.b16 %v8069_v32 }
 0x4c5   : > { %15653 = vst [vmem:[#allocation82_spill] sm:$0xff] %v13865_v10  ;;  %v8177_v20 = vor.u32 %v8175_v34, %v8173_v52 }
 0x4c6   : > { %v7052_v6 = vshrl.u32 %v6987_v24, 16  ;;  %v7055_v56 = vshll.u32 %v6987_v24, 16  ;;  %v6936_v24 = vsel %vm15658_vm11, %v6919_v30, 0  ;;  %vm15681_vm11 = vmmov %vm15659_vm4 }
 0x4c7   : > { %v6979_v36 = vunpack.c.l.b16 %v6936_v24  ;;  %vm15682_vm4 = vmmov %vm15660_vm3 }
 0x4c8   : > { %9537 = vmatmul.msk.bf16.gmra.mxu0 %vm15660_vm3, %v8166_v3  ;;  %v6889_v17 = vpop.f32.mrf.mxu2  ;;  %v8169_v3 = vor.u32 %v8167_v22, %v8165_v44  ;;  %v8111_v44 = vunpack.c.l.b16 %v8068_v2  ;;  %v7054_v19 = vrot.slane %v7052_v6, 3  ;;  %v7057_v22 = vrot.slane %v7055_v56, 4  ;;  %vm15684_vm3 = vmmov %vm15649_vm0 }
 0x4c9   : > { %v13885_v13 = vadd.f32 %v6889_v17, %v6639_v55  ;;  %v7756_v17 = vrot.slane %v7754_v60, 3  ;;  %v6988_v56 = vpack.c.b16 %v6979_v36, %v6979_v36  ;;  %vm15685_vm13 = vmmov %vm15682_vm4 }
 0x4ca   : > { %v8174_v1 = vsel %vm15673_vm8, %v8169_v3, %v8173_v52  ;;  %v7058_v60 = vor.u32 %v7057_v22, %v7054_v19  ;;  %vm15688_vm6 = vmmov %vm15682_vm4 }
 0x4cb   : > { %v7061_v32 = vshrl.u32 %v6988_v56, 16  ;;  %v7064_v38 = vshll.u32 %v6988_v56, 16  ;;  %vm15691_vm2 = vmmov %vm15682_vm4 }
 0x4cc   : > { %v13887_v47 = vpop.f32.mrf.mxu3  ;;  %v7059_v6 = vsel %vm15677_vm12, %v7049_v14, %v7058_v60  ;;  %vm15692_vm1 = vmmov %vm15691_vm2 }
 0x4cd   : > { %15663 = vst [vmem:[#allocation81_spill] sm:$0xff] %v13887_v47  ;;  %9443 = vmatmul.msk.bf16.gmra.mxu2 %vm15665_vm14, %v7752_v46  ;;  %v7760_v46 = vor.u32 %v7759_v50, %v7756_v17  ;;  %v8053_v17 = vld [vmem:[#allocation2 + $0x4c] sm:$0x1]  ;;  %v6648_v50 = vpop.f32.mrf.mxu1  ;;  %v7066_v52 = vrot.slane %v7064_v38, 4  ;;  %vm15687_vm14 = vmmov %vm15673_vm8 }
 0x4ce   : > { %v6649_v14 = vadd.f32 %v6648_v50, %v13798_v16  ;;  %v9736_v50 = vld [vmem:[%s14226_s12 + $0x30] sm:$0xff]  ;;  %vm15693_vm8 = vmmov %vm15692_vm1 }
 0x4d0   : > { %v6892_v54 = vpop.f32.mrf.mxu2 }
 0x4d1   : > { %v13896_v55 = vadd.f32 %v6892_v54, %v13647_v25  ;;  %9314 = vmatmul.msk.bf16.gmra.mxu3 %vm15667_vm10, %v7050_v27  ;;  %v6644_v25 = vadd.f32 %v13664_v33, %v13661_v0  ;;  %v13913_v54 = vpop.f32.mrf.mxu0  ;;  %v8121_v27 = vpack.c.b16 %v8112_v21, %v8111_v44  ;;  %v7761_v33 = vsel %vm15649_vm0, %v7751_v39, %v7760_v46  ;;  %vm15690_vm10 = vmmov %vm15682_vm4 }
 0x4d2   : > { %v7063_v44 = vrot.slane %v7061_v32, 3  ;;  %v9707_v32 = vld [vmem:[#allocation2 + $0x14] sm:$0xff]  ;;  %vm15695_vm0 = vmmov %vm15692_vm1 }
 0x4d3   : > { %v8179_v51 = vshll.u32 %v8121_v27, 16  ;;  %v8183_v11 = vshrl.u32 %v8121_v27, 16  ;;  %vm15697_vm12 = vmmov %vm15695_vm0 }
 0x4d4   : > { %v13899_v49 = vpop.f32.mrf.mxu3  ;;  %v7067_v19 = vor.u32 %v7066_v52, %v7063_v44  ;;  %v9734_v52 = vld [vmem:[%s14226_s12 + $0x20] sm:$0xff] }
 0x4d5   : > { %15668 = vst [vmem:[#allocation14_spill] sm:$0xff] %v13899_v49  ;;  %v8181_v2 = vrot.slane %v8179_v51, 1 }
 0x4d6   : > { %v7068_v16 = vsel %vm15684_vm3, %v7058_v60, %v7067_v19  ;;  %v9706_v60 = vld [vmem:[#allocation2 + $0xc] sm:$0xff] }
 0x4d8   : > { %9538 = vmatmul.msk.bf16.gmra.mxu0 %vm15674_vm9, %v8174_v1  ;;  %v6894_v8 = vpop.f32.mrf.mxu2  ;;  %vm15694_vm9 = vmmov %vm15692_vm1 }
 0x4d9   : > { %v13909_v41 = vadd.f32 %v6894_v8, %v6644_v25  ;;  %v13924_v39 = vpop.f32.mrf.mxu0  ;;  %v8070_v25 = vsel %vm15680_vm15, %v8053_v17, 0 }
 0x4da   : > { %v8113_v30 = vunpack.c.l.b16 %v8070_v25 }
 0x4dc   : > { %v13915_v0 = vpop.f32.mrf.mxu3  ;;  %v8122_v8 = vpack.c.b16 %v8113_v30, %v8113_v30 }
 0x4dd   : > { %15675 = vst [vmem:[#allocation25_spill] sm:$0xff] %v13915_v0  ;;  %9444 = vmatmul.msk.bf16.gmra.mxu2 %vm15676_vm7, %v7761_v33  ;;  %v8185_v33 = vor.u32 %v8183_v11, %v8181_v2  ;;  %v9709_v11 = vld [vmem:[#allocation2 + $0x24] sm:$0xff]  ;;  %vm15696_vm7 = vmmov %vm15695_vm0 }
 0x4de   : > { %v8187_v24 = vshll.u32 %v8122_v8, 16 }
 0x4e0   : > { %v6897_v3 = vpop.f32.mrf.mxu2  ;;  %v8189_v36 = vrot.slane %v8187_v24, 1 }
 0x4e1   : > { %v13921_v35 = vadd.f32 %v6897_v3, %v13692_v9  ;;  %9315 = vmatmul.msk.bf16.gmra.mxu3 %vm15678_vm5, %v7059_v6  ;;  %v8182_v9 = vsel %vm15681_vm11, %v8177_v20, %v8181_v2  ;;  %v13937_v22 = vpop.f32.mrf.mxu0  ;;  %v9737_v3 = vld [vmem:[%s14226_s12 + $0x38] sm:$0xff]  ;;  %vm15698_vm5 = vcmask 261120  }
 0x4e2   : > { %v8190_v51 = vsel %vm15687_vm14, %v8185_v33, %v8189_v36  ;;  %8416 = vmatpush.bf16.msrb.mxu1 %v9737_v3  ;;  %v9733_v33 = vld [vmem:[%s14226_s12 + $0x18] sm:$0xff]  ;;  %vm15699_vm15 = vmmov %vm15698_vm5 }
 0x4e3   : > { %vm15700_vm11 = vmmov %vm15698_vm5 }
 0x4e4   : > { %v13926_v15 = vpop.f32.mrf.mxu3 }
 0x4e5   : > { %15679 = vst [vmem:[#allocation71_spill] sm:$0xff] %v13926_v15 }
 0x4e6   : > { %8417 = vmatpush.bf16.msrb.mxu1 %v9736_v50 }
 0x4e8   : > { %9539 = vmatmul.msk.bf16.gmra.mxu0 %vm15682_vm4, %v8182_v9  ;;  %v6899_v1 = vpop.f32.mrf.mxu2  ;;  %vm15701_vm4 = vmmov %vm15698_vm5 }
 0x4e9   : > { %v13933_v21 = vadd.f32 %v6899_v1, %v6649_v14  ;;  %v13947_v6 = vpop.f32.mrf.mxu0  ;;  %vm15702_vm3 = vmmov %vm15701_vm4 }
 0x4ea   : > { %vm15705_vm14 = vmmov %vm15702_vm3 }
 0x4ec   : > { %v13935_v46 = vpop.f32.mrf.mxu3 }
 0x4ed   : > { %15683 = vst [vmem:[#allocation78_spill] sm:$0xff] %v13935_v46 }
 0x4f1   : > { %9316 = vmatmul.msk.bf16.gmra.mxu3 %vm15685_vm13, %v7068_v16  ;;  %v13969_v14 = vpop.f32.mrf.mxu0  ;;  %vm15703_vm13 = vmmov %vm15702_vm3 }
 0x4f4   : > { %v13941_v34 = vpop.f32.mrf.mxu3 }
 0x4f5   : > { %15686 = vst [vmem:[#allocation48_spill] sm:$0xff] %v13941_v34 }
 0x4f8   : > { %9540 = vmatmul.msk.bf16.gmra.mxu0 %vm15688_vm6, %v8190_v51  ;;  %vm15707_vm6 = vmmov %vm15702_vm3 }
 0x4f9   : > { %v13975_v1 = vpop.f32.mrf.mxu0 }
 0x4fc   : > { %v13950_v27 = vpop.f32.mrf.mxu3 }
 0x4fd   : > { %15689 = vst [vmem:[#allocation26_spill] sm:$0xff] %v13950_v27 }
 0x501   : > { %9501 = vmatmul.msk.bf16.vlgmr.msrb.gmra.mxu3 %vm15690_vm10, %v9706_v60  ;;  %v13983_v8 = vpop.f32.mrf.mxu0  ;;  %vm15709_vm10 = vmmov %vm15702_vm3 }
 0x504   : > { %v7126_v56 = vpop.f32.mrf.mxu3 }
 0x505   : > { %v13954_v17 = vadd.f32 %v7126_v56, %v13671_v4  ;;  %v9735_v4 = vld [vmem:[%s14226_s12 + $0x28] sm:$0xff]  ;;  %v9732_v56 = vld [vmem:[%s14226_s12 + $0x10] sm:$0xff] }
 0x506   : > { %8418 = vmatpush.bf16.msrb.mxu1 %v9735_v4 }
 0x507   : > { %v7328_v27 = vadd.f32 %v13821_v40, %v13954_v17  ;;  %v14052_v40 = vld [vmem:[%s14225_s11] ss:$0 sm:$0xff] }
 0x50a   : > { %8419 = vmatpush.bf16.msrb.mxu1 %v9734_v52  ;;  %v9712_v52 = vld [vmem:[#allocation2 + $0x3c] sm:$0xff] }
 0x50c   : > { %v7128_v20 = vpop.f32.mrf.mxu3 }
 0x50d   : > { %v13960_v2 = vadd.f32 %v7128_v20, %v13695_v18  ;;  %v9708_v18 = vld [vmem:[#allocation2 + $0x1c] sm:$0xff] }
 0x50e   : > { %8420 = vmatpush.bf16.msrb.mxu1 %v9733_v33 }
 0x511   : > { %9502 = vmatmul.msk.bf16.gmra.mxu3 %vm15691_vm2, %v9707_v32  ;;  %v9711_v32 = vld [vmem:[#allocation2 + $0x34] sm:$0xff]  ;;  %vm15711_vm2 = vmmov %vm15702_vm3 }
 0x512   : > { %8421 = vmatpush.bf16.msrb.mxu1 %v9732_v56 }
 0x514   : > { %v7131_v38 = vpop.f32.mrf.mxu3 }
 0x515   : > { %v13964_v25 = vadd.f32 %v7131_v38, %v13707_v5 }
 0x51c   : > { %v7133_v9 = vpop.f32.mrf.mxu3 }
 0x51d   : > { %v13972_v30 = vadd.f32 %v7133_v9, %v13732_v23  ;;  %v9731_v9 = vld [vmem:[%s14226_s12 + $0x8] sm:$0xff] }
 0x51e   : > { %8422 = vmatpush.bf16.msrb.mxu1 %v9731_v9 }
 0x521   : > { %9503 = vmatmul.msk.bf16.gmra.mxu3 %vm15692_vm1, %v9708_v18  ;;  %vm15713_vm1 = vmmov %vm15711_vm2 }
 0x524   : > { %v7136_v44 = vpop.f32.mrf.mxu3 }
 0x525   : > { %v13978_v5 = vadd.f32 %v7136_v44, %v13745_v42  ;;  %v13992_v42 = vpop.f32.mrf.mxu0 }
 0x52c   : > { %v7138_v19 = vpop.f32.mrf.mxu3 }
 0x52d   : > { %v13986_v23 = vadd.f32 %v7138_v19, %v13763_v48  ;;  %v9710_v48 = vld [vmem:[#allocation2 + $0x2c] sm:$0xff]  ;;  %v14000_v3 = vpop.f32.mrf.mxu0  ;;  %v7555_v19 = vpop.f32.mrf.mxu1 }
 0x531   : > { %9504 = vmatmul.msk.bf16.gmra.mxu3 %vm15693_vm8, %v9709_v11  ;;  %v7819_v11 = vpop.f32.mrf.mxu2  ;;  %vm15715_vm8 = vmmov %vm15713_vm1 }
 0x534   : > { %v7141_v24 = vpop.f32.mrf.mxu3 }
 0x535   : > { %v13990_v16 = vadd.f32 %v7141_v24, %v13779_v37  ;;  %v14009_v50 = vpop.f32.mrf.mxu0 }
 0x539   : > { %v7821_v56 = vpop.f32.mrf.mxu2 }
 0x53c   : > { %v7143_v36 = vpop.f32.mrf.mxu3 }
 0x53d   : > { %v13998_v51 = vadd.f32 %v7143_v36, %v13802_v53  ;;  %v14015_v38 = vpop.f32.mrf.mxu0  ;;  %v7557_v36 = vpop.f32.mrf.mxu1 }
 0x541   : > { %9505 = vmatmul.msk.bf16.gmra.mxu3 %vm15694_vm9, %v9710_v48  ;;  %v9730_v48 = vld [vmem:[%s14226_s12] sm:$0xff]  ;;  %vm15717_vm9 = vmmov %vm15713_vm1 }
 0x542   : > { %8423 = vmatpush.bf16.msrb.mxu1 %v9730_v48 }
 0x544   : > { %v7146_v60 = vpop.f32.mrf.mxu3 }
 0x545   : > { %v14004_v37 = vadd.f32 %v7146_v60, %v13818_v29 }
 0x54c   : > { %v7148_v20 = vpop.f32.mrf.mxu3 }
 0x54d   : > { %v14012_v53 = vadd.f32 %v7148_v20, %v13845_v59  ;;  %v14026_v59 = vpop.f32.mrf.mxu0  ;;  %v9717_v20 = vld [vmem:[#allocation2 + $0x44] sm:$0xff] }
 0x551   : > { %9506 = vmatmul.msk.bf16.gmra.mxu3 %vm15695_vm0, %v9711_v32  ;;  %vm15719_vm0 = vmmov %vm15713_vm1 }
 0x554   : > { %v7151_v4 = vpop.f32.mrf.mxu3 }
 0x555   : > { %v14018_v29 = vadd.f32 %v7151_v4, %v13859_v26  ;;  %v8248_v33 = vpop.f32.mrf.mxu0  ;;  %v7560_v4 = vpop.f32.mrf.mxu1 }
 0x55c   : > { %v7153_v18 = vpop.f32.mrf.mxu3 }
 0x55d   : > { %v14024_v44 = vadd.f32 %v7153_v18, %v13885_v13  ;;  %v8250_v32 = vpop.f32.mrf.mxu0  ;;  %v7824_v18 = vpop.f32.mrf.mxu2 }
 0x55e   : > { %v7562_v48 = vpop.f32.mrf.mxu1 }
 0x561   : > { %9507 = vmatmul.msk.bf16.gmra.mxu3 %vm15696_vm7, %v9712_v52  ;;  %vm15721_vm7 = vmmov %vm15719_vm0 }
 0x564   : > { %v7156_v24 = vpop.f32.mrf.mxu3 }
 0x565   : > { %v14030_v26 = vadd.f32 %v7156_v24, %v13896_v55  ;;  %v8253_v52 = vpop.f32.mrf.mxu0  ;;  %v7826_v34 = vpop.f32.mrf.mxu2 }
 0x566   : > { %v7565_v49 = vpop.f32.mrf.mxu1 }
 0x56c   : > { %v7158_v60 = vpop.f32.mrf.mxu3 }
 0x56d   : > { %v14036_v13 = vadd.f32 %v7158_v60, %v13909_v41  ;;  %v7595_v60 = vadd.f32 %v7555_v19, %v7328_v27  ;;  %v8255_v0 = vpop.f32.mrf.mxu0  ;;  %v7829_v17 = vpop.f32.mrf.mxu2  ;;  %v7330_v27 = vadd.f32 %v13875_v45, %v13964_v25 }
 0x56f   : > { %v7859_v15 = vadd.f32 %v7819_v11, %v7595_v60 }
 0x571   : > { %9508 = vmatmul.msk.bf16.gmra.mxu3 %vm15697_vm12, %v9717_v20  ;;  %v7329_v20 = vadd.f32 %v13849_v61, %v13960_v2  ;;  %vm15722_vm12 = vmmov %vm15719_vm0 }
 0x574   : > { %v7161_v9 = vpop.f32.mrf.mxu3 }
 0x575   : > { %v14040_v55 = vadd.f32 %v7161_v9, %v13921_v35  ;;  %v7596_v9 = vadd.f32 %v7557_v36, %v7329_v20  ;;  %v8258_v11 = vpop.f32.mrf.mxu0  ;;  %v7331_v36 = vadd.f32 %v13892_v43, %v13972_v30  ;;  %v7831_v10 = vpop.f32.mrf.mxu2 }
 0x577   : > { %v7598_v45 = vadd.f32 %v7562_v48, %v7331_v36 }
 0x57c   : > { %v7163_v24 = vpop.f32.mrf.mxu3 }
 0x57d   : > { %v14045_v41 = vadd.f32 %v7163_v24, %v13933_v21  ;;  %v7860_v21 = vadd.f32 %v7821_v56, %v7596_v9  ;;  %v8260_v25 = vpop.f32.mrf.mxu0 }
 0x584   : > { %v7981_v46 = vpop.f32.mrf.mxu3 }
 0x585   : > { %v8021_v35 = vadd.f32 %v7981_v46, %v7859_v15  ;;  %v7597_v46 = vadd.f32 %v7560_v4, %v7330_v27  ;;  %v7332_v4 = vadd.f32 %v13913_v54, %v13978_v5 }
 0x587   : > { %v8288_v47 = vadd.f32 %v8248_v33, %v8021_v35  ;;  %v7567_v33 = vpop.f32.mrf.mxu1  ;;  %v7861_v9 = vadd.f32 %v7824_v18, %v7597_v46  ;;  %v7599_v18 = vadd.f32 %v7565_v49, %v7332_v4  ;;  %v7334_v49 = vadd.f32 %v13937_v22, %v13990_v16 }
 0x589   : > { %v8308_v61 = vadd.f32 %v14052_v40, %v8288_v47 }
 0x58b   : > { %v8324_v60 = vmax.f32 %v8308_v61, 0.0 }
 0x58c   : > { %v7983_v24 = vpop.f32.mrf.mxu3 }
 0x58d   : > { %v8022_v19 = vadd.f32 %v7983_v24, %v7860_v21 }
 0x58f   : > { %v8289_v2 = vadd.f32 %v8250_v32, %v8022_v19  ;;  %v7862_v32 = vadd.f32 %v7826_v34, %v7598_v45  ;;  %v7570_v21 = vpop.f32.mrf.mxu1  ;;  %v7834_v19 = vpop.f32.mrf.mxu2 }
 0x591   : > { %v8309_v15 = vadd.f32 %v14052_v40, %v8289_v2  ;;  %v7333_v2 = vadd.f32 %v13924_v39, %v13986_v23 }
 0x593   : > { %v8325_v20 = vmax.f32 %v8309_v15, 0.0  ;;  %v7600_v54 = vadd.f32 %v7567_v33, %v7333_v2 }
 0x594   : > { %v7986_v56 = vpop.f32.mrf.mxu3 }
 0x595   : > { %v8340_v35 = vpack.c.bf16 %v8325_v20, %v8324_v60  ;;  %v8023_v63 = vadd.f32 %v7986_v56, %v7861_v9 }
 0x597   : > { %8424 = vmatmul.bf16.vlgmr.msrb.gmra.mxu1 %v8340_v35  ;;  %v8290_v47 = vadd.f32 %v8253_v52, %v8023_v63  ;;  %v8263_v63 = vpop.f32.mrf.mxu0  ;;  %v7863_v52 = vadd.f32 %v7829_v17, %v7599_v18  ;;  %v7572_v36 = vpop.f32.mrf.mxu1 }
 0x598   : > { %v7836_v5 = vpop.f32.mrf.mxu2 }
 0x599   : > { %v8310_v43 = vadd.f32 %v14052_v40, %v8290_v47  ;;  %v7601_v47 = vadd.f32 %v7570_v21, %v7334_v49  ;;  %v7336_v21 = vadd.f32 %v13969_v14, %v14004_v37 }
 0x59b   : > { %v8326_v48 = vmax.f32 %v8310_v43, 0.0  ;;  %v7865_v4 = vadd.f32 %v7834_v19, %v7601_v47 }
 0x59c   : > { %v7988_v24 = vpop.f32.mrf.mxu3 }
 0x59d   : > { %v8024_v27 = vadd.f32 %v7988_v24, %v7862_v32  ;;  %v7335_v32 = vadd.f32 %v13947_v6, %v13998_v51 }
 0x59f   : > { %v8291_v30 = vadd.f32 %v8255_v0, %v8024_v27  ;;  %v7864_v0 = vadd.f32 %v7831_v10, %v7600_v54  ;;  %v8265_v9 = vpop.f32.mrf.mxu0  ;;  %v7575_v45 = vpop.f32.mrf.mxu1  ;;  %v7602_v22 = vadd.f32 %v7572_v36, %v7335_v32  ;;  %v7339_v32 = vadd.f32 %v13992_v42, %v14024_v44 }
 0x5a0   : > { %v7603_v19 = vadd.f32 %v7575_v45, %v7336_v21 }
 0x5a1   : > { %v8311_v61 = vadd.f32 %v14052_v40, %v8291_v30 }
 0x5a3   : > { %v8327_v15 = vmax.f32 %v8311_v61, 0.0 }
 0x5a4   : > { %v7991_v34 = vpop.f32.mrf.mxu3 }
 0x5a5   : > { %v8341_v46 = vpack.c.bf16 %v8327_v15, %v8326_v48  ;;  %v8025_v60 = vadd.f32 %v7991_v34, %v7863_v52  ;;  %v7337_v52 = vadd.f32 %v13975_v1, %v14012_v53 }
 0x5a7   : > { %8429 = vmatmul.bf16.gmra.mxu1 %v8341_v46  ;;  %v8292_v20 = vadd.f32 %v8258_v11, %v8025_v60  ;;  %v7839_v11 = vpop.f32.mrf.mxu2  ;;  %v8268_v16 = vpop.f32.mrf.mxu0 }
 0x5a8   : > { %v7577_v30 = vpop.f32.mrf.mxu1  ;;  %v7867_v54 = vadd.f32 %v7839_v11, %v7603_v19 }
 0x5a9   : > { %v8312_v39 = vadd.f32 %v14052_v40, %v8292_v20  ;;  %v7604_v14 = vadd.f32 %v7577_v30, %v7337_v52 }
 0x5ab   : > { %v8328_v33 = vmax.f32 %v8312_v39, 0.0 }
 0x5ac   : > { %v7993_v56 = vpop.f32.mrf.mxu3 }
 0x5ad   : > { %v8026_v35 = vadd.f32 %v7993_v56, %v7864_v0 }
 0x5af   : > { %v8293_v23 = vadd.f32 %v8260_v25, %v8026_v35  ;;  %v7866_v25 = vadd.f32 %v7836_v5, %v7602_v22  ;;  %v7841_v48 = vpop.f32.mrf.mxu2  ;;  %v8270_v34 = vpop.f32.mrf.mxu0 }
 0x5b0   : > { %v7868_v56 = vadd.f32 %v7841_v48, %v7604_v14  ;;  %v7342_v14 = vadd.f32 %v14015_v38, %v14040_v55 }
 0x5b1   : > { %v8313_v17 = vadd.f32 %v14052_v40, %v8293_v23 }
 0x5b3   : > { %v8329_v24 = vmax.f32 %v8313_v17, 0.0 }
 0x5b4   : > { %v7996_v10 = vpop.f32.mrf.mxu3 }
 0x5b5   : > { %v8342_v27 = vpack.c.bf16 %v8329_v24, %v8328_v33  ;;  %v8027_v43 = vadd.f32 %v7996_v10, %v7865_v4 }
 0x5b7   : > { %8434 = vmatmul.bf16.gmra.mxu1 %v8342_v27  ;;  %v8294_v61 = vadd.f32 %v8263_v63, %v8027_v43  ;;  %v7580_v63 = vpop.f32.mrf.mxu1  ;;  %v7844_v37 = vpop.f32.mrf.mxu2 }
 0x5b8   : > { %v8273_v49 = vpop.f32.mrf.mxu0 }
 0x5b9   : > { %v8314_v6 = vadd.f32 %v14052_v40, %v8294_v61 }
 0x5bb   : > { %v8330_v46 = vmax.f32 %v8314_v6, 0.0 }
 0x5bc   : > { %v7998_v18 = vpop.f32.mrf.mxu3 }
 0x5bd   : > { %v8028_v2 = vadd.f32 %v7998_v18, %v7866_v25  ;;  %v7340_v25 = vadd.f32 %v14000_v3, %v14030_v26 }
 0x5bf   : > { %v8295_v51 = vadd.f32 %v8265_v9, %v8028_v2  ;;  %v7338_v9 = vadd.f32 %v13983_v8, %v14018_v29  ;;  %v7582_v23 = vpop.f32.mrf.mxu1  ;;  %v7846_v47 = vpop.f32.mrf.mxu2 }
 0x5c0   : > { %v8275_v27 = vpop.f32.mrf.mxu0  ;;  %v7606_v8 = vadd.f32 %v7582_v23, %v7339_v32 }
 0x5c1   : > { %v8315_v15 = vadd.f32 %v14052_v40, %v8295_v51  ;;  %v7605_v17 = vadd.f32 %v7580_v63, %v7338_v9  ;;  %v7341_v51 = vadd.f32 %v14009_v50, %v14036_v13 }
 0x5c3   : > { %v8331_v36 = vmax.f32 %v8315_v15, 0.0  ;;  %v7869_v10 = vadd.f32 %v7844_v37, %v7605_v17 }
 0x5c4   : > { %v8001_v60 = vpop.f32.mrf.mxu3 }
 0x5c5   : > { %v8343_v5 = vpack.c.bf16 %v8331_v36, %v8330_v46  ;;  %v8029_v20 = vadd.f32 %v8001_v60, %v7867_v54 }
 0x5c7   : > { %8439 = vmatmul.bf16.gmra.mxu1 %v8343_v5  ;;  %v8296_v0 = vadd.f32 %v8268_v16, %v8029_v20  ;;  %v7585_v29 = vpop.f32.mrf.mxu1  ;;  %v7870_v16 = vadd.f32 %v7846_v47, %v7606_v8  ;;  %v7849_v30 = vpop.f32.mrf.mxu2 }
 0x5c8   : > { %v8278_v21 = vpop.f32.mrf.mxu0  ;;  %v7607_v48 = vadd.f32 %v7585_v29, %v7340_v25  ;;  %v14101_v29 = vld [vmem:[%s14223_s9] ss:$0 sm:$0xff] }
 0x5c9   : > { %v8316_v1 = vadd.f32 %v14052_v40, %v8296_v0 }
 0x5ca   : > { %v7871_v52 = vadd.f32 %v7849_v30, %v7607_v48 }
 0x5cb   : > { %v8332_v33 = vmax.f32 %v8316_v1, 0.0 }
 0x5cc   : > { %v8003_v35 = vpop.f32.mrf.mxu3 }
 0x5cd   : > { %v8030_v39 = vadd.f32 %v8003_v35, %v7868_v56  ;;  %v7343_v35 = vadd.f32 %v14026_v59, %v14045_v41 }
 0x5cf   : > { %v8297_v53 = vadd.f32 %v8270_v34, %v8030_v39  ;;  %v7587_v6 = vpop.f32.mrf.mxu1  ;;  %v7851_v36 = vpop.f32.mrf.mxu2 }
 0x5d0   : > { %v7608_v3 = vadd.f32 %v7587_v6, %v7341_v51  ;;  %v8280_v26 = vpop.f32.mrf.mxu0 }
 0x5d1   : > { %v8317_v45 = vadd.f32 %v14052_v40, %v8297_v53 }
 0x5d2   : > { %v7872_v54 = vadd.f32 %v7851_v36, %v7608_v3 }
 0x5d3   : > { %v8333_v24 = vmax.f32 %v8317_v45, 0.0 }
 0x5d4   : > { %v8006_v11 = vpop.f32.mrf.mxu3 }
 0x5d5   : > { %v8344_v4 = vpack.c.bf16 %v8333_v24, %v8332_v33  ;;  %v8031_v43 = vadd.f32 %v8006_v11, %v7869_v10 }
 0x5d7   : > { %8444 = vmatmul.bf16.gmra.mxu1 %v8344_v4  ;;  %v8298_v22 = vadd.f32 %v8273_v49, %v8031_v43  ;;  %v7590_v5 = vpop.f32.mrf.mxu1  ;;  %v7854_v0 = vpop.f32.mrf.mxu2 }
 0x5d8   : > { %v7609_v49 = vadd.f32 %v7590_v5, %v7342_v14  ;;  %v8283_v23 = vpop.f32.mrf.mxu0  ;;  %v5624_v14 = vadd.f32 %v14101_v29, %v13789_v28 }
 0x5d9   : > { %v8318_v42 = vadd.f32 %v14052_v40, %v8298_v22  ;;  %v5614_v22 = vadd.f32 %v14101_v29, %v13717_v58  ;;  %v9878_v58 = vld [vmem:[%s10048_s25 + $0x8] sm:$0xff] }
 0x5da   : > { %v7873_v53 = vadd.f32 %v7854_v0, %v7609_v49 }
 0x5db   : > { %v8334_v15 = vmax.f32 %v8318_v42, 0.0 }
 0x5dc   : > { %v8008_v61 = vpop.f32.mrf.mxu3 }
 0x5dd   : > { %v8032_v18 = vadd.f32 %v8008_v61, %v7870_v16  ;;  %v9877_v16 = vld [vmem:[%s10048_s25] sm:$0xff] }
 0x5de   : > { %v5653_v30 = vadd.f32 %v9877_v16, %v5614_v22  ;;  %v14109_v61 = vld [vmem:[%s14227_s13] ss:$0 sm:$0xff] }
 0x5df   : > { %v8299_v44 = vadd.f32 %v8275_v27, %v8032_v18  ;;  %v7592_v17 = vpop.f32.mrf.mxu1  ;;  %v7856_v55 = vpop.f32.mrf.mxu2  ;;  %v5616_v18 = vadd.f32 %v14101_v29, %v13736_v12  ;;  %v5619_v12 = vadd.f32 %v14101_v29, %v13752_v7  ;;  %v15706_v22 = vld [vmem:[#allocation82_spill] sm:$0xff] }
 0x5e0   : > { %v7610_v38 = vadd.f32 %v7592_v17, %v7343_v35  ;;  %v8285_v10 = vpop.f32.mrf.mxu0  ;;  %v5669_v25 = vmax.f32 %v5653_v30, 0.0  ;;  %v5626_v35 = vadd.f32 %v14101_v29, %v13810_v31  ;;  %v5629_v17 = vadd.f32 %v14101_v29, %v13827_v62 }
 0x5e1   : > { %v8319_v2 = vadd.f32 %v14052_v40, %v8299_v44  ;;  %v5634_v16 = vadd.f32 %v14101_v29, %v15706_v22 }
 0x5e2   : > { %v7874_v33 = vadd.f32 %v7856_v55, %v7610_v38  ;;  %v9883_v55 = vld [vmem:[%s10048_s25 + $0x30] sm:$0xff] }
 0x5e3   : > { %v8335_v19 = vmax.f32 %v8319_v2, 0.0  ;;  %v5659_v31 = vadd.f32 %v9883_v55, %v5629_v17  ;;  %v15716_v17 = vld [vmem:[#allocation78_spill] sm:$0xff] }
 0x5e4   : > { %v8011_v34 = vpop.f32.mrf.mxu3 }
 0x5e5   : > { %v8345_v46 = vpack.c.bf16 %v8335_v19, %v8334_v15  ;;  %v8033_v63 = vadd.f32 %v8011_v34, %v7871_v52  ;;  %v9879_v19 = vld [vmem:[%s10048_s25 + $0x10] sm:$0xff] }
 0x5e6   : > { %v5655_v34 = vadd.f32 %v9879_v19, %v5619_v12  ;;  %v9886_v12 = vld [vmem:[%s10048_s25 + $0x48] sm:$0xff] }
 0x5e7   : > { %8449 = vmatmul.bf16.gmra.mxu1 %v8345_v46  ;;  %v8300_v60 = vadd.f32 %v8278_v21, %v8033_v63  ;;  %v5654_v21 = vadd.f32 %v9878_v58, %v5616_v18  ;;  %v5621_v63 = vadd.f32 %v14101_v29, %v13771_v57 }
 0x5e8   : > { %v5671_v36 = vmax.f32 %v5655_v34, 0.0 }
 0x5e9   : > { %v8320_v50 = vadd.f32 %v14052_v40, %v8300_v60  ;;  %v5670_v6 = vmax.f32 %v5654_v21, 0.0  ;;  %v9880_v60 = vld [vmem:[%s10048_s25 + $0x18] sm:$0xff] }
 0x5ea   : > { %v5656_v7 = vadd.f32 %v9880_v60, %v5621_v63  ;;  %v15708_v21 = vld [vmem:[#allocation81_spill] sm:$0xff] }
 0x5eb   : > { %v8336_v9 = vmax.f32 %v8320_v50, 0.0 }
 0x5ec   : > { %v8013_v20 = vpop.f32.mrf.mxu3 }
 0x5ed   : > { %v8034_v37 = vadd.f32 %v8013_v20, %v7872_v54  ;;  %v5672_v20 = vmax.f32 %v5656_v7, 0.0 }
 0x5ef   : > { %v8301_v13 = vadd.f32 %v8280_v26, %v8034_v37 }
 0x5f1   : > { %v8321_v56 = vadd.f32 %v14052_v40, %v8301_v13  ;;  %v9881_v13 = vld [vmem:[%s10048_s25 + $0x20] sm:$0xff] }
 0x5f2   : > { %v5657_v57 = vadd.f32 %v9881_v13, %v5624_v14 }
 0x5f3   : > { %v8337_v39 = vmax.f32 %v8321_v56, 0.0 }
 0x5f4   : > { %v8016_v1 = vpop.f32.mrf.mxu3  ;;  %v5673_v49 = vmax.f32 %v5657_v57, 0.0 }
 0x5f5   : > { %v8346_v45 = vpack.c.bf16 %v8337_v39, %v8336_v9  ;;  %v8035_v47 = vadd.f32 %v8016_v1, %v7873_v53 }
 0x5f7   : > { %8454 = vmatmul.bf16.gmra.mxu1 %v8346_v45  ;;  %v8302_v32 = vadd.f32 %v8283_v23, %v8035_v47  ;;  %v9882_v23 = vld [vmem:[%s10048_s25 + $0x28] sm:$0xff] }
 0x5f8   : > { %v5658_v28 = vadd.f32 %v9882_v23, %v5626_v35  ;;  %v9889_v23 = vld [vmem:[%s10048_s25 + $0x60] sm:$0xff] }
 0x5f9   : > { %v8322_v4 = vadd.f32 %v14052_v40, %v8302_v32 }
 0x5fa   : > { %v5674_v45 = vmax.f32 %v5658_v28, 0.0 }
 0x5fb   : > { %v8338_v27 = vmax.f32 %v8322_v4, 0.0 }
 0x5fc   : > { %v8018_v24 = vpop.f32.mrf.mxu3 }
 0x5fd   : > { %v8036_v11 = vadd.f32 %v8018_v24, %v7874_v33  ;;  %v5675_v24 = vmax.f32 %v5659_v31, 0.0  ;;  %v9890_v31 = vld [vmem:[%s10048_s25 + $0x68] sm:$0xff] }
 0x5ff   : > { %v8303_v59 = vadd.f32 %v8285_v10, %v8036_v11  ;;  %v15704_v11 = vld [vmem:[#allocation52_spill] sm:$0xff] }
 0x600   : > { %v5631_v10 = vadd.f32 %v14101_v29, %v15704_v11 }
 0x601   : > { %v8323_v41 = vadd.f32 %v14052_v40, %v8303_v59 }
 0x603   : > { %v8339_v43 = vmax.f32 %v8323_v41, 0.0  ;;  %v9884_v41 = vld [vmem:[%s10048_s25 + $0x38] sm:$0xff] }
 0x604   : > { %v5660_v62 = vadd.f32 %v9884_v41, %v5631_v10  ;;  %v15718_v10 = vld [vmem:[#allocation48_spill] sm:$0xff] }
 0x605   : > { %v8347_v8 = vpack.c.bf16 %v8339_v43, %v8338_v27 }
 0x607   : > { %8459 = vmatmul.bf16.gmra.mxu1 %v8347_v8  ;;  %v5676_v8 = vmax.f32 %v5660_v62, 0.0  ;;  %v9891_v62 = vld [vmem:[%s10048_s25 + $0x70] sm:$0xff] }
 0x614   : > { %v8425_v40 = vpop.f32.mrf.mxu1 }
 0x615   : > { %v8426_v42 = vadd.f32 %v14109_v61, %v8425_v40 }
 0x617   : > { %v8465_v44 = vadd.f32 %v8426_v42, %v5669_v25  ;;  %v9885_v25 = vld [vmem:[%s10048_s25 + $0x40] sm:$0xff] }
 0x618   : > { %v5661_v18 = vadd.f32 %v9885_v25, %v5634_v16  ;;  %v15720_v16 = vld [vmem:[#allocation26_spill] sm:$0xff] }
 0x619   : > { %v8481_v2 = vmax.f32 %v8465_v44, 0.0 }
 0x61a   : > { %v5677_v58 = vmax.f32 %v5661_v18, 0.0  ;;  %v9892_v18 = vld [vmem:[%s10048_s25 + $0x78] sm:$0xff] }
 0x61b   : > { %8497 = vst.msk [vmem:[%s14119_s18] sm:$0xff] %vm15698_vm5, %v8481_v2  ;;  %v5636_v2 = vadd.f32 %v14101_v29, %v15708_v21 }
 0x61c   : > { %v8427_v48 = vpop.f32.mrf.mxu1 }
 0x61d   : > { %v8428_v51 = vadd.f32 %v14109_v61, %v8427_v48 }
 0x61f   : > { %v8466_v15 = vadd.f32 %v8428_v51, %v5670_v6  ;;  %v5662_v51 = vadd.f32 %v9886_v12, %v5636_v2 }
 0x621   : > { %v8482_v52 = vmax.f32 %v8466_v15, 0.0  ;;  %v5678_v34 = vmax.f32 %v5662_v51, 0.0 }
 0x623   : > { %8498 = vst.msk [vmem:[%s14119_s18 + $0x8] sm:$0xff] %vm15699_vm15, %v8482_v52  ;;  %v15710_v52 = vld [vmem:[#allocation14_spill] sm:$0xff] }
 0x624   : > { %v8430_v46 = vpop.f32.mrf.mxu1 }
 0x625   : > { %v8431_v3 = vadd.f32 %v14109_v61, %v8430_v46  ;;  %v5639_v46 = vadd.f32 %v14101_v29, %v15710_v52 }
 0x627   : > { %v8467_v26 = vadd.f32 %v8431_v3, %v5671_v36  ;;  %v9887_v3 = vld [vmem:[%s10048_s25 + $0x50] sm:$0xff] }
 0x629   : > { %v8483_v54 = vmax.f32 %v8467_v26, 0.0  ;;  %v5663_v26 = vadd.f32 %v9887_v3, %v5639_v46 }
 0x62b   : > { %8499 = vst.msk [vmem:[%s14119_s18 + $0x10] sm:$0xff] %vm15700_vm11, %v8483_v54  ;;  %v5679_v54 = vmax.f32 %v5663_v26, 0.0 }
 0x62c   : > { %v8432_v5 = vpop.f32.mrf.mxu1 }
 0x62d   : > { %v8433_v37 = vadd.f32 %v14109_v61, %v8432_v5  ;;  %v15712_v5 = vld [vmem:[#allocation25_spill] sm:$0xff] }
 0x62f   : > { %v8468_v50 = vadd.f32 %v8433_v37, %v5672_v20  ;;  %v5641_v20 = vadd.f32 %v14101_v29, %v15712_v5 }
 0x631   : > { %v8484_v0 = vmax.f32 %v8468_v50, 0.0  ;;  %v9888_v50 = vld [vmem:[%s10048_s25 + $0x58] sm:$0xff] }
 0x632   : > { %v5664_v13 = vadd.f32 %v9888_v50, %v5641_v20 }
 0x633   : > { %8500 = vst.msk [vmem:[%s14119_s18 + $0x18] sm:$0xff] %vm15701_vm4, %v8484_v0 }
 0x634   : > { %v8435_v56 = vpop.f32.mrf.mxu1 }
 0x635   : > { %v8436_v9 = vadd.f32 %v14109_v61, %v8435_v56  ;;  %v5680_v56 = vmax.f32 %v5664_v13, 0.0 }
 0x637   : > { %v8469_v39 = vadd.f32 %v8436_v9, %v5673_v49  ;;  %v15714_v49 = vld [vmem:[#allocation71_spill] sm:$0xff] }
 0x638   : > { %v5644_v35 = vadd.f32 %v14101_v29, %v15714_v49 }
 0x639   : > { %v8485_v1 = vmax.f32 %v8469_v39, 0.0 }
 0x63a   : > { %v5665_v28 = vadd.f32 %v9889_v23, %v5644_v35 }
 0x63b   : > { %8501 = vst.msk [vmem:[%s14119_s18 + $0x20] sm:$0xff] %vm15702_vm3, %v8485_v1 }
 0x63c   : > { %v8437_v53 = vpop.f32.mrf.mxu1 }
 0x63d   : > { %v8438_v47 = vadd.f32 %v14109_v61, %v8437_v53 }
 0x63f   : > { %v8470_v38 = vadd.f32 %v8438_v47, %v5674_v45  ;;  %v5681_v45 = vmax.f32 %v5665_v28, 0.0  ;;  %v5646_v47 = vadd.f32 %v14101_v29, %v15716_v17 }
 0x641   : > { %v8486_v32 = vmax.f32 %v8470_v38, 0.0 }
 0x643   : > { %8502 = vst.msk [vmem:[%s14119_s18 + $0x28] sm:$0xff] %vm15703_vm13, %v8486_v32  ;;  %v5666_v32 = vadd.f32 %v9890_v31, %v5646_v47 }
 0x644   : > { %v8440_v33 = vpop.f32.mrf.mxu1 }
 0x645   : > { %v8441_v4 = vadd.f32 %v14109_v61, %v8440_v33  ;;  %v5682_v11 = vmax.f32 %v5666_v32, 0.0 }
 0x647   : > { %v8471_v59 = vadd.f32 %v8441_v4, %v5675_v24  ;;  %v5649_v4 = vadd.f32 %v14101_v29, %v15718_v10 }
 0x649   : > { %v8487_v27 = vmax.f32 %v8471_v59, 0.0 }
 0x64b   : > { %8503 = vst.msk [vmem:[%s14119_s18 + $0x30] sm:$0xff] %vm15705_vm14, %v8487_v27  ;;  %v5667_v27 = vadd.f32 %v9891_v62, %v5649_v4 }
 0x64c   : > { %v8442_v43 = vpop.f32.mrf.mxu1 }
 0x64d   : > { %v8443_v30 = vadd.f32 %v14109_v61, %v8442_v43  ;;  %v5683_v22 = vmax.f32 %v5667_v27, 0.0 }
 0x64f   : > { %v8472_v40 = vadd.f32 %v8443_v30, %v5676_v8  ;;  %v5651_v30 = vadd.f32 %v14101_v29, %v15720_v16 }
 0x651   : > { %v8488_v42 = vmax.f32 %v8472_v40, 0.0 }
 0x653   : > { %8504 = vst.msk [vmem:[%s14119_s18 + $0x38] sm:$0xff] %vm15707_vm6, %v8488_v42  ;;  %v5668_v42 = vadd.f32 %v9892_v18, %v5651_v30 }
 0x654   : > { %v8445_v44 = vpop.f32.mrf.mxu1 }
 0x655   : > { %v8446_v48 = vadd.f32 %v14109_v61, %v8445_v44  ;;  %v5684_v21 = vmax.f32 %v5668_v42, 0.0 }
 0x657   : > { %v8473_v6 = vadd.f32 %v8446_v48, %v5677_v58 }
 0x659   : > { %v8489_v15 = vmax.f32 %v8473_v6, 0.0 }
 0x65b   : > { %8505 = vst.msk [vmem:[%s14119_s18 + $0x40] sm:$0xff] %vm15709_vm10, %v8489_v15 }
 0x65c   : > { %v8447_v19 = vpop.f32.mrf.mxu1 }
 0x65d   : > { %v8448_v36 = vadd.f32 %v14109_v61, %v8447_v19 }
 0x65f   : > { %v8474_v63 = vadd.f32 %v8448_v36, %v5678_v34 }
 0x661   : > { %v8490_v60 = vmax.f32 %v8474_v63, 0.0 }
 0x663   : > { %8506 = vst.msk [vmem:[%s14119_s18 + $0x48] sm:$0xff] %vm15711_vm2, %v8490_v60 }
 0x664   : > { %v8450_v7 = vpop.f32.mrf.mxu1 }
 0x665   : > { %v8451_v14 = vadd.f32 %v14109_v61, %v8450_v7 }
 0x667   : > { %v8475_v37 = vadd.f32 %v8451_v14, %v5679_v54 }
 0x669   : > { %v8491_v57 = vmax.f32 %v8475_v37, 0.0 }
 0x66b   : > { %8507 = vst.msk [vmem:[%s14119_s18 + $0x50] sm:$0xff] %vm15713_vm1, %v8491_v57 }
 0x66c   : > { %v8452_v0 = vpop.f32.mrf.mxu1 }
 0x66d   : > { %v8453_v9 = vadd.f32 %v14109_v61, %v8452_v0 }
 0x66f   : > { %v8476_v39 = vadd.f32 %v8453_v9, %v5680_v56 }
 0x671   : > { %v8492_v1 = vmax.f32 %v8476_v39, 0.0 }
 0x673   : > { %8508 = vst.msk [vmem:[%s14119_s18 + $0x58] sm:$0xff] %vm15715_vm8, %v8492_v1 }
 0x674   : > { %v8455_v53 = vpop.f32.mrf.mxu1 }
 0x675   : > { %v8456_v38 = vadd.f32 %v14109_v61, %v8455_v53 }
 0x677   : > { %v8477_v55 = vadd.f32 %v8456_v38, %v5681_v45 }
 0x679   : > { %v8493_v33 = vmax.f32 %v8477_v55, 0.0 }
 0x67b   : > { %8509 = vst.msk [vmem:[%s14119_s18 + $0x60] sm:$0xff] %vm15717_vm9, %v8493_v33 }
 0x67c   : > { %v8457_v24 = vpop.f32.mrf.mxu1 }
 0x67d   : > { %v8458_v59 = vadd.f32 %v14109_v61, %v8457_v24 }
 0x67f   : > { %v8478_v41 = vadd.f32 %v8458_v59, %v5682_v11 }
 0x681   : > { %v8494_v43 = vmax.f32 %v8478_v41, 0.0 }
 0x683   : > { %8510 = vst.msk [vmem:[%s14119_s18 + $0x68] sm:$0xff] %vm15719_vm0, %v8494_v43 }
 0x684   : > { %v8460_v8 = vpop.f32.mrf.mxu1 }
 0x685   : > { %v8461_v40 = vadd.f32 %v14109_v61, %v8460_v8 }
 0x687   : > { %v8479_v25 = vadd.f32 %v8461_v40, %v5683_v22 }
 0x689   : > { %v8495_v44 = vmax.f32 %v8479_v25, 0.0 }
 0x68b   : > { %8511 = vst.msk [vmem:[%s14119_s18 + $0x70] sm:$0xff] %vm15721_vm7, %v8495_v44 }
 0x68c   : > { %v8462_v58 = vpop.f32.mrf.mxu1 }
 0x68d   : > { %v8463_v2 = vadd.f32 %v14109_v61, %v8462_v58 }
 0x68f   : > { %v8480_v48 = vadd.f32 %v8463_v2, %v5684_v21 }
 0x691   : > { %v8496_v6 = vmax.f32 %v8480_v48, 0.0 }
 0x693   : > { %8512 = vst.msk [vmem:[%s14119_s18 + $0x78] sm:$0xff] %vm15722_vm12, %v8496_v6 }
 0x694 PF: > { %s25_s29 = sadd.s32 1, %s9933_s29  }
 0x695   : > { %p22_p7 = scmp.ge.s32.totalorder %s25_s29, 4  }
 0x697   :  { %24 = sbr.rel (!%p22_p7) target bundleno = 1 (0x1), region = 138 }
 0x69c   :  { %8534 = vsyncpa [#allocation4], 1 }
 0x69d   :  { %8536 = vsyncpa [#allocation4 + $0x1], 1 }

</bundles_post_ra>
